<compile_context>
chip_gen: v5e
topology: v5e:2x2
jax: 0.10.0
libtpu: 0.0.40
codegen_flags: <defaults>
</compile_context>

<pallas_src>
import functools

import jax
import jax.numpy as jnp
from jax.experimental import pallas as pl
from jax.experimental.pallas import tpu as pltpu

LN_EPS = 1e-5                  # nn.LayerNorm default
MATMUL_DTYPE = jnp.float32     # flip to jnp.bfloat16 at production sizes


# --------------------------------------------------------------------------
# in-kernel math helpers (2-D activations (S, D), host-prepared weights)
# --------------------------------------------------------------------------
def _dot(a, b):
    # 2-D matmul, f32 accumulation on the MXU.
    return jnp.dot(a.astype(MATMUL_DTYPE), b.astype(MATMUL_DTYPE),
                   preferred_element_type=jnp.float32)


def _bdot(a, b):
    # head-batched matmul: (H, M, K) @ (H, K, N) -> (H, M, N).
    return jnp.einsum("hmk,hkn->hmn", a.astype(MATMUL_DTYPE),
                      b.astype(MATMUL_DTYPE),
                      preferred_element_type=jnp.float32)


def _layernorm(x, g, b):
    mu = jnp.mean(x, axis=-1, keepdims=True)
    xc = x - mu
    var = jnp.mean(xc * xc, axis=-1, keepdims=True)
    return xc * jax.lax.rsqrt(var + LN_EPS) * g + b


def _ffn(x, w1, b1, w2, b2):
    # w1: (D, d_ff) pre-transposed; w2: (D, d_ff) torch layout (lane-dense).
    # Second matmul contracts the minor dim of both operands (A @ B^T on MXU),
    # so no in-kernel transpose is needed.  Dropout is identity (eval).
    h = jnp.maximum(_dot(x, w1) + b1, 0.0)
    out = jnp.einsum("sf,of->so", h.astype(MATMUL_DTYPE),
                     w2.astype(MATMUL_DTYPE),
                     preferred_element_type=jnp.float32)
    return out + b2


def _attention(xq, xkv, w_qkv, b_qkv, w_out, b_out):
    # xq: (S, D) queries; xkv: (T, D) keys/values (same object for self-attn).
    # w_qkv: (3, H, D, Dh) head-batched q/k/v projections (pre-transposed),
    # b_qkv: (3, H, 1, Dh), w_out: (H, Dh, D), b_out: (1, D).
    _, H, _, Dh = w_qkv.shape
    S, D = xq.shape
    T = xkv.shape[0]
    scale = 1.0 / float(Dh) ** 0.5

    # heads on a leading batch axis (no lane-splitting reshapes, no lane slices)
    xq_h = jnp.broadcast_to(xq[None], (H, S, D))
    xkv_h = xq_h if xkv is xq else jnp.broadcast_to(xkv[None], (H, T, D))

    q = _bdot(xq_h, w_qkv[0]) + b_qkv[0]      # (H, S, Dh)
    k = _bdot(xkv_h, w_qkv[1]) + b_qkv[1]     # (H, T, Dh)
    v = _bdot(xkv_h, w_qkv[2]) + b_qkv[2]     # (H, T, Dh)

    s = jnp.einsum("hqd,hkd->hqk", (q * scale).astype(MATMUL_DTYPE),
                   k.astype(MATMUL_DTYPE),
                   preferred_element_type=jnp.float32)           # (H, S, T)
    s = s - jnp.max(s, axis=-1, keepdims=True)                   # f32 softmax
    p = jnp.exp(s)
    p = p * pl.reciprocal(jnp.sum(p, axis=-1, keepdims=True), approx=True)

    o = jnp.einsum("hqk,hkd->hqd", p.astype(MATMUL_DTYPE),
                   v.astype(MATMUL_DTYPE),
                   preferred_element_type=jnp.float32)           # (H, S, Dh)
    ctx = jnp.einsum("hsd,hdo->hso", o.astype(MATMUL_DTYPE),
                     w_out.astype(MATMUL_DTYPE),
                     preferred_element_type=jnp.float32)         # (H, S, D)
    return jnp.sum(ctx, axis=0) + b_out                          # (S, D)


# --------------------------------------------------------------------------
# the fused whole-model kernel (encoder stack + decoder stack + seq mean)
# --------------------------------------------------------------------------
def _informer_kernel(x_ref,
                     # encoder weights, stacked over layers on axis 0
                     e_wqkv, e_bqkv, e_wo, e_bo,
                     e_w1, e_b1, e_w2, e_b2,
                     e_g1, e_be1, e_g2, e_be2,
                     # decoder weights, stacked over layers on axis 0
                     d_sa_wqkv, d_sa_bqkv, d_sa_wo, d_sa_bo,
                     d_ca_wqkv, d_ca_bqkv, d_ca_wo, d_ca_bo,
                     d_w1, d_b1, d_w2, d_b2,
                     d_g1, d_be1, d_g2, d_be2, d_g3, d_be3,
                     o_ref, *, n_enc, n_dec):
    x = x_ref[0]                                  # (S, D): this batch element

    # ---- encoder stack (post-norm nn.TransformerEncoderLayer) ----
    enc = x
    for l in range(n_enc):
        a = _attention(enc, enc, e_wqkv[l], e_bqkv[l], e_wo[l], e_bo[l])
        enc = _layernorm(enc + a, e_g1[l], e_be1[l])
        f = _ffn(enc, e_w1[l], e_b1[l], e_w2[l], e_b2[l])
        enc = _layernorm(enc + f, e_g2[l], e_be2[l])

    # ---- decoder stack (self-attn -> cross-attn -> FFN) ----
    dec = x
    for l in range(n_dec):
        sa = _attention(dec, dec, d_sa_wqkv[l], d_sa_bqkv[l],
                        d_sa_wo[l], d_sa_bo[l])
        dec = _layernorm(dec + sa, d_g1[l], d_be1[l])
        ca = _attention(dec, enc, d_ca_wqkv[l], d_ca_bqkv[l],
                        d_ca_wo[l], d_ca_bo[l])
        dec = _layernorm(dec + ca, d_g2[l], d_be2[l])
        f = _ffn(dec, d_w1[l], d_b1[l], d_w2[l], d_b2[l])
        dec = _layernorm(dec + f, d_g3[l], d_be3[l])

    # mean over the sequence axis == torch.mean(out.permute(1, 0, 2), dim=1)
    o_ref[...] = jnp.mean(dec, axis=0, keepdims=True)[None]      # (1, 1, D)


# --------------------------------------------------------------------------
# host-side, one-time weight preparation (transpose / head-split / stack)
# --------------------------------------------------------------------------
def _prep_attn(in_w, in_b, out_w, out_b, num_heads):
    """Torch-convention MHA weights -> head-batched, pre-transposed tensors."""
    D = in_w.shape[1]
    H = num_heads
    Dh = D // H

    def proj(w):      # (D_out, D_in) torch -> (H, D_in, Dh)
        return jnp.transpose(w.T.reshape(D, H, Dh), (1, 0, 2))

    def bias(b):      # (1, D) -> (H, 1, Dh)
        return b.reshape(H, Dh)[:, None, :]

    w_qkv = jnp.stack([proj(in_w[0:D]), proj(in_w[D:2 * D]),
                       proj(in_w[2 * D:3 * D])])                 # (3, H, D, Dh)
    b_qkv = jnp.stack([bias(in_b[:, 0:D]), bias(in_b[:, D:2 * D]),
                       bias(in_b[:, 2 * D:3 * D])])              # (3, H, 1, Dh)
    w_o = out_w.T.reshape(H, Dh, D)                              # (H, Dh, D)
    return w_qkv, b_qkv, w_o, out_b


def _prepare_weights(params, num_heads):
    def enc_arrays(p):
        return _prep_attn(p["sa_in_w"], p["sa_in_b"], p["sa_out_w"],
                          p["sa_out_b"], num_heads) + (
            p["w1"].T, p["b1"], p["w2"], p["b2"],        # w2 stays lane-dense
            p["ln1_g"], p["ln1_b"], p["ln2_g"], p["ln2_b"])

    def dec_arrays(p):
        return (_prep_attn(p["sa_in_w"], p["sa_in_b"], p["sa_out_w"],
                           p["sa_out_b"], num_heads)
                + _prep_attn(p["ca_in_w"], p["ca_in_b"], p["ca_out_w"],
                             p["ca_out_b"], num_heads)
                + (p["w1"].T, p["b1"], p["w2"], p["b2"],
                   p["ln1_g"], p["ln1_b"], p["ln2_g"], p["ln2_b"],
                   p["ln3_g"], p["ln3_b"]))

    def stack(layers, fn):
        per_layer = [fn(p) for p in layers]
        return tuple(jnp.stack(arrs, axis=0) for arrs in zip(*per_layer))

    return (stack(params["encoder_layers"], enc_arrays)
            + stack(params["decoder_layers"], dec_arrays))


def _const_spec(arr):
    nd = arr.ndim
    return pl.BlockSpec(arr.shape, lambda b, _nd=nd: (0,) * _nd)


# --------------------------------------------------------------------------
# full forward pass
# --------------------------------------------------------------------------
def informer_forward(text_raw_indices, params, num_heads):
    # TODO(synk): embedding row-gather stays in plain JAX glue (data-dependent
    # gather); the transformer hot path below is a single fused Pallas kernel.
    x = jnp.take(params["embedding"], text_raw_indices, axis=0)   # (B, S, D)
    B, S, D = x.shape
    n_enc = len(params["encoder_layers"])
    n_dec = len(params["decoder_layers"])

    weights = _prepare_weights(params, num_heads)

    out = pl.pallas_call(
        functools.partial(_informer_kernel, n_enc=n_enc, n_dec=n_dec),
        grid=(B,),
        out_shape=jax.ShapeDtypeStruct((B, 1, D), jnp.float32),
        in_specs=[pl.BlockSpec((1, S, D), lambda b: (b, 0, 0))]
                 + [_const_spec(w) for w in weights],
        out_specs=pl.BlockSpec((1, 1, D), lambda b: (b, 0, 0)),
        compiler_params=pltpu.CompilerParams(
            dimension_semantics=("parallel",)),
    )(x, *weights)
    return out.reshape(B, D)


# --------------------------------------------------------------------------
# plain-JAX reference (torch-convention weights, f32) for a sanity check
# --------------------------------------------------------------------------
def _ref_ffn(x, w1, b1, w2, b2):
    h = jnp.maximum(jnp.dot(x, w1.T) + b1, 0.0)
    return jnp.dot(h, w2.T) + b2


def _ref_mha(xq, xkv, in_w, in_b, out_w, out_b, num_heads):
    S, B, D = xq.shape
    T = xkv.shape[0]
    H, Dh = num_heads, D // num_heads
    q = jnp.dot(xq, in_w[0:D].T) + in_b[:, 0:D]
    k = jnp.dot(xkv, in_w[D:2 * D].T) + in_b[:, D:2 * D]
    v = jnp.dot(xkv, in_w[2 * D:].T) + in_b[:, 2 * D:]
    q = q.reshape(S, B, H, Dh)
    k = k.reshape(T, B, H, Dh)
    v = v.reshape(T, B, H, Dh)
    s = jnp.einsum("sbhd,tbhd->bhst", q, k) / float(Dh) ** 0.5
    p = jax.nn.softmax(s, axis=-1)
    o = jnp.einsum("bhst,tbhd->sbhd", p, v).reshape(S, B, D)
    return jnp.dot(o, out_w.T) + out_b


def ref_forward(text_raw_indices, params, num_heads):
    x = jnp.take(params["embedding"], text_raw_indices, axis=0)
    x = jnp.transpose(x, (1, 0, 2))                               # (S, B, D)
    enc = x
    for p in params["encoder_layers"]:
        a = _ref_mha(enc, enc, p["sa_in_w"], p["sa_in_b"],
                     p["sa_out_w"], p["sa_out_b"], num_heads)
        enc = _layernorm(enc + a, p["ln1_g"], p["ln1_b"])
        enc = _layernorm(enc + _ref_ffn(enc, p["w1"], p["b1"], p["w2"], p["b2"]),
                         p["ln2_g"], p["ln2_b"])
    dec = x
    for p in params["decoder_layers"]:
        sa = _ref_mha(dec, dec, p["sa_in_w"], p["sa_in_b"],
                      p["sa_out_w"], p["sa_out_b"], num_heads)
        dec = _layernorm(dec + sa, p["ln1_g"], p["ln1_b"])
        ca = _ref_mha(dec, enc, p["ca_in_w"], p["ca_in_b"],
                      p["ca_out_w"], p["ca_out_b"], num_heads)
        dec = _layernorm(dec + ca, p["ln2_g"], p["ln2_b"])
        dec = _layernorm(dec + _ref_ffn(dec, p["w1"], p["b1"], p["w2"], p["b2"]),
                         p["ln3_g"], p["ln3_b"])
    return jnp.mean(jnp.transpose(dec, (1, 0, 2)), axis=1)


# --------------------------------------------------------------------------
# deterministic parameter init (PyTorch weight conventions)
# --------------------------------------------------------------------------
def init_params(key, vocab, d_model, n_enc, n_dec, d_ff, polarities):
    keys = iter(jax.random.split(key, 128))

    def w(shape, scale=0.1):
        return scale * jax.random.normal(next(keys), shape, jnp.float32)

    def enc_layer():
        return dict(
            sa_in_w=w((3 * d_model, d_model)), sa_in_b=w((1, 3 * d_model), 0.02),
            sa_out_w=w((d_model, d_model)), sa_out_b=w((1, d_model), 0.02),
            w1=w((d_ff, d_model)), b1=w((1, d_ff), 0.02),
            w2=w((d_model, d_ff)), b2=w((1, d_model), 0.02),
            ln1_g=jnp.ones((1, d_model), jnp.float32),
            ln1_b=jnp.zeros((1, d_model), jnp.float32),
            ln2_g=jnp.ones((1, d_model), jnp.float32),
            ln2_b=jnp.zeros((1, d_model), jnp.float32),
        )

    def dec_layer():
        p = enc_layer()
        p.update(
            ca_in_w=w((3 * d_model, d_model)), ca_in_b=w((1, 3 * d_model), 0.02),
            ca_out_w=w((d_model, d_model)), ca_out_b=w((1, d_model), 0.02),
            ln3_g=jnp.ones((1, d_model), jnp.float32),
            ln3_b=jnp.zeros((1, d_model), jnp.float32),
        )
        return p

    return dict(
        embedding=w((vocab, d_model), 1.0),
        encoder_layers=[enc_layer() for _ in range(n_enc)],
        decoder_layers=[dec_layer() for _ in range(n_dec)],
        # fc exists in __init__ but is never used in forward (kept for parity):
        fc_w=w((polarities, d_model)), fc_b=w((1, polarities), 0.02),
    )


if __name__ == "__main__":
    B, S = 2, 8           # batch, sequence length
    VOCAB = 50
    D_MODEL = 32          # opt.hidden_dim (== embedding dim)
    N_HEADS = 4           # opt.num_heads
    N_ENC, N_DEC = 2, 2   # opt.num_encoder_layers / opt.num_decoder_layers
    D_FF = 2048           # nn.TransformerEncoderLayer default dim_feedforward
    POLARITIES = 3        # opt.polarities_dim (fc unused in forward)

    key = jax.random.PRNGKey(0)
    pkey, ikey = jax.random.split(key)
    params = init_params(pkey, VOCAB, D_MODEL, N_ENC, N_DEC, D_FF, POLARITIES)
    text_raw_indices = jax.random.randint(ikey, (B, S), 0, VOCAB, dtype=jnp.int32)

    out = jax.block_until_ready(informer_forward(text_raw_indices, params, N_HEADS))
    assert out.shape == (B, D_MODEL)

    ref = jax.block_until_ready(ref_forward(text_raw_indices, params, N_HEADS))
    if not jnp.allclose(out, ref, atol=3e-2, rtol=3e-2):
        raise SystemExit(
            "mismatch vs reference, max abs diff = %g"
            % float(jnp.max(jnp.abs(out - ref))))

    print("KERNEL_OK")
</pallas_src>

<mosaic_0001>
module attributes {stable_mosaic.version = 11 : i64} {
  func.func @_informer_kernel(%arg0: i32, %arg1: memref<1x8x32xf32, #tpu.memory_space<vmem>>, %arg2: memref<2x3x4x32x8xf32, #tpu.memory_space<vmem>>, %arg3: memref<2x3x4x1x8xf32, #tpu.memory_space<vmem>>, %arg4: memref<2x4x8x32xf32, #tpu.memory_space<vmem>>, %arg5: memref<2x1x32xf32, #tpu.memory_space<vmem>>, %arg6: memref<2x32x2048xf32, #tpu.memory_space<vmem>>, %arg7: memref<2x1x2048xf32, #tpu.memory_space<vmem>>, %arg8: memref<2x32x2048xf32, #tpu.memory_space<vmem>>, %arg9: memref<2x1x32xf32, #tpu.memory_space<vmem>>, %arg10: memref<2x1x32xf32, #tpu.memory_space<vmem>>, %arg11: memref<2x1x32xf32, #tpu.memory_space<vmem>>, %arg12: memref<2x1x32xf32, #tpu.memory_space<vmem>>, %arg13: memref<2x1x32xf32, #tpu.memory_space<vmem>>, %arg14: memref<2x3x4x32x8xf32, #tpu.memory_space<vmem>>, %arg15: memref<2x3x4x1x8xf32, #tpu.memory_space<vmem>>, %arg16: memref<2x4x8x32xf32, #tpu.memory_space<vmem>>, %arg17: memref<2x1x32xf32, #tpu.memory_space<vmem>>, %arg18: memref<2x3x4x32x8xf32, #tpu.memory_space<vmem>>, %arg19: memref<2x3x4x1x8xf32, #tpu.memory_space<vmem>>, %arg20: memref<2x4x8x32xf32, #tpu.memory_space<vmem>>, %arg21: memref<2x1x32xf32, #tpu.memory_space<vmem>>, %arg22: memref<2x32x2048xf32, #tpu.memory_space<vmem>>, %arg23: memref<2x1x2048xf32, #tpu.memory_space<vmem>>, %arg24: memref<2x32x2048xf32, #tpu.memory_space<vmem>>, %arg25: memref<2x1x32xf32, #tpu.memory_space<vmem>>, %arg26: memref<2x1x32xf32, #tpu.memory_space<vmem>>, %arg27: memref<2x1x32xf32, #tpu.memory_space<vmem>>, %arg28: memref<2x1x32xf32, #tpu.memory_space<vmem>>, %arg29: memref<2x1x32xf32, #tpu.memory_space<vmem>>, %arg30: memref<2x1x32xf32, #tpu.memory_space<vmem>>, %arg31: memref<2x1x32xf32, #tpu.memory_space<vmem>>, %arg32: memref<1x1x32xf32, #tpu.memory_space<vmem>>) attributes {dimension_semantics = [#tpu.dimension_semantics<parallel>], iteration_bounds = array<i64: 2>, scalar_prefetch = 0 : i64, scratch_operands = 0 : i64, tpu.core_type = #tpu.core_type<tc>, window_params = [{transform_indices = @transform_0, window_bounds = array<i64: 1, 8, 32>}, {pipeline_mode = #tpu.pipeline_mode<synchronous>, transform_indices = @transform_1, window_bounds = array<i64: 2, 3, 4, 32, 8>}, {pipeline_mode = #tpu.pipeline_mode<synchronous>, transform_indices = @transform_2, window_bounds = array<i64: 2, 3, 4, 1, 8>}, {pipeline_mode = #tpu.pipeline_mode<synchronous>, transform_indices = @transform_3, window_bounds = array<i64: 2, 4, 8, 32>}, {pipeline_mode = #tpu.pipeline_mode<synchronous>, transform_indices = @transform_4, window_bounds = array<i64: 2, 1, 32>}, {pipeline_mode = #tpu.pipeline_mode<synchronous>, transform_indices = @transform_5, window_bounds = array<i64: 2, 32, 2048>}, {pipeline_mode = #tpu.pipeline_mode<synchronous>, transform_indices = @transform_6, window_bounds = array<i64: 2, 1, 2048>}, {pipeline_mode = #tpu.pipeline_mode<synchronous>, transform_indices = @transform_7, window_bounds = array<i64: 2, 32, 2048>}, {pipeline_mode = #tpu.pipeline_mode<synchronous>, transform_indices = @transform_8, window_bounds = array<i64: 2, 1, 32>}, {pipeline_mode = #tpu.pipeline_mode<synchronous>, transform_indices = @transform_9, window_bounds = array<i64: 2, 1, 32>}, {pipeline_mode = #tpu.pipeline_mode<synchronous>, transform_indices = @transform_10, window_bounds = array<i64: 2, 1, 32>}, {pipeline_mode = #tpu.pipeline_mode<synchronous>, transform_indices = @transform_11, window_bounds = array<i64: 2, 1, 32>}, {pipeline_mode = #tpu.pipeline_mode<synchronous>, transform_indices = @transform_12, window_bounds = array<i64: 2, 1, 32>}, {pipeline_mode = #tpu.pipeline_mode<synchronous>, transform_indices = @transform_13, window_bounds = array<i64: 2, 3, 4, 32, 8>}, {pipeline_mode = #tpu.pipeline_mode<synchronous>, transform_indices = @transform_14, window_bounds = array<i64: 2, 3, 4, 1, 8>}, {pipeline_mode = #tpu.pipeline_mode<synchronous>, transform_indices = @transform_15, window_bounds = array<i64: 2, 4, 8, 32>}, {pipeline_mode = #tpu.pipeline_mode<synchronous>, transform_indices = @transform_16, window_bounds = array<i64: 2, 1, 32>}, {pipeline_mode = #tpu.pipeline_mode<synchronous>, transform_indices = @transform_17, window_bounds = array<i64: 2, 3, 4, 32, 8>}, {pipeline_mode = #tpu.pipeline_mode<synchronous>, transform_indices = @transform_18, window_bounds = array<i64: 2, 3, 4, 1, 8>}, {pipeline_mode = #tpu.pipeline_mode<synchronous>, transform_indices = @transform_19, window_bounds = array<i64: 2, 4, 8, 32>}, {pipeline_mode = #tpu.pipeline_mode<synchronous>, transform_indices = @transform_20, window_bounds = array<i64: 2, 1, 32>}, {pipeline_mode = #tpu.pipeline_mode<synchronous>, transform_indices = @transform_21, window_bounds = array<i64: 2, 32, 2048>}, {pipeline_mode = #tpu.pipeline_mode<synchronous>, transform_indices = @transform_22, window_bounds = array<i64: 2, 1, 2048>}, {pipeline_mode = #tpu.pipeline_mode<synchronous>, transform_indices = @transform_23, window_bounds = array<i64: 2, 32, 2048>}, {pipeline_mode = #tpu.pipeline_mode<synchronous>, transform_indices = @transform_24, window_bounds = array<i64: 2, 1, 32>}, {pipeline_mode = #tpu.pipeline_mode<synchronous>, transform_indices = @transform_25, window_bounds = array<i64: 2, 1, 32>}, {pipeline_mode = #tpu.pipeline_mode<synchronous>, transform_indices = @transform_26, window_bounds = array<i64: 2, 1, 32>}, {pipeline_mode = #tpu.pipeline_mode<synchronous>, transform_indices = @transform_27, window_bounds = array<i64: 2, 1, 32>}, {pipeline_mode = #tpu.pipeline_mode<synchronous>, transform_indices = @transform_28, window_bounds = array<i64: 2, 1, 32>}, {pipeline_mode = #tpu.pipeline_mode<synchronous>, transform_indices = @transform_29, window_bounds = array<i64: 2, 1, 32>}, {pipeline_mode = #tpu.pipeline_mode<synchronous>, transform_indices = @transform_30, window_bounds = array<i64: 2, 1, 32>}, {transform_indices = @transform_31, window_bounds = array<i64: 1, 1, 32>}]} {
    %c0 = arith.constant 0 : index
    %c0_0 = arith.constant 0 : index
    %c0_1 = arith.constant 0 : index
    %0 = vector.load %arg1[%c0, %c0_0, %c0_1] : memref<1x8x32xf32, #tpu.memory_space<vmem>>, vector<1x8x32xf32>
    %1 = vector.shape_cast %0 : vector<1x8x32xf32> to vector<8x32xf32>
    %c0_2 = arith.constant 0 : index
    %c0_3 = arith.constant 0 : index
    %c0_4 = arith.constant 0 : index
    %c0_5 = arith.constant 0 : index
    %c0_6 = arith.constant 0 : index
    %2 = vector.load %arg2[%c0_2, %c0_3, %c0_4, %c0_5, %c0_6] : memref<2x3x4x32x8xf32, #tpu.memory_space<vmem>>, vector<1x3x4x32x8xf32>
    %3 = vector.shape_cast %2 : vector<1x3x4x32x8xf32> to vector<3x4x32x8xf32>
    %c0_7 = arith.constant 0 : index
    %c0_8 = arith.constant 0 : index
    %c0_9 = arith.constant 0 : index
    %c0_10 = arith.constant 0 : index
    %c0_11 = arith.constant 0 : index
    %4 = vector.load %arg3[%c0_7, %c0_8, %c0_9, %c0_10, %c0_11] : memref<2x3x4x1x8xf32, #tpu.memory_space<vmem>>, vector<1x3x4x1x8xf32>
    %5 = vector.shape_cast %4 : vector<1x3x4x1x8xf32> to vector<3x4x1x8xf32>
    %c0_12 = arith.constant 0 : index
    %c0_13 = arith.constant 0 : index
    %c0_14 = arith.constant 0 : index
    %c0_15 = arith.constant 0 : index
    %6 = vector.load %arg4[%c0_12, %c0_13, %c0_14, %c0_15] : memref<2x4x8x32xf32, #tpu.memory_space<vmem>>, vector<1x4x8x32xf32>
    %7 = vector.shape_cast %6 : vector<1x4x8x32xf32> to vector<4x8x32xf32>
    %c0_16 = arith.constant 0 : index
    %c0_17 = arith.constant 0 : index
    %c0_18 = arith.constant 0 : index
    %8 = vector.load %arg5[%c0_16, %c0_17, %c0_18] : memref<2x1x32xf32, #tpu.memory_space<vmem>>, vector<1x1x32xf32>
    %9 = vector.shape_cast %8 : vector<1x1x32xf32> to vector<1x32xf32>
    %10 = vector.shape_cast %1 : vector<8x32xf32> to vector<1x8x32xf32>
    %11 = vector.shape_cast %10 : vector<1x8x32xf32> to vector<1x8x32xf32>
    %12 = vector.broadcast %11 : vector<1x8x32xf32> to vector<4x8x32xf32>
    %13 = vector.extract_strided_slice %3 {offsets = [0, 0, 0, 0], sizes = [1, 4, 32, 8], strides = [1, 1, 1, 1]} : vector<3x4x32x8xf32> to vector<1x4x32x8xf32>
    %14 = vector.shape_cast %13 : vector<1x4x32x8xf32> to vector<4x32x8xf32>
    "tpu.trace_start"() <{level = 10 : i32, message = "hmk,hkn->hmn"}> : () -> ()
    %cst = arith.constant dense<0.000000e+00> : vector<4x8x8xf32>
    %15 = tpu.matmul %12, %14, %cst {dimension_numbers = #tpu.dot_dimension_numbers<[2], [1], [1], [2], [0, 0, 0, 1, 1, 2], [0], [0]>} : vector<4x8x32xf32>, vector<4x32x8xf32>, vector<4x8x8xf32> -> vector<4x8x8xf32>
    "tpu.trace_stop"() : () -> ()
    %16 = vector.extract_strided_slice %5 {offsets = [0, 0, 0, 0], sizes = [1, 4, 1, 8], strides = [1, 1, 1, 1]} : vector<3x4x1x8xf32> to vector<1x4x1x8xf32>
    %17 = vector.shape_cast %16 : vector<1x4x1x8xf32> to vector<4x1x8xf32>
    %18 = vector.broadcast %17 : vector<4x1x8xf32> to vector<4x8x8xf32>
    %19 = arith.addf %15, %18 : vector<4x8x8xf32>
    %20 = vector.extract_strided_slice %3 {offsets = [1, 0, 0, 0], sizes = [1, 4, 32, 8], strides = [1, 1, 1, 1]} : vector<3x4x32x8xf32> to vector<1x4x32x8xf32>
    %21 = vector.shape_cast %20 : vector<1x4x32x8xf32> to vector<4x32x8xf32>
    "tpu.trace_start"() <{level = 10 : i32, message = "hmk,hkn->hmn"}> : () -> ()
    %cst_19 = arith.constant dense<0.000000e+00> : vector<4x8x8xf32>
    %22 = tpu.matmul %12, %21, %cst_19 {dimension_numbers = #tpu.dot_dimension_numbers<[2], [1], [1], [2], [0, 0, 0, 1, 1, 2], [0], [0]>} : vector<4x8x32xf32>, vector<4x32x8xf32>, vector<4x8x8xf32> -> vector<4x8x8xf32>
    "tpu.trace_stop"() : () -> ()
    %23 = vector.extract_strided_slice %5 {offsets = [1, 0, 0, 0], sizes = [1, 4, 1, 8], strides = [1, 1, 1, 1]} : vector<3x4x1x8xf32> to vector<1x4x1x8xf32>
    %24 = vector.shape_cast %23 : vector<1x4x1x8xf32> to vector<4x1x8xf32>
    %25 = vector.broadcast %24 : vector<4x1x8xf32> to vector<4x8x8xf32>
    %26 = arith.addf %22, %25 : vector<4x8x8xf32>
    %27 = vector.extract_strided_slice %3 {offsets = [2, 0, 0, 0], sizes = [1, 4, 32, 8], strides = [1, 1, 1, 1]} : vector<3x4x32x8xf32> to vector<1x4x32x8xf32>
    %28 = vector.shape_cast %27 : vector<1x4x32x8xf32> to vector<4x32x8xf32>
    "tpu.trace_start"() <{level = 10 : i32, message = "hmk,hkn->hmn"}> : () -> ()
    %cst_20 = arith.constant dense<0.000000e+00> : vector<4x8x8xf32>
    %29 = tpu.matmul %12, %28, %cst_20 {dimension_numbers = #tpu.dot_dimension_numbers<[2], [1], [1], [2], [0, 0, 0, 1, 1, 2], [0], [0]>} : vector<4x8x32xf32>, vector<4x32x8xf32>, vector<4x8x8xf32> -> vector<4x8x8xf32>
    "tpu.trace_stop"() : () -> ()
    %30 = vector.extract_strided_slice %5 {offsets = [2, 0, 0, 0], sizes = [1, 4, 1, 8], strides = [1, 1, 1, 1]} : vector<3x4x1x8xf32> to vector<1x4x1x8xf32>
    %31 = vector.shape_cast %30 : vector<1x4x1x8xf32> to vector<4x1x8xf32>
    %32 = vector.broadcast %31 : vector<4x1x8xf32> to vector<4x8x8xf32>
    %33 = arith.addf %29, %32 : vector<4x8x8xf32>
    %cst_21 = arith.constant 0.353553385 : f32
    %34 = vector.broadcast %cst_21 : f32 to vector<4x8x8xf32>
    %35 = arith.mulf %19, %34 : vector<4x8x8xf32>
    "tpu.trace_start"() <{level = 10 : i32, message = "hqd,hkd->hqk"}> : () -> ()
    %cst_22 = arith.constant dense<0.000000e+00> : vector<4x8x8xf32>
    %36 = tpu.matmul %35, %26, %cst_22 {dimension_numbers = #tpu.dot_dimension_numbers<[2], [2], [1], [1], [0, 0, 0, 1, 1, 1], [0], [0]>} : vector<4x8x8xf32>, vector<4x8x8xf32>, vector<4x8x8xf32> -> vector<4x8x8xf32>
    "tpu.trace_stop"() : () -> ()
    %cst_23 = arith.constant dense<0xFF800000> : vector<4x8xf32>
    %37 = vector.multi_reduction <maximumf>, %36, %cst_23 [2] : vector<4x8x8xf32> to vector<4x8xf32>
    %38 = vector.shape_cast %37 : vector<4x8xf32> to vector<4x8x1xf32>
    %39 = vector.broadcast %38 : vector<4x8x1xf32> to vector<4x8x8xf32>
    %40 = arith.subf %36, %39 : vector<4x8x8xf32>
    %41 = math.exp %40 : vector<4x8x8xf32>
    %cst_24 = arith.constant dense<0.000000e+00> : vector<4x8xf32>
    %42 = vector.multi_reduction <add>, %41, %cst_24 [2] : vector<4x8x8xf32> to vector<4x8xf32>
    %43 = vector.shape_cast %42 : vector<4x8xf32> to vector<4x8x1xf32>
    %44 = tpu.reciprocal %43 {approx = true} : vector<4x8x1xf32> -> vector<4x8x1xf32>
    %45 = vector.broadcast %44 : vector<4x8x1xf32> to vector<4x8x8xf32>
    %46 = arith.mulf %41, %45 : vector<4x8x8xf32>
    "tpu.trace_start"() <{level = 10 : i32, message = "hqk,hkd->hqd"}> : () -> ()
    %cst_25 = arith.constant dense<0.000000e+00> : vector<4x8x8xf32>
    %47 = tpu.matmul %46, %33, %cst_25 {dimension_numbers = #tpu.dot_dimension_numbers<[2], [1], [1], [2], [0, 0, 0, 1, 1, 2], [0], [0]>} : vector<4x8x8xf32>, vector<4x8x8xf32>, vector<4x8x8xf32> -> vector<4x8x8xf32>
    "tpu.trace_stop"() : () -> ()
    "tpu.trace_start"() <{level = 10 : i32, message = "hsd,hdo->hso"}> : () -> ()
    %cst_26 = arith.constant dense<0.000000e+00> : vector<4x8x32xf32>
    %48 = tpu.matmul %47, %7, %cst_26 {dimension_numbers = #tpu.dot_dimension_numbers<[2], [1], [1], [2], [0, 0, 0, 1, 1, 2], [0], [0]>} : vector<4x8x8xf32>, vector<4x8x32xf32>, vector<4x8x32xf32> -> vector<4x8x32xf32>
    "tpu.trace_stop"() : () -> ()
    %cst_27 = arith.constant dense<0.000000e+00> : vector<8x32xf32>
    %49 = vector.multi_reduction <add>, %48, %cst_27 [0] : vector<4x8x32xf32> to vector<8x32xf32>
    %50 = vector.broadcast %9 : vector<1x32xf32> to vector<8x32xf32>
    %51 = arith.addf %49, %50 : vector<8x32xf32>
    %52 = arith.addf %1, %51 : vector<8x32xf32>
    %c0_28 = arith.constant 0 : index
    %c0_29 = arith.constant 0 : index
    %c0_30 = arith.constant 0 : index
    %53 = vector.load %arg10[%c0_28, %c0_29, %c0_30] : memref<2x1x32xf32, #tpu.memory_space<vmem>>, vector<1x1x32xf32>
    %54 = vector.shape_cast %53 : vector<1x1x32xf32> to vector<1x32xf32>
    %c0_31 = arith.constant 0 : index
    %c0_32 = arith.constant 0 : index
    %c0_33 = arith.constant 0 : index
    %55 = vector.load %arg11[%c0_31, %c0_32, %c0_33] : memref<2x1x32xf32, #tpu.memory_space<vmem>>, vector<1x1x32xf32>
    %56 = vector.shape_cast %55 : vector<1x1x32xf32> to vector<1x32xf32>
    %cst_34 = arith.constant dense<0.000000e+00> : vector<8xf32>
    %57 = vector.multi_reduction <add>, %52, %cst_34 [1] : vector<8x32xf32> to vector<8xf32>
    %58 = vector.shape_cast %57 : vector<8xf32> to vector<8x1xf32>
    %cst_35 = arith.constant 3.200000e+01 : f32
    %59 = vector.broadcast %cst_35 : f32 to vector<8x1xf32>
    %60 = arith.divf %58, %59 : vector<8x1xf32>
    %61 = vector.broadcast %60 : vector<8x1xf32> to vector<8x32xf32>
    %62 = arith.subf %52, %61 : vector<8x32xf32>
    %63 = arith.mulf %62, %62 : vector<8x32xf32>
    %cst_36 = arith.constant dense<0.000000e+00> : vector<8xf32>
    %64 = vector.multi_reduction <add>, %63, %cst_36 [1] : vector<8x32xf32> to vector<8xf32>
    %65 = vector.shape_cast %64 : vector<8xf32> to vector<8x1xf32>
    %cst_37 = arith.constant 3.200000e+01 : f32
    %66 = vector.broadcast %cst_37 : f32 to vector<8x1xf32>
    %67 = arith.divf %65, %66 : vector<8x1xf32>
    %cst_38 = arith.constant 9.99999974E-6 : f32
    %68 = vector.broadcast %cst_38 : f32 to vector<8x1xf32>
    %69 = arith.addf %67, %68 : vector<8x1xf32>
    %70 = math.rsqrt %69 : vector<8x1xf32>
    %71 = vector.broadcast %70 : vector<8x1xf32> to vector<8x32xf32>
    %72 = arith.mulf %62, %71 : vector<8x32xf32>
    %73 = vector.broadcast %54 : vector<1x32xf32> to vector<8x32xf32>
    %74 = arith.mulf %72, %73 : vector<8x32xf32>
    %75 = vector.broadcast %56 : vector<1x32xf32> to vector<8x32xf32>
    %76 = arith.addf %74, %75 : vector<8x32xf32>
    %c0_39 = arith.constant 0 : index
    %c0_40 = arith.constant 0 : index
    %c0_41 = arith.constant 0 : index
    %77 = vector.load %arg6[%c0_39, %c0_40, %c0_41] : memref<2x32x2048xf32, #tpu.memory_space<vmem>>, vector<1x32x2048xf32>
    %78 = vector.shape_cast %77 : vector<1x32x2048xf32> to vector<32x2048xf32>
    %c0_42 = arith.constant 0 : index
    %c0_43 = arith.constant 0 : index
    %c0_44 = arith.constant 0 : index
    %79 = vector.load %arg7[%c0_42, %c0_43, %c0_44] : memref<2x1x2048xf32, #tpu.memory_space<vmem>>, vector<1x1x2048xf32>
    %80 = vector.shape_cast %79 : vector<1x1x2048xf32> to vector<1x2048xf32>
    %c0_45 = arith.constant 0 : index
    %c0_46 = arith.constant 0 : index
    %c0_47 = arith.constant 0 : index
    %81 = vector.load %arg8[%c0_45, %c0_46, %c0_47] : memref<2x32x2048xf32, #tpu.memory_space<vmem>>, vector<1x32x2048xf32>
    %82 = vector.shape_cast %81 : vector<1x32x2048xf32> to vector<32x2048xf32>
    %c0_48 = arith.constant 0 : index
    %c0_49 = arith.constant 0 : index
    %c0_50 = arith.constant 0 : index
    %83 = vector.load %arg9[%c0_48, %c0_49, %c0_50] : memref<2x1x32xf32, #tpu.memory_space<vmem>>, vector<1x1x32xf32>
    %84 = vector.shape_cast %83 : vector<1x1x32xf32> to vector<1x32xf32>
    %cst_51 = arith.constant dense<0.000000e+00> : vector<8x2048xf32>
    %85 = tpu.matmul %76, %78, %cst_51 {dimension_numbers = #tpu.dot_dimension_numbers<[1], [0], [0], [1], [0, 0, 1, 1], [], []>} : vector<8x32xf32>, vector<32x2048xf32>, vector<8x2048xf32> -> vector<8x2048xf32>
    %86 = vector.broadcast %80 : vector<1x2048xf32> to vector<8x2048xf32>
    %87 = arith.addf %85, %86 : vector<8x2048xf32>
    %cst_52 = arith.constant 0.000000e+00 : f32
    %88 = vector.broadcast %cst_52 : f32 to vector<8x2048xf32>
    %89 = arith.maximumf %87, %88 : vector<8x2048xf32>
    "tpu.trace_start"() <{level = 10 : i32, message = "sf,of->so"}> : () -> ()
    %cst_53 = arith.constant dense<0.000000e+00> : vector<8x32xf32>
    %90 = tpu.matmul %89, %82, %cst_53 {dimension_numbers = #tpu.dot_dimension_numbers<[1], [1], [0], [0], [0, 0, 1, 0], [], []>} : vector<8x2048xf32>, vector<32x2048xf32>, vector<8x32xf32> -> vector<8x32xf32>
    "tpu.trace_stop"() : () -> ()
    %91 = vector.broadcast %84 : vector<1x32xf32> to vector<8x32xf32>
    %92 = arith.addf %90, %91 : vector<8x32xf32>
    %93 = arith.addf %76, %92 : vector<8x32xf32>
    %c0_54 = arith.constant 0 : index
    %c0_55 = arith.constant 0 : index
    %c0_56 = arith.constant 0 : index
    %94 = vector.load %arg12[%c0_54, %c0_55, %c0_56] : memref<2x1x32xf32, #tpu.memory_space<vmem>>, vector<1x1x32xf32>
    %95 = vector.shape_cast %94 : vector<1x1x32xf32> to vector<1x32xf32>
    %c0_57 = arith.constant 0 : index
    %c0_58 = arith.constant 0 : index
    %c0_59 = arith.constant 0 : index
    %96 = vector.load %arg13[%c0_57, %c0_58, %c0_59] : memref<2x1x32xf32, #tpu.memory_space<vmem>>, vector<1x1x32xf32>
    %97 = vector.shape_cast %96 : vector<1x1x32xf32> to vector<1x32xf32>
    %cst_60 = arith.constant dense<0.000000e+00> : vector<8xf32>
    %98 = vector.multi_reduction <add>, %93, %cst_60 [1] : vector<8x32xf32> to vector<8xf32>
    %99 = vector.shape_cast %98 : vector<8xf32> to vector<8x1xf32>
    %cst_61 = arith.constant 3.200000e+01 : f32
    %100 = vector.broadcast %cst_61 : f32 to vector<8x1xf32>
    %101 = arith.divf %99, %100 : vector<8x1xf32>
    %102 = vector.broadcast %101 : vector<8x1xf32> to vector<8x32xf32>
    %103 = arith.subf %93, %102 : vector<8x32xf32>
    %104 = arith.mulf %103, %103 : vector<8x32xf32>
    %cst_62 = arith.constant dense<0.000000e+00> : vector<8xf32>
    %105 = vector.multi_reduction <add>, %104, %cst_62 [1] : vector<8x32xf32> to vector<8xf32>
    %106 = vector.shape_cast %105 : vector<8xf32> to vector<8x1xf32>
    %cst_63 = arith.constant 3.200000e+01 : f32
    %107 = vector.broadcast %cst_63 : f32 to vector<8x1xf32>
    %108 = arith.divf %106, %107 : vector<8x1xf32>
    %cst_64 = arith.constant 9.99999974E-6 : f32
    %109 = vector.broadcast %cst_64 : f32 to vector<8x1xf32>
    %110 = arith.addf %108, %109 : vector<8x1xf32>
    %111 = math.rsqrt %110 : vector<8x1xf32>
    %112 = vector.broadcast %111 : vector<8x1xf32> to vector<8x32xf32>
    %113 = arith.mulf %103, %112 : vector<8x32xf32>
    %114 = vector.broadcast %95 : vector<1x32xf32> to vector<8x32xf32>
    %115 = arith.mulf %113, %114 : vector<8x32xf32>
    %116 = vector.broadcast %97 : vector<1x32xf32> to vector<8x32xf32>
    %117 = arith.addf %115, %116 : vector<8x32xf32>
    %c1 = arith.constant 1 : index
    %c0_65 = arith.constant 0 : index
    %c0_66 = arith.constant 0 : index
    %c0_67 = arith.constant 0 : index
    %c0_68 = arith.constant 0 : index
    %118 = vector.load %arg2[%c1, %c0_65, %c0_66, %c0_67, %c0_68] : memref<2x3x4x32x8xf32, #tpu.memory_space<vmem>>, vector<1x3x4x32x8xf32>
    %119 = vector.shape_cast %118 : vector<1x3x4x32x8xf32> to vector<3x4x32x8xf32>
    %c1_69 = arith.constant 1 : index
    %c0_70 = arith.constant 0 : index
    %c0_71 = arith.constant 0 : index
    %c0_72 = arith.constant 0 : index
    %c0_73 = arith.constant 0 : index
    %120 = vector.load %arg3[%c1_69, %c0_70, %c0_71, %c0_72, %c0_73] : memref<2x3x4x1x8xf32, #tpu.memory_space<vmem>>, vector<1x3x4x1x8xf32>
    %121 = vector.shape_cast %120 : vector<1x3x4x1x8xf32> to vector<3x4x1x8xf32>
    %c1_74 = arith.constant 1 : index
    %c0_75 = arith.constant 0 : index
    %c0_76 = arith.constant 0 : index
    %c0_77 = arith.constant 0 : index
    %122 = vector.load %arg4[%c1_74, %c0_75, %c0_76, %c0_77] : memref<2x4x8x32xf32, #tpu.memory_space<vmem>>, vector<1x4x8x32xf32>
    %123 = vector.shape_cast %122 : vector<1x4x8x32xf32> to vector<4x8x32xf32>
    %c1_78 = arith.constant 1 : index
    %c0_79 = arith.constant 0 : index
    %c0_80 = arith.constant 0 : index
    %124 = vector.load %arg5[%c1_78, %c0_79, %c0_80] : memref<2x1x32xf32, #tpu.memory_space<vmem>>, vector<1x1x32xf32>
    %125 = vector.shape_cast %124 : vector<1x1x32xf32> to vector<1x32xf32>
    %126 = vector.shape_cast %117 : vector<8x32xf32> to vector<1x8x32xf32>
    %127 = vector.shape_cast %126 : vector<1x8x32xf32> to vector<1x8x32xf32>
    %128 = vector.broadcast %127 : vector<1x8x32xf32> to vector<4x8x32xf32>
    %129 = vector.extract_strided_slice %119 {offsets = [0, 0, 0, 0], sizes = [1, 4, 32, 8], strides = [1, 1, 1, 1]} : vector<3x4x32x8xf32> to vector<1x4x32x8xf32>
    %130 = vector.shape_cast %129 : vector<1x4x32x8xf32> to vector<4x32x8xf32>
    "tpu.trace_start"() <{level = 10 : i32, message = "hmk,hkn->hmn"}> : () -> ()
    %cst_81 = arith.constant dense<0.000000e+00> : vector<4x8x8xf32>
    %131 = tpu.matmul %128, %130, %cst_81 {dimension_numbers = #tpu.dot_dimension_numbers<[2], [1], [1], [2], [0, 0, 0, 1, 1, 2], [0], [0]>} : vector<4x8x32xf32>, vector<4x32x8xf32>, vector<4x8x8xf32> -> vector<4x8x8xf32>
    "tpu.trace_stop"() : () -> ()
    %132 = vector.extract_strided_slice %121 {offsets = [0, 0, 0, 0], sizes = [1, 4, 1, 8], strides = [1, 1, 1, 1]} : vector<3x4x1x8xf32> to vector<1x4x1x8xf32>
    %133 = vector.shape_cast %132 : vector<1x4x1x8xf32> to vector<4x1x8xf32>
    %134 = vector.broadcast %133 : vector<4x1x8xf32> to vector<4x8x8xf32>
    %135 = arith.addf %131, %134 : vector<4x8x8xf32>
    %136 = vector.extract_strided_slice %119 {offsets = [1, 0, 0, 0], sizes = [1, 4, 32, 8], strides = [1, 1, 1, 1]} : vector<3x4x32x8xf32> to vector<1x4x32x8xf32>
    %137 = vector.shape_cast %136 : vector<1x4x32x8xf32> to vector<4x32x8xf32>
    "tpu.trace_start"() <{level = 10 : i32, message = "hmk,hkn->hmn"}> : () -> ()
    %cst_82 = arith.constant dense<0.000000e+00> : vector<4x8x8xf32>
    %138 = tpu.matmul %128, %137, %cst_82 {dimension_numbers = #tpu.dot_dimension_numbers<[2], [1], [1], [2], [0, 0, 0, 1, 1, 2], [0], [0]>} : vector<4x8x32xf32>, vector<4x32x8xf32>, vector<4x8x8xf32> -> vector<4x8x8xf32>
    "tpu.trace_stop"() : () -> ()
    %139 = vector.extract_strided_slice %121 {offsets = [1, 0, 0, 0], sizes = [1, 4, 1, 8], strides = [1, 1, 1, 1]} : vector<3x4x1x8xf32> to vector<1x4x1x8xf32>
    %140 = vector.shape_cast %139 : vector<1x4x1x8xf32> to vector<4x1x8xf32>
    %141 = vector.broadcast %140 : vector<4x1x8xf32> to vector<4x8x8xf32>
    %142 = arith.addf %138, %141 : vector<4x8x8xf32>
    %143 = vector.extract_strided_slice %119 {offsets = [2, 0, 0, 0], sizes = [1, 4, 32, 8], strides = [1, 1, 1, 1]} : vector<3x4x32x8xf32> to vector<1x4x32x8xf32>
    %144 = vector.shape_cast %143 : vector<1x4x32x8xf32> to vector<4x32x8xf32>
    "tpu.trace_start"() <{level = 10 : i32, message = "hmk,hkn->hmn"}> : () -> ()
    %cst_83 = arith.constant dense<0.000000e+00> : vector<4x8x8xf32>
    %145 = tpu.matmul %128, %144, %cst_83 {dimension_numbers = #tpu.dot_dimension_numbers<[2], [1], [1], [2], [0, 0, 0, 1, 1, 2], [0], [0]>} : vector<4x8x32xf32>, vector<4x32x8xf32>, vector<4x8x8xf32> -> vector<4x8x8xf32>
    "tpu.trace_stop"() : () -> ()
    %146 = vector.extract_strided_slice %121 {offsets = [2, 0, 0, 0], sizes = [1, 4, 1, 8], strides = [1, 1, 1, 1]} : vector<3x4x1x8xf32> to vector<1x4x1x8xf32>
    %147 = vector.shape_cast %146 : vector<1x4x1x8xf32> to vector<4x1x8xf32>
    %148 = vector.broadcast %147 : vector<4x1x8xf32> to vector<4x8x8xf32>
    %149 = arith.addf %145, %148 : vector<4x8x8xf32>
    %cst_84 = arith.constant 0.353553385 : f32
    %150 = vector.broadcast %cst_84 : f32 to vector<4x8x8xf32>
    %151 = arith.mulf %135, %150 : vector<4x8x8xf32>
    "tpu.trace_start"() <{level = 10 : i32, message = "hqd,hkd->hqk"}> : () -> ()
    %cst_85 = arith.constant dense<0.000000e+00> : vector<4x8x8xf32>
    %152 = tpu.matmul %151, %142, %cst_85 {dimension_numbers = #tpu.dot_dimension_numbers<[2], [2], [1], [1], [0, 0, 0, 1, 1, 1], [0], [0]>} : vector<4x8x8xf32>, vector<4x8x8xf32>, vector<4x8x8xf32> -> vector<4x8x8xf32>
    "tpu.trace_stop"() : () -> ()
    %cst_86 = arith.constant dense<0xFF800000> : vector<4x8xf32>
    %153 = vector.multi_reduction <maximumf>, %152, %cst_86 [2] : vector<4x8x8xf32> to vector<4x8xf32>
    %154 = vector.shape_cast %153 : vector<4x8xf32> to vector<4x8x1xf32>
    %155 = vector.broadcast %154 : vector<4x8x1xf32> to vector<4x8x8xf32>
    %156 = arith.subf %152, %155 : vector<4x8x8xf32>
    %157 = math.exp %156 : vector<4x8x8xf32>
    %cst_87 = arith.constant dense<0.000000e+00> : vector<4x8xf32>
    %158 = vector.multi_reduction <add>, %157, %cst_87 [2] : vector<4x8x8xf32> to vector<4x8xf32>
    %159 = vector.shape_cast %158 : vector<4x8xf32> to vector<4x8x1xf32>
    %160 = tpu.reciprocal %159 {approx = true} : vector<4x8x1xf32> -> vector<4x8x1xf32>
    %161 = vector.broadcast %160 : vector<4x8x1xf32> to vector<4x8x8xf32>
    %162 = arith.mulf %157, %161 : vector<4x8x8xf32>
    "tpu.trace_start"() <{level = 10 : i32, message = "hqk,hkd->hqd"}> : () -> ()
    %cst_88 = arith.constant dense<0.000000e+00> : vector<4x8x8xf32>
    %163 = tpu.matmul %162, %149, %cst_88 {dimension_numbers = #tpu.dot_dimension_numbers<[2], [1], [1], [2], [0, 0, 0, 1, 1, 2], [0], [0]>} : vector<4x8x8xf32>, vector<4x8x8xf32>, vector<4x8x8xf32> -> vector<4x8x8xf32>
    "tpu.trace_stop"() : () -> ()
    "tpu.trace_start"() <{level = 10 : i32, message = "hsd,hdo->hso"}> : () -> ()
    %cst_89 = arith.constant dense<0.000000e+00> : vector<4x8x32xf32>
    %164 = tpu.matmul %163, %123, %cst_89 {dimension_numbers = #tpu.dot_dimension_numbers<[2], [1], [1], [2], [0, 0, 0, 1, 1, 2], [0], [0]>} : vector<4x8x8xf32>, vector<4x8x32xf32>, vector<4x8x32xf32> -> vector<4x8x32xf32>
    "tpu.trace_stop"() : () -> ()
    %cst_90 = arith.constant dense<0.000000e+00> : vector<8x32xf32>
    %165 = vector.multi_reduction <add>, %164, %cst_90 [0] : vector<4x8x32xf32> to vector<8x32xf32>
    %166 = vector.broadcast %125 : vector<1x32xf32> to vector<8x32xf32>
    %167 = arith.addf %165, %166 : vector<8x32xf32>
    %168 = arith.addf %117, %167 : vector<8x32xf32>
    %c1_91 = arith.constant 1 : index
    %c0_92 = arith.constant 0 : index
    %c0_93 = arith.constant 0 : index
    %169 = vector.load %arg10[%c1_91, %c0_92, %c0_93] : memref<2x1x32xf32, #tpu.memory_space<vmem>>, vector<1x1x32xf32>
    %170 = vector.shape_cast %169 : vector<1x1x32xf32> to vector<1x32xf32>
    %c1_94 = arith.constant 1 : index
    %c0_95 = arith.constant 0 : index
    %c0_96 = arith.constant 0 : index
    %171 = vector.load %arg11[%c1_94, %c0_95, %c0_96] : memref<2x1x32xf32, #tpu.memory_space<vmem>>, vector<1x1x32xf32>
    %172 = vector.shape_cast %171 : vector<1x1x32xf32> to vector<1x32xf32>
    %cst_97 = arith.constant dense<0.000000e+00> : vector<8xf32>
    %173 = vector.multi_reduction <add>, %168, %cst_97 [1] : vector<8x32xf32> to vector<8xf32>
    %174 = vector.shape_cast %173 : vector<8xf32> to vector<8x1xf32>
    %cst_98 = arith.constant 3.200000e+01 : f32
    %175 = vector.broadcast %cst_98 : f32 to vector<8x1xf32>
    %176 = arith.divf %174, %175 : vector<8x1xf32>
    %177 = vector.broadcast %176 : vector<8x1xf32> to vector<8x32xf32>
    %178 = arith.subf %168, %177 : vector<8x32xf32>
    %179 = arith.mulf %178, %178 : vector<8x32xf32>
    %cst_99 = arith.constant dense<0.000000e+00> : vector<8xf32>
    %180 = vector.multi_reduction <add>, %179, %cst_99 [1] : vector<8x32xf32> to vector<8xf32>
    %181 = vector.shape_cast %180 : vector<8xf32> to vector<8x1xf32>
    %cst_100 = arith.constant 3.200000e+01 : f32
    %182 = vector.broadcast %cst_100 : f32 to vector<8x1xf32>
    %183 = arith.divf %181, %182 : vector<8x1xf32>
    %cst_101 = arith.constant 9.99999974E-6 : f32
    %184 = vector.broadcast %cst_101 : f32 to vector<8x1xf32>
    %185 = arith.addf %183, %184 : vector<8x1xf32>
    %186 = math.rsqrt %185 : vector<8x1xf32>
    %187 = vector.broadcast %186 : vector<8x1xf32> to vector<8x32xf32>
    %188 = arith.mulf %178, %187 : vector<8x32xf32>
    %189 = vector.broadcast %170 : vector<1x32xf32> to vector<8x32xf32>
    %190 = arith.mulf %188, %189 : vector<8x32xf32>
    %191 = vector.broadcast %172 : vector<1x32xf32> to vector<8x32xf32>
    %192 = arith.addf %190, %191 : vector<8x32xf32>
    %c1_102 = arith.constant 1 : index
    %c0_103 = arith.constant 0 : index
    %c0_104 = arith.constant 0 : index
    %193 = vector.load %arg6[%c1_102, %c0_103, %c0_104] : memref<2x32x2048xf32, #tpu.memory_space<vmem>>, vector<1x32x2048xf32>
    %194 = vector.shape_cast %193 : vector<1x32x2048xf32> to vector<32x2048xf32>
    %c1_105 = arith.constant 1 : index
    %c0_106 = arith.constant 0 : index
    %c0_107 = arith.constant 0 : index
    %195 = vector.load %arg7[%c1_105, %c0_106, %c0_107] : memref<2x1x2048xf32, #tpu.memory_space<vmem>>, vector<1x1x2048xf32>
    %196 = vector.shape_cast %195 : vector<1x1x2048xf32> to vector<1x2048xf32>
    %c1_108 = arith.constant 1 : index
    %c0_109 = arith.constant 0 : index
    %c0_110 = arith.constant 0 : index
    %197 = vector.load %arg8[%c1_108, %c0_109, %c0_110] : memref<2x32x2048xf32, #tpu.memory_space<vmem>>, vector<1x32x2048xf32>
    %198 = vector.shape_cast %197 : vector<1x32x2048xf32> to vector<32x2048xf32>
    %c1_111 = arith.constant 1 : index
    %c0_112 = arith.constant 0 : index
    %c0_113 = arith.constant 0 : index
    %199 = vector.load %arg9[%c1_111, %c0_112, %c0_113] : memref<2x1x32xf32, #tpu.memory_space<vmem>>, vector<1x1x32xf32>
    %200 = vector.shape_cast %199 : vector<1x1x32xf32> to vector<1x32xf32>
    %cst_114 = arith.constant dense<0.000000e+00> : vector<8x2048xf32>
    %201 = tpu.matmul %192, %194, %cst_114 {dimension_numbers = #tpu.dot_dimension_numbers<[1], [0], [0], [1], [0, 0, 1, 1], [], []>} : vector<8x32xf32>, vector<32x2048xf32>, vector<8x2048xf32> -> vector<8x2048xf32>
    %202 = vector.broadcast %196 : vector<1x2048xf32> to vector<8x2048xf32>
    %203 = arith.addf %201, %202 : vector<8x2048xf32>
    %cst_115 = arith.constant 0.000000e+00 : f32
    %204 = vector.broadcast %cst_115 : f32 to vector<8x2048xf32>
    %205 = arith.maximumf %203, %204 : vector<8x2048xf32>
    "tpu.trace_start"() <{level = 10 : i32, message = "sf,of->so"}> : () -> ()
    %cst_116 = arith.constant dense<0.000000e+00> : vector<8x32xf32>
    %206 = tpu.matmul %205, %198, %cst_116 {dimension_numbers = #tpu.dot_dimension_numbers<[1], [1], [0], [0], [0, 0, 1, 0], [], []>} : vector<8x2048xf32>, vector<32x2048xf32>, vector<8x32xf32> -> vector<8x32xf32>
    "tpu.trace_stop"() : () -> ()
    %207 = vector.broadcast %200 : vector<1x32xf32> to vector<8x32xf32>
    %208 = arith.addf %206, %207 : vector<8x32xf32>
    %209 = arith.addf %192, %208 : vector<8x32xf32>
    %c1_117 = arith.constant 1 : index
    %c0_118 = arith.constant 0 : index
    %c0_119 = arith.constant 0 : index
    %210 = vector.load %arg12[%c1_117, %c0_118, %c0_119] : memref<2x1x32xf32, #tpu.memory_space<vmem>>, vector<1x1x32xf32>
    %211 = vector.shape_cast %210 : vector<1x1x32xf32> to vector<1x32xf32>
    %c1_120 = arith.constant 1 : index
    %c0_121 = arith.constant 0 : index
    %c0_122 = arith.constant 0 : index
    %212 = vector.load %arg13[%c1_120, %c0_121, %c0_122] : memref<2x1x32xf32, #tpu.memory_space<vmem>>, vector<1x1x32xf32>
    %213 = vector.shape_cast %212 : vector<1x1x32xf32> to vector<1x32xf32>
    %cst_123 = arith.constant dense<0.000000e+00> : vector<8xf32>
    %214 = vector.multi_reduction <add>, %209, %cst_123 [1] : vector<8x32xf32> to vector<8xf32>
    %215 = vector.shape_cast %214 : vector<8xf32> to vector<8x1xf32>
    %cst_124 = arith.constant 3.200000e+01 : f32
    %216 = vector.broadcast %cst_124 : f32 to vector<8x1xf32>
    %217 = arith.divf %215, %216 : vector<8x1xf32>
    %218 = vector.broadcast %217 : vector<8x1xf32> to vector<8x32xf32>
    %219 = arith.subf %209, %218 : vector<8x32xf32>
    %220 = arith.mulf %219, %219 : vector<8x32xf32>
    %cst_125 = arith.constant dense<0.000000e+00> : vector<8xf32>
    %221 = vector.multi_reduction <add>, %220, %cst_125 [1] : vector<8x32xf32> to vector<8xf32>
    %222 = vector.shape_cast %221 : vector<8xf32> to vector<8x1xf32>
    %cst_126 = arith.constant 3.200000e+01 : f32
    %223 = vector.broadcast %cst_126 : f32 to vector<8x1xf32>
    %224 = arith.divf %222, %223 : vector<8x1xf32>
    %cst_127 = arith.constant 9.99999974E-6 : f32
    %225 = vector.broadcast %cst_127 : f32 to vector<8x1xf32>
    %226 = arith.addf %224, %225 : vector<8x1xf32>
    %227 = math.rsqrt %226 : vector<8x1xf32>
    %228 = vector.broadcast %227 : vector<8x1xf32> to vector<8x32xf32>
    %229 = arith.mulf %219, %228 : vector<8x32xf32>
    %230 = vector.broadcast %211 : vector<1x32xf32> to vector<8x32xf32>
    %231 = arith.mulf %229, %230 : vector<8x32xf32>
    %232 = vector.broadcast %213 : vector<1x32xf32> to vector<8x32xf32>
    %233 = arith.addf %231, %232 : vector<8x32xf32>
    %c0_128 = arith.constant 0 : index
    %c0_129 = arith.constant 0 : index
    %c0_130 = arith.constant 0 : index
    %c0_131 = arith.constant 0 : index
    %c0_132 = arith.constant 0 : index
    %234 = vector.load %arg14[%c0_128, %c0_129, %c0_130, %c0_131, %c0_132] : memref<2x3x4x32x8xf32, #tpu.memory_space<vmem>>, vector<1x3x4x32x8xf32>
    %235 = vector.shape_cast %234 : vector<1x3x4x32x8xf32> to vector<3x4x32x8xf32>
    %c0_133 = arith.constant 0 : index
    %c0_134 = arith.constant 0 : index
    %c0_135 = arith.constant 0 : index
    %c0_136 = arith.constant 0 : index
    %c0_137 = arith.constant 0 : index
    %236 = vector.load %arg15[%c0_133, %c0_134, %c0_135, %c0_136, %c0_137] : memref<2x3x4x1x8xf32, #tpu.memory_space<vmem>>, vector<1x3x4x1x8xf32>
    %237 = vector.shape_cast %236 : vector<1x3x4x1x8xf32> to vector<3x4x1x8xf32>
    %c0_138 = arith.constant 0 : index
    %c0_139 = arith.constant 0 : index
    %c0_140 = arith.constant 0 : index
    %c0_141 = arith.constant 0 : index
    %238 = vector.load %arg16[%c0_138, %c0_139, %c0_140, %c0_141] : memref<2x4x8x32xf32, #tpu.memory_space<vmem>>, vector<1x4x8x32xf32>
    %239 = vector.shape_cast %238 : vector<1x4x8x32xf32> to vector<4x8x32xf32>
    %c0_142 = arith.constant 0 : index
    %c0_143 = arith.constant 0 : index
    %c0_144 = arith.constant 0 : index
    %240 = vector.load %arg17[%c0_142, %c0_143, %c0_144] : memref<2x1x32xf32, #tpu.memory_space<vmem>>, vector<1x1x32xf32>
    %241 = vector.shape_cast %240 : vector<1x1x32xf32> to vector<1x32xf32>
    %242 = vector.shape_cast %1 : vector<8x32xf32> to vector<1x8x32xf32>
    %243 = vector.shape_cast %242 : vector<1x8x32xf32> to vector<1x8x32xf32>
    %244 = vector.broadcast %243 : vector<1x8x32xf32> to vector<4x8x32xf32>
    %245 = vector.extract_strided_slice %235 {offsets = [0, 0, 0, 0], sizes = [1, 4, 32, 8], strides = [1, 1, 1, 1]} : vector<3x4x32x8xf32> to vector<1x4x32x8xf32>
    %246 = vector.shape_cast %245 : vector<1x4x32x8xf32> to vector<4x32x8xf32>
    "tpu.trace_start"() <{level = 10 : i32, message = "hmk,hkn->hmn"}> : () -> ()
    %cst_145 = arith.constant dense<0.000000e+00> : vector<4x8x8xf32>
    %247 = tpu.matmul %244, %246, %cst_145 {dimension_numbers = #tpu.dot_dimension_numbers<[2], [1], [1], [2], [0, 0, 0, 1, 1, 2], [0], [0]>} : vector<4x8x32xf32>, vector<4x32x8xf32>, vector<4x8x8xf32> -> vector<4x8x8xf32>
    "tpu.trace_stop"() : () -> ()
    %248 = vector.extract_strided_slice %237 {offsets = [0, 0, 0, 0], sizes = [1, 4, 1, 8], strides = [1, 1, 1, 1]} : vector<3x4x1x8xf32> to vector<1x4x1x8xf32>
    %249 = vector.shape_cast %248 : vector<1x4x1x8xf32> to vector<4x1x8xf32>
    %250 = vector.broadcast %249 : vector<4x1x8xf32> to vector<4x8x8xf32>
    %251 = arith.addf %247, %250 : vector<4x8x8xf32>
    %252 = vector.extract_strided_slice %235 {offsets = [1, 0, 0, 0], sizes = [1, 4, 32, 8], strides = [1, 1, 1, 1]} : vector<3x4x32x8xf32> to vector<1x4x32x8xf32>
    %253 = vector.shape_cast %252 : vector<1x4x32x8xf32> to vector<4x32x8xf32>
    "tpu.trace_start"() <{level = 10 : i32, message = "hmk,hkn->hmn"}> : () -> ()
    %cst_146 = arith.constant dense<0.000000e+00> : vector<4x8x8xf32>
    %254 = tpu.matmul %244, %253, %cst_146 {dimension_numbers = #tpu.dot_dimension_numbers<[2], [1], [1], [2], [0, 0, 0, 1, 1, 2], [0], [0]>} : vector<4x8x32xf32>, vector<4x32x8xf32>, vector<4x8x8xf32> -> vector<4x8x8xf32>
    "tpu.trace_stop"() : () -> ()
    %255 = vector.extract_strided_slice %237 {offsets = [1, 0, 0, 0], sizes = [1, 4, 1, 8], strides = [1, 1, 1, 1]} : vector<3x4x1x8xf32> to vector<1x4x1x8xf32>
    %256 = vector.shape_cast %255 : vector<1x4x1x8xf32> to vector<4x1x8xf32>
    %257 = vector.broadcast %256 : vector<4x1x8xf32> to vector<4x8x8xf32>
    %258 = arith.addf %254, %257 : vector<4x8x8xf32>
    %259 = vector.extract_strided_slice %235 {offsets = [2, 0, 0, 0], sizes = [1, 4, 32, 8], strides = [1, 1, 1, 1]} : vector<3x4x32x8xf32> to vector<1x4x32x8xf32>
    %260 = vector.shape_cast %259 : vector<1x4x32x8xf32> to vector<4x32x8xf32>
    "tpu.trace_start"() <{level = 10 : i32, message = "hmk,hkn->hmn"}> : () -> ()
    %cst_147 = arith.constant dense<0.000000e+00> : vector<4x8x8xf32>
    %261 = tpu.matmul %244, %260, %cst_147 {dimension_numbers = #tpu.dot_dimension_numbers<[2], [1], [1], [2], [0, 0, 0, 1, 1, 2], [0], [0]>} : vector<4x8x32xf32>, vector<4x32x8xf32>, vector<4x8x8xf32> -> vector<4x8x8xf32>
    "tpu.trace_stop"() : () -> ()
    %262 = vector.extract_strided_slice %237 {offsets = [2, 0, 0, 0], sizes = [1, 4, 1, 8], strides = [1, 1, 1, 1]} : vector<3x4x1x8xf32> to vector<1x4x1x8xf32>
    %263 = vector.shape_cast %262 : vector<1x4x1x8xf32> to vector<4x1x8xf32>
    %264 = vector.broadcast %263 : vector<4x1x8xf32> to vector<4x8x8xf32>
    %265 = arith.addf %261, %264 : vector<4x8x8xf32>
    %cst_148 = arith.constant 0.353553385 : f32
    %266 = vector.broadcast %cst_148 : f32 to vector<4x8x8xf32>
    %267 = arith.mulf %251, %266 : vector<4x8x8xf32>
    "tpu.trace_start"() <{level = 10 : i32, message = "hqd,hkd->hqk"}> : () -> ()
    %cst_149 = arith.constant dense<0.000000e+00> : vector<4x8x8xf32>
    %268 = tpu.matmul %267, %258, %cst_149 {dimension_numbers = #tpu.dot_dimension_numbers<[2], [2], [1], [1], [0, 0, 0, 1, 1, 1], [0], [0]>} : vector<4x8x8xf32>, vector<4x8x8xf32>, vector<4x8x8xf32> -> vector<4x8x8xf32>
    "tpu.trace_stop"() : () -> ()
    %cst_150 = arith.constant dense<0xFF800000> : vector<4x8xf32>
    %269 = vector.multi_reduction <maximumf>, %268, %cst_150 [2] : vector<4x8x8xf32> to vector<4x8xf32>
    %270 = vector.shape_cast %269 : vector<4x8xf32> to vector<4x8x1xf32>
    %271 = vector.broadcast %270 : vector<4x8x1xf32> to vector<4x8x8xf32>
    %272 = arith.subf %268, %271 : vector<4x8x8xf32>
    %273 = math.exp %272 : vector<4x8x8xf32>
    %cst_151 = arith.constant dense<0.000000e+00> : vector<4x8xf32>
    %274 = vector.multi_reduction <add>, %273, %cst_151 [2] : vector<4x8x8xf32> to vector<4x8xf32>
    %275 = vector.shape_cast %274 : vector<4x8xf32> to vector<4x8x1xf32>
    %276 = tpu.reciprocal %275 {approx = true} : vector<4x8x1xf32> -> vector<4x8x1xf32>
    %277 = vector.broadcast %276 : vector<4x8x1xf32> to vector<4x8x8xf32>
    %278 = arith.mulf %273, %277 : vector<4x8x8xf32>
    "tpu.trace_start"() <{level = 10 : i32, message = "hqk,hkd->hqd"}> : () -> ()
    %cst_152 = arith.constant dense<0.000000e+00> : vector<4x8x8xf32>
    %279 = tpu.matmul %278, %265, %cst_152 {dimension_numbers = #tpu.dot_dimension_numbers<[2], [1], [1], [2], [0, 0, 0, 1, 1, 2], [0], [0]>} : vector<4x8x8xf32>, vector<4x8x8xf32>, vector<4x8x8xf32> -> vector<4x8x8xf32>
    "tpu.trace_stop"() : () -> ()
    "tpu.trace_start"() <{level = 10 : i32, message = "hsd,hdo->hso"}> : () -> ()
    %cst_153 = arith.constant dense<0.000000e+00> : vector<4x8x32xf32>
    %280 = tpu.matmul %279, %239, %cst_153 {dimension_numbers = #tpu.dot_dimension_numbers<[2], [1], [1], [2], [0, 0, 0, 1, 1, 2], [0], [0]>} : vector<4x8x8xf32>, vector<4x8x32xf32>, vector<4x8x32xf32> -> vector<4x8x32xf32>
    "tpu.trace_stop"() : () -> ()
    %cst_154 = arith.constant dense<0.000000e+00> : vector<8x32xf32>
    %281 = vector.multi_reduction <add>, %280, %cst_154 [0] : vector<4x8x32xf32> to vector<8x32xf32>
    %282 = vector.broadcast %241 : vector<1x32xf32> to vector<8x32xf32>
    %283 = arith.addf %281, %282 : vector<8x32xf32>
    %284 = arith.addf %1, %283 : vector<8x32xf32>
    %c0_155 = arith.constant 0 : index
    %c0_156 = arith.constant 0 : index
    %c0_157 = arith.constant 0 : index
    %285 = vector.load %arg26[%c0_155, %c0_156, %c0_157] : memref<2x1x32xf32, #tpu.memory_space<vmem>>, vector<1x1x32xf32>
    %286 = vector.shape_cast %285 : vector<1x1x32xf32> to vector<1x32xf32>
    %c0_158 = arith.constant 0 : index
    %c0_159 = arith.constant 0 : index
    %c0_160 = arith.constant 0 : index
    %287 = vector.load %arg27[%c0_158, %c0_159, %c0_160] : memref<2x1x32xf32, #tpu.memory_space<vmem>>, vector<1x1x32xf32>
    %288 = vector.shape_cast %287 : vector<1x1x32xf32> to vector<1x32xf32>
    %cst_161 = arith.constant dense<0.000000e+00> : vector<8xf32>
    %289 = vector.multi_reduction <add>, %284, %cst_161 [1] : vector<8x32xf32> to vector<8xf32>
    %290 = vector.shape_cast %289 : vector<8xf32> to vector<8x1xf32>
    %cst_162 = arith.constant 3.200000e+01 : f32
    %291 = vector.broadcast %cst_162 : f32 to vector<8x1xf32>
    %292 = arith.divf %290, %291 : vector<8x1xf32>
    %293 = vector.broadcast %292 : vector<8x1xf32> to vector<8x32xf32>
    %294 = arith.subf %284, %293 : vector<8x32xf32>
    %295 = arith.mulf %294, %294 : vector<8x32xf32>
    %cst_163 = arith.constant dense<0.000000e+00> : vector<8xf32>
    %296 = vector.multi_reduction <add>, %295, %cst_163 [1] : vector<8x32xf32> to vector<8xf32>
    %297 = vector.shape_cast %296 : vector<8xf32> to vector<8x1xf32>
    %cst_164 = arith.constant 3.200000e+01 : f32
    %298 = vector.broadcast %cst_164 : f32 to vector<8x1xf32>
    %299 = arith.divf %297, %298 : vector<8x1xf32>
    %cst_165 = arith.constant 9.99999974E-6 : f32
    %300 = vector.broadcast %cst_165 : f32 to vector<8x1xf32>
    %301 = arith.addf %299, %300 : vector<8x1xf32>
    %302 = math.rsqrt %301 : vector<8x1xf32>
    %303 = vector.broadcast %302 : vector<8x1xf32> to vector<8x32xf32>
    %304 = arith.mulf %294, %303 : vector<8x32xf32>
    %305 = vector.broadcast %286 : vector<1x32xf32> to vector<8x32xf32>
    %306 = arith.mulf %304, %305 : vector<8x32xf32>
    %307 = vector.broadcast %288 : vector<1x32xf32> to vector<8x32xf32>
    %308 = arith.addf %306, %307 : vector<8x32xf32>
    %c0_166 = arith.constant 0 : index
    %c0_167 = arith.constant 0 : index
    %c0_168 = arith.constant 0 : index
    %c0_169 = arith.constant 0 : index
    %c0_170 = arith.constant 0 : index
    %309 = vector.load %arg18[%c0_166, %c0_167, %c0_168, %c0_169, %c0_170] : memref<2x3x4x32x8xf32, #tpu.memory_space<vmem>>, vector<1x3x4x32x8xf32>
    %310 = vector.shape_cast %309 : vector<1x3x4x32x8xf32> to vector<3x4x32x8xf32>
    %c0_171 = arith.constant 0 : index
    %c0_172 = arith.constant 0 : index
    %c0_173 = arith.constant 0 : index
    %c0_174 = arith.constant 0 : index
    %c0_175 = arith.constant 0 : index
    %311 = vector.load %arg19[%c0_171, %c0_172, %c0_173, %c0_174, %c0_175] : memref<2x3x4x1x8xf32, #tpu.memory_space<vmem>>, vector<1x3x4x1x8xf32>
    %312 = vector.shape_cast %311 : vector<1x3x4x1x8xf32> to vector<3x4x1x8xf32>
    %c0_176 = arith.constant 0 : index
    %c0_177 = arith.constant 0 : index
    %c0_178 = arith.constant 0 : index
    %c0_179 = arith.constant 0 : index
    %313 = vector.load %arg20[%c0_176, %c0_177, %c0_178, %c0_179] : memref<2x4x8x32xf32, #tpu.memory_space<vmem>>, vector<1x4x8x32xf32>
    %314 = vector.shape_cast %313 : vector<1x4x8x32xf32> to vector<4x8x32xf32>
    %c0_180 = arith.constant 0 : index
    %c0_181 = arith.constant 0 : index
    %c0_182 = arith.constant 0 : index
    %315 = vector.load %arg21[%c0_180, %c0_181, %c0_182] : memref<2x1x32xf32, #tpu.memory_space<vmem>>, vector<1x1x32xf32>
    %316 = vector.shape_cast %315 : vector<1x1x32xf32> to vector<1x32xf32>
    %317 = vector.shape_cast %308 : vector<8x32xf32> to vector<1x8x32xf32>
    %318 = vector.shape_cast %317 : vector<1x8x32xf32> to vector<1x8x32xf32>
    %319 = vector.broadcast %318 : vector<1x8x32xf32> to vector<4x8x32xf32>
    %320 = vector.shape_cast %233 : vector<8x32xf32> to vector<1x8x32xf32>
    %321 = vector.shape_cast %320 : vector<1x8x32xf32> to vector<1x8x32xf32>
    %322 = vector.broadcast %321 : vector<1x8x32xf32> to vector<4x8x32xf32>
    %323 = vector.extract_strided_slice %310 {offsets = [0, 0, 0, 0], sizes = [1, 4, 32, 8], strides = [1, 1, 1, 1]} : vector<3x4x32x8xf32> to vector<1x4x32x8xf32>
    %324 = vector.shape_cast %323 : vector<1x4x32x8xf32> to vector<4x32x8xf32>
    "tpu.trace_start"() <{level = 10 : i32, message = "hmk,hkn->hmn"}> : () -> ()
    %cst_183 = arith.constant dense<0.000000e+00> : vector<4x8x8xf32>
    %325 = tpu.matmul %319, %324, %cst_183 {dimension_numbers = #tpu.dot_dimension_numbers<[2], [1], [1], [2], [0, 0, 0, 1, 1, 2], [0], [0]>} : vector<4x8x32xf32>, vector<4x32x8xf32>, vector<4x8x8xf32> -> vector<4x8x8xf32>
    "tpu.trace_stop"() : () -> ()
    %326 = vector.extract_strided_slice %312 {offsets = [0, 0, 0, 0], sizes = [1, 4, 1, 8], strides = [1, 1, 1, 1]} : vector<3x4x1x8xf32> to vector<1x4x1x8xf32>
    %327 = vector.shape_cast %326 : vector<1x4x1x8xf32> to vector<4x1x8xf32>
    %328 = vector.broadcast %327 : vector<4x1x8xf32> to vector<4x8x8xf32>
    %329 = arith.addf %325, %328 : vector<4x8x8xf32>
    %330 = vector.extract_strided_slice %310 {offsets = [1, 0, 0, 0], sizes = [1, 4, 32, 8], strides = [1, 1, 1, 1]} : vector<3x4x32x8xf32> to vector<1x4x32x8xf32>
    %331 = vector.shape_cast %330 : vector<1x4x32x8xf32> to vector<4x32x8xf32>
    "tpu.trace_start"() <{level = 10 : i32, message = "hmk,hkn->hmn"}> : () -> ()
    %cst_184 = arith.constant dense<0.000000e+00> : vector<4x8x8xf32>
    %332 = tpu.matmul %322, %331, %cst_184 {dimension_numbers = #tpu.dot_dimension_numbers<[2], [1], [1], [2], [0, 0, 0, 1, 1, 2], [0], [0]>} : vector<4x8x32xf32>, vector<4x32x8xf32>, vector<4x8x8xf32> -> vector<4x8x8xf32>
    "tpu.trace_stop"() : () -> ()
    %333 = vector.extract_strided_slice %312 {offsets = [1, 0, 0, 0], sizes = [1, 4, 1, 8], strides = [1, 1, 1, 1]} : vector<3x4x1x8xf32> to vector<1x4x1x8xf32>
    %334 = vector.shape_cast %333 : vector<1x4x1x8xf32> to vector<4x1x8xf32>
    %335 = vector.broadcast %334 : vector<4x1x8xf32> to vector<4x8x8xf32>
    %336 = arith.addf %332, %335 : vector<4x8x8xf32>
    %337 = vector.extract_strided_slice %310 {offsets = [2, 0, 0, 0], sizes = [1, 4, 32, 8], strides = [1, 1, 1, 1]} : vector<3x4x32x8xf32> to vector<1x4x32x8xf32>
    %338 = vector.shape_cast %337 : vector<1x4x32x8xf32> to vector<4x32x8xf32>
    "tpu.trace_start"() <{level = 10 : i32, message = "hmk,hkn->hmn"}> : () -> ()
    %cst_185 = arith.constant dense<0.000000e+00> : vector<4x8x8xf32>
    %339 = tpu.matmul %322, %338, %cst_185 {dimension_numbers = #tpu.dot_dimension_numbers<[2], [1], [1], [2], [0, 0, 0, 1, 1, 2], [0], [0]>} : vector<4x8x32xf32>, vector<4x32x8xf32>, vector<4x8x8xf32> -> vector<4x8x8xf32>
    "tpu.trace_stop"() : () -> ()
    %340 = vector.extract_strided_slice %312 {offsets = [2, 0, 0, 0], sizes = [1, 4, 1, 8], strides = [1, 1, 1, 1]} : vector<3x4x1x8xf32> to vector<1x4x1x8xf32>
    %341 = vector.shape_cast %340 : vector<1x4x1x8xf32> to vector<4x1x8xf32>
    %342 = vector.broadcast %341 : vector<4x1x8xf32> to vector<4x8x8xf32>
    %343 = arith.addf %339, %342 : vector<4x8x8xf32>
    %cst_186 = arith.constant 0.353553385 : f32
    %344 = vector.broadcast %cst_186 : f32 to vector<4x8x8xf32>
    %345 = arith.mulf %329, %344 : vector<4x8x8xf32>
    "tpu.trace_start"() <{level = 10 : i32, message = "hqd,hkd->hqk"}> : () -> ()
    %cst_187 = arith.constant dense<0.000000e+00> : vector<4x8x8xf32>
    %346 = tpu.matmul %345, %336, %cst_187 {dimension_numbers = #tpu.dot_dimension_numbers<[2], [2], [1], [1], [0, 0, 0, 1, 1, 1], [0], [0]>} : vector<4x8x8xf32>, vector<4x8x8xf32>, vector<4x8x8xf32> -> vector<4x8x8xf32>
    "tpu.trace_stop"() : () -> ()
    %cst_188 = arith.constant dense<0xFF800000> : vector<4x8xf32>
    %347 = vector.multi_reduction <maximumf>, %346, %cst_188 [2] : vector<4x8x8xf32> to vector<4x8xf32>
    %348 = vector.shape_cast %347 : vector<4x8xf32> to vector<4x8x1xf32>
    %349 = vector.broadcast %348 : vector<4x8x1xf32> to vector<4x8x8xf32>
    %350 = arith.subf %346, %349 : vector<4x8x8xf32>
    %351 = math.exp %350 : vector<4x8x8xf32>
    %cst_189 = arith.constant dense<0.000000e+00> : vector<4x8xf32>
    %352 = vector.multi_reduction <add>, %351, %cst_189 [2] : vector<4x8x8xf32> to vector<4x8xf32>
    %353 = vector.shape_cast %352 : vector<4x8xf32> to vector<4x8x1xf32>
    %354 = tpu.reciprocal %353 {approx = true} : vector<4x8x1xf32> -> vector<4x8x1xf32>
    %355 = vector.broadcast %354 : vector<4x8x1xf32> to vector<4x8x8xf32>
    %356 = arith.mulf %351, %355 : vector<4x8x8xf32>
    "tpu.trace_start"() <{level = 10 : i32, message = "hqk,hkd->hqd"}> : () -> ()
    %cst_190 = arith.constant dense<0.000000e+00> : vector<4x8x8xf32>
    %357 = tpu.matmul %356, %343, %cst_190 {dimension_numbers = #tpu.dot_dimension_numbers<[2], [1], [1], [2], [0, 0, 0, 1, 1, 2], [0], [0]>} : vector<4x8x8xf32>, vector<4x8x8xf32>, vector<4x8x8xf32> -> vector<4x8x8xf32>
    "tpu.trace_stop"() : () -> ()
    "tpu.trace_start"() <{level = 10 : i32, message = "hsd,hdo->hso"}> : () -> ()
    %cst_191 = arith.constant dense<0.000000e+00> : vector<4x8x32xf32>
    %358 = tpu.matmul %357, %314, %cst_191 {dimension_numbers = #tpu.dot_dimension_numbers<[2], [1], [1], [2], [0, 0, 0, 1, 1, 2], [0], [0]>} : vector<4x8x8xf32>, vector<4x8x32xf32>, vector<4x8x32xf32> -> vector<4x8x32xf32>
    "tpu.trace_stop"() : () -> ()
    %cst_192 = arith.constant dense<0.000000e+00> : vector<8x32xf32>
    %359 = vector.multi_reduction <add>, %358, %cst_192 [0] : vector<4x8x32xf32> to vector<8x32xf32>
    %360 = vector.broadcast %316 : vector<1x32xf32> to vector<8x32xf32>
    %361 = arith.addf %359, %360 : vector<8x32xf32>
    %362 = arith.addf %308, %361 : vector<8x32xf32>
    %c0_193 = arith.constant 0 : index
    %c0_194 = arith.constant 0 : index
    %c0_195 = arith.constant 0 : index
    %363 = vector.load %arg28[%c0_193, %c0_194, %c0_195] : memref<2x1x32xf32, #tpu.memory_space<vmem>>, vector<1x1x32xf32>
    %364 = vector.shape_cast %363 : vector<1x1x32xf32> to vector<1x32xf32>
    %c0_196 = arith.constant 0 : index
    %c0_197 = arith.constant 0 : index
    %c0_198 = arith.constant 0 : index
    %365 = vector.load %arg29[%c0_196, %c0_197, %c0_198] : memref<2x1x32xf32, #tpu.memory_space<vmem>>, vector<1x1x32xf32>
    %366 = vector.shape_cast %365 : vector<1x1x32xf32> to vector<1x32xf32>
    %cst_199 = arith.constant dense<0.000000e+00> : vector<8xf32>
    %367 = vector.multi_reduction <add>, %362, %cst_199 [1] : vector<8x32xf32> to vector<8xf32>
    %368 = vector.shape_cast %367 : vector<8xf32> to vector<8x1xf32>
    %cst_200 = arith.constant 3.200000e+01 : f32
    %369 = vector.broadcast %cst_200 : f32 to vector<8x1xf32>
    %370 = arith.divf %368, %369 : vector<8x1xf32>
    %371 = vector.broadcast %370 : vector<8x1xf32> to vector<8x32xf32>
    %372 = arith.subf %362, %371 : vector<8x32xf32>
    %373 = arith.mulf %372, %372 : vector<8x32xf32>
    %cst_201 = arith.constant dense<0.000000e+00> : vector<8xf32>
    %374 = vector.multi_reduction <add>, %373, %cst_201 [1] : vector<8x32xf32> to vector<8xf32>
    %375 = vector.shape_cast %374 : vector<8xf32> to vector<8x1xf32>
    %cst_202 = arith.constant 3.200000e+01 : f32
    %376 = vector.broadcast %cst_202 : f32 to vector<8x1xf32>
    %377 = arith.divf %375, %376 : vector<8x1xf32>
    %cst_203 = arith.constant 9.99999974E-6 : f32
    %378 = vector.broadcast %cst_203 : f32 to vector<8x1xf32>
    %379 = arith.addf %377, %378 : vector<8x1xf32>
    %380 = math.rsqrt %379 : vector<8x1xf32>
    %381 = vector.broadcast %380 : vector<8x1xf32> to vector<8x32xf32>
    %382 = arith.mulf %372, %381 : vector<8x32xf32>
    %383 = vector.broadcast %364 : vector<1x32xf32> to vector<8x32xf32>
    %384 = arith.mulf %382, %383 : vector<8x32xf32>
    %385 = vector.broadcast %366 : vector<1x32xf32> to vector<8x32xf32>
    %386 = arith.addf %384, %385 : vector<8x32xf32>
    %c0_204 = arith.constant 0 : index
    %c0_205 = arith.constant 0 : index
    %c0_206 = arith.constant 0 : index
    %387 = vector.load %arg22[%c0_204, %c0_205, %c0_206] : memref<2x32x2048xf32, #tpu.memory_space<vmem>>, vector<1x32x2048xf32>
    %388 = vector.shape_cast %387 : vector<1x32x2048xf32> to vector<32x2048xf32>
    %c0_207 = arith.constant 0 : index
    %c0_208 = arith.constant 0 : index
    %c0_209 = arith.constant 0 : index
    %389 = vector.load %arg23[%c0_207, %c0_208, %c0_209] : memref<2x1x2048xf32, #tpu.memory_space<vmem>>, vector<1x1x2048xf32>
    %390 = vector.shape_cast %389 : vector<1x1x2048xf32> to vector<1x2048xf32>
    %c0_210 = arith.constant 0 : index
    %c0_211 = arith.constant 0 : index
    %c0_212 = arith.constant 0 : index
    %391 = vector.load %arg24[%c0_210, %c0_211, %c0_212] : memref<2x32x2048xf32, #tpu.memory_space<vmem>>, vector<1x32x2048xf32>
    %392 = vector.shape_cast %391 : vector<1x32x2048xf32> to vector<32x2048xf32>
    %c0_213 = arith.constant 0 : index
    %c0_214 = arith.constant 0 : index
    %c0_215 = arith.constant 0 : index
    %393 = vector.load %arg25[%c0_213, %c0_214, %c0_215] : memref<2x1x32xf32, #tpu.memory_space<vmem>>, vector<1x1x32xf32>
    %394 = vector.shape_cast %393 : vector<1x1x32xf32> to vector<1x32xf32>
    %cst_216 = arith.constant dense<0.000000e+00> : vector<8x2048xf32>
    %395 = tpu.matmul %386, %388, %cst_216 {dimension_numbers = #tpu.dot_dimension_numbers<[1], [0], [0], [1], [0, 0, 1, 1], [], []>} : vector<8x32xf32>, vector<32x2048xf32>, vector<8x2048xf32> -> vector<8x2048xf32>
    %396 = vector.broadcast %390 : vector<1x2048xf32> to vector<8x2048xf32>
    %397 = arith.addf %395, %396 : vector<8x2048xf32>
    %cst_217 = arith.constant 0.000000e+00 : f32
    %398 = vector.broadcast %cst_217 : f32 to vector<8x2048xf32>
    %399 = arith.maximumf %397, %398 : vector<8x2048xf32>
    "tpu.trace_start"() <{level = 10 : i32, message = "sf,of->so"}> : () -> ()
    %cst_218 = arith.constant dense<0.000000e+00> : vector<8x32xf32>
    %400 = tpu.matmul %399, %392, %cst_218 {dimension_numbers = #tpu.dot_dimension_numbers<[1], [1], [0], [0], [0, 0, 1, 0], [], []>} : vector<8x2048xf32>, vector<32x2048xf32>, vector<8x32xf32> -> vector<8x32xf32>
    "tpu.trace_stop"() : () -> ()
    %401 = vector.broadcast %394 : vector<1x32xf32> to vector<8x32xf32>
    %402 = arith.addf %400, %401 : vector<8x32xf32>
    %403 = arith.addf %386, %402 : vector<8x32xf32>
    %c0_219 = arith.constant 0 : index
    %c0_220 = arith.constant 0 : index
    %c0_221 = arith.constant 0 : index
    %404 = vector.load %arg30[%c0_219, %c0_220, %c0_221] : memref<2x1x32xf32, #tpu.memory_space<vmem>>, vector<1x1x32xf32>
    %405 = vector.shape_cast %404 : vector<1x1x32xf32> to vector<1x32xf32>
    %c0_222 = arith.constant 0 : index
    %c0_223 = arith.constant 0 : index
    %c0_224 = arith.constant 0 : index
    %406 = vector.load %arg31[%c0_222, %c0_223, %c0_224] : memref<2x1x32xf32, #tpu.memory_space<vmem>>, vector<1x1x32xf32>
    %407 = vector.shape_cast %406 : vector<1x1x32xf32> to vector<1x32xf32>
    %cst_225 = arith.constant dense<0.000000e+00> : vector<8xf32>
    %408 = vector.multi_reduction <add>, %403, %cst_225 [1] : vector<8x32xf32> to vector<8xf32>
    %409 = vector.shape_cast %408 : vector<8xf32> to vector<8x1xf32>
    %cst_226 = arith.constant 3.200000e+01 : f32
    %410 = vector.broadcast %cst_226 : f32 to vector<8x1xf32>
    %411 = arith.divf %409, %410 : vector<8x1xf32>
    %412 = vector.broadcast %411 : vector<8x1xf32> to vector<8x32xf32>
    %413 = arith.subf %403, %412 : vector<8x32xf32>
    %414 = arith.mulf %413, %413 : vector<8x32xf32>
    %cst_227 = arith.constant dense<0.000000e+00> : vector<8xf32>
    %415 = vector.multi_reduction <add>, %414, %cst_227 [1] : vector<8x32xf32> to vector<8xf32>
    %416 = vector.shape_cast %415 : vector<8xf32> to vector<8x1xf32>
    %cst_228 = arith.constant 3.200000e+01 : f32
    %417 = vector.broadcast %cst_228 : f32 to vector<8x1xf32>
    %418 = arith.divf %416, %417 : vector<8x1xf32>
    %cst_229 = arith.constant 9.99999974E-6 : f32
    %419 = vector.broadcast %cst_229 : f32 to vector<8x1xf32>
    %420 = arith.addf %418, %419 : vector<8x1xf32>
    %421 = math.rsqrt %420 : vector<8x1xf32>
    %422 = vector.broadcast %421 : vector<8x1xf32> to vector<8x32xf32>
    %423 = arith.mulf %413, %422 : vector<8x32xf32>
    %424 = vector.broadcast %405 : vector<1x32xf32> to vector<8x32xf32>
    %425 = arith.mulf %423, %424 : vector<8x32xf32>
    %426 = vector.broadcast %407 : vector<1x32xf32> to vector<8x32xf32>
    %427 = arith.addf %425, %426 : vector<8x32xf32>
    %c1_230 = arith.constant 1 : index
    %c0_231 = arith.constant 0 : index
    %c0_232 = arith.constant 0 : index
    %c0_233 = arith.constant 0 : index
    %c0_234 = arith.constant 0 : index
    %428 = vector.load %arg14[%c1_230, %c0_231, %c0_232, %c0_233, %c0_234] : memref<2x3x4x32x8xf32, #tpu.memory_space<vmem>>, vector<1x3x4x32x8xf32>
    %429 = vector.shape_cast %428 : vector<1x3x4x32x8xf32> to vector<3x4x32x8xf32>
    %c1_235 = arith.constant 1 : index
    %c0_236 = arith.constant 0 : index
    %c0_237 = arith.constant 0 : index
    %c0_238 = arith.constant 0 : index
    %c0_239 = arith.constant 0 : index
    %430 = vector.load %arg15[%c1_235, %c0_236, %c0_237, %c0_238, %c0_239] : memref<2x3x4x1x8xf32, #tpu.memory_space<vmem>>, vector<1x3x4x1x8xf32>
    %431 = vector.shape_cast %430 : vector<1x3x4x1x8xf32> to vector<3x4x1x8xf32>
    %c1_240 = arith.constant 1 : index
    %c0_241 = arith.constant 0 : index
    %c0_242 = arith.constant 0 : index
    %c0_243 = arith.constant 0 : index
    %432 = vector.load %arg16[%c1_240, %c0_241, %c0_242, %c0_243] : memref<2x4x8x32xf32, #tpu.memory_space<vmem>>, vector<1x4x8x32xf32>
    %433 = vector.shape_cast %432 : vector<1x4x8x32xf32> to vector<4x8x32xf32>
    %c1_244 = arith.constant 1 : index
    %c0_245 = arith.constant 0 : index
    %c0_246 = arith.constant 0 : index
    %434 = vector.load %arg17[%c1_244, %c0_245, %c0_246] : memref<2x1x32xf32, #tpu.memory_space<vmem>>, vector<1x1x32xf32>
    %435 = vector.shape_cast %434 : vector<1x1x32xf32> to vector<1x32xf32>
    %436 = vector.shape_cast %427 : vector<8x32xf32> to vector<1x8x32xf32>
    %437 = vector.shape_cast %436 : vector<1x8x32xf32> to vector<1x8x32xf32>
    %438 = vector.broadcast %437 : vector<1x8x32xf32> to vector<4x8x32xf32>
    %439 = vector.extract_strided_slice %429 {offsets = [0, 0, 0, 0], sizes = [1, 4, 32, 8], strides = [1, 1, 1, 1]} : vector<3x4x32x8xf32> to vector<1x4x32x8xf32>
    %440 = vector.shape_cast %439 : vector<1x4x32x8xf32> to vector<4x32x8xf32>
    "tpu.trace_start"() <{level = 10 : i32, message = "hmk,hkn->hmn"}> : () -> ()
    %cst_247 = arith.constant dense<0.000000e+00> : vector<4x8x8xf32>
    %441 = tpu.matmul %438, %440, %cst_247 {dimension_numbers = #tpu.dot_dimension_numbers<[2], [1], [1], [2], [0, 0, 0, 1, 1, 2], [0], [0]>} : vector<4x8x32xf32>, vector<4x32x8xf32>, vector<4x8x8xf32> -> vector<4x8x8xf32>
    "tpu.trace_stop"() : () -> ()
    %442 = vector.extract_strided_slice %431 {offsets = [0, 0, 0, 0], sizes = [1, 4, 1, 8], strides = [1, 1, 1, 1]} : vector<3x4x1x8xf32> to vector<1x4x1x8xf32>
    %443 = vector.shape_cast %442 : vector<1x4x1x8xf32> to vector<4x1x8xf32>
    %444 = vector.broadcast %443 : vector<4x1x8xf32> to vector<4x8x8xf32>
    %445 = arith.addf %441, %444 : vector<4x8x8xf32>
    %446 = vector.extract_strided_slice %429 {offsets = [1, 0, 0, 0], sizes = [1, 4, 32, 8], strides = [1, 1, 1, 1]} : vector<3x4x32x8xf32> to vector<1x4x32x8xf32>
    %447 = vector.shape_cast %446 : vector<1x4x32x8xf32> to vector<4x32x8xf32>
    "tpu.trace_start"() <{level = 10 : i32, message = "hmk,hkn->hmn"}> : () -> ()
    %cst_248 = arith.constant dense<0.000000e+00> : vector<4x8x8xf32>
    %448 = tpu.matmul %438, %447, %cst_248 {dimension_numbers = #tpu.dot_dimension_numbers<[2], [1], [1], [2], [0, 0, 0, 1, 1, 2], [0], [0]>} : vector<4x8x32xf32>, vector<4x32x8xf32>, vector<4x8x8xf32> -> vector<4x8x8xf32>
    "tpu.trace_stop"() : () -> ()
    %449 = vector.extract_strided_slice %431 {offsets = [1, 0, 0, 0], sizes = [1, 4, 1, 8], strides = [1, 1, 1, 1]} : vector<3x4x1x8xf32> to vector<1x4x1x8xf32>
    %450 = vector.shape_cast %449 : vector<1x4x1x8xf32> to vector<4x1x8xf32>
    %451 = vector.broadcast %450 : vector<4x1x8xf32> to vector<4x8x8xf32>
    %452 = arith.addf %448, %451 : vector<4x8x8xf32>
    %453 = vector.extract_strided_slice %429 {offsets = [2, 0, 0, 0], sizes = [1, 4, 32, 8], strides = [1, 1, 1, 1]} : vector<3x4x32x8xf32> to vector<1x4x32x8xf32>
    %454 = vector.shape_cast %453 : vector<1x4x32x8xf32> to vector<4x32x8xf32>
    "tpu.trace_start"() <{level = 10 : i32, message = "hmk,hkn->hmn"}> : () -> ()
    %cst_249 = arith.constant dense<0.000000e+00> : vector<4x8x8xf32>
    %455 = tpu.matmul %438, %454, %cst_249 {dimension_numbers = #tpu.dot_dimension_numbers<[2], [1], [1], [2], [0, 0, 0, 1, 1, 2], [0], [0]>} : vector<4x8x32xf32>, vector<4x32x8xf32>, vector<4x8x8xf32> -> vector<4x8x8xf32>
    "tpu.trace_stop"() : () -> ()
    %456 = vector.extract_strided_slice %431 {offsets = [2, 0, 0, 0], sizes = [1, 4, 1, 8], strides = [1, 1, 1, 1]} : vector<3x4x1x8xf32> to vector<1x4x1x8xf32>
    %457 = vector.shape_cast %456 : vector<1x4x1x8xf32> to vector<4x1x8xf32>
    %458 = vector.broadcast %457 : vector<4x1x8xf32> to vector<4x8x8xf32>
    %459 = arith.addf %455, %458 : vector<4x8x8xf32>
    %cst_250 = arith.constant 0.353553385 : f32
    %460 = vector.broadcast %cst_250 : f32 to vector<4x8x8xf32>
    %461 = arith.mulf %445, %460 : vector<4x8x8xf32>
    "tpu.trace_start"() <{level = 10 : i32, message = "hqd,hkd->hqk"}> : () -> ()
    %cst_251 = arith.constant dense<0.000000e+00> : vector<4x8x8xf32>
    %462 = tpu.matmul %461, %452, %cst_251 {dimension_numbers = #tpu.dot_dimension_numbers<[2], [2], [1], [1], [0, 0, 0, 1, 1, 1], [0], [0]>} : vector<4x8x8xf32>, vector<4x8x8xf32>, vector<4x8x8xf32> -> vector<4x8x8xf32>
    "tpu.trace_stop"() : () -> ()
    %cst_252 = arith.constant dense<0xFF800000> : vector<4x8xf32>
    %463 = vector.multi_reduction <maximumf>, %462, %cst_252 [2] : vector<4x8x8xf32> to vector<4x8xf32>
    %464 = vector.shape_cast %463 : vector<4x8xf32> to vector<4x8x1xf32>
    %465 = vector.broadcast %464 : vector<4x8x1xf32> to vector<4x8x8xf32>
    %466 = arith.subf %462, %465 : vector<4x8x8xf32>
    %467 = math.exp %466 : vector<4x8x8xf32>
    %cst_253 = arith.constant dense<0.000000e+00> : vector<4x8xf32>
    %468 = vector.multi_reduction <add>, %467, %cst_253 [2] : vector<4x8x8xf32> to vector<4x8xf32>
    %469 = vector.shape_cast %468 : vector<4x8xf32> to vector<4x8x1xf32>
    %470 = tpu.reciprocal %469 {approx = true} : vector<4x8x1xf32> -> vector<4x8x1xf32>
    %471 = vector.broadcast %470 : vector<4x8x1xf32> to vector<4x8x8xf32>
    %472 = arith.mulf %467, %471 : vector<4x8x8xf32>
    "tpu.trace_start"() <{level = 10 : i32, message = "hqk,hkd->hqd"}> : () -> ()
    %cst_254 = arith.constant dense<0.000000e+00> : vector<4x8x8xf32>
    %473 = tpu.matmul %472, %459, %cst_254 {dimension_numbers = #tpu.dot_dimension_numbers<[2], [1], [1], [2], [0, 0, 0, 1, 1, 2], [0], [0]>} : vector<4x8x8xf32>, vector<4x8x8xf32>, vector<4x8x8xf32> -> vector<4x8x8xf32>
    "tpu.trace_stop"() : () -> ()
    "tpu.trace_start"() <{level = 10 : i32, message = "hsd,hdo->hso"}> : () -> ()
    %cst_255 = arith.constant dense<0.000000e+00> : vector<4x8x32xf32>
    %474 = tpu.matmul %473, %433, %cst_255 {dimension_numbers = #tpu.dot_dimension_numbers<[2], [1], [1], [2], [0, 0, 0, 1, 1, 2], [0], [0]>} : vector<4x8x8xf32>, vector<4x8x32xf32>, vector<4x8x32xf32> -> vector<4x8x32xf32>
    "tpu.trace_stop"() : () -> ()
    %cst_256 = arith.constant dense<0.000000e+00> : vector<8x32xf32>
    %475 = vector.multi_reduction <add>, %474, %cst_256 [0] : vector<4x8x32xf32> to vector<8x32xf32>
    %476 = vector.broadcast %435 : vector<1x32xf32> to vector<8x32xf32>
    %477 = arith.addf %475, %476 : vector<8x32xf32>
    %478 = arith.addf %427, %477 : vector<8x32xf32>
    %c1_257 = arith.constant 1 : index
    %c0_258 = arith.constant 0 : index
    %c0_259 = arith.constant 0 : index
    %479 = vector.load %arg26[%c1_257, %c0_258, %c0_259] : memref<2x1x32xf32, #tpu.memory_space<vmem>>, vector<1x1x32xf32>
    %480 = vector.shape_cast %479 : vector<1x1x32xf32> to vector<1x32xf32>
    %c1_260 = arith.constant 1 : index
    %c0_261 = arith.constant 0 : index
    %c0_262 = arith.constant 0 : index
    %481 = vector.load %arg27[%c1_260, %c0_261, %c0_262] : memref<2x1x32xf32, #tpu.memory_space<vmem>>, vector<1x1x32xf32>
    %482 = vector.shape_cast %481 : vector<1x1x32xf32> to vector<1x32xf32>
    %cst_263 = arith.constant dense<0.000000e+00> : vector<8xf32>
    %483 = vector.multi_reduction <add>, %478, %cst_263 [1] : vector<8x32xf32> to vector<8xf32>
    %484 = vector.shape_cast %483 : vector<8xf32> to vector<8x1xf32>
    %cst_264 = arith.constant 3.200000e+01 : f32
    %485 = vector.broadcast %cst_264 : f32 to vector<8x1xf32>
    %486 = arith.divf %484, %485 : vector<8x1xf32>
    %487 = vector.broadcast %486 : vector<8x1xf32> to vector<8x32xf32>
    %488 = arith.subf %478, %487 : vector<8x32xf32>
    %489 = arith.mulf %488, %488 : vector<8x32xf32>
    %cst_265 = arith.constant dense<0.000000e+00> : vector<8xf32>
    %490 = vector.multi_reduction <add>, %489, %cst_265 [1] : vector<8x32xf32> to vector<8xf32>
    %491 = vector.shape_cast %490 : vector<8xf32> to vector<8x1xf32>
    %cst_266 = arith.constant 3.200000e+01 : f32
    %492 = vector.broadcast %cst_266 : f32 to vector<8x1xf32>
    %493 = arith.divf %491, %492 : vector<8x1xf32>
    %cst_267 = arith.constant 9.99999974E-6 : f32
    %494 = vector.broadcast %cst_267 : f32 to vector<8x1xf32>
    %495 = arith.addf %493, %494 : vector<8x1xf32>
    %496 = math.rsqrt %495 : vector<8x1xf32>
    %497 = vector.broadcast %496 : vector<8x1xf32> to vector<8x32xf32>
    %498 = arith.mulf %488, %497 : vector<8x32xf32>
    %499 = vector.broadcast %480 : vector<1x32xf32> to vector<8x32xf32>
    %500 = arith.mulf %498, %499 : vector<8x32xf32>
    %501 = vector.broadcast %482 : vector<1x32xf32> to vector<8x32xf32>
    %502 = arith.addf %500, %501 : vector<8x32xf32>
    %c1_268 = arith.constant 1 : index
    %c0_269 = arith.constant 0 : index
    %c0_270 = arith.constant 0 : index
    %c0_271 = arith.constant 0 : index
    %c0_272 = arith.constant 0 : index
    %503 = vector.load %arg18[%c1_268, %c0_269, %c0_270, %c0_271, %c0_272] : memref<2x3x4x32x8xf32, #tpu.memory_space<vmem>>, vector<1x3x4x32x8xf32>
    %504 = vector.shape_cast %503 : vector<1x3x4x32x8xf32> to vector<3x4x32x8xf32>
    %c1_273 = arith.constant 1 : index
    %c0_274 = arith.constant 0 : index
    %c0_275 = arith.constant 0 : index
    %c0_276 = arith.constant 0 : index
    %c0_277 = arith.constant 0 : index
    %505 = vector.load %arg19[%c1_273, %c0_274, %c0_275, %c0_276, %c0_277] : memref<2x3x4x1x8xf32, #tpu.memory_space<vmem>>, vector<1x3x4x1x8xf32>
    %506 = vector.shape_cast %505 : vector<1x3x4x1x8xf32> to vector<3x4x1x8xf32>
    %c1_278 = arith.constant 1 : index
    %c0_279 = arith.constant 0 : index
    %c0_280 = arith.constant 0 : index
    %c0_281 = arith.constant 0 : index
    %507 = vector.load %arg20[%c1_278, %c0_279, %c0_280, %c0_281] : memref<2x4x8x32xf32, #tpu.memory_space<vmem>>, vector<1x4x8x32xf32>
    %508 = vector.shape_cast %507 : vector<1x4x8x32xf32> to vector<4x8x32xf32>
    %c1_282 = arith.constant 1 : index
    %c0_283 = arith.constant 0 : index
    %c0_284 = arith.constant 0 : index
    %509 = vector.load %arg21[%c1_282, %c0_283, %c0_284] : memref<2x1x32xf32, #tpu.memory_space<vmem>>, vector<1x1x32xf32>
    %510 = vector.shape_cast %509 : vector<1x1x32xf32> to vector<1x32xf32>
    %511 = vector.shape_cast %502 : vector<8x32xf32> to vector<1x8x32xf32>
    %512 = vector.shape_cast %511 : vector<1x8x32xf32> to vector<1x8x32xf32>
    %513 = vector.broadcast %512 : vector<1x8x32xf32> to vector<4x8x32xf32>
    %514 = vector.shape_cast %233 : vector<8x32xf32> to vector<1x8x32xf32>
    %515 = vector.shape_cast %514 : vector<1x8x32xf32> to vector<1x8x32xf32>
    %516 = vector.broadcast %515 : vector<1x8x32xf32> to vector<4x8x32xf32>
    %517 = vector.extract_strided_slice %504 {offsets = [0, 0, 0, 0], sizes = [1, 4, 32, 8], strides = [1, 1, 1, 1]} : vector<3x4x32x8xf32> to vector<1x4x32x8xf32>
    %518 = vector.shape_cast %517 : vector<1x4x32x8xf32> to vector<4x32x8xf32>
    "tpu.trace_start"() <{level = 10 : i32, message = "hmk,hkn->hmn"}> : () -> ()
    %cst_285 = arith.constant dense<0.000000e+00> : vector<4x8x8xf32>
    %519 = tpu.matmul %513, %518, %cst_285 {dimension_numbers = #tpu.dot_dimension_numbers<[2], [1], [1], [2], [0, 0, 0, 1, 1, 2], [0], [0]>} : vector<4x8x32xf32>, vector<4x32x8xf32>, vector<4x8x8xf32> -> vector<4x8x8xf32>
    "tpu.trace_stop"() : () -> ()
    %520 = vector.extract_strided_slice %506 {offsets = [0, 0, 0, 0], sizes = [1, 4, 1, 8], strides = [1, 1, 1, 1]} : vector<3x4x1x8xf32> to vector<1x4x1x8xf32>
    %521 = vector.shape_cast %520 : vector<1x4x1x8xf32> to vector<4x1x8xf32>
    %522 = vector.broadcast %521 : vector<4x1x8xf32> to vector<4x8x8xf32>
    %523 = arith.addf %519, %522 : vector<4x8x8xf32>
    %524 = vector.extract_strided_slice %504 {offsets = [1, 0, 0, 0], sizes = [1, 4, 32, 8], strides = [1, 1, 1, 1]} : vector<3x4x32x8xf32> to vector<1x4x32x8xf32>
    %525 = vector.shape_cast %524 : vector<1x4x32x8xf32> to vector<4x32x8xf32>
    "tpu.trace_start"() <{level = 10 : i32, message = "hmk,hkn->hmn"}> : () -> ()
    %cst_286 = arith.constant dense<0.000000e+00> : vector<4x8x8xf32>
    %526 = tpu.matmul %516, %525, %cst_286 {dimension_numbers = #tpu.dot_dimension_numbers<[2], [1], [1], [2], [0, 0, 0, 1, 1, 2], [0], [0]>} : vector<4x8x32xf32>, vector<4x32x8xf32>, vector<4x8x8xf32> -> vector<4x8x8xf32>
    "tpu.trace_stop"() : () -> ()
    %527 = vector.extract_strided_slice %506 {offsets = [1, 0, 0, 0], sizes = [1, 4, 1, 8], strides = [1, 1, 1, 1]} : vector<3x4x1x8xf32> to vector<1x4x1x8xf32>
    %528 = vector.shape_cast %527 : vector<1x4x1x8xf32> to vector<4x1x8xf32>
    %529 = vector.broadcast %528 : vector<4x1x8xf32> to vector<4x8x8xf32>
    %530 = arith.addf %526, %529 : vector<4x8x8xf32>
    %531 = vector.extract_strided_slice %504 {offsets = [2, 0, 0, 0], sizes = [1, 4, 32, 8], strides = [1, 1, 1, 1]} : vector<3x4x32x8xf32> to vector<1x4x32x8xf32>
    %532 = vector.shape_cast %531 : vector<1x4x32x8xf32> to vector<4x32x8xf32>
    "tpu.trace_start"() <{level = 10 : i32, message = "hmk,hkn->hmn"}> : () -> ()
    %cst_287 = arith.constant dense<0.000000e+00> : vector<4x8x8xf32>
    %533 = tpu.matmul %516, %532, %cst_287 {dimension_numbers = #tpu.dot_dimension_numbers<[2], [1], [1], [2], [0, 0, 0, 1, 1, 2], [0], [0]>} : vector<4x8x32xf32>, vector<4x32x8xf32>, vector<4x8x8xf32> -> vector<4x8x8xf32>
    "tpu.trace_stop"() : () -> ()
    %534 = vector.extract_strided_slice %506 {offsets = [2, 0, 0, 0], sizes = [1, 4, 1, 8], strides = [1, 1, 1, 1]} : vector<3x4x1x8xf32> to vector<1x4x1x8xf32>
    %535 = vector.shape_cast %534 : vector<1x4x1x8xf32> to vector<4x1x8xf32>
    %536 = vector.broadcast %535 : vector<4x1x8xf32> to vector<4x8x8xf32>
    %537 = arith.addf %533, %536 : vector<4x8x8xf32>
    %cst_288 = arith.constant 0.353553385 : f32
    %538 = vector.broadcast %cst_288 : f32 to vector<4x8x8xf32>
    %539 = arith.mulf %523, %538 : vector<4x8x8xf32>
    "tpu.trace_start"() <{level = 10 : i32, message = "hqd,hkd->hqk"}> : () -> ()
    %cst_289 = arith.constant dense<0.000000e+00> : vector<4x8x8xf32>
    %540 = tpu.matmul %539, %530, %cst_289 {dimension_numbers = #tpu.dot_dimension_numbers<[2], [2], [1], [1], [0, 0, 0, 1, 1, 1], [0], [0]>} : vector<4x8x8xf32>, vector<4x8x8xf32>, vector<4x8x8xf32> -> vector<4x8x8xf32>
    "tpu.trace_stop"() : () -> ()
    %cst_290 = arith.constant dense<0xFF800000> : vector<4x8xf32>
    %541 = vector.multi_reduction <maximumf>, %540, %cst_290 [2] : vector<4x8x8xf32> to vector<4x8xf32>
    %542 = vector.shape_cast %541 : vector<4x8xf32> to vector<4x8x1xf32>
    %543 = vector.broadcast %542 : vector<4x8x1xf32> to vector<4x8x8xf32>
    %544 = arith.subf %540, %543 : vector<4x8x8xf32>
    %545 = math.exp %544 : vector<4x8x8xf32>
    %cst_291 = arith.constant dense<0.000000e+00> : vector<4x8xf32>
    %546 = vector.multi_reduction <add>, %545, %cst_291 [2] : vector<4x8x8xf32> to vector<4x8xf32>
    %547 = vector.shape_cast %546 : vector<4x8xf32> to vector<4x8x1xf32>
    %548 = tpu.reciprocal %547 {approx = true} : vector<4x8x1xf32> -> vector<4x8x1xf32>
    %549 = vector.broadcast %548 : vector<4x8x1xf32> to vector<4x8x8xf32>
    %550 = arith.mulf %545, %549 : vector<4x8x8xf32>
    "tpu.trace_start"() <{level = 10 : i32, message = "hqk,hkd->hqd"}> : () -> ()
    %cst_292 = arith.constant dense<0.000000e+00> : vector<4x8x8xf32>
    %551 = tpu.matmul %550, %537, %cst_292 {dimension_numbers = #tpu.dot_dimension_numbers<[2], [1], [1], [2], [0, 0, 0, 1, 1, 2], [0], [0]>} : vector<4x8x8xf32>, vector<4x8x8xf32>, vector<4x8x8xf32> -> vector<4x8x8xf32>
    "tpu.trace_stop"() : () -> ()
    "tpu.trace_start"() <{level = 10 : i32, message = "hsd,hdo->hso"}> : () -> ()
    %cst_293 = arith.constant dense<0.000000e+00> : vector<4x8x32xf32>
    %552 = tpu.matmul %551, %508, %cst_293 {dimension_numbers = #tpu.dot_dimension_numbers<[2], [1], [1], [2], [0, 0, 0, 1, 1, 2], [0], [0]>} : vector<4x8x8xf32>, vector<4x8x32xf32>, vector<4x8x32xf32> -> vector<4x8x32xf32>
    "tpu.trace_stop"() : () -> ()
    %cst_294 = arith.constant dense<0.000000e+00> : vector<8x32xf32>
    %553 = vector.multi_reduction <add>, %552, %cst_294 [0] : vector<4x8x32xf32> to vector<8x32xf32>
    %554 = vector.broadcast %510 : vector<1x32xf32> to vector<8x32xf32>
    %555 = arith.addf %553, %554 : vector<8x32xf32>
    %556 = arith.addf %502, %555 : vector<8x32xf32>
    %c1_295 = arith.constant 1 : index
    %c0_296 = arith.constant 0 : index
    %c0_297 = arith.constant 0 : index
    %557 = vector.load %arg28[%c1_295, %c0_296, %c0_297] : memref<2x1x32xf32, #tpu.memory_space<vmem>>, vector<1x1x32xf32>
    %558 = vector.shape_cast %557 : vector<1x1x32xf32> to vector<1x32xf32>
    %c1_298 = arith.constant 1 : index
    %c0_299 = arith.constant 0 : index
    %c0_300 = arith.constant 0 : index
    %559 = vector.load %arg29[%c1_298, %c0_299, %c0_300] : memref<2x1x32xf32, #tpu.memory_space<vmem>>, vector<1x1x32xf32>
    %560 = vector.shape_cast %559 : vector<1x1x32xf32> to vector<1x32xf32>
    %cst_301 = arith.constant dense<0.000000e+00> : vector<8xf32>
    %561 = vector.multi_reduction <add>, %556, %cst_301 [1] : vector<8x32xf32> to vector<8xf32>
    %562 = vector.shape_cast %561 : vector<8xf32> to vector<8x1xf32>
    %cst_302 = arith.constant 3.200000e+01 : f32
    %563 = vector.broadcast %cst_302 : f32 to vector<8x1xf32>
    %564 = arith.divf %562, %563 : vector<8x1xf32>
    %565 = vector.broadcast %564 : vector<8x1xf32> to vector<8x32xf32>
    %566 = arith.subf %556, %565 : vector<8x32xf32>
    %567 = arith.mulf %566, %566 : vector<8x32xf32>
    %cst_303 = arith.constant dense<0.000000e+00> : vector<8xf32>
    %568 = vector.multi_reduction <add>, %567, %cst_303 [1] : vector<8x32xf32> to vector<8xf32>
    %569 = vector.shape_cast %568 : vector<8xf32> to vector<8x1xf32>
    %cst_304 = arith.constant 3.200000e+01 : f32
    %570 = vector.broadcast %cst_304 : f32 to vector<8x1xf32>
    %571 = arith.divf %569, %570 : vector<8x1xf32>
    %cst_305 = arith.constant 9.99999974E-6 : f32
    %572 = vector.broadcast %cst_305 : f32 to vector<8x1xf32>
    %573 = arith.addf %571, %572 : vector<8x1xf32>
    %574 = math.rsqrt %573 : vector<8x1xf32>
    %575 = vector.broadcast %574 : vector<8x1xf32> to vector<8x32xf32>
    %576 = arith.mulf %566, %575 : vector<8x32xf32>
    %577 = vector.broadcast %558 : vector<1x32xf32> to vector<8x32xf32>
    %578 = arith.mulf %576, %577 : vector<8x32xf32>
    %579 = vector.broadcast %560 : vector<1x32xf32> to vector<8x32xf32>
    %580 = arith.addf %578, %579 : vector<8x32xf32>
    %c1_306 = arith.constant 1 : index
    %c0_307 = arith.constant 0 : index
    %c0_308 = arith.constant 0 : index
    %581 = vector.load %arg22[%c1_306, %c0_307, %c0_308] : memref<2x32x2048xf32, #tpu.memory_space<vmem>>, vector<1x32x2048xf32>
    %582 = vector.shape_cast %581 : vector<1x32x2048xf32> to vector<32x2048xf32>
    %c1_309 = arith.constant 1 : index
    %c0_310 = arith.constant 0 : index
    %c0_311 = arith.constant 0 : index
    %583 = vector.load %arg23[%c1_309, %c0_310, %c0_311] : memref<2x1x2048xf32, #tpu.memory_space<vmem>>, vector<1x1x2048xf32>
    %584 = vector.shape_cast %583 : vector<1x1x2048xf32> to vector<1x2048xf32>
    %c1_312 = arith.constant 1 : index
    %c0_313 = arith.constant 0 : index
    %c0_314 = arith.constant 0 : index
    %585 = vector.load %arg24[%c1_312, %c0_313, %c0_314] : memref<2x32x2048xf32, #tpu.memory_space<vmem>>, vector<1x32x2048xf32>
    %586 = vector.shape_cast %585 : vector<1x32x2048xf32> to vector<32x2048xf32>
    %c1_315 = arith.constant 1 : index
    %c0_316 = arith.constant 0 : index
    %c0_317 = arith.constant 0 : index
    %587 = vector.load %arg25[%c1_315, %c0_316, %c0_317] : memref<2x1x32xf32, #tpu.memory_space<vmem>>, vector<1x1x32xf32>
    %588 = vector.shape_cast %587 : vector<1x1x32xf32> to vector<1x32xf32>
    %cst_318 = arith.constant dense<0.000000e+00> : vector<8x2048xf32>
    %589 = tpu.matmul %580, %582, %cst_318 {dimension_numbers = #tpu.dot_dimension_numbers<[1], [0], [0], [1], [0, 0, 1, 1], [], []>} : vector<8x32xf32>, vector<32x2048xf32>, vector<8x2048xf32> -> vector<8x2048xf32>
    %590 = vector.broadcast %584 : vector<1x2048xf32> to vector<8x2048xf32>
    %591 = arith.addf %589, %590 : vector<8x2048xf32>
    %cst_319 = arith.constant 0.000000e+00 : f32
    %592 = vector.broadcast %cst_319 : f32 to vector<8x2048xf32>
    %593 = arith.maximumf %591, %592 : vector<8x2048xf32>
    "tpu.trace_start"() <{level = 10 : i32, message = "sf,of->so"}> : () -> ()
    %cst_320 = arith.constant dense<0.000000e+00> : vector<8x32xf32>
    %594 = tpu.matmul %593, %586, %cst_320 {dimension_numbers = #tpu.dot_dimension_numbers<[1], [1], [0], [0], [0, 0, 1, 0], [], []>} : vector<8x2048xf32>, vector<32x2048xf32>, vector<8x32xf32> -> vector<8x32xf32>
    "tpu.trace_stop"() : () -> ()
    %595 = vector.broadcast %588 : vector<1x32xf32> to vector<8x32xf32>
    %596 = arith.addf %594, %595 : vector<8x32xf32>
    %597 = arith.addf %580, %596 : vector<8x32xf32>
    %c1_321 = arith.constant 1 : index
    %c0_322 = arith.constant 0 : index
    %c0_323 = arith.constant 0 : index
    %598 = vector.load %arg30[%c1_321, %c0_322, %c0_323] : memref<2x1x32xf32, #tpu.memory_space<vmem>>, vector<1x1x32xf32>
    %599 = vector.shape_cast %598 : vector<1x1x32xf32> to vector<1x32xf32>
    %c1_324 = arith.constant 1 : index
    %c0_325 = arith.constant 0 : index
    %c0_326 = arith.constant 0 : index
    %600 = vector.load %arg31[%c1_324, %c0_325, %c0_326] : memref<2x1x32xf32, #tpu.memory_space<vmem>>, vector<1x1x32xf32>
    %601 = vector.shape_cast %600 : vector<1x1x32xf32> to vector<1x32xf32>
    %cst_327 = arith.constant dense<0.000000e+00> : vector<8xf32>
    %602 = vector.multi_reduction <add>, %597, %cst_327 [1] : vector<8x32xf32> to vector<8xf32>
    %603 = vector.shape_cast %602 : vector<8xf32> to vector<8x1xf32>
    %cst_328 = arith.constant 3.200000e+01 : f32
    %604 = vector.broadcast %cst_328 : f32 to vector<8x1xf32>
    %605 = arith.divf %603, %604 : vector<8x1xf32>
    %606 = vector.broadcast %605 : vector<8x1xf32> to vector<8x32xf32>
    %607 = arith.subf %597, %606 : vector<8x32xf32>
    %608 = arith.mulf %607, %607 : vector<8x32xf32>
    %cst_329 = arith.constant dense<0.000000e+00> : vector<8xf32>
    %609 = vector.multi_reduction <add>, %608, %cst_329 [1] : vector<8x32xf32> to vector<8xf32>
    %610 = vector.shape_cast %609 : vector<8xf32> to vector<8x1xf32>
    %cst_330 = arith.constant 3.200000e+01 : f32
    %611 = vector.broadcast %cst_330 : f32 to vector<8x1xf32>
    %612 = arith.divf %610, %611 : vector<8x1xf32>
    %cst_331 = arith.constant 9.99999974E-6 : f32
    %613 = vector.broadcast %cst_331 : f32 to vector<8x1xf32>
    %614 = arith.addf %612, %613 : vector<8x1xf32>
    %615 = math.rsqrt %614 : vector<8x1xf32>
    %616 = vector.broadcast %615 : vector<8x1xf32> to vector<8x32xf32>
    %617 = arith.mulf %607, %616 : vector<8x32xf32>
    %618 = vector.broadcast %599 : vector<1x32xf32> to vector<8x32xf32>
    %619 = arith.mulf %617, %618 : vector<8x32xf32>
    %620 = vector.broadcast %601 : vector<1x32xf32> to vector<8x32xf32>
    %621 = arith.addf %619, %620 : vector<8x32xf32>
    %cst_332 = arith.constant dense<0.000000e+00> : vector<32xf32>
    %622 = vector.multi_reduction <add>, %621, %cst_332 [0] : vector<8x32xf32> to vector<32xf32>
    %623 = vector.shape_cast %622 : vector<32xf32> to vector<1x32xf32>
    %cst_333 = arith.constant 8.000000e+00 : f32
    %624 = vector.broadcast %cst_333 : f32 to vector<1x32xf32>
    %625 = arith.divf %623, %624 : vector<1x32xf32>
    %626 = vector.shape_cast %625 : vector<1x32xf32> to vector<1x1x32xf32>
    %c0_334 = arith.constant 0 : index
    %c0_335 = arith.constant 0 : index
    %c0_336 = arith.constant 0 : index
    %627 = vector.load %arg32[%c0_334, %c0_335, %c0_336] : memref<1x1x32xf32, #tpu.memory_space<vmem>>, vector<1x1x32xf32>
    tpu.vector_store %arg32[%c0_334, %c0_335, %c0_336], %626 {strides = array<i32>} : memref<1x1x32xf32, #tpu.memory_space<vmem>>, vector<1x1x32xf32>,
    return
  }
  func.func @transform_0(%arg0: i32) -> (i32, i32, i32) {
    %c0_i32 = arith.constant 0 : i32
    %c0_i32_0 = arith.constant 0 : i32
    %c0_i32_1 = arith.constant 0 : i32
    return %arg0, %c0_i32, %c0_i32_0 : i32, i32, i32
  }
  func.func @transform_1(%arg0: i32) -> (i32, i32, i32, i32, i32) {
    %c0_i32 = arith.constant 0 : i32
    %c0_i32_0 = arith.constant 0 : i32
    %c0_i32_1 = arith.constant 0 : i32
    %c0_i32_2 = arith.constant 0 : i32
    %c0_i32_3 = arith.constant 0 : i32
    %c0_i32_4 = arith.constant 0 : i32
    return %c0_i32, %c0_i32_0, %c0_i32_1, %c0_i32_2, %c0_i32_3 : i32, i32, i32, i32, i32
  }
  func.func @transform_2(%arg0: i32) -> (i32, i32, i32, i32, i32) {
    %c0_i32 = arith.constant 0 : i32
    %c0_i32_0 = arith.constant 0 : i32
    %c0_i32_1 = arith.constant 0 : i32
    %c0_i32_2 = arith.constant 0 : i32
    %c0_i32_3 = arith.constant 0 : i32
    %c0_i32_4 = arith.constant 0 : i32
    return %c0_i32, %c0_i32_0, %c0_i32_1, %c0_i32_2, %c0_i32_3 : i32, i32, i32, i32, i32
  }
  func.func @transform_3(%arg0: i32) -> (i32, i32, i32, i32) {
    %c0_i32 = arith.constant 0 : i32
    %c0_i32_0 = arith.constant 0 : i32
    %c0_i32_1 = arith.constant 0 : i32
    %c0_i32_2 = arith.constant 0 : i32
    %c0_i32_3 = arith.constant 0 : i32
    return %c0_i32, %c0_i32_0, %c0_i32_1, %c0_i32_2 : i32, i32, i32, i32
  }
  func.func @transform_4(%arg0: i32) -> (i32, i32, i32) {
    %c0_i32 = arith.constant 0 : i32
    %c0_i32_0 = arith.constant 0 : i32
    %c0_i32_1 = arith.constant 0 : i32
    %c0_i32_2 = arith.constant 0 : i32
    return %c0_i32, %c0_i32_0, %c0_i32_1 : i32, i32, i32
  }
  func.func @transform_5(%arg0: i32) -> (i32, i32, i32) {
    %c0_i32 = arith.constant 0 : i32
    %c0_i32_0 = arith.constant 0 : i32
    %c0_i32_1 = arith.constant 0 : i32
    %c0_i32_2 = arith.constant 0 : i32
    return %c0_i32, %c0_i32_0, %c0_i32_1 : i32, i32, i32
  }
  func.func @transform_6(%arg0: i32) -> (i32, i32, i32) {
    %c0_i32 = arith.constant 0 : i32
    %c0_i32_0 = arith.constant 0 : i32
    %c0_i32_1 = arith.constant 0 : i32
    %c0_i32_2 = arith.constant 0 : i32
    return %c0_i32, %c0_i32_0, %c0_i32_1 : i32, i32, i32
  }
  func.func @transform_7(%arg0: i32) -> (i32, i32, i32) {
    %c0_i32 = arith.constant 0 : i32
    %c0_i32_0 = arith.constant 0 : i32
    %c0_i32_1 = arith.constant 0 : i32
    %c0_i32_2 = arith.constant 0 : i32
    return %c0_i32, %c0_i32_0, %c0_i32_1 : i32, i32, i32
  }
  func.func @transform_8(%arg0: i32) -> (i32, i32, i32) {
    %c0_i32 = arith.constant 0 : i32
    %c0_i32_0 = arith.constant 0 : i32
    %c0_i32_1 = arith.constant 0 : i32
    %c0_i32_2 = arith.constant 0 : i32
    return %c0_i32, %c0_i32_0, %c0_i32_1 : i32, i32, i32
  }
  func.func @transform_9(%arg0: i32) -> (i32, i32, i32) {
    %c0_i32 = arith.constant 0 : i32
    %c0_i32_0 = arith.constant 0 : i32
    %c0_i32_1 = arith.constant 0 : i32
    %c0_i32_2 = arith.constant 0 : i32
    return %c0_i32, %c0_i32_0, %c0_i32_1 : i32, i32, i32
  }
  func.func @transform_10(%arg0: i32) -> (i32, i32, i32) {
    %c0_i32 = arith.constant 0 : i32
    %c0_i32_0 = arith.constant 0 : i32
    %c0_i32_1 = arith.constant 0 : i32
    %c0_i32_2 = arith.constant 0 : i32
    return %c0_i32, %c0_i32_0, %c0_i32_1 : i32, i32, i32
  }
  func.func @transform_11(%arg0: i32) -> (i32, i32, i32) {
    %c0_i32 = arith.constant 0 : i32
    %c0_i32_0 = arith.constant 0 : i32
    %c0_i32_1 = arith.constant 0 : i32
    %c0_i32_2 = arith.constant 0 : i32
    return %c0_i32, %c0_i32_0, %c0_i32_1 : i32, i32, i32
  }
  func.func @transform_12(%arg0: i32) -> (i32, i32, i32) {
    %c0_i32 = arith.constant 0 : i32
    %c0_i32_0 = arith.constant 0 : i32
    %c0_i32_1 = arith.constant 0 : i32
    %c0_i32_2 = arith.constant 0 : i32
    return %c0_i32, %c0_i32_0, %c0_i32_1 : i32, i32, i32
  }
  func.func @transform_13(%arg0: i32) -> (i32, i32, i32, i32, i32) {
    %c0_i32 = arith.constant 0 : i32
    %c0_i32_0 = arith.constant 0 : i32
    %c0_i32_1 = arith.constant 0 : i32
    %c0_i32_2 = arith.constant 0 : i32
    %c0_i32_3 = arith.constant 0 : i32
    %c0_i32_4 = arith.constant 0 : i32
    return %c0_i32, %c0_i32_0, %c0_i32_1, %c0_i32_2, %c0_i32_3 : i32, i32, i32, i32, i32
  }
  func.func @transform_14(%arg0: i32) -> (i32, i32, i32, i32, i32) {
    %c0_i32 = arith.constant 0 : i32
    %c0_i32_0 = arith.constant 0 : i32
    %c0_i32_1 = arith.constant 0 : i32
    %c0_i32_2 = arith.constant 0 : i32
    %c0_i32_3 = arith.constant 0 : i32
    %c0_i32_4 = arith.constant 0 : i32
    return %c0_i32, %c0_i32_0, %c0_i32_1, %c0_i32_2, %c0_i32_3 : i32, i32, i32, i32, i32
  }
  func.func @transform_15(%arg0: i32) -> (i32, i32, i32, i32) {
    %c0_i32 = arith.constant 0 : i32
    %c0_i32_0 = arith.constant 0 : i32
    %c0_i32_1 = arith.constant 0 : i32
    %c0_i32_2 = arith.constant 0 : i32
    %c0_i32_3 = arith.constant 0 : i32
    return %c0_i32, %c0_i32_0, %c0_i32_1, %c0_i32_2 : i32, i32, i32, i32
  }
  func.func @transform_16(%arg0: i32) -> (i32, i32, i32) {
    %c0_i32 = arith.constant 0 : i32
    %c0_i32_0 = arith.constant 0 : i32
    %c0_i32_1 = arith.constant 0 : i32
    %c0_i32_2 = arith.constant 0 : i32
    return %c0_i32, %c0_i32_0, %c0_i32_1 : i32, i32, i32
  }
  func.func @transform_17(%arg0: i32) -> (i32, i32, i32, i32, i32) {
    %c0_i32 = arith.constant 0 : i32
    %c0_i32_0 = arith.constant 0 : i32
    %c0_i32_1 = arith.constant 0 : i32
    %c0_i32_2 = arith.constant 0 : i32
    %c0_i32_3 = arith.constant 0 : i32
    %c0_i32_4 = arith.constant 0 : i32
    return %c0_i32, %c0_i32_0, %c0_i32_1, %c0_i32_2, %c0_i32_3 : i32, i32, i32, i32, i32
  }
  func.func @transform_18(%arg0: i32) -> (i32, i32, i32, i32, i32) {
    %c0_i32 = arith.constant 0 : i32
    %c0_i32_0 = arith.constant 0 : i32
    %c0_i32_1 = arith.constant 0 : i32
    %c0_i32_2 = arith.constant 0 : i32
    %c0_i32_3 = arith.constant 0 : i32
    %c0_i32_4 = arith.constant 0 : i32
    return %c0_i32, %c0_i32_0, %c0_i32_1, %c0_i32_2, %c0_i32_3 : i32, i32, i32, i32, i32
  }
  func.func @transform_19(%arg0: i32) -> (i32, i32, i32, i32) {
    %c0_i32 = arith.constant 0 : i32
    %c0_i32_0 = arith.constant 0 : i32
    %c0_i32_1 = arith.constant 0 : i32
    %c0_i32_2 = arith.constant 0 : i32
    %c0_i32_3 = arith.constant 0 : i32
    return %c0_i32, %c0_i32_0, %c0_i32_1, %c0_i32_2 : i32, i32, i32, i32
  }
  func.func @transform_20(%arg0: i32) -> (i32, i32, i32) {
    %c0_i32 = arith.constant 0 : i32
    %c0_i32_0 = arith.constant 0 : i32
    %c0_i32_1 = arith.constant 0 : i32
    %c0_i32_2 = arith.constant 0 : i32
    return %c0_i32, %c0_i32_0, %c0_i32_1 : i32, i32, i32
  }
  func.func @transform_21(%arg0: i32) -> (i32, i32, i32) {
    %c0_i32 = arith.constant 0 : i32
    %c0_i32_0 = arith.constant 0 : i32
    %c0_i32_1 = arith.constant 0 : i32
    %c0_i32_2 = arith.constant 0 : i32
    return %c0_i32, %c0_i32_0, %c0_i32_1 : i32, i32, i32
  }
  func.func @transform_22(%arg0: i32) -> (i32, i32, i32) {
    %c0_i32 = arith.constant 0 : i32
    %c0_i32_0 = arith.constant 0 : i32
    %c0_i32_1 = arith.constant 0 : i32
    %c0_i32_2 = arith.constant 0 : i32
    return %c0_i32, %c0_i32_0, %c0_i32_1 : i32, i32, i32
  }
  func.func @transform_23(%arg0: i32) -> (i32, i32, i32) {
    %c0_i32 = arith.constant 0 : i32
    %c0_i32_0 = arith.constant 0 : i32
    %c0_i32_1 = arith.constant 0 : i32
    %c0_i32_2 = arith.constant 0 : i32
    return %c0_i32, %c0_i32_0, %c0_i32_1 : i32, i32, i32
  }
  func.func @transform_24(%arg0: i32) -> (i32, i32, i32) {
    %c0_i32 = arith.constant 0 : i32
    %c0_i32_0 = arith.constant 0 : i32
    %c0_i32_1 = arith.constant 0 : i32
    %c0_i32_2 = arith.constant 0 : i32
    return %c0_i32, %c0_i32_0, %c0_i32_1 : i32, i32, i32
  }
  func.func @transform_25(%arg0: i32) -> (i32, i32, i32) {
    %c0_i32 = arith.constant 0 : i32
    %c0_i32_0 = arith.constant 0 : i32
    %c0_i32_1 = arith.constant 0 : i32
    %c0_i32_2 = arith.constant 0 : i32
    return %c0_i32, %c0_i32_0, %c0_i32_1 : i32, i32, i32
  }
  func.func @transform_26(%arg0: i32) -> (i32, i32, i32) {
    %c0_i32 = arith.constant 0 : i32
    %c0_i32_0 = arith.constant 0 : i32
    %c0_i32_1 = arith.constant 0 : i32
    %c0_i32_2 = arith.constant 0 : i32
    return %c0_i32, %c0_i32_0, %c0_i32_1 : i32, i32, i32
  }
  func.func @transform_27(%arg0: i32) -> (i32, i32, i32) {
    %c0_i32 = arith.constant 0 : i32
    %c0_i32_0 = arith.constant 0 : i32
    %c0_i32_1 = arith.constant 0 : i32
    %c0_i32_2 = arith.constant 0 : i32
    return %c0_i32, %c0_i32_0, %c0_i32_1 : i32, i32, i32
  }
  func.func @transform_28(%arg0: i32) -> (i32, i32, i32) {
    %c0_i32 = arith.constant 0 : i32
    %c0_i32_0 = arith.constant 0 : i32
    %c0_i32_1 = arith.constant 0 : i32
    %c0_i32_2 = arith.constant 0 : i32
    return %c0_i32, %c0_i32_0, %c0_i32_1 : i32, i32, i32
  }
  func.func @transform_29(%arg0: i32) -> (i32, i32, i32) {
    %c0_i32 = arith.constant 0 : i32
    %c0_i32_0 = arith.constant 0 : i32
    %c0_i32_1 = arith.constant 0 : i32
    %c0_i32_2 = arith.constant 0 : i32
    return %c0_i32, %c0_i32_0, %c0_i32_1 : i32, i32, i32
  }
  func.func @transform_30(%arg0: i32) -> (i32, i32, i32) {
    %c0_i32 = arith.constant 0 : i32
    %c0_i32_0 = arith.constant 0 : i32
    %c0_i32_1 = arith.constant 0 : i32
    %c0_i32_2 = arith.constant 0 : i32
    return %c0_i32, %c0_i32_0, %c0_i32_1 : i32, i32, i32
  }
  func.func @transform_31(%arg0: i32) -> (i32, i32, i32) {
    %c0_i32 = arith.constant 0 : i32
    %c0_i32_0 = arith.constant 0 : i32
    %c0_i32_1 = arith.constant 0 : i32
    return %arg0, %c0_i32, %c0_i32_0 : i32, i32, i32
  }
}

</mosaic_0001>

<bundles_post_ra>
// kernel: tpu_custom_call.1
= control target key start
LH: loop header
LB: loop body
LE: loop exit
PB: predicated region body
PF: predicated region fallthrough
CT: control target
= control target key end

     0   :  { %s9981_s6 = smov 1   ;;  %s9982_s10 = smov 2   ;;  %s11644_s0 = inlined_call_operand.smem [shape: u32[32], index: -1, kind: input, shape index: {}] }
   0x1   :  { %s10026_s5 = sld [smem:[%s11644_s0]]   ;;  %s9983_s14 = smov 3  }
   0x2   :  { %s10031_s9 = sld [smem:[%s11644_s0 + %s9981_s6]]   ;;  %s9984_s18 = smov 4  }
   0x3   :  { %s10036_s13 = sld [smem:[%s11644_s0 + %s9982_s10]]   ;;  %s9985_s22 = smov 5  }
   0x4   :  { %s10041_s17 = sld [smem:[%s11644_s0 + %s9983_s14]]   ;;  %s9986_s26 = smov 6  }
   0x5   :  { %s10046_s21 = sld [smem:[%s11644_s0 + %s9984_s18]]   ;;  %s9987_s30 = smov 7  }
   0x6   :  { %s10051_s25 = sld [smem:[%s11644_s0 + %s9985_s22]]   ;;  %s9988_s4 = smov 8  }
   0x7   :  { %11682 = sst [smem:[#allocation11_spill]] %s10026_s5  ;;  %s9989_s10 = smov 9  }
   0x8   :  { %11683 = sst [smem:[#allocation12_spill]] %s10031_s9  ;;  %s9990_s15 = smov 10  }
   0x9   :  { %s10056_s29 = sld [smem:[%s11644_s0 + %s9986_s26]]   ;;  %s9991_s20 = smov 11  }
   0xa   :  { %s10061_s3 = sld [smem:[%s11644_s0 + %s9987_s30]]   ;;  %s9992_s26 = smov 12  }
   0xb   :  { %s10066_s8 = sld [smem:[%s11644_s0 + %s9988_s4]]   ;;  %s9993_s1 = smov 13  }
   0xc   :  { %s10071_s14 = sld [smem:[%s11644_s0 + %s9989_s10]]   ;;  %s9994_s7 = smov 14  }
   0xd   :  { %s10076_s19 = sld [smem:[%s11644_s0 + %s9990_s15]]   ;;  %s9995_s15 = smov 15  }
   0xe   :  { %s10081_s24 = sld [smem:[%s11644_s0 + %s9991_s20]]   ;;  %s9996_s22 = smov 16  }
   0xf   :  { %s10086_s30 = sld [smem:[%s11644_s0 + %s9992_s26]]   ;;  %s9997_s28 = smov 17  }
  0x10   :  { %11684 = sst [smem:[#allocation13_spill]] %s10061_s3 }
  0x11   :  { %11685 = sst [smem:[#allocation14_spill]] %s10066_s8 }
  0x12   :  { %s10091_s6 = sld [smem:[%s11644_s0 + %s9993_s1]]  }
  0x13   :  { %s10096_s12 = sld [smem:[%s11644_s0 + %s9994_s7]]   ;;  %s9998_s7 = smov 18  }
  0x14   :  { %s10101_s20 = sld [smem:[%s11644_s0 + %s9995_s15]]   ;;  %s9999_s15 = smov 19  }
  0x15   :  { %11686 = sst [smem:[#allocation15_spill]] %s10086_s30 }
  0x16   :  { %s10106_s27 = sld [smem:[%s11644_s0 + %s9996_s22]]   ;;  %s10000_s22 = smov 20  }
  0x17   :  { %s10111_s4 = sld [smem:[%s11644_s0 + %s9997_s28]]   ;;  %s10001_s28 = smov 21  }
  0x18   :  { %11687 = sst [smem:[#allocation16_spill]] %s10091_s6 }
  0x19   :  { %11688 = sst [smem:[#allocation17_spill]] %s10096_s12 }
  0x1a   :  { %11689 = sst [smem:[#allocation18_spill]] %s10101_s20 }
  0x1b   :  { %s10116_s12 = sld [smem:[%s11644_s0 + %s9998_s7]]   ;;  %s10002_s7 = smov 22  }
  0x1c   :  { %11690 = sst [smem:[#allocation19_spill]] %s10106_s27 }
  0x1d   :  { %11691 = sst [smem:[#allocation20_spill]] %s10111_s4 }
  0x1e   :  { %s10121_s20 = sld [smem:[%s11644_s0 + %s9999_s15]]   ;;  %s10003_s15 = smov 23  }
  0x1f   :  { %s10126_s27 = sld [smem:[%s11644_s0 + %s10000_s22]]   ;;  %s10004_s22 = smov 24  }
  0x20   :  { %s10131_s4 = sld [smem:[%s11644_s0 + %s10001_s28]]   ;;  %s10005_s28 = smov 25  }
  0x21   :  { %11692 = sst [smem:[#allocation21_spill]] %s10116_s12 }
  0x22   :  { %s10136_s12 = sld [smem:[%s11644_s0 + %s10002_s7]]   ;;  %s10006_s7 = smov 26  }
  0x23   :  { %s10151_s6 = sld [smem:[%s11644_s0 + %s10005_s28]]   ;;  %s10009_s28 = smov 29  }
  0x24   :  { %11693 = sst [smem:[#allocation22_spill]] %s10121_s20 }
  0x25   :  { %11694 = sst [smem:[#allocation23_spill]] %s10126_s27 }
  0x26   :  { %11695 = sst [smem:[#allocation24_spill]] %s10131_s4 }
  0x27   :  { %s10141_s20 = sld [smem:[%s11644_s0 + %s10003_s15]]   ;;  %s10007_s15 = smov 27  }
  0x28   :  { %11696 = sst [smem:[#allocation25_spill]] %s10136_s12 }
  0x29   :  { %s10146_s27 = sld [smem:[%s11644_s0 + %s10004_s22]]   ;;  %s10008_s22 = smov 28  }
  0x2a   :  { %11698 = sst [smem:[#allocation27_spill]] %s10151_s6 }
  0x2b   :  { %s10156_s12 = sld [smem:[%s11644_s0 + %s10006_s7]]   ;;  %s10010_s7 = smov 30  }
  0x2c   :  { %s10161_s30 = sld [smem:[%s11644_s0 + %s10007_s15]]   ;;  %s10011_s15 = smov 31  }
  0x2d   :  { %s10171_s6 = sld [smem:[%s11644_s0 + %s10009_s28]]  }
  0x2f   :  { %11697 = sst [smem:[#allocation26_spill]] %s10146_s27 }
  0x30   :  { %s10166_s27 = sld [smem:[%s11644_s0 + %s10008_s22]]  }
  0x31   :  { %11699 = sst [smem:[#allocation28_spill]] %s10156_s12 }
  0x32   :  { %11700 = sst [smem:[#allocation29_spill]] %s10161_s30 }
  0x33   :  { %11701 = sst [smem:[#allocation30_spill]] %s10171_s6 }
  0x34   :  { %s10176_s12 = sld [smem:[%s11644_s0 + %s10010_s7]]  }
  0x35   :  { %s10181_s30 = sld [smem:[%s11644_s0 + %s10011_s15]]  }
  0x3a   :  { %11702 = sst [smem:[#allocation31_spill]] %s10176_s12 }
  0x3b   :  { %11703 = sst [smem:[#allocation32_spill]] %s10181_s30 }
  0x3c   :  { %68 = vsyncpa [#allocation3], 0 }
  0x3d   :  { %69 = vsyncpa [#allocation6], 0 }
  0x3e   :  { %70 = vsyncpa [#allocation4], 0 }
  0x3f   :  { %72 = vsyncpa [#allocation4 + $0x1], 0  ;;  %s10183_s22 = smov 0   ;;  %s10185_s23 = smov 0  }
  0x40   :  { %s10187_s26 = smov 0   ;;  %s10189_s28 = smov 0  }
  0x41 LB: > { %s11704_s6 = sld [smem:[#allocation30_spill]]  ;;  %s10204_s0 = sadd.s32 4294967295, %s9979_s28   ;;  %s9967_s22 = sphi %s10183_s22, %s11753_s22   ;;  %s9979_s28 = sphi %s10189_s28, %s11752_s28   ;;  %s9975_s26 = sphi %s10187_s26, %s11755_s26   ;;  %s9971_s23 = sphi %s10185_s23, %s11754_s23  }
  0x42   : > { %s11705_s9 = sld [smem:[#allocation12_spill]]  ;;  %s8949_s1 = sadd.s32 4294967294, %s9979_s28  }
  0x43   : > { %s11706_s8 = sld [smem:[#allocation14_spill]]  ;;  %s10208_s2 = sadd.s32 1, %s9979_s28  }
  0x44   : > { %s11707_s4 = sld [smem:[#allocation24_spill]]  ;;  %s741_s7 = sadd.s32 1, %s9975_s26 }
  0x45   : > { %s11708_s3 = sld [smem:[#allocation13_spill]]  ;;  %s738_s10 = ssub.s32 %s9979_s28, %s10208_s2 }
  0x46   : > { %11709 = sst [smem:[#allocation33_spill]] %s9967_s22  ;;  %p751_p0 = scmp.ne.s32.totalorder %s9975_s26, %s9971_s23 }
  0x47   : > { %11710 = sst [smem:[#allocation34_spill]] %s9971_s23  ;;  %p739_p1 = scmp.eq.s32.totalorder %s738_s10, 0 }
  0x48   : > { %11711 = sst [smem:[#allocation35_spill]] %s9975_s26  ;;  %p752_p2 = scmp.eq.s32.totalorder %s10204_s0, 1 }
  0x49   : > { %11712 = sst [smem:[#allocation36_spill]] %s9979_s28  ;;  %p757_p3 = scmp.ne.s32.totalorder %s9971_s23, %s9967_s22 }
  0x4a   : > { %11713 = sst [smem:[#allocation37_spill]] %s10208_s2  ;;  %p758_p4 = scmp.eq.s32.totalorder %s8949_s1, 1 }
  0x4b   : > { %s10219_s11 = scalar_select %p739_p1, %s9975_s26, %s741_s7  }
  0x4c   : > { %p10221_p5 = por %p752_p2, %p751_p0  ;;  %p10225_p6 = por %p758_p4, %p757_p3 }
  0x4d   : > { %11714 = sst [smem:[#allocation38_spill]] %s10219_s11  ;;  %p8950_p7 = scmp.ge.s32.totalorder %s9979_s28, 1 }
  0x4e   : > { %s11715_s15 = scalar_select %p10221_p5, 1, 0 }
  0x4f   : > { %s11717_s16 = scalar_select %p10225_p6, 1, 0 }
  0x50   : > { %11716 = sst [smem:[#allocation39_spill]] %s11715_s15  ;;  %p765_p8 = scmp.lt.s32.totalorder %s9979_s28, 3 }
  0x51   : > { %11718 = sst [smem:[#allocation40_spill]] %s11717_s16  ;;  %p9552_p9 = scmp.eq.s32.totalorder %s10204_s0, 0 }
  0x52   : > { %p10232_p10 = pnand %p8950_p7, %p765_p8  ;;  %s836_s10 = sshll.u32 %s11707_s4, 4  ;;  %s837_s10 = int_to_ptr.hbm [resolvable:$true] %s836_s10 }
  0x53   : > { %s10012_s1 = smov [#allocation2]   ;;  %s853_s26 = sshll.u32 %s10141_s20, 4  ;;  %s10246_s26 = int_to_ptr.hbm [resolvable:$true] %s853_s26 }
  0x54   : > { %p9541_p11 = pneg %p10232_p10  ;;  %s838_s7 = sshll.u32 %s10012_s1, 4  ;;  %s839_s7 = int_to_ptr.vmem [resolvable:$true] %s838_s7 }
  0x55   : > { %s9849_s2 = sshra.s32 %s837_s10, 4  ;;  %s9856_s1 = scalar_lea.hbm %s11707_s4, 1024  ;;  %s9850_s2 = int_to_ptr.hbm [resolvable:$true] %s9849_s2 }
  0x56   : > { %p10241_p12 = pnand %p9552_p9, %p9541_p11  ;;  %s9851_s16 = scalar_lea.hbm %s9850_s2, 1024 }
  0x57   : > { %p9852_p13 = scmp.ne.s32.totalorder %s9850_s2, %s9851_s16  ;;  %p9857_p3 = scmp.lt.s32.totalorder %s9850_s2, %s11707_s4 }
  0x58   : > { %p9853_p0 = pneg %p10241_p12  ;;  %p9858_p4 = scmp.lt.s32.totalorder %s9856_s1, %s9851_s16 }
  0x5a   : > { %p9854_p1 = pnand %p9853_p0, %p9852_p13  ;;  %p9859_p7 = por %p9858_p4, %p9857_p3 }
  0x5c   : > { %p9855_p2 = pneg %p9854_p1 }
  0x5e   : > { %p9860_p8 = pnand %p9859_p7, %p9855_p2 }
  0x60   : > { %9863 = shalt.err (!%p9860_p8)
}
  0x61   : > { %s10013_s22 = smov 2048   ;;  %s10014_s28 = smov 128  }
  0x62   : > { %9544 = dma.hbm_to_vmem [thread:$0]  (!%p10241_p12), %s837_s10, 16384, %s839_s7, [#allocation3], %s10013_s22, %s10013_s22, %s10014_s28  }
  0x63   : > { %s10015_s15 = smov [#allocation5]   ;;  %s9879_s23 = sshra.s32 %s10246_s26, 4  ;;  %s9880_s23 = int_to_ptr.hbm [resolvable:$true] %s9879_s23 }
  0x64   : > { %s855_s30 = sshll.u32 %s10015_s15, 4  ;;  %s9881_s12 = scalar_lea.hbm %s9880_s23, 1024  ;;  %s856_s30 = int_to_ptr.vmem [resolvable:$true] %s855_s30 }
  0x65   : > { %p9882_p11 = scmp.ne.s32.totalorder %s9880_s23, %s9881_s12  ;;  %s9886_s2 = scalar_lea.hbm %s10141_s20, 1024 }
  0x66   : > { %p9887_p2 = scmp.lt.s32.totalorder %s9880_s23, %s10141_s20  ;;  %p9888_p3 = scmp.lt.s32.totalorder %s9886_s2, %s9881_s12 }
  0x67   : > { %p9884_p13 = pnand %p9882_p11, %p9853_p0 }
  0x68   : > { %p9889_p4 = por %p9888_p3, %p9887_p2 }
  0x69   : > { %p9885_p1 = pneg %p9884_p13 }
  0x6b   : > { %p9890_p7 = pnand %p9889_p4, %p9885_p1 }
  0x6d   : > { %9893 = shalt.err (!%p9890_p7)
}
  0x6e   : > { %9547 = dma.hbm_to_vmem [thread:$0]  (!%p10241_p12), %s10246_s26, 16384, %s856_s30, [#allocation6], %s10013_s22, %s10013_s22, %s10014_s28  }
  0x6f   : > { %899 = sbr.rel (%p10232_p10) target bundleno = 8498 (0x2132), region = 144 }
  0x74   : > { %9954 = dma.done.wait (%p9552_p9), [#allocation3], 16384  }
  0x75   : > { %9956 = vsyncadd (%p9552_p9), [#allocation3], 4294950912 }
  0x76   : > { %9958 = dma.done.wait (%p9552_p9), [#allocation6], 16384  }
  0x77   : > { %9960 = vsyncadd (%p9552_p9), [#allocation6], 4294950912  ;;  %s11721_s5 = sld [smem:[#allocation11_spill]]  ;;  %p983_p10 = scmp.lt.s32.totalorder %s10204_s0, 1  ;;  %v991_v0 = vld [vmem:[%s11705_s9 + $0x18] sm:$0xff]  ;;  %v990_v3 = vld [vmem:[%s11705_s9 + $0x10] sm:$0xff] }
  0x78   : > { %v999_v1 = vld [vmem:[%s11705_s9 + $0x58] sm:$0xff]  ;;  %1081 = vmatpush.msra.mxu0 %v991_v0  ;;  %v998_v4 = vld [vmem:[%s11705_s9 + $0x50] sm:$0xff]  ;;  %v989_v6 = vld [vmem:[%s11705_s9 + $0x8] sm:$0xff]  ;;  %vm1065_vm0 = vcmask 261120   ;;  %vm1337_vm1 = vcmask 64512   ;;  %s11722_s23 = sld [smem:[#allocation15_spill]] }
  0x79   : > { %s984_s30 = scalar_select %p983_p10, %s10204_s0, 1  ;;  %v1003_v2 = vld [vmem:[%s11705_s9 + $0x78] sm:$0xff]  ;;  %1121 = vmatpush.msra.mxu2 %v999_v1  ;;  %v1002_v5 = vld [vmem:[%s11705_s9 + $0x70] sm:$0xff]  ;;  %v997_v7 = vld [vmem:[%s11705_s9 + $0x48] sm:$0xff] }
  0x7a   : > { %1141 = vmatpush.msra.mxu3 %v1003_v2  ;;  %1082 = vmatpush.msra.mxu0 %v990_v3  ;;  %v1001_v8 = vld [vmem:[%s11705_s9 + $0x68] sm:$0xff]  ;;  %v988_v9 = vld [vmem:[%s11705_s9] sm:$0xff]  ;;  %v995_v11 = vld [vmem:[%s11705_s9 + $0x38] sm:$0xff]  ;;  %s11724_s26 = sld [smem:[#allocation16_spill]] }
  0x7b   : > { %s8957_s12 = sshll.u32 %s984_s30, 3  ;;  %1122 = vmatpush.msra.mxu2 %v998_v4  ;;  %v996_v10 = vld [vmem:[%s11705_s9 + $0x40] sm:$0xff]  ;;  %1101 = vmatpush.msra.mxu1 %v995_v11  ;;  %v1007_v14 = vld [vmem:[%s11705_s9 + $0x98] sm:$0xff]  ;;  %v994_v17 = vld [vmem:[%s11705_s9 + $0x30] sm:$0xff]  ;;  %s11726_s28 = sld [smem:[#allocation17_spill]] }
  0x7c   : > { %1142 = vmatpush.msra.mxu3 %v1002_v5  ;;  %1083 = vmatpush.msra.mxu0 %v989_v6  ;;  %v1000_v12 = vld [vmem:[%s11705_s9 + $0x60] sm:$0xff]  ;;  %v1015_v15 = vld [vmem:[%s11705_s9 + $0xd8] sm:$0xff]  ;;  %v1006_v18 = vld [vmem:[%s11705_s9 + $0x90] sm:$0xff]  ;;  %s11728_s18 = sld [smem:[#allocation18_spill]] }
  0x7d   : > { %s10287_s22 = scalar_lea.vmem %s11721_s5, %s8957_s12  ;;  %1123 = vmatpush.msra.mxu2 %v997_v7  ;;  %v1019_v16 = vld [vmem:[%s11705_s9 + $0xf8] sm:$0xff]  ;;  %v1014_v19 = vld [vmem:[%s11705_s9 + $0xd0] sm:$0xff]  ;;  %v993_v21 = vld [vmem:[%s11705_s9 + $0x28] sm:$0xff]  ;;  %1102 = vmatpush.msra.mxu1 %v994_v17  ;;  %s11729_s10 = sld [smem:[#allocation19_spill]] }
  0x7e   : > { %v10295_v13 = vld [vmem:[%s10287_s22] sm:$0xff]  ;;  %1143 = vmatpush.msra.mxu3 %v1001_v8  ;;  %1084 = vmatpush.msra.mxu0 %v988_v9  ;;  %v1018_v20 = vld [vmem:[%s11705_s9 + $0xf0] sm:$0xff]  ;;  %v1005_v22 = vld [vmem:[%s11705_s9 + $0x88] sm:$0xff]  ;;  %s11723_s11 = smov %s11722_s23  ;;  %s11730_s7 = sld [smem:[#allocation20_spill]] }
  0x7f   : > { %1124 = vmatpush.msra.mxu2 %v996_v10  ;;  %8958 = vmatmul.msk.f32.vlgmr.msra.gmra.mxu0 %vm1065_vm0, %v10295_v13  ;;  %v1013_v23 = vld [vmem:[%s11705_s9 + $0xc8] sm:$0xff]  ;;  %v992_v25 = vld [vmem:[%s11705_s9 + $0x20] sm:$0xff]  ;;  %v1011_v29 = vld [vmem:[%s11705_s9 + $0xb8] sm:$0xff]  ;;  %s11731_s1 = sld [smem:[#allocation27_spill]] }
  0x80   : > { %1144 = vmatpush.msra.mxu3 %v1000_v12  ;;  %8960 = vmatmul.msk.f32.vlgmr.msra.gmra.mxu2 %vm1065_vm0, %v10295_v13  ;;  %v1017_v24 = vld [vmem:[%s11705_s9 + $0xe8] sm:$0xff]  ;;  %v1004_v26 = vld [vmem:[%s11705_s9 + $0x80] sm:$0xff]  ;;  %v1023_v30 = vld [vmem:[%s11705_s9 + $0x118] sm:$0xff]  ;;  %s11725_s15 = smov %s11724_s26  ;;  %s11732_s2 = sld [smem:[#allocation28_spill]] }
  0x81   : > { %8961 = vmatmul.msk.f32.vlgmr.msra.gmra.mxu3 %vm1065_vm0, %v10295_v13  ;;  %1173 = vmatpush.msrb.mxu0 %v1007_v14  ;;  %v1012_v27 = vld [vmem:[%s11705_s9 + $0xc0] sm:$0xff]  ;;  %v1010_v31 = vld [vmem:[%s11705_s9 + $0xb0] sm:$0xff]  ;;  %v1009_v32 = vld [vmem:[%s11705_s9 + $0xa8] sm:$0xff]  ;;  %s11727_s16 = smov %s11726_s28  ;;  %s11733_s30 = sld [smem:[#allocation21_spill]] }
  0x82   : > { %1213 = vmatpush.msrb.mxu2 %v1015_v15  ;;  %1233 = vmatpush.msrb.mxu3 %v1019_v16  ;;  %v1016_v28 = vld [vmem:[%s11705_s9 + $0xe0] sm:$0xff]  ;;  %v1022_v34 = vld [vmem:[%s11705_s9 + $0x110] sm:$0xff]  ;;  %v1021_v35 = vld [vmem:[%s11705_s9 + $0x108] sm:$0xff]  ;;  %s11734_s12 = sld [smem:[#allocation22_spill]] }
  0x83   : > { %1174 = vmatpush.msrb.mxu0 %v1006_v18  ;;  %1103 = vmatpush.msra.mxu1 %v993_v21  ;;  %v1008_v33 = vld [vmem:[%s11705_s9 + $0xa0] sm:$0xff]  ;;  %v1031_v36 = vld [vmem:[%s11705_s9 + $0x158] sm:$0xff]  ;;  %v1030_v40 = vld [vmem:[%s11705_s9 + $0x150] sm:$0xff] }
  0x84   : > { %1214 = vmatpush.msrb.mxu2 %v1014_v19  ;;  %1234 = vmatpush.msrb.mxu3 %v1018_v20  ;;  %v1035_v37 = vld [vmem:[%s11705_s9 + $0x178] sm:$0xff]  ;;  %v1020_v38 = vld [vmem:[%s11705_s9 + $0x100] sm:$0xff]  ;;  %v1034_v41 = vld [vmem:[%s11705_s9 + $0x170] sm:$0xff] }
  0x85   : > { %1175 = vmatpush.msrb.mxu0 %v1005_v22  ;;  %1104 = vmatpush.msra.mxu1 %v992_v25  ;;  %v1027_v39 = vld [vmem:[%s11705_s9 + $0x138] sm:$0xff]  ;;  %v1026_v42 = vld [vmem:[%s11705_s9 + $0x130] sm:$0xff]  ;;  %v1029_v43 = vld [vmem:[%s11705_s9 + $0x148] sm:$0xff] }
  0x86   : > { %1215 = vmatpush.msrb.mxu2 %v1013_v23  ;;  %1235 = vmatpush.msrb.mxu3 %v1017_v24  ;;  %v1033_v44 = vld [vmem:[%s11705_s9 + $0x168] sm:$0xff]  ;;  %v1028_v46 = vld [vmem:[%s11705_s9 + $0x140] sm:$0xff] }
  0x87   : > { %1176 = vmatpush.msrb.mxu0 %v1004_v26  ;;  %8959 = vmatmul.msk.f32.vlgmr.msra.gmra.mxu1 %vm1065_vm0, %v10295_v13  ;;  %v1025_v45 = vld [vmem:[%s11705_s9 + $0x128] sm:$0xff]  ;;  %v1032_v47 = vld [vmem:[%s11705_s9 + $0x160] sm:$0xff] }
  0x88   : > { %1216 = vmatpush.msrb.mxu2 %v1012_v27  ;;  %1236 = vmatpush.msrb.mxu3 %v1016_v28  ;;  %v1024_v48 = vld [vmem:[%s11705_s9 + $0x120] sm:$0xff]  ;;  %v9634_v14 = vld [vmem:[%s10036_s13 + $0x8] ss:$0 sm:$0xff]  ;;  %v9635_v17 = vld [vmem:[%s10036_s13 + $0x9] ss:$0 sm:$0xff] }
  0x89   : > { %8962 = vmatmul.msk.f32.vlgmr.msrb.gmra.mxu0 %vm1065_vm0, %v10295_v13  ;;  %8964 = vmatmul.msk.f32.vlgmr.msrb.gmra.mxu2 %vm1065_vm0, %v10295_v13  ;;  %v9626_v50 = vld [vmem:[%s10036_s13] ss:$0 sm:$0xff]  ;;  %v9630_v53 = vld [vmem:[%s10036_s13 + $0x4] ss:$0 sm:$0xff]  ;;  %v9628_v57 = vld [vmem:[%s10036_s13 + $0x3] ss:$0 sm:$0xff] }
  0x8a   : > { %8965 = vmatmul.msk.f32.vlgmr.msrb.gmra.mxu3 %vm1065_vm0, %v10295_v13  ;;  %1193 = vmatpush.msrb.mxu1 %v1011_v29  ;;  %v9627_v60 = vld [vmem:[%s10036_s13 + $0x2] ss:$0 sm:$0xff]  ;;  %v9629_v61 = vld [vmem:[%s10036_s13 + $0x1] ss:$0 sm:$0xff]  ;;  %v9631_v62 = vld [vmem:[%s10036_s13 + $0x6] ss:$0 sm:$0xff] }
  0x8b   : > { %1265 = vmatpush.msra.mxu0 %v1023_v30  ;;  %1305 = vmatpush.msra.mxu2 %v1031_v36  ;;  %v9632_v63 = vld [vmem:[%s10036_s13 + $0x7] ss:$0 sm:$0xff]  ;;  %v9633_v1 = vld [vmem:[%s10036_s13 + $0x5] ss:$0 sm:$0xff]  ;;  %v9636_v20 = vld [vmem:[%s10036_s13 + $0xa] ss:$0 sm:$0xff] }
  0x8c   : > { %1194 = vmatpush.msrb.mxu1 %v1010_v31  ;;  %1325 = vmatpush.msra.mxu3 %v1035_v37  ;;  %v9637_v21 = vld [vmem:[%s10036_s13 + $0xb] ss:$0 sm:$0xff] }
  0x8d   : > { %1266 = vmatpush.msra.mxu0 %v1022_v34  ;;  %1306 = vmatpush.msra.mxu2 %v1030_v40 }
  0x8e   : > { %1195 = vmatpush.msrb.mxu1 %v1009_v32  ;;  %1326 = vmatpush.msra.mxu3 %v1034_v41 }
  0x8f   : > { %1267 = vmatpush.msra.mxu0 %v1021_v35  ;;  %1307 = vmatpush.msra.mxu2 %v1029_v43 }
  0x90   : > { %1196 = vmatpush.msrb.mxu1 %v1008_v33  ;;  %1327 = vmatpush.msra.mxu3 %v1033_v44 }
  0x91   : > { %8963 = vmatmul.msk.f32.vlgmr.msrb.gmra.mxu1 %vm1065_vm0, %v10295_v13  ;;  %1268 = vmatpush.msra.mxu0 %v1020_v38 }
  0x92   : > { %8966 = vmatmul.msk.f32.vlgmr.msra.gmra.mxu0 %vm1065_vm0, %v10295_v13  ;;  %1285 = vmatpush.msra.mxu1 %v1027_v39 }
  0x93   : > { %1308 = vmatpush.msra.mxu2 %v1028_v46  ;;  %1328 = vmatpush.msra.mxu3 %v1032_v47 }
  0x94   : > { %1286 = vmatpush.msra.mxu1 %v1026_v42  ;;  %8968 = vmatmul.msk.f32.vlgmr.msra.gmra.mxu2 %vm1065_vm0, %v10295_v13 }
  0x95   : > { %8969 = vmatmul.msk.f32.vlgmr.msra.gmra.mxu3 %vm1065_vm0, %v10295_v13 }
  0x96   : > { %1287 = vmatpush.msra.mxu1 %v1025_v45 }
  0x98   : > { %1288 = vmatpush.msra.mxu1 %v1024_v48 }
  0x99   : > { %8967 = vmatmul.msk.f32.vlgmr.msra.gmra.mxu1 %vm1065_vm0, %v10295_v13 }
  0xfc   : > { %v1086_v49 = vpop.f32.mrf.mxu0 }
  0xfd   : > { %v1087_v54 = vadd.f32 %v9626_v50, %v1086_v49 }
  0xff   : > { %v1333_v59 = vmul.f32 0.35355338, %v1087_v54 }
 0x103   : > { %v1126_v51 = vpop.f32.mrf.mxu2 }
 0x104   : > { %v1146_v52 = vpop.f32.mrf.mxu3  ;;  %v1106_v55 = vpop.f32.mrf.mxu1  ;;  %v1127_v2 = vadd.f32 %v9627_v60, %v1126_v51 }
 0x105   : > { %v1147_v0 = vadd.f32 %v9628_v57, %v1146_v52  ;;  %v1107_v3 = vadd.f32 %v9629_v61, %v1106_v55 }
 0x106   : > { %v1178_v56 = vpop.f32.mrf.mxu0  ;;  %v1335_v11 = vmul.f32 0.35355338, %v1127_v2  ;;  %v1048_v2 = vld [vmem:[%s10041_s17] sm:$0xff] }
 0x107   : > { %v1179_v58 = vadd.f32 %v9630_v53, %v1178_v56  ;;  %v1336_v9 = vmul.f32 0.35355338, %v1147_v0  ;;  %v1334_v12 = vmul.f32 0.35355338, %v1107_v3  ;;  %v1049_v3 = vld [vmem:[%s10041_s17 + $0x8] sm:$0xff] }
 0x109   : > { %8970 = vmatpush.xpose.msk.msrb.mxu0 %vm1337_vm1, %v1179_v58 }
 0x10c   : > { %v1218_v4 = vpop.f32.mrf.mxu2  ;;  %8971 = vmatmul.msk.f32.vlgmr.msrb.gmra.mxu0 %vm1337_vm1, %v1333_v59 }
 0x10d   : > { %v1219_v5 = vadd.f32 %v9631_v62, %v1218_v4  ;;  %v1238_v6 = vpop.f32.mrf.mxu3  ;;  %v1050_v4 = vld [vmem:[%s10041_s17 + $0x10] sm:$0xff] }
 0x10e   : > { %v1239_v7 = vadd.f32 %v9632_v63, %v1238_v6  ;;  %v1198_v8 = vpop.f32.mrf.mxu1 }
 0x10f   : > { %v1199_v10 = vadd.f32 %v9633_v1, %v1198_v8  ;;  %8974 = vmatpush.xpose.msk.msrb.mxu2 %vm1337_vm1, %v1219_v5  ;;  %v1270_v15 = vpop.f32.mrf.mxu0  ;;  %v1051_v5 = vld [vmem:[%s10041_s17 + $0x18] sm:$0xff] }
 0x110   : > { %8976 = vmatpush.xpose.msk.msrb.mxu3 %vm1337_vm1, %v1239_v7  ;;  %v1271_v16 = vadd.f32 %v9634_v14, %v1270_v15 }
 0x111   : > { %8972 = vmatpush.xpose.msk.msrb.mxu1 %vm1337_vm1, %v1199_v10 }
 0x112   : > { %8975 = vmatmul.msk.f32.vlgmr.msrb.gmra.mxu2 %vm1337_vm1, %v1335_v11  ;;  %1504 = vmatpush.msra.mxu0 %v1271_v16 }
 0x113   : > { %8977 = vmatmul.msk.f32.vlgmr.msrb.gmra.mxu3 %vm1337_vm1, %v1336_v9 }
 0x114   : > { %8973 = vmatmul.msk.f32.vlgmr.msrb.gmra.mxu1 %vm1337_vm1, %v1334_v12  ;;  %1596 = vmatpush.msrb.mxu0 %v1048_v2  ;;  %v1744_v2 = vld [vmem:[%s10051_s25 + $0xb8] sm:$0xff] }
 0x116   : > { %v1290_v18 = vpop.f32.mrf.mxu1 }
 0x117   : > { %v1291_v19 = vadd.f32 %v9635_v17, %v1290_v18  ;;  %v1310_v22 = vpop.f32.mrf.mxu2 }
 0x118   : > { %v1311_v23 = vadd.f32 %v9636_v20, %v1310_v22  ;;  %v1330_v24 = vpop.f32.mrf.mxu3  ;;  %v9638_v20 = vld [vmem:[%s10046_s21] ss:$0 sm:$0xff] }
 0x119   : > { %1527 = vmatpush.msra.mxu1 %v1291_v19  ;;  %v1331_v25 = vadd.f32 %v9637_v21, %v1330_v24 }
 0x11a   : > { %1550 = vmatpush.msra.mxu2 %v1311_v23 }
 0x11b   : > { %1573 = vmatpush.msra.mxu3 %v1331_v25  ;;  %1619 = vmatpush.msrb.mxu1 %v1049_v3  ;;  %v1725_v3 = vld [vmem:[%s10051_s25 + $0x20] sm:$0xff] }
 0x11c   : > { %1642 = vmatpush.msrb.mxu2 %v1050_v4  ;;  %v1726_v4 = vld [vmem:[%s10051_s25 + $0x28] sm:$0xff] }
 0x11d   : > { %1665 = vmatpush.msrb.mxu3 %v1051_v5 }
 0x189   : > { %v1361_v26 = vpop.f32.mrf.mxu0 }
 0x18a   : > { %v1442_v27 = vsel %vm1337_vm1, %v1361_v26, -inf }
 0x18b   : > { %1443 = vmax.xlane.f32.xlu1 %v1442_v27 }
 0x191   : > { %v1387_v28 = vpop.f32.mrf.mxu1 }
 0x192   : > { %v1445_v29 = vsel %vm1337_vm1, %v1387_v28, -inf }
 0x193   : > { %1446 = vmax.xlane.f32.xlu1 %v1445_v29 }
 0x195   : > { %v1413_v30 = vpop.f32.mrf.mxu2 }
 0x196   : > { %v1448_v31 = vsel %vm1337_vm1, %v1413_v30, -inf  ;;  %v1439_v32 = vpop.f32.mrf.mxu3 }
 0x197   : > { %1449 = vmax.xlane.f32.xlu0 %v1448_v31  ;;  %v1451_v33 = vsel %vm1337_vm1, %v1439_v32, -inf }
 0x19f   : > { %1452 = vmax.xlane.f32.xlu0 %v1451_v33 }
 0x1fe   : > { %v1444_v34 = vpop.xlane.xlu1 %1443 }
 0x1ff   : > { %v1454_v35 = vsub.f32 %v1361_v26, %v1444_v34  ;;  %v10016_v26 = vmov 32.0  }
 0x201   : > { %v1458_v36 = vmul.f32 1.442695, %v1454_v35 }
 0x203   : > { %9728 = vpow2.f32 %v1458_v36 }
 0x206   : > { %v1447_v37 = vpop.xlane.xlu1 %1446 }
 0x207   : > { %v1455_v38 = vsub.f32 %v1387_v28, %v1447_v37  ;;  %v1769_v37 = vld [vmem:[%s10051_s25 + $0x180] sm:$0xff] }
 0x209   : > { %v9729_v39 = vpop.eup %9728  ;;  %v1460_v40 = vmul.f32 1.442695, %v1455_v38  ;;  %v1770_v38 = vld [vmem:[%s10051_s25 + $0x188] sm:$0xff] }
 0x20a   : > { %v1450_v41 = vpop.xlane.xlu0 %1449  ;;  %v1466_v42 = vsel %vm1337_vm1, %v9729_v39, 0.0 }
 0x20b   : > { %9730 = vpow2.f32 %v1460_v40  ;;  %v1456_v43 = vsub.f32 %v1413_v30, %v1450_v41  ;;  %1467 = vadd.xlane.f32.xlu0 %v1466_v42  ;;  %v1772_v40 = vld [vmem:[%s10051_s25 + $0x198] sm:$0xff]  ;;  %v1753_v41 = vld [vmem:[%s10051_s25 + $0x100] sm:$0xff]  ;;  %v1754_v42 = vld [vmem:[%s10051_s25 + $0x108] sm:$0xff] }
 0x20d   : > { %v1462_v44 = vmul.f32 1.442695, %v1456_v43  ;;  %v1755_v43 = vld [vmem:[%s10051_s25 + $0x110] sm:$0xff] }
 0x20f   : > { %9732 = vpow2.f32 %v1462_v44  ;;  %v1756_v44 = vld [vmem:[%s10051_s25 + $0x118] sm:$0xff] }
 0x211   : > { %v9731_v45 = vpop.eup %9730 }
 0x212   : > { %v1453_v46 = vpop.xlane.xlu0 %1452  ;;  %v1469_v47 = vsel %vm1337_vm1, %v9731_v45, 0.0 }
 0x213   : > { %v1457_v48 = vsub.f32 %v1439_v32, %v1453_v46  ;;  %1470 = vadd.xlane.f32.xlu1 %v1469_v47  ;;  %v1738_v46 = vld [vmem:[%s10051_s25 + $0x88] sm:$0xff]  ;;  %v1739_v47 = vld [vmem:[%s10051_s25 + $0x90] sm:$0xff] }
 0x215   : > { %v9733_v49 = vpop.eup %9732  ;;  %v1464_v50 = vmul.f32 1.442695, %v1457_v48  ;;  %v1740_v48 = vld [vmem:[%s10051_s25 + $0x98] sm:$0xff] }
 0x216   : > { %v1472_v51 = vsel %vm1337_vm1, %v9733_v49, 0.0 }
 0x217   : > { %9734 = vpow2.f32 %v1464_v50  ;;  %1473 = vadd.xlane.f32.xlu2 %v1472_v51  ;;  %v1722_v50 = vld [vmem:[%s10051_s25 + $0x8] sm:$0xff]  ;;  %v1723_v51 = vld [vmem:[%s10051_s25 + $0x10] sm:$0xff] }
 0x21d   : > { %v9735_v52 = vpop.eup %9734 }
 0x21e   : > { %v1475_v53 = vsel %vm1337_vm1, %v9735_v52, 0.0 }
 0x21f   : > { %1476 = vadd.xlane.f32.xlu2 %v1475_v53  ;;  %v1773_v53 = vld [vmem:[%s10051_s25 + $0x1a0] sm:$0xff] }
 0x27e   : > { %v1468_v54 = vpop.xlane.xlu0 %1467 }
 0x27f   : > { %9736 = vrcp.f32 %v1468_v54  ;;  %v1774_v54 = vld [vmem:[%s10051_s25 + $0x1a8] sm:$0xff] }
 0x285   : > { %v9737_v55 = vpop.eup %9736 }
 0x286   : > { %v1482_v56 = vmul.f32 %v9737_v55, %v9729_v39  ;;  %v1471_v57 = vpop.xlane.xlu1 %1470  ;;  %v1771_v39 = vld [vmem:[%s10051_s25 + $0x190] sm:$0xff] }
 0x287   : > { %9738 = vrcp.f32 %v1471_v57  ;;  %v1775_v55 = vld [vmem:[%s10051_s25 + $0x1b0] sm:$0xff]  ;;  %v1757_v57 = vld [vmem:[%s10051_s25 + $0x120] sm:$0xff] }
 0x288   : > { %8978 = vmatmul.msk.f32.vlgmr.msra.gmra.mxu0 %vm1337_vm1, %v1482_v56  ;;  %v1776_v56 = vld [vmem:[%s10051_s25 + $0x1b8] sm:$0xff] }
 0x289   : > { %1901 = vmatpush.msra.mxu0 %v1769_v37  ;;  %v1781_v37 = vld [vmem:[%s10051_s25 + $0x1e0] sm:$0xff] }
 0x28a   : > { %v1474_v58 = vpop.xlane.xlu2 %1473 }
 0x28b   : > { %9740 = vrcp.f32 %v1474_v58  ;;  %1902 = vmatpush.msra.mxu0 %v1753_v41  ;;  %v1758_v58 = vld [vmem:[%s10051_s25 + $0x128] sm:$0xff]  ;;  %v1765_v41 = vld [vmem:[%s10051_s25 + $0x160] sm:$0xff] }
 0x28d   : > { %v9739_v59 = vpop.eup %9738 }
 0x28e   : > { %v1483_v60 = vmul.f32 %v9739_v59, %v9731_v45  ;;  %v1737_v45 = vld [vmem:[%s10051_s25 + $0x80] sm:$0xff] }
 0x28f   : > { %1903 = vmatpush.msra.mxu0 %v1737_v45  ;;  %v1749_v45 = vld [vmem:[%s10051_s25 + $0xe0] sm:$0xff] }
 0x290   : > { %8979 = vmatmul.msk.f32.vlgmr.msra.gmra.mxu1 %vm1337_vm1, %v1483_v60  ;;  %v1759_v60 = vld [vmem:[%s10051_s25 + $0x130] sm:$0xff] }
 0x291   : > { %v9741_v61 = vpop.eup %9740  ;;  %1921 = vmatpush.msra.mxu1 %v1770_v38  ;;  %v1782_v38 = vld [vmem:[%s10051_s25 + $0x1e8] sm:$0xff] }
 0x292   : > { %v1484_v62 = vmul.f32 %v9741_v61, %v9733_v49  ;;  %v1477_v63 = vpop.xlane.xlu2 %1476  ;;  %v1721_v49 = vld [vmem:[%s10051_s25] sm:$0xff]  ;;  %v1760_v61 = vld [vmem:[%s10051_s25 + $0x138] sm:$0xff] }
 0x293   : > { %9742 = vrcp.f32 %v1477_v63  ;;  %1922 = vmatpush.msra.mxu1 %v1754_v42  ;;  %1904 = vmatpush.msra.mxu0 %v1721_v49  ;;  %v1766_v42 = vld [vmem:[%s10051_s25 + $0x168] sm:$0xff]  ;;  %v1733_v49 = vld [vmem:[%s10051_s25 + $0x60] sm:$0xff] }
 0x294   : > { %8980 = vmatmul.msk.f32.vlgmr.msra.gmra.mxu2 %vm1337_vm1, %v1484_v62  ;;  %9744 = vrcp.f32 %v10016_v26  ;;  %v1741_v62 = vld [vmem:[%s10051_s25 + $0xa0] sm:$0xff]  ;;  %v1762_v26 = vld [vmem:[%s10051_s25 + $0x148] sm:$0xff] }
 0x295   : > { %1941 = vmatpush.msra.mxu2 %v1771_v39  ;;  %1923 = vmatpush.msra.mxu1 %v1738_v46  ;;  %v1783_v39 = vld [vmem:[%s10051_s25 + $0x1f0] sm:$0xff]  ;;  %v1750_v46 = vld [vmem:[%s10051_s25 + $0xe8] sm:$0xff] }
 0x297   : > { %1942 = vmatpush.msra.mxu2 %v1755_v43  ;;  %1924 = vmatpush.msra.mxu1 %v1722_v50  ;;  %v1767_v43 = vld [vmem:[%s10051_s25 + $0x170] sm:$0xff]  ;;  %v1734_v50 = vld [vmem:[%s10051_s25 + $0x68] sm:$0xff] }
 0x299   : > { %v9743_v0 = vpop.eup %9742  ;;  %1943 = vmatpush.msra.mxu2 %v1739_v47  ;;  %v1751_v47 = vld [vmem:[%s10051_s25 + $0xf0] sm:$0xff] }
 0x29a   : > { %v1485_v1 = vmul.f32 %v9743_v0, %v9735_v52  ;;  %v9745_v27 = vpop.eup %9744  ;;  %v1724_v52 = vld [vmem:[%s10051_s25 + $0x18] sm:$0xff]  ;;  %v1742_v0 = vld [vmem:[%s10051_s25 + $0xa8] sm:$0xff] }
 0x29b   : > { %v1688_v28 = vmul.f32 32.0, %v9745_v27  ;;  %vm1692_vm2 = vweird.f32 %v9745_v27  ;;  %1944 = vmatpush.msra.mxu2 %v1723_v51  ;;  %v1735_v51 = vld [vmem:[%s10051_s25 + $0x70] sm:$0xff] }
 0x29c   : > { %8981 = vmatmul.msk.f32.vlgmr.msra.gmra.mxu3 %vm1337_vm1, %v1485_v1  ;;  %v1743_v1 = vld [vmem:[%s10051_s25 + $0xb0] sm:$0xff] }
 0x29d   : > { %v1689_v29 = vsub.f32 1.0, %v1688_v28  ;;  %1961 = vmatpush.msra.mxu3 %v1772_v40  ;;  %v1764_v28 = vld [vmem:[%s10051_s25 + $0x158] sm:$0xff] }
 0x29e   : > { %v1784_v40 = vld [vmem:[%s10051_s25 + $0x1f8] sm:$0xff] }
 0x29f   : > { %v1690_v30 = vmul.f32 %v9745_v27, %v1689_v29  ;;  %1962 = vmatpush.msra.mxu3 %v1756_v44  ;;  %v1745_v29 = vld [vmem:[%s10051_s25 + $0xc0] sm:$0xff]  ;;  %v1768_v44 = vld [vmem:[%s10051_s25 + $0x178] sm:$0xff] }
 0x2a1   : > { %v1691_v31 = vadd.f32 %v9745_v27, %v1690_v30  ;;  %1963 = vmatpush.msra.mxu3 %v1740_v48  ;;  %v1746_v30 = vld [vmem:[%s10051_s25 + $0xc8] sm:$0xff]  ;;  %v1752_v48 = vld [vmem:[%s10051_s25 + $0xf8] sm:$0xff] }
 0x2a3   : > { %v10403_v32 = vsel %vm1692_vm2, %v9745_v27, %v1691_v31  ;;  %1964 = vmatpush.msra.mxu3 %v1724_v52  ;;  %v1763_v27 = vld [vmem:[%s10051_s25 + $0x150] sm:$0xff]  ;;  %v1736_v52 = vld [vmem:[%s10051_s25 + $0x78] sm:$0xff] }
 0x2a4   : > { %v1747_v31 = vld [vmem:[%s10051_s25 + $0xd0] sm:$0xff] }
 0x305   : > { %v1506_v6 = vpop.f32.mrf.mxu0 }
 0x306   : > { %8982 = vmatmul.msk.f32.vlgmr.msrb.gmra.mxu0 %vm1337_vm1, %v1506_v6  ;;  %v1727_v6 = vld [vmem:[%s10051_s25 + $0x30] sm:$0xff] }
 0x307   : > { %1981 = vmatpush.msrb.mxu0 %v1773_v53  ;;  %v1835_v53 = vld [vmem:[%s11708_s3 + $0x180] sm:$0xff] }
 0x309   : > { %1982 = vmatpush.msrb.mxu0 %v1757_v57  ;;  %v1819_v57 = vld [vmem:[%s11708_s3 + $0x100] sm:$0xff] }
 0x30b   : > { %1983 = vmatpush.msrb.mxu0 %v1741_v62  ;;  %v1804_v62 = vld [vmem:[%s11708_s3 + $0x88] sm:$0xff] }
 0x30d   : > { %v1529_v7 = vpop.f32.mrf.mxu1  ;;  %1984 = vmatpush.msrb.mxu0 %v1725_v3  ;;  %v1839_v3 = vld [vmem:[%s11708_s3 + $0x1a0] sm:$0xff] }
 0x30e   : > { %8983 = vmatmul.msk.f32.vlgmr.msrb.gmra.mxu1 %vm1337_vm1, %v1529_v7  ;;  %v1728_v7 = vld [vmem:[%s10051_s25 + $0x38] sm:$0xff] }
 0x30f   : > { %2001 = vmatpush.msrb.mxu1 %v1774_v54  ;;  %v1836_v54 = vld [vmem:[%s11708_s3 + $0x188] sm:$0xff] }
 0x311   : > { %2002 = vmatpush.msrb.mxu1 %v1758_v58  ;;  %v1820_v58 = vld [vmem:[%s11708_s3 + $0x108] sm:$0xff] }
 0x313   : > { %2003 = vmatpush.msrb.mxu1 %v1742_v0  ;;  %v1806_v0 = vld [vmem:[%s11708_s3 + $0x98] sm:$0xff] }
 0x315   : > { %2004 = vmatpush.msrb.mxu1 %v1726_v4  ;;  %v1840_v4 = vld [vmem:[%s11708_s3 + $0x1a8] sm:$0xff] }
 0x317   : > { %v1552_v8 = vpop.f32.mrf.mxu2 }
 0x318   : > { %8984 = vmatmul.msk.f32.vlgmr.msrb.gmra.mxu2 %vm1337_vm1, %v1552_v8 }
 0x319   : > { %2021 = vmatpush.msrb.mxu2 %v1775_v55  ;;  %v1837_v55 = vld [vmem:[%s11708_s3 + $0x190] sm:$0xff] }
 0x31b   : > { %2022 = vmatpush.msrb.mxu2 %v1759_v60  ;;  %v1822_v60 = vld [vmem:[%s11708_s3 + $0x118] sm:$0xff] }
 0x31d   : > { %2023 = vmatpush.msrb.mxu2 %v1743_v1  ;;  %v1787_v1 = vld [vmem:[%s11708_s3] sm:$0xff] }
 0x31f   : > { %v1575_v9 = vpop.f32.mrf.mxu3  ;;  %2024 = vmatpush.msrb.mxu2 %v1727_v6  ;;  %v1790_v6 = vld [vmem:[%s11708_s3 + $0x18] sm:$0xff] }
 0x320   : > { %8985 = vmatmul.msk.f32.vlgmr.msrb.gmra.mxu3 %vm1337_vm1, %v1575_v9 }
 0x321   : > { %2041 = vmatpush.msrb.mxu3 %v1776_v56  ;;  %v1838_v56 = vld [vmem:[%s11708_s3 + $0x198] sm:$0xff] }
 0x323   : > { %2042 = vmatpush.msrb.mxu3 %v1760_v61  ;;  %v1803_v61 = vld [vmem:[%s11708_s3 + $0x80] sm:$0xff] }
 0x325   : > { %2043 = vmatpush.msrb.mxu3 %v1744_v2  ;;  %v1788_v2 = vld [vmem:[%s11708_s3 + $0x8] sm:$0xff] }
 0x327   : > { %2044 = vmatpush.msrb.mxu3 %v1728_v7  ;;  %v1841_v7 = vld [vmem:[%s11708_s3 + $0x1b0] sm:$0xff] }
 0x383   : > { %v1598_v11 = vpop.f32.mrf.mxu0 }
 0x384   : > { %v1670_v15 = vsel %vm1065_vm0, %v1598_v11, 0.0 }
 0x38b   : > { %v1621_v10 = vpop.f32.mrf.mxu1 }
 0x38c   : > { %v1671_v14 = vsel %vm1065_vm0, %v1621_v10, 0.0 }
 0x38d   : > { %v1672_v17 = vadd.f32 %v1671_v14, %v1670_v15  ;;  %v9639_v15 = vld [vmem:[%s10071_s14] ss:$0 sm:$0xff] }
 0x39b   : > { %v1644_v12 = vpop.f32.mrf.mxu2 }
 0x39c   : > { %v1673_v16 = vsel %vm1065_vm0, %v1644_v12, 0.0 }
 0x39d   : > { %v1674_v18 = vadd.f32 %v1673_v16, %v1672_v17  ;;  %v9640_v17 = vld [vmem:[%s10076_s19] ss:$0 sm:$0xff] }
 0x3a3   : > { %v1667_v19 = vpop.f32.mrf.mxu3 }
 0x3a4   : > { %v1675_v21 = vsel %vm1065_vm0, %v1667_v19, 0.0 }
 0x3a5   : > { %v1676_v22 = vadd.f32 %v1675_v21, %v1674_v18  ;;  %v1777_v21 = vld [vmem:[%s10051_s25 + $0x1c0] sm:$0xff] }
 0x3a7   : > { %v1680_v23 = vadd.f32 %v9638_v20, %v1676_v22  ;;  %v1778_v22 = vld [vmem:[%s10051_s25 + $0x1c8] sm:$0xff] }
 0x3a9   : > { %v1681_v24 = vadd.f32 %v1680_v23, %v10295_v13  ;;  %v1779_v23 = vld [vmem:[%s10051_s25 + $0x1d0] sm:$0xff] }
 0x3ab   : > { %v1684_v25 = vsel %vm1065_vm0, %v1681_v24, 0.0 }
 0x3ac   : > { %1685 = vadd.xlane.f32.xlu2 %v1684_v25  ;;  %v1761_v25 = vld [vmem:[%s10051_s25 + $0x140] sm:$0xff] }
 0x41f   : > { %v1686_v13 = vpop.xlane.xlu2 %1685 }
 0x420   : > { %v1694_v33 = vmul.f32 %v10403_v32, %v1686_v13  ;;  %v1748_v13 = vld [vmem:[%s10051_s25 + $0xd8] sm:$0xff] }
 0x422   : > { %v10406_v34 = vsub.f32 %v1681_v24, %v1694_v33  ;;  %v1780_v24 = vld [vmem:[%s10051_s25 + $0x1d8] sm:$0xff]  ;;  %v1729_v33 = vld [vmem:[%s10051_s25 + $0x40] sm:$0xff] }
 0x424   : > { %v1696_v35 = vmul.f32 %v10406_v34, %v10406_v34 }
 0x426   : > { %v1697_v36 = vsel %vm1065_vm0, %v1696_v35, 0.0  ;;  %v1731_v35 = vld [vmem:[%s10051_s25 + $0x50] sm:$0xff] }
 0x427   : > { %1698 = vadd.xlane.f32.xlu0 %v1697_v36  ;;  %v1732_v36 = vld [vmem:[%s10051_s25 + $0x58] sm:$0xff] }
 0x49a   : > { %v1699_v59 = vpop.xlane.xlu0 %1698 }
 0x49b   : > { %v1700_v63 = vmul.f32 %v1699_v59, %v10403_v32  ;;  %v1821_v59 = vld [vmem:[%s11708_s3 + $0x110] sm:$0xff] }
 0x49d   : > { %v1701_v5 = vadd.f32 1e-05, %v1700_v63  ;;  %v1805_v63 = vld [vmem:[%s11708_s3 + $0x90] sm:$0xff] }
 0x49f   : > { %9746 = vrsqrt.f32 %v1701_v5  ;;  %vm1708_vm4 = vweird.f32 %v1701_v5 }
 0x4a5   : > { %v9747_v8 = vpop.eup %9746 }
 0x4a6   : > { %v1703_v9 = vmul.f32 %v9747_v8, %v1701_v5  ;;  %vm1709_vm3 = vweird.f32 %v9747_v8  ;;  %v1789_v5 = vld [vmem:[%s11708_s3 + $0x10] sm:$0xff] }
 0x4a7   : > { %vm1710_vm5 = vmor %vm1708_vm4, %vm1709_vm3 }
 0x4a8   : > { %v1704_v10 = vmul.f32 %v9747_v8, %v1703_v9  ;;  %v1823_v9 = vld [vmem:[%s11708_s3 + $0x120] sm:$0xff] }
 0x4aa   : > { %v1705_v11 = vmul.f32 0.5, %v1704_v10  ;;  %v1824_v10 = vld [vmem:[%s11708_s3 + $0x128] sm:$0xff] }
 0x4ac   : > { %v1706_v12 = vsub.f32 1.5, %v1705_v11  ;;  %v1807_v11 = vld [vmem:[%s11708_s3 + $0xa0] sm:$0xff] }
 0x4ae   : > { %v1707_v14 = vmul.f32 %v9747_v8, %v1706_v12  ;;  %v1808_v12 = vld [vmem:[%s11708_s3 + $0xa8] sm:$0xff] }
 0x4b0   : > { %v1711_v16 = vsel %vm1710_vm5, %v9747_v8, %v1707_v14  ;;  %v1842_v8 = vld [vmem:[%s11708_s3 + $0x1b8] sm:$0xff]  ;;  %v1825_v14 = vld [vmem:[%s11708_s3 + $0x130] sm:$0xff] }
 0x4b1   : > { %v1712_v18 = vmul.f32 %v1711_v16, %v10406_v34  ;;  %v1730_v34 = vld [vmem:[%s10051_s25 + $0x48] sm:$0xff]  ;;  %v1791_v16 = vld [vmem:[%s11708_s3 + $0x20] sm:$0xff] }
 0x4b3   : > { %v1716_v19 = vmul.f32 %v9639_v15, %v1712_v18  ;;  %v1826_v15 = vld [vmem:[%s11708_s3 + $0x138] sm:$0xff]  ;;  %v1809_v18 = vld [vmem:[%s11708_s3 + $0xb0] sm:$0xff] }
 0x4b5   : > { %v10447_v20 = vadd.f32 %v9640_v17, %v1716_v19  ;;  %v1792_v17 = vld [vmem:[%s11708_s3 + $0x28] sm:$0xff]  ;;  %v1810_v19 = vld [vmem:[%s11708_s3 + $0xb8] sm:$0xff] }
 0x4b7   : > { %8986 = vmatmul.msk.f32.vlgmr.msra.gmra.mxu0 %vm1065_vm0, %v10447_v20  ;;  %8987 = vmatmul.msk.f32.vlgmr.msra.gmra.mxu1 %vm1065_vm0, %v10447_v20 }
 0x4b8   : > { %8988 = vmatmul.msk.f32.vlgmr.msra.gmra.mxu2 %vm1065_vm0, %v10447_v20  ;;  %8989 = vmatmul.msk.f32.vlgmr.msra.gmra.mxu3 %vm1065_vm0, %v10447_v20 }
 0x4b9   : > { %2061 = vmatpush.msra.mxu0 %v1777_v21  ;;  %2081 = vmatpush.msra.mxu1 %v1778_v22  ;;  %v1793_v21 = vld [vmem:[%s11708_s3 + $0x30] sm:$0xff]  ;;  %v1794_v22 = vld [vmem:[%s11708_s3 + $0x38] sm:$0xff] }
 0x4ba   : > { %2101 = vmatpush.msra.mxu2 %v1779_v23  ;;  %2121 = vmatpush.msra.mxu3 %v1780_v24  ;;  %v1785_v23 = vld [vmem:[%s10056_s29] sm:$0xff] }
 0x4bb   : > { %2062 = vmatpush.msra.mxu0 %v1761_v25  ;;  %2082 = vmatpush.msra.mxu1 %v1762_v26  ;;  %v1854_v24 = vperm.slane %v1785_v23, 0  ;;  %v1855_v25 = vperm.slane %v1785_v23, 1 }
 0x4bc   : > { %2102 = vmatpush.msra.mxu2 %v1763_v27  ;;  %2122 = vmatpush.msra.mxu3 %v1764_v28 }
 0x4bd   : > { %2063 = vmatpush.msra.mxu0 %v1745_v29  ;;  %2083 = vmatpush.msra.mxu1 %v1746_v30 }
 0x4be   : > { %2103 = vmatpush.msra.mxu2 %v1747_v31  ;;  %2123 = vmatpush.msra.mxu3 %v1748_v13  ;;  %v1843_v13 = vld [vmem:[%s11708_s3 + $0x1c0] sm:$0xff] }
 0x4bf   : > { %8990 = vmatmul.msk.f32.vlgmr.msrb.gmra.mxu0 %vm1065_vm0, %v10447_v20  ;;  %8991 = vmatmul.msk.f32.vlgmr.msrb.gmra.mxu1 %vm1065_vm0, %v10447_v20 }
 0x4c0   : > { %8992 = vmatmul.msk.f32.vlgmr.msrb.gmra.mxu2 %vm1065_vm0, %v10447_v20  ;;  %8993 = vmatmul.msk.f32.vlgmr.msrb.gmra.mxu3 %vm1065_vm0, %v10447_v20 }
 0x4c1   : > { %2064 = vmatpush.msra.mxu0 %v1729_v33  ;;  %2084 = vmatpush.msra.mxu1 %v1730_v34  ;;  %v1844_v33 = vld [vmem:[%s11708_s3 + $0x1c8] sm:$0xff]  ;;  %v1856_v34 = vperm.slane %v1785_v23, 2 }
 0x4c2   : > { %2104 = vmatpush.msra.mxu2 %v1731_v35  ;;  %2124 = vmatpush.msra.mxu3 %v1732_v36  ;;  %v1857_v35 = vperm.slane %v1785_v23, 3  ;;  %v1858_v36 = vperm.slane %v1785_v23, 4 }
 0x4c3   : > { %2141 = vmatpush.msrb.mxu0 %v1781_v37  ;;  %2161 = vmatpush.msrb.mxu1 %v1782_v38  ;;  %v1859_v37 = vperm.slane %v1785_v23, 5 }
 0x4c4   : > { %2181 = vmatpush.msrb.mxu2 %v1783_v39  ;;  %2201 = vmatpush.msrb.mxu3 %v1784_v40  ;;  %v1827_v40 = vld [vmem:[%s11708_s3 + $0x140] sm:$0xff] }
 0x4c5   : > { %2142 = vmatpush.msrb.mxu0 %v1765_v41  ;;  %2162 = vmatpush.msrb.mxu1 %v1766_v42  ;;  %v1828_v41 = vld [vmem:[%s11708_s3 + $0x148] sm:$0xff] }
 0x4c6   : > { %2182 = vmatpush.msrb.mxu2 %v1767_v43  ;;  %2202 = vmatpush.msrb.mxu3 %v1768_v44 }
 0x4c7   : > { %8994 = vmatmul.msk.f32.vlgmr.msra.gmra.mxu0 %vm1065_vm0, %v10447_v20  ;;  %8995 = vmatmul.msk.f32.vlgmr.msra.gmra.mxu1 %vm1065_vm0, %v10447_v20 }
 0x4c8   : > { %8996 = vmatmul.msk.f32.vlgmr.msra.gmra.mxu2 %vm1065_vm0, %v10447_v20  ;;  %8997 = vmatmul.msk.f32.vlgmr.msra.gmra.mxu3 %vm1065_vm0, %v10447_v20 }
 0x4c9   : > { %2143 = vmatpush.msrb.mxu0 %v1749_v45  ;;  %2163 = vmatpush.msrb.mxu1 %v1750_v46 }
 0x4ca   : > { %2183 = vmatpush.msrb.mxu2 %v1751_v47  ;;  %2203 = vmatpush.msrb.mxu3 %v1752_v48 }
 0x4cb   : > { %2144 = vmatpush.msrb.mxu0 %v1733_v49  ;;  %2164 = vmatpush.msrb.mxu1 %v1734_v50  ;;  %v1845_v50 = vld [vmem:[%s11708_s3 + $0x1d0] sm:$0xff] }
 0x4cc   : > { %2184 = vmatpush.msrb.mxu2 %v1735_v51  ;;  %2204 = vmatpush.msrb.mxu3 %v1736_v52  ;;  %v1846_v51 = vld [vmem:[%s11708_s3 + $0x1d8] sm:$0xff]  ;;  %v10553_v52 = vld [vmem:[%s10056_s29 + $0x8] sm:$0xff] }
 0x4cd   : > { %2240 = vmatpush.xpose.msra.mxu0 %v1835_v53  ;;  %2260 = vmatpush.xpose.msra.mxu1 %v1836_v54 }
 0x4ce   : > { %2280 = vmatpush.xpose.msra.mxu2 %v1837_v55  ;;  %2300 = vmatpush.xpose.msra.mxu3 %v1838_v56  ;;  %v1811_v55 = vld [vmem:[%s11708_s3 + $0xc0] sm:$0xff]  ;;  %v1812_v56 = vld [vmem:[%s11708_s3 + $0xc8] sm:$0xff] }
 0x4cf   : > { %8998 = vmatmul.msk.f32.vlgmr.msrb.gmra.mxu0 %vm1065_vm0, %v10447_v20  ;;  %8999 = vmatmul.msk.f32.vlgmr.msrb.gmra.mxu1 %vm1065_vm0, %v10447_v20 }
 0x4d0   : > { %9000 = vmatmul.msk.f32.vlgmr.msrb.gmra.mxu2 %vm1065_vm0, %v10447_v20  ;;  %9001 = vmatmul.msk.f32.vlgmr.msrb.gmra.mxu3 %vm1065_vm0, %v10447_v20 }
 0x4d1   : > { %2241 = vmatpush.xpose.msra.mxu0 %v1819_v57  ;;  %2261 = vmatpush.xpose.msra.mxu1 %v1820_v58  ;;  %v1860_v57 = vperm.slane %v1785_v23, 6  ;;  %v1861_v58 = vperm.slane %v1785_v23, 7 }
 0x4d2   : > { %2281 = vmatpush.xpose.msra.mxu2 %v1821_v59  ;;  %2301 = vmatpush.xpose.msra.mxu3 %v1822_v60  ;;  %v1862_v59 = vperm.slane %v10553_v52, 0  ;;  %v1863_v60 = vperm.slane %v10553_v52, 1 }
 0x4d5   : > { %2242 = vmatpush.xpose.msra.mxu0 %v1803_v61  ;;  %2262 = vmatpush.xpose.msra.mxu1 %v1804_v62  ;;  %v1829_v61 = vld [vmem:[%s11708_s3 + $0x150] sm:$0xff]  ;;  %v1830_v62 = vld [vmem:[%s11708_s3 + $0x158] sm:$0xff] }
 0x4d6   : > { %2282 = vmatpush.xpose.msra.mxu2 %v1805_v63  ;;  %2302 = vmatpush.xpose.msra.mxu3 %v1806_v0 }
 0x4d9   : > { %2243 = vmatpush.xpose.msra.mxu0 %v1787_v1  ;;  %2263 = vmatpush.xpose.msra.mxu1 %v1788_v2 }
 0x4da   : > { %2283 = vmatpush.xpose.msra.mxu2 %v1789_v5  ;;  %2303 = vmatpush.xpose.msra.mxu3 %v1790_v6  ;;  %v1795_v5 = vld [vmem:[%s11708_s3 + $0x40] sm:$0xff]  ;;  %v1796_v6 = vld [vmem:[%s11708_s3 + $0x48] sm:$0xff] }
 0x4dd   : > { %2320 = vmatpush.xpose.msrb.mxu0 %v1839_v3  ;;  %2340 = vmatpush.xpose.msrb.mxu1 %v1840_v4 }
 0x4de   : > { %2360 = vmatpush.xpose.msrb.mxu2 %v1841_v7  ;;  %2380 = vmatpush.xpose.msrb.mxu3 %v1842_v8 }
 0x4e1   : > { %2321 = vmatpush.xpose.msrb.mxu0 %v1823_v9  ;;  %2341 = vmatpush.xpose.msrb.mxu1 %v1824_v10  ;;  %v1847_v9 = vld [vmem:[%s11708_s3 + $0x1e0] sm:$0xff]  ;;  %v1848_v10 = vld [vmem:[%s11708_s3 + $0x1e8] sm:$0xff] }
 0x4e2   : > { %2361 = vmatpush.xpose.msrb.mxu2 %v1825_v14  ;;  %2381 = vmatpush.xpose.msrb.mxu3 %v1826_v15 }
 0x4e5   : > { %2322 = vmatpush.xpose.msrb.mxu0 %v1807_v11  ;;  %2342 = vmatpush.xpose.msrb.mxu1 %v1808_v12 }
 0x4e6   : > { %2362 = vmatpush.xpose.msrb.mxu2 %v1809_v18  ;;  %2382 = vmatpush.xpose.msrb.mxu3 %v1810_v19  ;;  %v1864_v18 = vperm.slane %v10553_v52, 2  ;;  %v1865_v19 = vperm.slane %v10553_v52, 3 }
 0x4e9   : > { %2323 = vmatpush.xpose.msrb.mxu0 %v1791_v16  ;;  %2343 = vmatpush.xpose.msrb.mxu1 %v1792_v17  ;;  %v1813_v16 = vld [vmem:[%s11708_s3 + $0xd0] sm:$0xff]  ;;  %v1814_v17 = vld [vmem:[%s11708_s3 + $0xd8] sm:$0xff] }
 0x4ea   : > { %2363 = vmatpush.xpose.msrb.mxu2 %v1793_v21  ;;  %2383 = vmatpush.xpose.msrb.mxu3 %v1794_v22  ;;  %v1831_v21 = vld [vmem:[%s11708_s3 + $0x160] sm:$0xff]  ;;  %v1832_v22 = vld [vmem:[%s11708_s3 + $0x168] sm:$0xff] }
 0x534   : > { %v1906_v26 = vpop.f32.mrf.mxu0  ;;  %v1926_v27 = vpop.f32.mrf.mxu1 }
 0x535   : > { %v1907_v28 = vadd.f32 %v1906_v26, %v1854_v24  ;;  %v1927_v29 = vadd.f32 %v1926_v27, %v1855_v25  ;;  %v1797_v25 = vld [vmem:[%s11708_s3 + $0x50] sm:$0xff]  ;;  %v1798_v26 = vld [vmem:[%s11708_s3 + $0x58] sm:$0xff] }
 0x537   : > { %v2209_v30 = vmax.f32 %v1907_v28, 0.0  ;;  %v2210_v31 = vmax.f32 %v1927_v29, 0.0  ;;  %v1849_v29 = vld [vmem:[%s11708_s3 + $0x1f0] sm:$0xff] }
 0x539   : > { %2244 = vmatmul.f32.vlgmr.msra.gmra.mxu0 %v2209_v30  ;;  %2264 = vmatmul.f32.vlgmr.msra.gmra.mxu1 %v2210_v31  ;;  %v1850_v30 = vld [vmem:[%s11708_s3 + $0x1f8] sm:$0xff]  ;;  %v1815_v31 = vld [vmem:[%s11708_s3 + $0xe0] sm:$0xff] }
 0x53a   : > { %2400 = vmatpush.xpose.msra.mxu0 %v1843_v13  ;;  %2420 = vmatpush.xpose.msra.mxu1 %v1844_v33  ;;  %v1816_v13 = vld [vmem:[%s11708_s3 + $0xe8] sm:$0xff] }
 0x53b   : > { %v1946_v38 = vpop.f32.mrf.mxu2  ;;  %v1966_v39 = vpop.f32.mrf.mxu3 }
 0x53c   : > { %v1947_v42 = vadd.f32 %v1946_v38, %v1856_v34  ;;  %v1967_v43 = vadd.f32 %v1966_v39, %v1857_v35  ;;  %v1986_v44 = vpop.f32.mrf.mxu0  ;;  %v2006_v45 = vpop.f32.mrf.mxu1  ;;  %v1866_v35 = vperm.slane %v10553_v52, 4  ;;  %v1833_v39 = vld [vmem:[%s11708_s3 + $0x170] sm:$0xff] }
 0x53d   : > { %v1987_v46 = vadd.f32 %v1986_v44, %v1858_v36  ;;  %v2007_v47 = vadd.f32 %v2006_v45, %v1859_v37  ;;  %v1867_v36 = vperm.slane %v10553_v52, 5  ;;  %v1868_v45 = vperm.slane %v10553_v52, 6 }
 0x53e   : > { %v2211_v48 = vmax.f32 %v1947_v42, 0.0  ;;  %v2212_v49 = vmax.f32 %v1967_v43, 0.0  ;;  %2401 = vmatpush.xpose.msra.mxu0 %v1827_v40  ;;  %2421 = vmatpush.xpose.msra.mxu1 %v1828_v41  ;;  %v1834_v40 = vld [vmem:[%s11708_s3 + $0x178] sm:$0xff]  ;;  %v1799_v41 = vld [vmem:[%s11708_s3 + $0x60] sm:$0xff]  ;;  %v1800_v42 = vld [vmem:[%s11708_s3 + $0x68] sm:$0xff] }
 0x53f   : > { %v2213_v53 = vmax.f32 %v1987_v46, 0.0  ;;  %v2214_v54 = vmax.f32 %v2007_v47, 0.0  ;;  %v1869_v46 = vperm.slane %v10553_v52, 7  ;;  %v1817_v47 = vld [vmem:[%s11708_s3 + $0xf0] sm:$0xff] }
 0x540   : > { %2284 = vmatmul.f32.vlgmr.msra.gmra.mxu2 %v2211_v48  ;;  %2304 = vmatmul.f32.vlgmr.msra.gmra.mxu3 %v2212_v49  ;;  %v1818_v48 = vld [vmem:[%s11708_s3 + $0xf8] sm:$0xff] }
 0x541   : > { %2440 = vmatpush.xpose.msra.mxu2 %v1845_v50  ;;  %2460 = vmatpush.xpose.msra.mxu3 %v1846_v51 }
 0x542   : > { %2324 = vmatmul.f32.vlgmr.msrb.gmra.mxu0 %v2213_v53  ;;  %2344 = vmatmul.f32.vlgmr.msrb.gmra.mxu1 %v2214_v54 }
 0x543   : > { %2402 = vmatpush.xpose.msra.mxu0 %v1811_v55  ;;  %2422 = vmatpush.xpose.msra.mxu1 %v1812_v56  ;;  %v2026_v63 = vpop.f32.mrf.mxu2  ;;  %v2046_v0 = vpop.f32.mrf.mxu3  ;;  %v1801_v56 = vld [vmem:[%s11708_s3 + $0x70] sm:$0xff] }
 0x544   : > { %v2027_v1 = vadd.f32 %v2026_v63, %v1860_v57  ;;  %v2047_v2 = vadd.f32 %v2046_v0, %v1861_v58  ;;  %v2066_v3 = vpop.f32.mrf.mxu0  ;;  %v2086_v4 = vpop.f32.mrf.mxu1  ;;  %v1802_v57 = vld [vmem:[%s11708_s3 + $0x78] sm:$0xff] }
 0x545   : > { %2441 = vmatpush.xpose.msra.mxu2 %v1829_v61  ;;  %2461 = vmatpush.xpose.msra.mxu3 %v1830_v62  ;;  %v2067_v7 = vadd.f32 %v2066_v3, %v1862_v59  ;;  %v2087_v8 = vadd.f32 %v2086_v4, %v1863_v60  ;;  %v9641_v59 = vld [vmem:[%s11706_s8] ss:$0 sm:$0xff] }
 0x546   : > { %v2215_v11 = vmax.f32 %v2027_v1, 0.0  ;;  %v2216_v12 = vmax.f32 %v2047_v2, 0.0 }
 0x547   : > { %v2217_v14 = vmax.f32 %v2067_v7, 0.0  ;;  %v2218_v15 = vmax.f32 %v2087_v8, 0.0  ;;  %2403 = vmatpush.xpose.msra.mxu0 %v1795_v5  ;;  %2423 = vmatpush.xpose.msra.mxu1 %v1796_v6 }
 0x548   : > { %2364 = vmatmul.f32.vlgmr.msrb.gmra.mxu2 %v2215_v11  ;;  %2384 = vmatmul.f32.vlgmr.msrb.gmra.mxu3 %v2216_v12 }
 0x549   : > { %2442 = vmatpush.xpose.msra.mxu2 %v1813_v16  ;;  %2462 = vmatpush.xpose.msra.mxu3 %v1814_v17 }
 0x54a   : > { %2404 = vmatmul.f32.vlgmr.msra.gmra.mxu0 %v2217_v14  ;;  %2424 = vmatmul.f32.vlgmr.msra.gmra.mxu1 %v2218_v15 }
 0x54b   : > { %2480 = vmatpush.xpose.msrb.mxu0 %v1847_v9  ;;  %2500 = vmatpush.xpose.msrb.mxu1 %v1848_v10  ;;  %v2106_v23 = vpop.f32.mrf.mxu2  ;;  %v2126_v24 = vpop.f32.mrf.mxu3 }
 0x54c   : > { %v2107_v27 = vadd.f32 %v2106_v23, %v1864_v18  ;;  %v2127_v28 = vadd.f32 %v2126_v24, %v1865_v19  ;;  %v2146_v37 = vpop.f32.mrf.mxu0  ;;  %v2166_v38 = vpop.f32.mrf.mxu1 }
 0x54d   : > { %2443 = vmatpush.xpose.msra.mxu2 %v1797_v25  ;;  %2463 = vmatpush.xpose.msra.mxu3 %v1798_v26  ;;  %v2147_v43 = vadd.f32 %v2146_v37, %v1866_v35  ;;  %v2167_v44 = vadd.f32 %v2166_v38, %v1867_v36  ;;  %v9005_v37 = vld [vmem:[%s11705_s9 + $0x198] sm:$0xff] }
 0x54e   : > { %v2219_v33 = vmax.f32 %v2107_v27, 0.0  ;;  %v2220_v34 = vmax.f32 %v2127_v28, 0.0  ;;  %v9013_v38 = vld [vmem:[%s11705_s9 + $0x1d8] sm:$0xff] }
 0x54f   : > { %2481 = vmatpush.xpose.msrb.mxu0 %v1831_v21  ;;  %2501 = vmatpush.xpose.msrb.mxu1 %v1832_v22  ;;  %v2221_v51 = vmax.f32 %v2147_v43, 0.0  ;;  %v2222_v53 = vmax.f32 %v2167_v44, 0.0  ;;  %v9016_v43 = vld [vmem:[%s11705_s9 + $0x1f0] sm:$0xff]  ;;  %v9003_v44 = vld [vmem:[%s11705_s9 + $0x188] sm:$0xff] }
 0x550   : > { %2444 = vmatmul.f32.vlgmr.msra.gmra.mxu2 %v2219_v33  ;;  %2464 = vmatmul.f32.vlgmr.msra.gmra.mxu3 %v2220_v34 }
 0x551   : > { %2520 = vmatpush.xpose.msrb.mxu2 %v1849_v29  ;;  %2540 = vmatpush.xpose.msrb.mxu3 %v1850_v30 }
 0x553   : > { %2482 = vmatpush.xpose.msrb.mxu0 %v1815_v31  ;;  %2502 = vmatpush.xpose.msrb.mxu1 %v1816_v13  ;;  %v2186_v49 = vpop.f32.mrf.mxu2  ;;  %v2206_v50 = vpop.f32.mrf.mxu3 }
 0x554   : > { %v2187_v54 = vadd.f32 %v2186_v49, %v1868_v45  ;;  %v2207_v55 = vadd.f32 %v2206_v50, %v1869_v46  ;;  %v9007_v45 = vld [vmem:[%s11705_s9 + $0x1a8] sm:$0xff]  ;;  %v9006_v49 = vld [vmem:[%s11705_s9 + $0x1a0] sm:$0xff] }
 0x555   : > { %2521 = vmatpush.xpose.msrb.mxu2 %v1833_v39  ;;  %2541 = vmatpush.xpose.msrb.mxu3 %v1834_v40  ;;  %v9017_v39 = vld [vmem:[%s11705_s9 + $0x1f8] sm:$0xff]  ;;  %v9004_v40 = vld [vmem:[%s11705_s9 + $0x190] sm:$0xff]  ;;  %v9011_v46 = vld [vmem:[%s11705_s9 + $0x1c8] sm:$0xff] }
 0x556   : > { %v2223_v52 = vmax.f32 %v2187_v54, 0.0  ;;  %v2224_v58 = vmax.f32 %v2207_v55, 0.0  ;;  %v9010_v50 = vld [vmem:[%s11705_s9 + $0x1c0] sm:$0xff]  ;;  %v9025_v54 = vld [vmem:[%s11705_s9 + $0x238] sm:$0xff] }
 0x557   : > { %2483 = vmatpush.xpose.msrb.mxu0 %v1799_v41  ;;  %2503 = vmatpush.xpose.msrb.mxu1 %v1800_v42  ;;  %v9008_v41 = vld [vmem:[%s11705_s9 + $0x1b0] sm:$0xff]  ;;  %v9029_v55 = vld [vmem:[%s11705_s9 + $0x258] sm:$0xff] }
 0x558   : > { %v9012_v42 = vld [vmem:[%s11705_s9 + $0x1d0] sm:$0xff] }
 0x559   : > { %2522 = vmatpush.xpose.msrb.mxu2 %v1817_v47  ;;  %2542 = vmatpush.xpose.msrb.mxu3 %v1818_v48  ;;  %v9015_v47 = vld [vmem:[%s11705_s9 + $0x1e8] sm:$0xff]  ;;  %v9002_v48 = vld [vmem:[%s11705_s9 + $0x180] sm:$0xff] }
 0x55a   : > { %2484 = vmatmul.f32.vlgmr.msrb.gmra.mxu0 %v2221_v51  ;;  %2504 = vmatmul.f32.vlgmr.msrb.gmra.mxu1 %v2222_v53  ;;  %v9014_v51 = vld [vmem:[%s11705_s9 + $0x1e0] sm:$0xff]  ;;  %v9021_v53 = vld [vmem:[%s11705_s9 + $0x218] sm:$0xff] }
 0x55b   : > { %2677 = vmatpush.msra.mxu0 %v9005_v37 }
 0x55d   : > { %2523 = vmatpush.xpose.msrb.mxu2 %v1801_v56  ;;  %2543 = vmatpush.xpose.msrb.mxu3 %v1802_v57  ;;  %v9033_v56 = vld [vmem:[%s11705_s9 + $0x278] sm:$0xff]  ;;  %v9020_v57 = vld [vmem:[%s11705_s9 + $0x210] sm:$0xff] }
 0x55e   : > { %2678 = vmatpush.msra.mxu0 %v9004_v40  ;;  %v9648_v40 = vld [vmem:[%s10036_s13 + $0x10] ss:$0 sm:$0xff] }
 0x560   : > { %2524 = vmatmul.f32.vlgmr.msrb.gmra.mxu2 %v2223_v52  ;;  %2544 = vmatmul.f32.vlgmr.msrb.gmra.mxu3 %v2224_v58  ;;  %v9024_v52 = vld [vmem:[%s11705_s9 + $0x230] sm:$0xff] }
 0x561   : > { %2717 = vmatpush.msra.mxu2 %v9013_v38  ;;  %2737 = vmatpush.msra.mxu3 %v9017_v39  ;;  %v9644_v38 = vld [vmem:[%s10036_s13 + $0xc] ss:$0 sm:$0xff]  ;;  %v9645_v39 = vld [vmem:[%s10036_s13 + $0xd] ss:$0 sm:$0xff] }
 0x562   : > { %2679 = vmatpush.msra.mxu0 %v9003_v44 }
 0x563   : > { %2718 = vmatpush.msra.mxu2 %v9012_v42  ;;  %2738 = vmatpush.msra.mxu3 %v9016_v43 }
 0x564   : > { %2680 = vmatpush.msra.mxu0 %v9002_v48 }
 0x565   : > { %2719 = vmatpush.msra.mxu2 %v9011_v46  ;;  %2739 = vmatpush.msra.mxu3 %v9015_v47 }
 0x566   : > { %2769 = vmatpush.msrb.mxu0 %v9021_v53  ;;  %v9650_v53 = vld [vmem:[%s10036_s13 + $0x12] ss:$0 sm:$0xff] }
 0x567   : > { %2720 = vmatpush.msra.mxu2 %v9010_v50  ;;  %2740 = vmatpush.msra.mxu3 %v9014_v51  ;;  %v9646_v50 = vld [vmem:[%s10036_s13 + $0xe] ss:$0 sm:$0xff]  ;;  %v9647_v51 = vld [vmem:[%s10036_s13 + $0xf] ss:$0 sm:$0xff] }
 0x568   : > { %2770 = vmatpush.msrb.mxu0 %v9020_v57  ;;  %v9652_v57 = vld [vmem:[%s10036_s13 + $0x14] ss:$0 sm:$0xff] }
 0x569   : > { %2809 = vmatpush.msrb.mxu2 %v9029_v55  ;;  %2829 = vmatpush.msrb.mxu3 %v9033_v56  ;;  %v9651_v56 = vld [vmem:[%s10036_s13 + $0x13] ss:$0 sm:$0xff] }
 0x5b6   : > { %v2245_v60 = vpop.f32.mrf.mxu0  ;;  %v2265_v62 = vpop.f32.mrf.mxu1 }
 0x5b7   : > { %v2246_v61 = vadd.f32 %v9641_v59, %v2245_v60  ;;  %v9028_v59 = vld [vmem:[%s11705_s9 + $0x250] sm:$0xff] }
 0x5b8   : > { %v9032_v60 = vld [vmem:[%s11705_s9 + $0x270] sm:$0xff]  ;;  %2810 = vmatpush.msrb.mxu2 %v9028_v59 }
 0x5b9   : > { %v2266_v63 = vadd.f32 %v2265_v62, %v2246_v61  ;;  %v9019_v61 = vld [vmem:[%s11705_s9 + $0x208] sm:$0xff]  ;;  %2830 = vmatpush.msrb.mxu3 %v9032_v60 }
 0x5ba   : > { %2771 = vmatpush.msrb.mxu0 %v9019_v61 }
 0x5bf   : > { %v2325_v3 = vpop.f32.mrf.mxu0  ;;  %v2345_v5 = vpop.f32.mrf.mxu1 }
 0x5c3   : > { %v2285_v0 = vpop.f32.mrf.mxu2  ;;  %v2305_v1 = vpop.f32.mrf.mxu3 }
 0x5c4   : > { %v2286_v2 = vadd.f32 %v2285_v0, %v2266_v63  ;;  %v9023_v63 = vld [vmem:[%s11705_s9 + $0x228] sm:$0xff] }
 0x5c5   : > { %v9027_v0 = vld [vmem:[%s11705_s9 + $0x248] sm:$0xff] }
 0x5c6   : > { %v2306_v4 = vadd.f32 %v2305_v1, %v2286_v2  ;;  %v9031_v1 = vld [vmem:[%s11705_s9 + $0x268] sm:$0xff]  ;;  %v9018_v2 = vld [vmem:[%s11705_s9 + $0x200] sm:$0xff]  ;;  %2811 = vmatpush.msrb.mxu2 %v9027_v0 }
 0x5c7   : > { %v2405_v12 = vpop.f32.mrf.mxu0  ;;  %v2425_v15 = vpop.f32.mrf.mxu1  ;;  %2831 = vmatpush.msrb.mxu3 %v9031_v1  ;;  %2772 = vmatpush.msrb.mxu0 %v9018_v2 }
 0x5c8   : > { %v2326_v6 = vadd.f32 %v2325_v3, %v2306_v4  ;;  %v9022_v3 = vld [vmem:[%s11705_s9 + $0x220] sm:$0xff] }
 0x5ca   : > { %v2346_v7 = vadd.f32 %v2345_v5, %v2326_v6  ;;  %v9026_v5 = vld [vmem:[%s11705_s9 + $0x240] sm:$0xff] }
 0x5cb   : > { %v2365_v8 = vpop.f32.mrf.mxu2  ;;  %v2385_v10 = vpop.f32.mrf.mxu3  ;;  %v9030_v6 = vld [vmem:[%s11705_s9 + $0x260] sm:$0xff]  ;;  %2812 = vmatpush.msrb.mxu2 %v9026_v5 }
 0x5cc   : > { %v2366_v9 = vadd.f32 %v2365_v8, %v2346_v7  ;;  %2832 = vmatpush.msrb.mxu3 %v9030_v6  ;;  %v9654_v6 = vld [vmem:[%s10036_s13 + $0x16] ss:$0 sm:$0xff] }
 0x5ce   : > { %v2386_v11 = vadd.f32 %v2385_v10, %v2366_v9 }
 0x5d0   : > { %v2406_v14 = vadd.f32 %v2405_v12, %v2386_v11 }
 0x5d2   : > { %v2426_v16 = vadd.f32 %v2425_v15, %v2406_v14  ;;  %v9642_v14 = vld [vmem:[%s10081_s24] ss:$0 sm:$0xff] }
 0x5d3   : > { %v2445_v17 = vpop.f32.mrf.mxu2  ;;  %v2465_v19 = vpop.f32.mrf.mxu3 }
 0x5d4   : > { %v2446_v18 = vadd.f32 %v2445_v17, %v2426_v16  ;;  %v9643_v16 = vld [vmem:[%s11722_s23] ss:$0 sm:$0xff]  ;;  %s11737_s23 = sld [smem:[#allocation29_spill]] }
 0x5d6   : > { %v2466_v21 = vadd.f32 %v2465_v19, %v2446_v18 }
 0x5d7   : > { %v2485_v22 = vpop.f32.mrf.mxu0  ;;  %v2505_v24 = vpop.f32.mrf.mxu1 }
 0x5d8   : > { %v2486_v23 = vadd.f32 %v2485_v22, %v2466_v21  ;;  %v9037_v21 = vld [vmem:[%s11705_s9 + $0x298] sm:$0xff] }
 0x5d9   : > { %v9041_v22 = vld [vmem:[%s11705_s9 + $0x2b8] sm:$0xff] }
 0x5da   : > { %v2506_v25 = vadd.f32 %v2505_v24, %v2486_v23  ;;  %v9045_v23 = vld [vmem:[%s11705_s9 + $0x2d8] sm:$0xff]  ;;  %s11738_s4 = smov %s11737_s23 }
 0x5db   : > { %v9049_v24 = vld [vmem:[%s11705_s9 + $0x2f8] sm:$0xff] }
 0x5e3   : > { %v2525_v26 = vpop.f32.mrf.mxu2  ;;  %v2545_v28 = vpop.f32.mrf.mxu3 }
 0x5e4   : > { %v2526_v27 = vadd.f32 %v2525_v26, %v2506_v25  ;;  %v9036_v25 = vld [vmem:[%s11705_s9 + $0x290] sm:$0xff] }
 0x5e5   : > { %v9040_v26 = vld [vmem:[%s11705_s9 + $0x2b0] sm:$0xff] }
 0x5e6   : > { %v2546_v29 = vadd.f32 %v2545_v28, %v2526_v27  ;;  %v9044_v27 = vld [vmem:[%s11705_s9 + $0x2d0] sm:$0xff] }
 0x5e7   : > { %v9048_v28 = vld [vmem:[%s11705_s9 + $0x2f0] sm:$0xff] }
 0x5e8   : > { %v2548_v30 = vadd.f32 %v2546_v29, %v10447_v20  ;;  %v9009_v20 = vld [vmem:[%s11705_s9 + $0x1b8] sm:$0xff]  ;;  %v9035_v29 = vld [vmem:[%s11705_s9 + $0x288] sm:$0xff] }
 0x5e9   : > { %2697 = vmatpush.msra.mxu1 %v9009_v20 }
 0x5ea   : > { %v2551_v31 = vsel %vm1065_vm0, %v2548_v30, 0.0 }
 0x5eb   : > { %2552 = vadd.xlane.f32.xlu1 %v2551_v31  ;;  %2698 = vmatpush.msra.mxu1 %v9008_v41  ;;  %v9043_v31 = vld [vmem:[%s11705_s9 + $0x2c8] sm:$0xff]  ;;  %v9649_v41 = vld [vmem:[%s10036_s13 + $0x11] ss:$0 sm:$0xff] }
 0x5ed   : > { %2699 = vmatpush.msra.mxu1 %v9007_v45 }
 0x5ef   : > { %2700 = vmatpush.msra.mxu1 %v9006_v49 }
 0x5f1   : > { %2789 = vmatpush.msrb.mxu1 %v9025_v54 }
 0x5f3   : > { %2790 = vmatpush.msrb.mxu1 %v9024_v52  ;;  %v9653_v52 = vld [vmem:[%s10036_s13 + $0x15] ss:$0 sm:$0xff] }
 0x5f5   : > { %2791 = vmatpush.msrb.mxu1 %v9023_v63 }
 0x5f7   : > { %2792 = vmatpush.msrb.mxu1 %v9022_v3 }
 0x65e   : > { %v2553_v13 = vpop.xlane.xlu1 %2552 }
 0x65f   : > { %v2554_v33 = vmul.f32 %v2553_v13, %v10403_v32  ;;  %v9047_v13 = vld [vmem:[%s11705_s9 + $0x2e8] sm:$0xff] }
 0x661   : > { %v10593_v34 = vsub.f32 %v2548_v30, %v2554_v33  ;;  %v9039_v30 = vld [vmem:[%s11705_s9 + $0x2a8] sm:$0xff]  ;;  %v9034_v33 = vld [vmem:[%s11705_s9 + $0x280] sm:$0xff] }
 0x663   : > { %v2556_v35 = vmul.f32 %v10593_v34, %v10593_v34 }
 0x665   : > { %v2557_v36 = vsel %vm1065_vm0, %v2556_v35, 0.0  ;;  %v9042_v35 = vld [vmem:[%s11705_s9 + $0x2c0] sm:$0xff] }
 0x666   : > { %2558 = vadd.xlane.f32.xlu2 %v2557_v36  ;;  %v9046_v36 = vld [vmem:[%s11705_s9 + $0x2e0] sm:$0xff] }
 0x6d9   : > { %v2559_v58 = vpop.xlane.xlu2 %2558 }
 0x6da   : > { %v2560_v62 = vmul.f32 %v2559_v58, %v10403_v32 }
 0x6dc   : > { %v2561_v4 = vadd.f32 1e-05, %v2560_v62 }
 0x6de   : > { %9748 = vrsqrt.f32 %v2561_v4  ;;  %vm2568_vm7 = vweird.f32 %v2561_v4 }
 0x6e4   : > { %v9749_v7 = vpop.eup %9748 }
 0x6e5   : > { %v2563_v8 = vmul.f32 %v9749_v7, %v2561_v4  ;;  %vm2569_vm6 = vweird.f32 %v9749_v7 }
 0x6e6   : > { %vm2570_vm8 = vmor %vm2568_vm7, %vm2569_vm6 }
 0x6e7   : > { %v2564_v9 = vmul.f32 %v9749_v7, %v2563_v8 }
 0x6e9   : > { %v2565_v10 = vmul.f32 0.5, %v2564_v9 }
 0x6eb   : > { %v2566_v11 = vsub.f32 1.5, %v2565_v10 }
 0x6ed   : > { %v2567_v12 = vmul.f32 %v9749_v7, %v2566_v11 }
 0x6ef   : > { %v2571_v15 = vsel %vm2570_vm8, %v9749_v7, %v2567_v12  ;;  %v9655_v7 = vld [vmem:[%s10036_s13 + $0x17] ss:$0 sm:$0xff] }
 0x6f0   : > { %v2572_v17 = vmul.f32 %v2571_v15, %v10593_v34  ;;  %v9038_v34 = vld [vmem:[%s11705_s9 + $0x2a0] sm:$0xff] }
 0x6f2   : > { %v2576_v18 = vmul.f32 %v9642_v14, %v2572_v17 }
 0x6f4   : > { %v10634_v19 = vadd.f32 %v9643_v16, %v2576_v18 }
 0x6f6   : > { %9067 = vmatmul.msk.f32.vlgmr.msra.gmra.mxu0 %vm1065_vm0, %v10634_v19  ;;  %9068 = vmatmul.msk.f32.vlgmr.msra.gmra.mxu1 %vm1065_vm0, %v10634_v19 }
 0x6f7   : > { %9069 = vmatmul.msk.f32.vlgmr.msra.gmra.mxu2 %vm1065_vm0, %v10634_v19  ;;  %9070 = vmatmul.msk.f32.vlgmr.msra.gmra.mxu3 %vm1065_vm0, %v10634_v19 }
 0x6f8   : > { %2861 = vmatpush.msra.mxu0 %v9037_v21  ;;  %2881 = vmatpush.msra.mxu1 %v9041_v22 }
 0x6f9   : > { %2901 = vmatpush.msra.mxu2 %v9045_v23  ;;  %2921 = vmatpush.msra.mxu3 %v9049_v24 }
 0x6fa   : > { %2862 = vmatpush.msra.mxu0 %v9036_v25  ;;  %2882 = vmatpush.msra.mxu1 %v9040_v26 }
 0x6fb   : > { %2902 = vmatpush.msra.mxu2 %v9044_v27  ;;  %2922 = vmatpush.msra.mxu3 %v9048_v28 }
 0x6fc   : > { %2863 = vmatpush.msra.mxu0 %v9035_v29  ;;  %2883 = vmatpush.msra.mxu1 %v9039_v30 }
 0x6fd   : > { %2903 = vmatpush.msra.mxu2 %v9043_v31  ;;  %2923 = vmatpush.msra.mxu3 %v9047_v13 }
 0x6fe   : > { %9071 = vmatmul.msk.f32.vlgmr.msrb.gmra.mxu0 %vm1065_vm0, %v10634_v19  ;;  %9072 = vmatmul.msk.f32.vlgmr.msrb.gmra.mxu1 %vm1065_vm0, %v10634_v19 }
 0x6ff   : > { %9073 = vmatmul.msk.f32.vlgmr.msrb.gmra.mxu2 %vm1065_vm0, %v10634_v19  ;;  %9074 = vmatmul.msk.f32.vlgmr.msrb.gmra.mxu3 %vm1065_vm0, %v10634_v19 }
 0x700   : > { %2864 = vmatpush.msra.mxu0 %v9034_v33  ;;  %2884 = vmatpush.msra.mxu1 %v9038_v34 }
 0x701   : > { %2904 = vmatpush.msra.mxu2 %v9042_v35  ;;  %2924 = vmatpush.msra.mxu3 %v9046_v36 }
 0x706   : > { %9075 = vmatmul.msk.f32.vlgmr.msra.gmra.mxu0 %vm1065_vm0, %v10634_v19  ;;  %9076 = vmatmul.msk.f32.vlgmr.msra.gmra.mxu1 %vm1065_vm0, %v10634_v19 }
 0x707   : > { %9077 = vmatmul.msk.f32.vlgmr.msra.gmra.mxu2 %vm1065_vm0, %v10634_v19  ;;  %9078 = vmatmul.msk.f32.vlgmr.msra.gmra.mxu3 %vm1065_vm0, %v10634_v19 }
 0x773   : > { %v2682_v37 = vpop.f32.mrf.mxu0  ;;  %v2702_v20 = vpop.f32.mrf.mxu1 }
 0x774   : > { %v2683_v44 = vadd.f32 %v9644_v38, %v2682_v37  ;;  %v2703_v45 = vadd.f32 %v9645_v39, %v2702_v20 }
 0x776   : > { %v2929_v54 = vmul.f32 0.35355338, %v2683_v44  ;;  %v2930_v55 = vmul.f32 0.35355338, %v2703_v45 }
 0x77a   : > { %v2722_v42 = vpop.f32.mrf.mxu2  ;;  %v2742_v43 = vpop.f32.mrf.mxu3 }
 0x77b   : > { %v2774_v46 = vpop.f32.mrf.mxu0  ;;  %v2794_v47 = vpop.f32.mrf.mxu1  ;;  %v2723_v58 = vadd.f32 %v9646_v50, %v2722_v42  ;;  %v2743_v59 = vadd.f32 %v9647_v51, %v2742_v43 }
 0x77c   : > { %v2775_v48 = vadd.f32 %v9648_v40, %v2774_v46  ;;  %v2795_v49 = vadd.f32 %v9649_v41, %v2794_v47 }
 0x77d   : > { %v2931_v4 = vmul.f32 0.35355338, %v2723_v58  ;;  %v2932_v5 = vmul.f32 0.35355338, %v2743_v59 }
 0x77e   : > { %9079 = vmatpush.xpose.msk.msrb.mxu0 %vm1337_vm1, %v2775_v48  ;;  %9081 = vmatpush.xpose.msk.msrb.mxu1 %vm1337_vm1, %v2795_v49 }
 0x781   : > { %9080 = vmatmul.msk.f32.vlgmr.msrb.gmra.mxu0 %vm1337_vm1, %v2929_v54  ;;  %9082 = vmatmul.msk.f32.vlgmr.msrb.gmra.mxu1 %vm1337_vm1, %v2930_v55  ;;  %v9062_v55 = vld [vmem:[%s10041_s17 + $0x20] sm:$0xff] }
 0x782   : > { %v2814_v60 = vpop.f32.mrf.mxu2  ;;  %v2834_v61 = vpop.f32.mrf.mxu3 }
 0x783   : > { %v2815_v62 = vadd.f32 %v9650_v53, %v2814_v60  ;;  %v2835_v63 = vadd.f32 %v9651_v56, %v2834_v61  ;;  %v2866_v0 = vpop.f32.mrf.mxu0  ;;  %v2886_v1 = vpop.f32.mrf.mxu1  ;;  %v9064_v56 = vld [vmem:[%s10041_s17 + $0x30] sm:$0xff] }
 0x784   : > { %v2867_v2 = vadd.f32 %v9652_v57, %v2866_v0  ;;  %v2887_v3 = vadd.f32 %v9653_v52, %v2886_v1  ;;  %v9065_v57 = vld [vmem:[%s10041_s17 + $0x38] sm:$0xff]  ;;  %v9063_v52 = vld [vmem:[%s10041_s17 + $0x28] sm:$0xff] }
 0x785   : > { %9083 = vmatpush.xpose.msk.msrb.mxu2 %vm1337_vm1, %v2815_v62  ;;  %9085 = vmatpush.xpose.msk.msrb.mxu3 %vm1337_vm1, %v2835_v63 }
 0x786   : > { %3099 = vmatpush.msra.mxu0 %v2867_v2  ;;  %3122 = vmatpush.msra.mxu1 %v2887_v3 }
 0x788   : > { %9084 = vmatmul.msk.f32.vlgmr.msrb.gmra.mxu2 %vm1337_vm1, %v2931_v4  ;;  %9086 = vmatmul.msk.f32.vlgmr.msrb.gmra.mxu3 %vm1337_vm1, %v2932_v5 }
 0x789   : > { %3191 = vmatpush.msrb.mxu0 %v9062_v55  ;;  %3214 = vmatpush.msrb.mxu1 %v9063_v52 }
 0x78a   : > { %v2906_v8 = vpop.f32.mrf.mxu2  ;;  %v2926_v9 = vpop.f32.mrf.mxu3 }
 0x78b   : > { %v2907_v10 = vadd.f32 %v9654_v6, %v2906_v8  ;;  %v2927_v11 = vadd.f32 %v9655_v7, %v2926_v9  ;;  %v9656_v7 = vld [vmem:[%s10046_s21 + $0x1] ss:$0 sm:$0xff] }
 0x78d   : > { %3145 = vmatpush.msra.mxu2 %v2907_v10  ;;  %3168 = vmatpush.msra.mxu3 %v2927_v11 }
 0x78f   : > { %3237 = vmatpush.msrb.mxu2 %v9064_v56  ;;  %3260 = vmatpush.msrb.mxu3 %v9065_v57 }
 0x7fe   : > { %v2956_v12 = vpop.f32.mrf.mxu0  ;;  %v2982_v21 = vpop.f32.mrf.mxu1 }
 0x7ff   : > { %v3037_v14 = vsel %vm1337_vm1, %v2956_v12, -inf  ;;  %v3040_v22 = vsel %vm1337_vm1, %v2982_v21, -inf }
 0x800   : > { %3038 = vmax.xlane.f32.xlu2 %v3037_v14 }
 0x80b   : > { %v3008_v15 = vpop.f32.mrf.mxu2  ;;  %v3034_v16 = vpop.f32.mrf.mxu3 }
 0x80c   : > { %v3046_v17 = vsel %vm1337_vm1, %v3034_v16, -inf  ;;  %v3043_v18 = vsel %vm1337_vm1, %v3008_v15, -inf }
 0x80d   : > { %3047 = vmax.xlane.f32.xlu1 %v3046_v17  ;;  %3044 = vmax.xlane.f32.xlu0 %v3043_v18 }
 0x815   : > { %3041 = vmax.xlane.f32.xlu0 %v3040_v22  ;;  %v9147_v22 = vld [vmem:[%s10051_s25 + $0x390] sm:$0xff] }
 0x873   : > { %v3039_v23 = vpop.xlane.xlu2 %3038 }
 0x874   : > { %v3049_v24 = vsub.f32 %v2956_v12, %v3039_v23  ;;  %v9148_v23 = vld [vmem:[%s10051_s25 + $0x398] sm:$0xff] }
 0x876   : > { %v3053_v25 = vmul.f32 1.442695, %v3049_v24  ;;  %v9129_v24 = vld [vmem:[%s10051_s25 + $0x300] sm:$0xff] }
 0x878   : > { %9750 = vpow2.f32 %v3053_v25  ;;  %v9130_v25 = vld [vmem:[%s10051_s25 + $0x308] sm:$0xff] }
 0x87e   : > { %v9751_v26 = vpop.eup %9750 }
 0x87f   : > { %v3061_v27 = vsel %vm1337_vm1, %v9751_v26, 0.0 }
 0x880   : > { %v3048_v28 = vpop.xlane.xlu1 %3047  ;;  %v3045_v29 = vpop.xlane.xlu0 %3044  ;;  %3062 = vadd.xlane.f32.xlu0 %v3061_v27  ;;  %v9132_v27 = vld [vmem:[%s10051_s25 + $0x318] sm:$0xff] }
 0x881   : > { %v3052_v30 = vsub.f32 %v3034_v16, %v3048_v28  ;;  %v3051_v31 = vsub.f32 %v3008_v15, %v3045_v29  ;;  %v9113_v28 = vld [vmem:[%s10051_s25 + $0x280] sm:$0xff]  ;;  %v9114_v29 = vld [vmem:[%s10051_s25 + $0x288] sm:$0xff] }
 0x883   : > { %v3059_v13 = vmul.f32 1.442695, %v3052_v30  ;;  %v3057_v33 = vmul.f32 1.442695, %v3051_v31  ;;  %v9115_v30 = vld [vmem:[%s10051_s25 + $0x290] sm:$0xff]  ;;  %v9116_v31 = vld [vmem:[%s10051_s25 + $0x298] sm:$0xff] }
 0x885   : > { %9752 = vpow2.f32 %v3059_v13  ;;  %v9097_v13 = vld [vmem:[%s10051_s25 + $0x200] sm:$0xff] }
 0x886   : > { %9754 = vpow2.f32 %v3057_v33  ;;  %v9098_v33 = vld [vmem:[%s10051_s25 + $0x208] sm:$0xff] }
 0x888   : > { %v3042_v34 = vpop.xlane.xlu0 %3041 }
 0x889   : > { %v3050_v35 = vsub.f32 %v2982_v21, %v3042_v34  ;;  %v9145_v21 = vld [vmem:[%s10051_s25 + $0x380] sm:$0xff]  ;;  %v9099_v34 = vld [vmem:[%s10051_s25 + $0x210] sm:$0xff] }
 0x88b   : > { %v9753_v36 = vpop.eup %9752  ;;  %v3055_v37 = vmul.f32 1.442695, %v3050_v35  ;;  %v9100_v35 = vld [vmem:[%s10051_s25 + $0x218] sm:$0xff] }
 0x88c   : > { %v9755_v20 = vpop.eup %9754  ;;  %v3070_v38 = vsel %vm1337_vm1, %v9753_v36, 0.0 }
 0x88d   : > { %9756 = vpow2.f32 %v3055_v37  ;;  %v3067_v39 = vsel %vm1337_vm1, %v9755_v20, 0.0  ;;  %3071 = vadd.xlane.f32.xlu2 %v3070_v38  ;;  %v9150_v37 = vld [vmem:[%s10051_s25 + $0x3a8] sm:$0xff]  ;;  %v9152_v38 = vld [vmem:[%s10051_s25 + $0x3b8] sm:$0xff] }
 0x88e   : > { %3068 = vadd.xlane.f32.xlu1 %v3067_v39  ;;  %v9133_v39 = vld [vmem:[%s10051_s25 + $0x320] sm:$0xff] }
 0x893   : > { %v9757_v40 = vpop.eup %9756 }
 0x894   : > { %v3064_v41 = vsel %vm1337_vm1, %v9757_v40, 0.0 }
 0x896   : > { %3065 = vadd.xlane.f32.xlu1 %v3064_v41 }
 0x8f3   : > { %v3063_v42 = vpop.xlane.xlu0 %3062 }
 0x8f4   : > { %9758 = vrcp.f32 %v3063_v42  ;;  %v9135_v42 = vld [vmem:[%s10051_s25 + $0x330] sm:$0xff] }
 0x8fa   : > { %v9759_v43 = vpop.eup %9758 }
 0x8fb   : > { %v3077_v44 = vmul.f32 %v9759_v43, %v9751_v26  ;;  %v9131_v26 = vld [vmem:[%s10051_s25 + $0x310] sm:$0xff]  ;;  %v9136_v43 = vld [vmem:[%s10051_s25 + $0x338] sm:$0xff] }
 0x8fd   : > { %9087 = vmatmul.msk.f32.vlgmr.msra.gmra.mxu0 %vm1337_vm1, %v3077_v44  ;;  %v9117_v44 = vld [vmem:[%s10051_s25 + $0x2a0] sm:$0xff] }
 0x8fe   : > { %3495 = vmatpush.msra.mxu0 %v9145_v21  ;;  %v9157_v21 = vld [vmem:[%s10051_s25 + $0x3e0] sm:$0xff] }
 0x900   : > { %v3072_v45 = vpop.xlane.xlu2 %3071  ;;  %3496 = vmatpush.msra.mxu0 %v9129_v24  ;;  %v9141_v24 = vld [vmem:[%s10051_s25 + $0x360] sm:$0xff] }
 0x901   : > { %v3069_v46 = vpop.xlane.xlu1 %3068  ;;  %9760 = vrcp.f32 %v3072_v45 }
 0x902   : > { %9762 = vrcp.f32 %v3069_v46  ;;  %3497 = vmatpush.msra.mxu0 %v9113_v28  ;;  %v9118_v46 = vld [vmem:[%s10051_s25 + $0x2a8] sm:$0xff]  ;;  %v9125_v28 = vld [vmem:[%s10051_s25 + $0x2e0] sm:$0xff] }
 0x904   : > { %3498 = vmatpush.msra.mxu0 %v9097_v13  ;;  %v9109_v13 = vld [vmem:[%s10051_s25 + $0x260] sm:$0xff] }
 0x907   : > { %v9761_v47 = vpop.eup %9760 }
 0x908   : > { %v9763_v48 = vpop.eup %9762  ;;  %v3080_v49 = vmul.f32 %v9761_v47, %v9753_v36  ;;  %v9149_v36 = vld [vmem:[%s10051_s25 + $0x3a0] sm:$0xff]  ;;  %v9119_v47 = vld [vmem:[%s10051_s25 + $0x2b0] sm:$0xff] }
 0x909   : > { %v3079_v50 = vmul.f32 %v9763_v48, %v9755_v20  ;;  %v3066_v51 = vpop.xlane.xlu1 %3065  ;;  %v9151_v20 = vld [vmem:[%s10051_s25 + $0x3b0] sm:$0xff]  ;;  %v9120_v48 = vld [vmem:[%s10051_s25 + $0x2b8] sm:$0xff] }
 0x90a   : > { %9764 = vrcp.f32 %v3066_v51  ;;  %9090 = vmatmul.msk.f32.vlgmr.msra.gmra.mxu3 %vm1337_vm1, %v3080_v49  ;;  %v9101_v49 = vld [vmem:[%s10051_s25 + $0x220] sm:$0xff] }
 0x90b   : > { %9089 = vmatmul.msk.f32.vlgmr.msra.gmra.mxu2 %vm1337_vm1, %v3079_v50  ;;  %3555 = vmatpush.msra.mxu3 %v9148_v23  ;;  %v9102_v50 = vld [vmem:[%s10051_s25 + $0x228] sm:$0xff]  ;;  %v9160_v23 = vld [vmem:[%s10051_s25 + $0x3f8] sm:$0xff] }
 0x90c   : > { %3535 = vmatpush.msra.mxu2 %v9147_v22  ;;  %v9159_v22 = vld [vmem:[%s10051_s25 + $0x3f0] sm:$0xff] }
 0x90d   : > { %3556 = vmatpush.msra.mxu3 %v9132_v27  ;;  %v9144_v27 = vld [vmem:[%s10051_s25 + $0x378] sm:$0xff] }
 0x90e   : > { %3536 = vmatpush.msra.mxu2 %v9131_v26  ;;  %v9143_v26 = vld [vmem:[%s10051_s25 + $0x370] sm:$0xff] }
 0x90f   : > { %3557 = vmatpush.msra.mxu3 %v9116_v31  ;;  %v9128_v31 = vld [vmem:[%s10051_s25 + $0x2f8] sm:$0xff] }
 0x910   : > { %v9765_v53 = vpop.eup %9764  ;;  %3537 = vmatpush.msra.mxu2 %v9115_v30  ;;  %v9127_v30 = vld [vmem:[%s10051_s25 + $0x2f0] sm:$0xff] }
 0x911   : > { %v3078_v54 = vmul.f32 %v9765_v53, %v9757_v40  ;;  %3558 = vmatpush.msra.mxu3 %v9100_v35  ;;  %v9134_v40 = vld [vmem:[%s10051_s25 + $0x328] sm:$0xff]  ;;  %v9103_v53 = vld [vmem:[%s10051_s25 + $0x230] sm:$0xff]  ;;  %v9112_v35 = vld [vmem:[%s10051_s25 + $0x278] sm:$0xff] }
 0x912   : > { %3538 = vmatpush.msra.mxu2 %v9099_v34  ;;  %v9111_v34 = vld [vmem:[%s10051_s25 + $0x270] sm:$0xff] }
 0x913   : > { %9088 = vmatmul.msk.f32.vlgmr.msra.gmra.mxu1 %vm1337_vm1, %v3078_v54  ;;  %v9104_v54 = vld [vmem:[%s10051_s25 + $0x238] sm:$0xff] }
 0x97a   : > { %v3101_v58 = vpop.f32.mrf.mxu0 }
 0x97b   : > { %9091 = vmatmul.msk.f32.vlgmr.msrb.gmra.mxu0 %vm1337_vm1, %v3101_v58 }
 0x97c   : > { %3575 = vmatpush.msrb.mxu0 %v9149_v36  ;;  %v9211_v36 = vld [vmem:[%s11708_s3 + $0x380] sm:$0xff] }
 0x97e   : > { %3576 = vmatpush.msrb.mxu0 %v9133_v39  ;;  %v9195_v39 = vld [vmem:[%s11708_s3 + $0x300] sm:$0xff] }
 0x980   : > { %3577 = vmatpush.msrb.mxu0 %v9117_v44  ;;  %v9180_v44 = vld [vmem:[%s11708_s3 + $0x288] sm:$0xff] }
 0x982   : > { %3578 = vmatpush.msrb.mxu0 %v9101_v49  ;;  %v9215_v49 = vld [vmem:[%s11708_s3 + $0x3a0] sm:$0xff] }
 0x98d   : > { %v3170_v59 = vpop.f32.mrf.mxu3 }
 0x98e   : > { %v3147_v60 = vpop.f32.mrf.mxu2  ;;  %9094 = vmatmul.msk.f32.vlgmr.msrb.gmra.mxu3 %vm1337_vm1, %v3170_v59 }
 0x98f   : > { %9093 = vmatmul.msk.f32.vlgmr.msrb.gmra.mxu2 %vm1337_vm1, %v3147_v60  ;;  %3635 = vmatpush.msrb.mxu3 %v9152_v38  ;;  %v9657_v60 = vld [vmem:[%s10071_s14 + $0x1] ss:$0 sm:$0xff]  ;;  %v9214_v38 = vld [vmem:[%s11708_s3 + $0x398] sm:$0xff] }
 0x990   : > { %v3124_v61 = vpop.f32.mrf.mxu1  ;;  %3615 = vmatpush.msrb.mxu2 %v9151_v20  ;;  %v9213_v20 = vld [vmem:[%s11708_s3 + $0x390] sm:$0xff] }
 0x991   : > { %9092 = vmatmul.msk.f32.vlgmr.msrb.gmra.mxu1 %vm1337_vm1, %v3124_v61  ;;  %3636 = vmatpush.msrb.mxu3 %v9136_v43  ;;  %v9179_v43 = vld [vmem:[%s11708_s3 + $0x280] sm:$0xff] }
 0x992   : > { %3616 = vmatpush.msrb.mxu2 %v9135_v42  ;;  %v9198_v42 = vld [vmem:[%s11708_s3 + $0x318] sm:$0xff] }
 0x993   : > { %3637 = vmatpush.msrb.mxu3 %v9120_v48  ;;  %v9164_v48 = vld [vmem:[%s11708_s3 + $0x208] sm:$0xff] }
 0x994   : > { %3617 = vmatpush.msrb.mxu2 %v9119_v47  ;;  %v9163_v47 = vld [vmem:[%s11708_s3 + $0x200] sm:$0xff] }
 0x995   : > { %3638 = vmatpush.msrb.mxu3 %v9104_v54  ;;  %v9217_v54 = vld [vmem:[%s11708_s3 + $0x3b0] sm:$0xff] }
 0x996   : > { %3618 = vmatpush.msrb.mxu2 %v9103_v53  ;;  %v9166_v53 = vld [vmem:[%s11708_s3 + $0x218] sm:$0xff] }
 0x9f8   : > { %v3193_v62 = vpop.f32.mrf.mxu0 }
 0x9f9   : > { %v3265_v1 = vsel %vm1065_vm0, %v3193_v62, 0.0  ;;  %v9658_v62 = vld [vmem:[%s10076_s19 + $0x1] ss:$0 sm:$0xff] }
 0xa0e   : > { %v3216_v63 = vpop.f32.mrf.mxu1 }
 0xa0f   : > { %v3266_v0 = vsel %vm1065_vm0, %v3216_v63, 0.0 }
 0xa10   : > { %v3267_v2 = vadd.f32 %v3266_v0, %v3265_v1 }
 0xa11   : > { %v3262_v4 = vpop.f32.mrf.mxu3 }
 0xa12   : > { %v3239_v3 = vpop.f32.mrf.mxu2  ;;  %v3270_v8 = vsel %vm1065_vm0, %v3262_v4, 0.0  ;;  %v9155_v4 = vld [vmem:[%s10051_s25 + $0x3d0] sm:$0xff] }
 0xa13   : > { %v3268_v5 = vsel %vm1065_vm0, %v3239_v3, 0.0  ;;  %v9154_v3 = vld [vmem:[%s10051_s25 + $0x3c8] sm:$0xff] }
 0xa14   : > { %v3269_v6 = vadd.f32 %v3268_v5, %v3267_v2  ;;  %v9153_v2 = vld [vmem:[%s10051_s25 + $0x3c0] sm:$0xff]  ;;  %v9156_v5 = vld [vmem:[%s10051_s25 + $0x3d8] sm:$0xff] }
 0xa16   : > { %v3271_v9 = vadd.f32 %v3270_v8, %v3269_v6  ;;  %v9137_v6 = vld [vmem:[%s10051_s25 + $0x340] sm:$0xff]  ;;  %v9139_v8 = vld [vmem:[%s10051_s25 + $0x350] sm:$0xff] }
 0xa18   : > { %v3275_v10 = vadd.f32 %v9656_v7, %v3271_v9  ;;  %v9138_v7 = vld [vmem:[%s10051_s25 + $0x348] sm:$0xff]  ;;  %v9140_v9 = vld [vmem:[%s10051_s25 + $0x358] sm:$0xff] }
 0xa1a   : > { %v3276_v11 = vadd.f32 %v3275_v10, %v10634_v19  ;;  %v9146_v19 = vld [vmem:[%s10051_s25 + $0x388] sm:$0xff]  ;;  %v9121_v10 = vld [vmem:[%s10051_s25 + $0x2c0] sm:$0xff] }
 0xa1b   : > { %3515 = vmatpush.msra.mxu1 %v9146_v19  ;;  %v9158_v19 = vld [vmem:[%s10051_s25 + $0x3e8] sm:$0xff] }
 0xa1c   : > { %v3281_v12 = vsel %vm1065_vm0, %v3276_v11, 0.0 }
 0xa1d   : > { %3282 = vadd.xlane.f32.xlu2 %v3281_v12  ;;  %3516 = vmatpush.msra.mxu1 %v9130_v25  ;;  %v9123_v12 = vld [vmem:[%s10051_s25 + $0x2d0] sm:$0xff]  ;;  %v9142_v25 = vld [vmem:[%s10051_s25 + $0x368] sm:$0xff] }
 0xa1f   : > { %3517 = vmatpush.msra.mxu1 %v9114_v29  ;;  %v9126_v29 = vld [vmem:[%s10051_s25 + $0x2e8] sm:$0xff] }
 0xa21   : > { %3518 = vmatpush.msra.mxu1 %v9098_v33  ;;  %v9110_v33 = vld [vmem:[%s10051_s25 + $0x268] sm:$0xff] }
 0xa23   : > { %3595 = vmatpush.msrb.mxu1 %v9150_v37  ;;  %v9212_v37 = vld [vmem:[%s11708_s3 + $0x388] sm:$0xff] }
 0xa25   : > { %3596 = vmatpush.msrb.mxu1 %v9134_v40  ;;  %v9196_v40 = vld [vmem:[%s11708_s3 + $0x308] sm:$0xff] }
 0xa27   : > { %3597 = vmatpush.msrb.mxu1 %v9118_v46  ;;  %v9182_v46 = vld [vmem:[%s11708_s3 + $0x298] sm:$0xff] }
 0xa29   : > { %3598 = vmatpush.msrb.mxu1 %v9102_v50  ;;  %v9216_v50 = vld [vmem:[%s11708_s3 + $0x3a8] sm:$0xff] }
 0xa90   : > { %v3283_v14 = vpop.xlane.xlu2 %3282 }
 0xa91   : > { %v3284_v15 = vmul.f32 %v3283_v14, %v10403_v32  ;;  %v9124_v14 = vld [vmem:[%s10051_s25 + $0x2d8] sm:$0xff] }
 0xa93   : > { %v10724_v16 = vsub.f32 %v3276_v11, %v3284_v15  ;;  %v9122_v11 = vld [vmem:[%s10051_s25 + $0x2c8] sm:$0xff]  ;;  %v9105_v15 = vld [vmem:[%s10051_s25 + $0x240] sm:$0xff] }
 0xa95   : > { %v3286_v17 = vmul.f32 %v10724_v16, %v10724_v16 }
 0xa97   : > { %v3287_v18 = vsel %vm1065_vm0, %v3286_v17, 0.0  ;;  %v9107_v17 = vld [vmem:[%s10051_s25 + $0x250] sm:$0xff] }
 0xa98   : > { %3288 = vadd.xlane.f32.xlu0 %v3287_v18  ;;  %v9108_v18 = vld [vmem:[%s10051_s25 + $0x258] sm:$0xff] }
 0xb0b   : > { %v3289_v41 = vpop.xlane.xlu0 %3288 }
 0xb0c   : > { %v3290_v45 = vmul.f32 %v3289_v41, %v10403_v32  ;;  %v9197_v41 = vld [vmem:[%s11708_s3 + $0x310] sm:$0xff] }
 0xb0e   : > { %v3291_v51 = vadd.f32 1e-05, %v3290_v45  ;;  %v9181_v45 = vld [vmem:[%s11708_s3 + $0x290] sm:$0xff] }
 0xb10   : > { %9766 = vrsqrt.f32 %v3291_v51  ;;  %vm3298_vm10 = vweird.f32 %v3291_v51 }
 0xb16   : > { %v9767_v55 = vpop.eup %9766 }
 0xb17   : > { %v3293_v56 = vmul.f32 %v9767_v55, %v3291_v51  ;;  %vm3299_vm9 = vweird.f32 %v9767_v55  ;;  %v9165_v51 = vld [vmem:[%s11708_s3 + $0x210] sm:$0xff] }
 0xb18   : > { %vm3300_vm11 = vmor %vm3298_vm10, %vm3299_vm9 }
 0xb19   : > { %v3294_v57 = vmul.f32 %v9767_v55, %v3293_v56  ;;  %v9199_v56 = vld [vmem:[%s11708_s3 + $0x320] sm:$0xff] }
 0xb1b   : > { %v3295_v52 = vmul.f32 0.5, %v3294_v57  ;;  %v9200_v57 = vld [vmem:[%s11708_s3 + $0x328] sm:$0xff] }
 0xb1d   : > { %v3296_v58 = vsub.f32 1.5, %v3295_v52  ;;  %v9183_v52 = vld [vmem:[%s11708_s3 + $0x2a0] sm:$0xff] }
 0xb1f   : > { %v3297_v59 = vmul.f32 %v9767_v55, %v3296_v58  ;;  %v9184_v58 = vld [vmem:[%s11708_s3 + $0x2a8] sm:$0xff] }
 0xb21   : > { %v3301_v61 = vsel %vm3300_vm11, %v9767_v55, %v3297_v59  ;;  %v9218_v55 = vld [vmem:[%s11708_s3 + $0x3b8] sm:$0xff]  ;;  %v9201_v59 = vld [vmem:[%s11708_s3 + $0x330] sm:$0xff] }
 0xb22   : > { %v3302_v63 = vmul.f32 %v3301_v61, %v10724_v16  ;;  %v9106_v16 = vld [vmem:[%s10051_s25 + $0x248] sm:$0xff]  ;;  %v9167_v61 = vld [vmem:[%s11708_s3 + $0x220] sm:$0xff] }
 0xb24   : > { %v3306_v0 = vmul.f32 %v9657_v60, %v3302_v63  ;;  %v9202_v60 = vld [vmem:[%s11708_s3 + $0x338] sm:$0xff]  ;;  %v9185_v63 = vld [vmem:[%s11708_s3 + $0x2b0] sm:$0xff] }
 0xb26   : > { %v10765_v1 = vadd.f32 %v9658_v62, %v3306_v0  ;;  %v9168_v62 = vld [vmem:[%s11708_s3 + $0x228] sm:$0xff]  ;;  %v9186_v0 = vld [vmem:[%s11708_s3 + $0x2b8] sm:$0xff] }
 0xb28   : > { %9228 = vmatmul.msk.f32.vlgmr.msra.gmra.mxu0 %vm1065_vm0, %v10765_v1  ;;  %9229 = vmatmul.msk.f32.vlgmr.msra.gmra.mxu1 %vm1065_vm0, %v10765_v1 }
 0xb29   : > { %9230 = vmatmul.msk.f32.vlgmr.msra.gmra.mxu2 %vm1065_vm0, %v10765_v1  ;;  %9231 = vmatmul.msk.f32.vlgmr.msra.gmra.mxu3 %vm1065_vm0, %v10765_v1 }
 0xb2a   : > { %3655 = vmatpush.msra.mxu0 %v9153_v2  ;;  %3675 = vmatpush.msra.mxu1 %v9154_v3  ;;  %v9169_v2 = vld [vmem:[%s11708_s3 + $0x230] sm:$0xff]  ;;  %v9170_v3 = vld [vmem:[%s11708_s3 + $0x238] sm:$0xff] }
 0xb2b   : > { %3695 = vmatpush.msra.mxu2 %v9155_v4  ;;  %3715 = vmatpush.msra.mxu3 %v9156_v5  ;;  %v9161_v4 = vld [vmem:[%s10056_s29 + $0x10] sm:$0xff] }
 0xb2c   : > { %3656 = vmatpush.msra.mxu0 %v9137_v6  ;;  %3676 = vmatpush.msra.mxu1 %v9138_v7  ;;  %v3448_v5 = vperm.slane %v9161_v4, 0  ;;  %v3449_v6 = vperm.slane %v9161_v4, 1 }
 0xb2d   : > { %3696 = vmatpush.msra.mxu2 %v9139_v8  ;;  %3716 = vmatpush.msra.mxu3 %v9140_v9 }
 0xb2e   : > { %3657 = vmatpush.msra.mxu0 %v9121_v10  ;;  %3677 = vmatpush.msra.mxu1 %v9122_v11 }
 0xb2f   : > { %3697 = vmatpush.msra.mxu2 %v9123_v12  ;;  %3717 = vmatpush.msra.mxu3 %v9124_v14  ;;  %v9219_v14 = vld [vmem:[%s11708_s3 + $0x3c0] sm:$0xff] }
 0xb30   : > { %9232 = vmatmul.msk.f32.vlgmr.msrb.gmra.mxu0 %vm1065_vm0, %v10765_v1  ;;  %9233 = vmatmul.msk.f32.vlgmr.msrb.gmra.mxu1 %vm1065_vm0, %v10765_v1 }
 0xb31   : > { %9234 = vmatmul.msk.f32.vlgmr.msrb.gmra.mxu2 %vm1065_vm0, %v10765_v1  ;;  %9235 = vmatmul.msk.f32.vlgmr.msrb.gmra.mxu3 %vm1065_vm0, %v10765_v1 }
 0xb32   : > { %3658 = vmatpush.msra.mxu0 %v9105_v15  ;;  %3678 = vmatpush.msra.mxu1 %v9106_v16  ;;  %v9220_v15 = vld [vmem:[%s11708_s3 + $0x3c8] sm:$0xff]  ;;  %v3450_v16 = vperm.slane %v9161_v4, 2 }
 0xb33   : > { %3698 = vmatpush.msra.mxu2 %v9107_v17  ;;  %3718 = vmatpush.msra.mxu3 %v9108_v18  ;;  %v3451_v17 = vperm.slane %v9161_v4, 3  ;;  %v3452_v18 = vperm.slane %v9161_v4, 4 }
 0xb34   : > { %3735 = vmatpush.msrb.mxu0 %v9157_v21  ;;  %3755 = vmatpush.msrb.mxu1 %v9158_v19  ;;  %v3453_v21 = vperm.slane %v9161_v4, 5 }
 0xb35   : > { %3775 = vmatpush.msrb.mxu2 %v9159_v22  ;;  %3795 = vmatpush.msrb.mxu3 %v9160_v23  ;;  %v9203_v23 = vld [vmem:[%s11708_s3 + $0x340] sm:$0xff] }
 0xb36   : > { %3736 = vmatpush.msrb.mxu0 %v9141_v24  ;;  %3756 = vmatpush.msrb.mxu1 %v9142_v25  ;;  %v9204_v24 = vld [vmem:[%s11708_s3 + $0x348] sm:$0xff] }
 0xb37   : > { %3776 = vmatpush.msrb.mxu2 %v9143_v26  ;;  %3796 = vmatpush.msrb.mxu3 %v9144_v27 }
 0xb38   : > { %9236 = vmatmul.msk.f32.vlgmr.msra.gmra.mxu0 %vm1065_vm0, %v10765_v1  ;;  %9237 = vmatmul.msk.f32.vlgmr.msra.gmra.mxu1 %vm1065_vm0, %v10765_v1 }
 0xb39   : > { %9238 = vmatmul.msk.f32.vlgmr.msra.gmra.mxu2 %vm1065_vm0, %v10765_v1  ;;  %9239 = vmatmul.msk.f32.vlgmr.msra.gmra.mxu3 %vm1065_vm0, %v10765_v1 }
 0xb3a   : > { %3737 = vmatpush.msrb.mxu0 %v9125_v28  ;;  %3757 = vmatpush.msrb.mxu1 %v9126_v29 }
 0xb3b   : > { %3777 = vmatpush.msrb.mxu2 %v9127_v30  ;;  %3797 = vmatpush.msrb.mxu3 %v9128_v31 }
 0xb3c   : > { %3738 = vmatpush.msrb.mxu0 %v9109_v13  ;;  %3758 = vmatpush.msrb.mxu1 %v9110_v33  ;;  %v9221_v33 = vld [vmem:[%s11708_s3 + $0x3d0] sm:$0xff] }
 0xb3d   : > { %3778 = vmatpush.msrb.mxu2 %v9111_v34  ;;  %3798 = vmatpush.msrb.mxu3 %v9112_v35  ;;  %v9222_v34 = vld [vmem:[%s11708_s3 + $0x3d8] sm:$0xff] }
 0xb3e   : > { %3834 = vmatpush.xpose.msra.mxu0 %v9211_v36  ;;  %3854 = vmatpush.xpose.msra.mxu1 %v9212_v37  ;;  %v10871_v35 = vld [vmem:[%s10056_s29 + $0x18] sm:$0xff] }
 0xb3f   : > { %3874 = vmatpush.xpose.msra.mxu2 %v9213_v20  ;;  %3894 = vmatpush.xpose.msra.mxu3 %v9214_v38  ;;  %v9187_v20 = vld [vmem:[%s11708_s3 + $0x2c0] sm:$0xff]  ;;  %v9188_v38 = vld [vmem:[%s11708_s3 + $0x2c8] sm:$0xff] }
 0xb40   : > { %9240 = vmatmul.msk.f32.vlgmr.msrb.gmra.mxu0 %vm1065_vm0, %v10765_v1  ;;  %9241 = vmatmul.msk.f32.vlgmr.msrb.gmra.mxu1 %vm1065_vm0, %v10765_v1 }
 0xb41   : > { %9242 = vmatmul.msk.f32.vlgmr.msrb.gmra.mxu2 %vm1065_vm0, %v10765_v1  ;;  %9243 = vmatmul.msk.f32.vlgmr.msrb.gmra.mxu3 %vm1065_vm0, %v10765_v1 }
 0xb42   : > { %3835 = vmatpush.xpose.msra.mxu0 %v9195_v39  ;;  %3855 = vmatpush.xpose.msra.mxu1 %v9196_v40  ;;  %v3454_v39 = vperm.slane %v9161_v4, 6  ;;  %v3455_v40 = vperm.slane %v9161_v4, 7 }
 0xb43   : > { %3875 = vmatpush.xpose.msra.mxu2 %v9197_v41  ;;  %3895 = vmatpush.xpose.msra.mxu3 %v9198_v42  ;;  %v3456_v41 = vperm.slane %v10871_v35, 0  ;;  %v3457_v42 = vperm.slane %v10871_v35, 1 }
 0xb46   : > { %3836 = vmatpush.xpose.msra.mxu0 %v9179_v43  ;;  %3856 = vmatpush.xpose.msra.mxu1 %v9180_v44  ;;  %v9205_v43 = vld [vmem:[%s11708_s3 + $0x350] sm:$0xff]  ;;  %v9206_v44 = vld [vmem:[%s11708_s3 + $0x358] sm:$0xff] }
 0xb47   : > { %3876 = vmatpush.xpose.msra.mxu2 %v9181_v45  ;;  %3896 = vmatpush.xpose.msra.mxu3 %v9182_v46 }
 0xb4a   : > { %3837 = vmatpush.xpose.msra.mxu0 %v9163_v47  ;;  %3857 = vmatpush.xpose.msra.mxu1 %v9164_v48 }
 0xb4b   : > { %3877 = vmatpush.xpose.msra.mxu2 %v9165_v51  ;;  %3897 = vmatpush.xpose.msra.mxu3 %v9166_v53  ;;  %v9171_v51 = vld [vmem:[%s11708_s3 + $0x240] sm:$0xff]  ;;  %v9172_v53 = vld [vmem:[%s11708_s3 + $0x248] sm:$0xff] }
 0xb4e   : > { %3914 = vmatpush.xpose.msrb.mxu0 %v9215_v49  ;;  %3934 = vmatpush.xpose.msrb.mxu1 %v9216_v50 }
 0xb4f   : > { %3954 = vmatpush.xpose.msrb.mxu2 %v9217_v54  ;;  %3974 = vmatpush.xpose.msrb.mxu3 %v9218_v55 }
 0xb52   : > { %3915 = vmatpush.xpose.msrb.mxu0 %v9199_v56  ;;  %3935 = vmatpush.xpose.msrb.mxu1 %v9200_v57  ;;  %v9223_v56 = vld [vmem:[%s11708_s3 + $0x3e0] sm:$0xff]  ;;  %v9224_v57 = vld [vmem:[%s11708_s3 + $0x3e8] sm:$0xff] }
 0xb53   : > { %3955 = vmatpush.xpose.msrb.mxu2 %v9201_v59  ;;  %3975 = vmatpush.xpose.msrb.mxu3 %v9202_v60 }
 0xb56   : > { %3916 = vmatpush.xpose.msrb.mxu0 %v9183_v52  ;;  %3936 = vmatpush.xpose.msrb.mxu1 %v9184_v58 }
 0xb57   : > { %3956 = vmatpush.xpose.msrb.mxu2 %v9185_v63  ;;  %3976 = vmatpush.xpose.msrb.mxu3 %v9186_v0  ;;  %v3458_v63 = vperm.slane %v10871_v35, 2  ;;  %v3459_v0 = vperm.slane %v10871_v35, 3 }
 0xb5a   : > { %3917 = vmatpush.xpose.msrb.mxu0 %v9167_v61  ;;  %3937 = vmatpush.xpose.msrb.mxu1 %v9168_v62  ;;  %v9189_v61 = vld [vmem:[%s11708_s3 + $0x2d0] sm:$0xff]  ;;  %v9190_v62 = vld [vmem:[%s11708_s3 + $0x2d8] sm:$0xff] }
 0xb5b   : > { %3957 = vmatpush.xpose.msrb.mxu2 %v9169_v2  ;;  %3977 = vmatpush.xpose.msrb.mxu3 %v9170_v3  ;;  %v9207_v2 = vld [vmem:[%s11708_s3 + $0x360] sm:$0xff]  ;;  %v9208_v3 = vld [vmem:[%s11708_s3 + $0x368] sm:$0xff] }
 0xba5   : > { %v3500_v7 = vpop.f32.mrf.mxu0  ;;  %v3520_v8 = vpop.f32.mrf.mxu1 }
 0xba6   : > { %v3501_v9 = vadd.f32 %v3500_v7, %v3448_v5  ;;  %v3521_v10 = vadd.f32 %v3520_v8, %v3449_v6  ;;  %v9173_v6 = vld [vmem:[%s11708_s3 + $0x250] sm:$0xff]  ;;  %v9174_v7 = vld [vmem:[%s11708_s3 + $0x258] sm:$0xff] }
 0xba8   : > { %v3803_v11 = vmax.f32 %v3501_v9, 0.0  ;;  %v3804_v12 = vmax.f32 %v3521_v10, 0.0  ;;  %v9225_v10 = vld [vmem:[%s11708_s3 + $0x3f0] sm:$0xff] }
 0xbaa   : > { %3838 = vmatmul.f32.vlgmr.msra.gmra.mxu0 %v3803_v11  ;;  %3858 = vmatmul.f32.vlgmr.msra.gmra.mxu1 %v3804_v12  ;;  %v9226_v11 = vld [vmem:[%s11708_s3 + $0x3f8] sm:$0xff]  ;;  %v9191_v12 = vld [vmem:[%s11708_s3 + $0x2e0] sm:$0xff] }
 0xbab   : > { %3994 = vmatpush.xpose.msra.mxu0 %v9219_v14  ;;  %4014 = vmatpush.xpose.msra.mxu1 %v9220_v15  ;;  %v9192_v14 = vld [vmem:[%s11708_s3 + $0x2e8] sm:$0xff] }
 0xbac   : > { %v3540_v19 = vpop.f32.mrf.mxu2  ;;  %v3560_v22 = vpop.f32.mrf.mxu3 }
 0xbad   : > { %v3541_v25 = vadd.f32 %v3540_v19, %v3450_v16  ;;  %v3561_v26 = vadd.f32 %v3560_v22, %v3451_v17  ;;  %v3580_v27 = vpop.f32.mrf.mxu0  ;;  %v3600_v28 = vpop.f32.mrf.mxu1  ;;  %v3460_v17 = vperm.slane %v10871_v35, 4  ;;  %v9209_v22 = vld [vmem:[%s11708_s3 + $0x370] sm:$0xff] }
 0xbae   : > { %v3581_v29 = vadd.f32 %v3580_v27, %v3452_v18  ;;  %v3601_v30 = vadd.f32 %v3600_v28, %v3453_v21  ;;  %v3461_v18 = vperm.slane %v10871_v35, 5  ;;  %v4180_v28 = vld [vmem:[%s11724_s26 + $0x18] sm:$0xff]  ;;  %s11739_s26 = sld [smem:[#allocation25_spill]] }
 0xbaf   : > { %v3805_v31 = vmax.f32 %v3541_v25, 0.0  ;;  %v3806_v13 = vmax.f32 %v3561_v26, 0.0  ;;  %3995 = vmatpush.xpose.msra.mxu0 %v9203_v23  ;;  %4015 = vmatpush.xpose.msra.mxu1 %v9204_v24  ;;  %v9210_v23 = vld [vmem:[%s11708_s3 + $0x378] sm:$0xff]  ;;  %v9175_v24 = vld [vmem:[%s11708_s3 + $0x260] sm:$0xff]  ;;  %v9176_v25 = vld [vmem:[%s11708_s3 + $0x268] sm:$0xff] }
 0xbb0   : > { %v3807_v36 = vmax.f32 %v3581_v29, 0.0  ;;  %v3808_v37 = vmax.f32 %v3601_v30, 0.0  ;;  %v4184_v29 = vld [vmem:[%s11725_s15 + $0x38] sm:$0xff]  ;;  %v3462_v30 = vperm.slane %v10871_v35, 6 }
 0xbb1   : > { %3878 = vmatmul.f32.vlgmr.msra.gmra.mxu2 %v3805_v31  ;;  %3898 = vmatmul.f32.vlgmr.msra.gmra.mxu3 %v3806_v13  ;;  %v3463_v31 = vperm.slane %v10871_v35, 7  ;;  %v9193_v13 = vld [vmem:[%s11708_s3 + $0x2f0] sm:$0xff] }
 0xbb2   : > { %4034 = vmatpush.xpose.msra.mxu2 %v9221_v33  ;;  %4054 = vmatpush.xpose.msra.mxu3 %v9222_v34  ;;  %v9194_v33 = vld [vmem:[%s11708_s3 + $0x2f8] sm:$0xff] }
 0xbb3   : > { %3918 = vmatmul.f32.vlgmr.msrb.gmra.mxu0 %v3807_v36  ;;  %3938 = vmatmul.f32.vlgmr.msrb.gmra.mxu1 %v3808_v37 }
 0xbb4   : > { %3996 = vmatpush.xpose.msra.mxu0 %v9187_v20  ;;  %4016 = vmatpush.xpose.msra.mxu1 %v9188_v38  ;;  %v3620_v45 = vpop.f32.mrf.mxu2  ;;  %v3640_v46 = vpop.f32.mrf.mxu3  ;;  %v4179_v38 = vld [vmem:[%s11725_s15 + $0x10] sm:$0xff]  ;;  %s11740_s5 = smov %s11739_s26 }
 0xbb5   : > { %v3621_v47 = vadd.f32 %v3620_v45, %v3454_v39  ;;  %v3641_v48 = vadd.f32 %v3640_v46, %v3455_v40  ;;  %v3660_v49 = vpop.f32.mrf.mxu0  ;;  %v3680_v50 = vpop.f32.mrf.mxu1  ;;  %v4183_v39 = vld [vmem:[%s11725_s15 + $0x30] sm:$0xff]  ;;  %v4192_v45 = vld [vmem:[%s11725_s15 + $0x78] sm:$0xff]  ;;  %v4182_v46 = vld [vmem:[%s11725_s15 + $0x28] sm:$0xff] }
 0xbb6   : > { %4035 = vmatpush.xpose.msra.mxu2 %v9205_v43  ;;  %4055 = vmatpush.xpose.msra.mxu3 %v9206_v44  ;;  %v3661_v54 = vadd.f32 %v3660_v49, %v3456_v41  ;;  %v3681_v55 = vadd.f32 %v3680_v50, %v3457_v42  ;;  %v9177_v41 = vld [vmem:[%s11708_s3 + $0x270] sm:$0xff]  ;;  %v9178_v42 = vld [vmem:[%s11708_s3 + $0x278] sm:$0xff]  ;;  %v4178_v43 = vld [vmem:[%s11725_s15 + $0x8] sm:$0xff] }
 0xbb7   : > { %v3809_v52 = vmax.f32 %v3621_v47, 0.0  ;;  %v3810_v58 = vmax.f32 %v3641_v48, 0.0  ;;  %v4188_v44 = vld [vmem:[%s11725_s15 + $0x58] sm:$0xff]  ;;  %v4177_v49 = vld [vmem:[%s11725_s15] sm:$0xff]  ;;  %v4187_v50 = vld [vmem:[%s11725_s15 + $0x50] sm:$0xff] }
 0xbb8   : > { %v3811_v59 = vmax.f32 %v3661_v54, 0.0  ;;  %v3812_v60 = vmax.f32 %v3681_v55, 0.0  ;;  %3997 = vmatpush.xpose.msra.mxu0 %v9171_v51  ;;  %4017 = vmatpush.xpose.msra.mxu1 %v9172_v53  ;;  %v4191_v51 = vld [vmem:[%s11725_s15 + $0x70] sm:$0xff]  ;;  %v4196_v53 = vld [vmem:[%s11725_s15 + $0x98] sm:$0xff]  ;;  %v4186_v54 = vld [vmem:[%s11725_s15 + $0x48] sm:$0xff] }
 0xbb9   : > { %3958 = vmatmul.f32.vlgmr.msrb.gmra.mxu2 %v3809_v52  ;;  %3978 = vmatmul.f32.vlgmr.msrb.gmra.mxu3 %v3810_v58  ;;  %v4190_v55 = vld [vmem:[%s11725_s15 + $0x68] sm:$0xff]  ;;  %v4195_v52 = vld [vmem:[%s11725_s15 + $0x90] sm:$0xff]  ;;  %v4185_v58 = vld [vmem:[%s11725_s15 + $0x40] sm:$0xff] }
 0xbba   : > { %4036 = vmatpush.xpose.msra.mxu2 %v9189_v61  ;;  %4056 = vmatpush.xpose.msra.mxu3 %v9190_v62  ;;  %v4194_v61 = vld [vmem:[%s11725_s15 + $0x88] sm:$0xff]  ;;  %v4208_v62 = vld [vmem:[%s11725_s15 + $0xf8] sm:$0xff] }
 0xbbb   : > { %3998 = vmatmul.f32.vlgmr.msra.gmra.mxu0 %v3811_v59  ;;  %4018 = vmatmul.f32.vlgmr.msra.gmra.mxu1 %v3812_v60  ;;  %v4189_v59 = vld [vmem:[%s11725_s15 + $0x60] sm:$0xff]  ;;  %v4204_v60 = vld [vmem:[%s11725_s15 + $0xd8] sm:$0xff] }
 0xbbc   : > { %4074 = vmatpush.xpose.msrb.mxu0 %v9223_v56  ;;  %4094 = vmatpush.xpose.msrb.mxu1 %v9224_v57  ;;  %v3700_v4 = vpop.f32.mrf.mxu2  ;;  %v3720_v5 = vpop.f32.mrf.mxu3  ;;  %v4181_v56 = vld [vmem:[%s11725_s15 + $0x20] sm:$0xff] }
 0xbbd   : > { %v3701_v8 = vadd.f32 %v3700_v4, %v3458_v63  ;;  %v3721_v9 = vadd.f32 %v3720_v5, %v3459_v0  ;;  %v3740_v21 = vpop.f32.mrf.mxu0  ;;  %v3760_v19 = vpop.f32.mrf.mxu1  ;;  %v10923_v57 = vld [vmem:[%s10287_s22] sm:$0xff]  ;;  %v4203_v0 = vld [vmem:[%s11725_s15 + $0xd0] sm:$0xff]  ;;  %v4206_v4 = vld [vmem:[%s11725_s15 + $0xe8] sm:$0xff]  ;;  %s11735_s22 = sld [smem:[#allocation23_spill]] }
 0xbbe   : > { %4037 = vmatpush.xpose.msra.mxu2 %v9173_v6  ;;  %4057 = vmatpush.xpose.msra.mxu3 %v9174_v7  ;;  %v3741_v26 = vadd.f32 %v3740_v21, %v3460_v17  ;;  %v3761_v27 = vadd.f32 %v3760_v19, %v3461_v18  ;;  %v4193_v63 = vld [vmem:[%s11725_s15 + $0x80] sm:$0xff]  ;;  %v4200_v5 = vld [vmem:[%s11725_s15 + $0xb8] sm:$0xff] }
 0xbbf   : > { %v3813_v15 = vmax.f32 %v3701_v8, 0.0  ;;  %v3814_v16 = vmax.f32 %v3721_v9, 0.0  ;;  %v4201_v6 = vld [vmem:[%s11725_s15 + $0xc0] sm:$0xff]  ;;  %v4199_v8 = vld [vmem:[%s11725_s15 + $0xb0] sm:$0xff]  ;;  %v4198_v9 = vld [vmem:[%s11725_s15 + $0xa8] sm:$0xff] }
 0xbc0   : > { %4075 = vmatpush.xpose.msrb.mxu0 %v9207_v2  ;;  %4095 = vmatpush.xpose.msrb.mxu1 %v9208_v3  ;;  %v3815_v37 = vmax.f32 %v3741_v26, 0.0  ;;  %v3816_v20 = vmax.f32 %v3761_v27, 0.0  ;;  %v4207_v2 = vld [vmem:[%s11725_s15 + $0xf0] sm:$0xff]  ;;  %v4202_v3 = vld [vmem:[%s11725_s15 + $0xc8] sm:$0xff]  ;;  %v4205_v7 = vld [vmem:[%s11725_s15 + $0xe0] sm:$0xff] }
 0xbc1   : > { %4038 = vmatmul.f32.vlgmr.msra.gmra.mxu2 %v3813_v15  ;;  %4058 = vmatmul.f32.vlgmr.msra.gmra.mxu3 %v3814_v16  ;;  %v4210_v15 = vld [vmem:[%s11725_s15 + $0x108] sm:$0xff]  ;;  %v4209_v16 = vld [vmem:[%s11725_s15 + $0x100] sm:$0xff] }
 0xbc2   : > { %4114 = vmatpush.xpose.msrb.mxu2 %v9225_v10  ;;  %4134 = vmatpush.xpose.msrb.mxu3 %v9226_v11  ;;  %v4197_v10 = vld [vmem:[%s11725_s15 + $0xa0] sm:$0xff]  ;;  %v4218_v26 = vld [vmem:[%s11725_s15 + $0x148] sm:$0xff] }
 0xbc3   : > { %v4222_v27 = vld [vmem:[%s11725_s15 + $0x168] sm:$0xff]  ;;  %s11736_s3 = smov %s11735_s22 }
 0xbc4   : > { %4076 = vmatpush.xpose.msrb.mxu0 %v9191_v12  ;;  %4096 = vmatpush.xpose.msrb.mxu1 %v9192_v14  ;;  %v3780_v34 = vpop.f32.mrf.mxu2  ;;  %v3800_v36 = vpop.f32.mrf.mxu3  ;;  %v4212_v12 = vld [vmem:[%s11725_s15 + $0x118] sm:$0xff]  ;;  %v4211_v14 = vld [vmem:[%s11725_s15 + $0x110] sm:$0xff] }
 0xbc5   : > { %v3781_v35 = vadd.f32 %v3780_v34, %v3462_v30  ;;  %v3801_v40 = vadd.f32 %v3800_v36, %v3463_v31  ;;  %v4221_v30 = vld [vmem:[%s11725_s15 + $0x160] sm:$0xff]  ;;  %v4216_v31 = vld [vmem:[%s11725_s15 + $0x138] sm:$0xff]  ;;  %v4215_v36 = vld [vmem:[%s11725_s15 + $0x130] sm:$0xff] }
 0xbc6   : > { %4115 = vmatpush.xpose.msrb.mxu2 %v9209_v22  ;;  %4135 = vmatpush.xpose.msrb.mxu3 %v9210_v23  ;;  %v4220_v22 = vld [vmem:[%s11725_s15 + $0x158] sm:$0xff] }
 0xbc7   : > { %v3817_v47 = vmax.f32 %v3781_v35, 0.0  ;;  %v3818_v48 = vmax.f32 %v3801_v40, 0.0  ;;  %v4224_v23 = vld [vmem:[%s11725_s15 + $0x178] sm:$0xff] }
 0xbc8   : > { %4077 = vmatpush.xpose.msrb.mxu0 %v9175_v24  ;;  %4097 = vmatpush.xpose.msrb.mxu1 %v9176_v25  ;;  %v4219_v24 = vld [vmem:[%s11725_s15 + $0x150] sm:$0xff] }
 0xbc9   : > { %v4223_v25 = vld [vmem:[%s11725_s15 + $0x170] sm:$0xff] }
 0xbca   : > { %4116 = vmatpush.xpose.msrb.mxu2 %v9193_v13  ;;  %4136 = vmatpush.xpose.msrb.mxu3 %v9194_v33 }
 0xbcb   : > { %4078 = vmatmul.f32.vlgmr.msrb.gmra.mxu0 %v3815_v37  ;;  %4098 = vmatmul.f32.vlgmr.msrb.gmra.mxu1 %v3816_v20  ;;  %v4214_v37 = vld [vmem:[%s11725_s15 + $0x128] sm:$0xff]  ;;  %v4213_v20 = vld [vmem:[%s11725_s15 + $0x120] sm:$0xff] }
 0xbcc   : > { %4266 = vmatpush.msra.mxu0 %v4180_v28  ;;  %4286 = vmatpush.msra.mxu1 %v4184_v29  ;;  %v4217_v29 = vld [vmem:[%s11725_s15 + $0x140] sm:$0xff] }
 0xbce   : > { %4267 = vmatpush.msra.mxu0 %v4179_v38  ;;  %4287 = vmatpush.msra.mxu1 %v4183_v39 }
 0xbcf   : > { %4117 = vmatpush.xpose.msrb.mxu2 %v9177_v41  ;;  %4137 = vmatpush.xpose.msrb.mxu3 %v9178_v42 }
 0xbd0   : > { %4268 = vmatpush.msra.mxu0 %v4178_v43  ;;  %4288 = vmatpush.msra.mxu1 %v4182_v46  ;;  %v9660_v43 = vld [vmem:[%s11726_s28] ss:$0 sm:$0xff]  ;;  %v9661_v46 = vld [vmem:[%s11727_s16 + $0x4] ss:$0 sm:$0xff]  ;;  %s11741_s28 = sld [smem:[#allocation26_spill]] }
 0xbd2   : > { %4118 = vmatmul.f32.vlgmr.msrb.gmra.mxu2 %v3817_v47  ;;  %4138 = vmatmul.f32.vlgmr.msrb.gmra.mxu3 %v3818_v48 }
 0xbd3   : > { %4306 = vmatpush.msra.mxu2 %v4188_v44  ;;  %4326 = vmatpush.msra.mxu3 %v4192_v45 }
 0xbd4   : > { %4269 = vmatpush.msra.mxu0 %v4177_v49  ;;  %4289 = vmatpush.msra.mxu1 %v4181_v56  ;;  %v9667_v56 = vld [vmem:[%s11727_s16 + $0x5] ss:$0 sm:$0xff] }
 0xbd5   : > { %4307 = vmatpush.msra.mxu2 %v4187_v50  ;;  %9246 = vmatmul.msk.f32.vlgmr.msra.gmra.mxu0 %vm1065_vm0, %v10923_v57 }
 0xbd6   : > { %4327 = vmatpush.msra.mxu3 %v4191_v51  ;;  %4358 = vmatpush.msrb.mxu0 %v4196_v53 }
 0xbd7   : > { %4308 = vmatpush.msra.mxu2 %v4186_v54  ;;  %9247 = vmatmul.msk.f32.vlgmr.msra.gmra.mxu1 %vm1065_vm0, %v10923_v57 }
 0xbd8   : > { %4328 = vmatpush.msra.mxu3 %v4190_v55  ;;  %4359 = vmatpush.msrb.mxu0 %v4195_v52  ;;  %v9664_v55 = vld [vmem:[%s11727_s16 + $0x1] ss:$0 sm:$0xff]  ;;  %v9662_v52 = vld [vmem:[%s11727_s16 + $0x2] ss:$0 sm:$0xff] }
 0xbd9   : > { %4309 = vmatpush.msra.mxu2 %v4185_v58  ;;  %4378 = vmatpush.msrb.mxu1 %v4200_v5  ;;  %v9663_v58 = vld [vmem:[%s11727_s16 + $0x3] ss:$0 sm:$0xff] }
 0xbda   : > { %4329 = vmatpush.msra.mxu3 %v4189_v59  ;;  %4360 = vmatpush.msrb.mxu0 %v4194_v61  ;;  %v9666_v61 = vld [vmem:[%s11727_s16 + $0x7] ss:$0 sm:$0xff] }
 0xbdb   : > { %4398 = vmatpush.msrb.mxu2 %v4204_v60  ;;  %9249 = vmatmul.msk.f32.vlgmr.msra.gmra.mxu3 %vm1065_vm0, %v10923_v57  ;;  %v9665_v60 = vld [vmem:[%s11727_s16 + $0x6] ss:$0 sm:$0xff] }
 0xbdc   : > { %4418 = vmatpush.msrb.mxu3 %v4208_v62  ;;  %9248 = vmatmul.msk.f32.vlgmr.msra.gmra.mxu2 %vm1065_vm0, %v10923_v57 }
 0xbdd   : > { %4361 = vmatpush.msrb.mxu0 %v4193_v63  ;;  %4399 = vmatpush.msrb.mxu2 %v4203_v0 }
 0xbde   : > { %9250 = vmatmul.msk.f32.vlgmr.msrb.gmra.mxu0 %vm1065_vm0, %v10923_v57  ;;  %4419 = vmatpush.msrb.mxu3 %v4207_v2 }
 0xbdf   : > { %4400 = vmatpush.msrb.mxu2 %v4202_v3  ;;  %4379 = vmatpush.msrb.mxu1 %v4199_v8 }
 0xbe0   : > { %4420 = vmatpush.msrb.mxu3 %v4206_v4  ;;  %4450 = vmatpush.msra.mxu0 %v4212_v12 }
 0xbe1   : > { %4401 = vmatpush.msrb.mxu2 %v4201_v6  ;;  %4380 = vmatpush.msrb.mxu1 %v4198_v9 }
 0xbe2   : > { %4421 = vmatpush.msrb.mxu3 %v4205_v7  ;;  %4451 = vmatpush.msra.mxu0 %v4211_v14 }
 0xbe3   : > { %9253 = vmatmul.msk.f32.vlgmr.msrb.gmra.mxu3 %vm1065_vm0, %v10923_v57  ;;  %4381 = vmatpush.msrb.mxu1 %v4197_v10  ;;  %v9668_v10 = vld [vmem:[%s11727_s16 + $0x8] ss:$0 sm:$0xff] }
 0xbe4   : > { %9252 = vmatmul.msk.f32.vlgmr.msrb.gmra.mxu2 %vm1065_vm0, %v10923_v57  ;;  %9251 = vmatmul.msk.f32.vlgmr.msrb.gmra.mxu1 %vm1065_vm0, %v10923_v57 }
 0xbe5   : > { %4452 = vmatpush.msra.mxu0 %v4210_v15  ;;  %4490 = vmatpush.msra.mxu2 %v4220_v22  ;;  %v9669_v15 = vld [vmem:[%s11727_s16 + $0xa] ss:$0 sm:$0xff]  ;;  %v9671_v22 = vld [vmem:[%s11727_s16 + $0x9] ss:$0 sm:$0xff] }
 0xbe6   : > { %4510 = vmatpush.msra.mxu3 %v4224_v23  ;;  %4470 = vmatpush.msra.mxu1 %v4216_v31 }
 0xbe7   : > { %4453 = vmatpush.msra.mxu0 %v4209_v16  ;;  %4491 = vmatpush.msra.mxu2 %v4219_v24  ;;  %v9670_v16 = vld [vmem:[%s11727_s16 + $0xb] ss:$0 sm:$0xff] }
 0xbe8   : > { %9254 = vmatmul.msk.f32.vlgmr.msra.gmra.mxu0 %vm1065_vm0, %v10923_v57  ;;  %4511 = vmatpush.msra.mxu3 %v4223_v25 }
 0xbe9   : > { %4492 = vmatpush.msra.mxu2 %v4218_v26  ;;  %4471 = vmatpush.msra.mxu1 %v4215_v36 }
 0xbea   : > { %4512 = vmatpush.msra.mxu3 %v4222_v27 }
 0xbeb   : > { %4493 = vmatpush.msra.mxu2 %v4217_v29  ;;  %4472 = vmatpush.msra.mxu1 %v4214_v37 }
 0xbec   : > { %4513 = vmatpush.msra.mxu3 %v4221_v30  ;;  %9256 = vmatmul.msk.f32.vlgmr.msra.gmra.mxu2 %vm1065_vm0, %v10923_v57 }
 0xbed   : > { %9257 = vmatmul.msk.f32.vlgmr.msra.gmra.mxu3 %vm1065_vm0, %v10923_v57  ;;  %4473 = vmatpush.msra.mxu1 %v4213_v20 }
 0xbee   : > { %9255 = vmatmul.msk.f32.vlgmr.msra.gmra.mxu1 %vm1065_vm0, %v10923_v57 }
 0xc27   : > { %v10958_v11 = vpop.f32.mrf.mxu0  ;;  %v10964_v17 = vpop.f32.mrf.mxu1 }
 0xc30   : > { %v10966_v18 = vpop.f32.mrf.mxu0  ;;  %v10980_v28 = vpop.f32.mrf.mxu1 }
 0xc34   : > { %v10970_v21 = vpop.f32.mrf.mxu2  ;;  %v10972_v19 = vpop.f32.mrf.mxu3 }
 0xc38   : > { %v10985_v13 = vpop.f32.mrf.mxu0  ;;  %v11000_v39 = vpop.f32.mrf.mxu1 }
 0xc3c   : > { %v10987_v33 = vpop.f32.mrf.mxu2  ;;  %v10989_v34 = vpop.f32.mrf.mxu3 }
 0xc44   : > { %v11004_v35 = vpop.f32.mrf.mxu2  ;;  %v11006_v40 = vpop.f32.mrf.mxu3 }
 0xc48   : > { %v10998_v38 = vpop.f32.mrf.mxu0  ;;  %v11008_v42 = vpop.f32.mrf.mxu1 }
 0xc52   : > { %v4271_v41 = vpop.f32.mrf.mxu0 }
 0xc53   : > { %v4272_v47 = vadd.f32 %v9660_v43, %v4271_v41 }
 0xc54   : > { %v4291_v50 = vpop.f32.mrf.mxu1 }
 0xc55   : > { %v11011_v44 = vpop.f32.mrf.mxu2  ;;  %v11013_v45 = vpop.f32.mrf.mxu3  ;;  %v4518_v51 = vmul.f32 0.35355338, %v4272_v47  ;;  %v4292_v59 = vadd.f32 %v9664_v55, %v4291_v50  ;;  %v9659_v47 = vld [vmem:[%s11706_s8 + $0x1] ss:$0 sm:$0xff]  ;;  %s11742_s8 = smov %s11741_s28 }
 0xc57   : > { %v4519_v3 = vmul.f32 0.35355338, %v4292_v59 }
 0xc5b   : > { %v4363_v48 = vpop.f32.mrf.mxu0 }
 0xc5c   : > { %v4364_v49 = vadd.f32 %v9661_v46, %v4363_v48  ;;  %v3840_v48 = vadd.f32 %v9659_v47, %v10958_v11 }
 0xc5e   : > { %9258 = vmatpush.xpose.msk.msrb.mxu0 %vm1337_vm1, %v4364_v49  ;;  %v4331_v54 = vpop.f32.mrf.mxu3  ;;  %v3860_v49 = vadd.f32 %v10964_v17, %v3840_v48 }
 0xc5f   : > { %v4311_v53 = vpop.f32.mrf.mxu2  ;;  %v4332_v2 = vadd.f32 %v9663_v58, %v4331_v54 }
 0xc60   : > { %v4312_v0 = vadd.f32 %v9662_v52, %v4311_v53  ;;  %v3880_v50 = vadd.f32 %v10970_v21, %v3860_v49 }
 0xc61   : > { %9259 = vmatmul.msk.f32.vlgmr.msrb.gmra.mxu0 %vm1337_vm1, %v4518_v51  ;;  %v4383_v62 = vpop.f32.mrf.mxu1  ;;  %v4521_v9 = vmul.f32 0.35355338, %v4332_v2 }
 0xc62   : > { %v4384_v63 = vadd.f32 %v9667_v56, %v4383_v62  ;;  %v4520_v8 = vmul.f32 0.35355338, %v4312_v0  ;;  %v3900_v51 = vadd.f32 %v10972_v19, %v3880_v50 }
 0xc64   : > { %9260 = vmatpush.xpose.msk.msrb.mxu1 %vm1337_vm1, %v4384_v63  ;;  %v3920_v53 = vadd.f32 %v10966_v18, %v3900_v51 }
 0xc65   : > { %v4455_v12 = vpop.f32.mrf.mxu0 }
 0xc66   : > { %v4423_v5 = vpop.f32.mrf.mxu3  ;;  %v4456_v14 = vadd.f32 %v9668_v10, %v4455_v12  ;;  %v3940_v54 = vadd.f32 %v10980_v28, %v3920_v53 }
 0xc67   : > { %v4403_v4 = vpop.f32.mrf.mxu2  ;;  %v4424_v7 = vadd.f32 %v9666_v61, %v4423_v5  ;;  %9261 = vmatmul.msk.f32.vlgmr.msrb.gmra.mxu1 %vm1337_vm1, %v4519_v3 }
 0xc68   : > { %v4404_v6 = vadd.f32 %v9665_v60, %v4403_v4  ;;  %4688 = vmatpush.msra.mxu0 %v4456_v14  ;;  %v3960_v55 = vadd.f32 %v10987_v33, %v3940_v54  ;;  %v9672_v54 = vld [vmem:[%s11729_s10] ss:$0 sm:$0xff] }
 0xc69   : > { %9264 = vmatpush.xpose.msk.msrb.mxu3 %vm1337_vm1, %v4424_v7 }
 0xc6a   : > { %9262 = vmatpush.xpose.msk.msrb.mxu2 %vm1337_vm1, %v4404_v6  ;;  %v3980_v56 = vadd.f32 %v10989_v34, %v3960_v55 }
 0xc6b   : > { %v4475_v27 = vpop.f32.mrf.mxu1 }
 0xc6c   : > { %9265 = vmatmul.msk.f32.vlgmr.msrb.gmra.mxu3 %vm1337_vm1, %v4521_v9  ;;  %v4476_v29 = vadd.f32 %v9671_v22, %v4475_v27  ;;  %v4000_v52 = vadd.f32 %v10985_v13, %v3980_v56  ;;  %v4239_v27 = vld [vmem:[%s11728_s18 + $0x10] sm:$0xff] }
 0xc6d   : > { %9263 = vmatmul.msk.f32.vlgmr.msrb.gmra.mxu2 %vm1337_vm1, %v4520_v8 }
 0xc6e   : > { %4711 = vmatpush.msra.mxu1 %v4476_v29  ;;  %v4020_v58 = vadd.f32 %v11000_v39, %v4000_v52  ;;  %v4240_v29 = vld [vmem:[%s11728_s18 + $0x18] sm:$0xff] }
 0xc6f   : > { %v4495_v23 = vpop.f32.mrf.mxu2 }
 0xc70   : > { %v4515_v24 = vpop.f32.mrf.mxu3  ;;  %v4496_v25 = vadd.f32 %v9669_v15, %v4495_v23  ;;  %v4040_v11 = vadd.f32 %v11004_v35, %v4020_v58 }
 0xc71   : > { %v4516_v26 = vadd.f32 %v9670_v16, %v4515_v24 }
 0xc72   : > { %4734 = vmatpush.msra.mxu2 %v4496_v25  ;;  %v4060_v17 = vadd.f32 %v11006_v40, %v4040_v11 }
 0xc73   : > { %4757 = vmatpush.msra.mxu3 %v4516_v26  ;;  %v4237_v26 = vld [vmem:[%s11728_s18] sm:$0xff] }
 0xc74   : > { %v4080_v19 = vadd.f32 %v10998_v38, %v4060_v17  ;;  %4780 = vmatpush.msrb.mxu0 %v4237_v26  ;;  %4826 = vmatpush.msrb.mxu2 %v4239_v27  ;;  %v4919_v27 = vld [vmem:[%s11730_s7 + $0xa8] sm:$0xff] }
 0xc75   : > { %4849 = vmatpush.msrb.mxu3 %v4240_v29  ;;  %v4923_v29 = vld [vmem:[%s11730_s7 + $0xc8] sm:$0xff] }
 0xc76   : > { %v4100_v18 = vadd.f32 %v11008_v42, %v4080_v19 }
 0xc78   : > { %v4120_v28 = vadd.f32 %v11011_v44, %v4100_v18 }
 0xc7a   : > { %v4140_v34 = vadd.f32 %v11013_v45, %v4120_v28 }
 0xc7c   : > { %v11057_v39 = vadd.f32 %v4140_v34, %v10765_v1 }
 0xc7e   : > { %v4147_v38 = vsel %vm1065_vm0, %v11057_v39, 0.0 }
 0xcde   : > { %v4545_v30 = vpop.f32.mrf.mxu0 }
 0xcdf   : > { %v4626_v31 = vsel %vm1337_vm1, %v4545_v30, -inf }
 0xce0   : > { %4627 = vmax.xlane.f32.xlu0 %v4626_v31 }
 0xce4   : > { %v4571_v43 = vpop.f32.mrf.mxu1 }
 0xce5   : > { %v4629_v46 = vsel %vm1337_vm1, %v4571_v43, -inf }
 0xcef   : > { %v4623_v37 = vpop.f32.mrf.mxu3 }
 0xcf0   : > { %v4597_v36 = vpop.f32.mrf.mxu2  ;;  %v4635_v20 = vsel %vm1337_vm1, %v4623_v37, -inf }
 0xcf1   : > { %v4632_v41 = vsel %vm1337_vm1, %v4597_v36, -inf  ;;  %4636 = vmax.xlane.f32.xlu2 %v4635_v20 }
 0xcf2   : > { %4633 = vmax.xlane.f32.xlu1 %v4632_v41 }
 0xcfa   : > { %4630 = vmax.xlane.f32.xlu1 %v4629_v46 }
 0xd53   : > { %v4628_v59 = vpop.xlane.xlu0 %4627 }
 0xd54   : > { %v4638_v21 = vsub.f32 %v4545_v30, %v4628_v59  ;;  %v4238_v30 = vld [vmem:[%s11728_s18 + $0x8] sm:$0xff] }
 0xd55   : > { %4803 = vmatpush.msrb.mxu1 %v4238_v30  ;;  %v4927_v30 = vld [vmem:[%s11730_s7 + $0xe8] sm:$0xff] }
 0xd56   : > { %v4642_v60 = vmul.f32 1.442695, %v4638_v21 }
 0xd58   : > { %9768 = vpow2.f32 %v4642_v60 }
 0xd5e   : > { %v9769_v33 = vpop.eup %9768 }
 0xd5f   : > { %v4650_v13 = vsel %vm1337_vm1, %v9769_v33, 0.0 }
 0xd60   : > { %4651 = vadd.xlane.f32.xlu1 %v4650_v13 }
 0xd64   : > { %v4637_v35 = vpop.xlane.xlu2 %4636 }
 0xd65   : > { %v4634_v40 = vpop.xlane.xlu1 %4633  ;;  %v4641_v61 = vsub.f32 %v4623_v37, %v4637_v35  ;;  %v4901_v35 = vld [vmem:[%s11730_s7 + $0x18] sm:$0xff] }
 0xd66   : > { %v4640_v62 = vsub.f32 %v4597_v36, %v4634_v40  ;;  %v4905_v40 = vld [vmem:[%s11730_s7 + $0x38] sm:$0xff] }
 0xd67   : > { %v4648_v63 = vmul.f32 1.442695, %v4641_v61  ;;  %v4909_v61 = vld [vmem:[%s11730_s7 + $0x58] sm:$0xff] }
 0xd68   : > { %v4646_v42 = vmul.f32 1.442695, %v4640_v62  ;;  %4148 = vadd.xlane.f32.xlu1 %v4147_v38  ;;  %v4913_v62 = vld [vmem:[%s11730_s7 + $0x78] sm:$0xff] }
 0xd69   : > { %9770 = vpow2.f32 %v4648_v63  ;;  %v4900_v63 = vld [vmem:[%s11730_s7 + $0x10] sm:$0xff] }
 0xd6a   : > { %9772 = vpow2.f32 %v4646_v42  ;;  %v4904_v42 = vld [vmem:[%s11730_s7 + $0x30] sm:$0xff] }
 0xd6d   : > { %v4631_v44 = vpop.xlane.xlu1 %4630 }
 0xd6e   : > { %v4639_v45 = vsub.f32 %v4571_v43, %v4631_v44  ;;  %v4908_v44 = vld [vmem:[%s11730_s7 + $0x50] sm:$0xff] }
 0xd6f   : > { %v9771_v0 = vpop.eup %9770 }
 0xd70   : > { %v4644_v2 = vmul.f32 1.442695, %v4639_v45  ;;  %v9773_v3 = vpop.eup %9772  ;;  %v4659_v1 = vsel %vm1337_vm1, %v9771_v0, 0.0  ;;  %v4912_v45 = vld [vmem:[%s11730_s7 + $0x70] sm:$0xff] }
 0xd71   : > { %v4656_v4 = vsel %vm1337_vm1, %v9773_v3, 0.0  ;;  %4660 = vadd.xlane.f32.xlu0 %v4659_v1  ;;  %v4911_v1 = vld [vmem:[%s11730_s7 + $0x68] sm:$0xff] }
 0xd72   : > { %9774 = vpow2.f32 %v4644_v2  ;;  %4657 = vadd.xlane.f32.xlu2 %v4656_v4  ;;  %v4903_v2 = vld [vmem:[%s11730_s7 + $0x28] sm:$0xff]  ;;  %v4898_v4 = vld [vmem:[%s11730_s7] sm:$0xff] }
 0xd78   : > { %v9775_v5 = vpop.eup %9774 }
 0xd79   : > { %v4653_v6 = vsel %vm1337_vm1, %v9775_v5, 0.0 }
 0xd7a   : > { %4654 = vadd.xlane.f32.xlu2 %v4653_v6  ;;  %v4906_v6 = vld [vmem:[%s11730_s7 + $0x40] sm:$0xff] }
 0xdd3   : > { %v4652_v7 = vpop.xlane.xlu1 %4651 }
 0xdd4   : > { %9776 = vrcp.f32 %v4652_v7  ;;  %v4910_v7 = vld [vmem:[%s11730_s7 + $0x60] sm:$0xff] }
 0xdda   : > { %v9777_v8 = vpop.eup %9776 }
 0xddb   : > { %v4666_v9 = vmul.f32 %v9777_v8, %v9769_v33  ;;  %v4149_v55 = vpop.xlane.xlu1 %4148  ;;  %v4917_v8 = vld [vmem:[%s11730_s7 + $0x98] sm:$0xff] }
 0xddc   : > { %v4150_v58 = vmul.f32 %v4149_v55, %v10403_v32 }
 0xddd   : > { %9266 = vmatmul.msk.f32.vlgmr.msra.gmra.mxu0 %vm1337_vm1, %v4666_v9  ;;  %v4921_v9 = vld [vmem:[%s11730_s7 + $0xb8] sm:$0xff] }
 0xdde   : > { %v11084_v59 = vsub.f32 %v11057_v39, %v4150_v58  ;;  %4990 = vmatpush.msra.mxu0 %v4901_v35  ;;  %v9674_v35 = vld [vmem:[%s11723_s11 + $0x1] ss:$0 sm:$0xff] }
 0xde0   : > { %v4152_v19 = vmul.f32 %v11084_v59, %v11084_v59  ;;  %4991 = vmatpush.msra.mxu0 %v4900_v63  ;;  %v4935_v63 = vld [vmem:[%s11730_s7 + $0x128] sm:$0xff] }
 0xde2   : > { %v4153_v60 = vsel %vm1065_vm0, %v4152_v19, 0.0 }
 0xde4   : > { %v4661_v10 = vpop.xlane.xlu0 %4660 }
 0xde5   : > { %v4658_v12 = vpop.xlane.xlu2 %4657  ;;  %9778 = vrcp.f32 %v4661_v10  ;;  %v4925_v10 = vld [vmem:[%s11730_s7 + $0xd8] sm:$0xff] }
 0xde6   : > { %9780 = vrcp.f32 %v4658_v12  ;;  %v4929_v12 = vld [vmem:[%s11730_s7 + $0xf8] sm:$0xff] }
 0xdeb   : > { %v9779_v14 = vpop.eup %9778 }
 0xdec   : > { %v9781_v15 = vpop.eup %9780  ;;  %v4669_v16 = vmul.f32 %v9779_v14, %v9771_v0  ;;  %v4899_v0 = vld [vmem:[%s11730_s7 + $0x8] sm:$0xff]  ;;  %v4916_v14 = vld [vmem:[%s11730_s7 + $0x90] sm:$0xff] }
 0xded   : > { %v4668_v22 = vmul.f32 %v9781_v15, %v9773_v3  ;;  %v4655_v23 = vpop.xlane.xlu2 %4654  ;;  %v4907_v3 = vld [vmem:[%s11730_s7 + $0x48] sm:$0xff]  ;;  %4992 = vmatpush.msra.mxu0 %v4899_v0  ;;  %v4920_v15 = vld [vmem:[%s11730_s7 + $0xb0] sm:$0xff]  ;;  %v4930_v0 = vld [vmem:[%s11730_s7 + $0x100] sm:$0xff] }
 0xdee   : > { %9782 = vrcp.f32 %v4655_v23  ;;  %9269 = vmatmul.msk.f32.vlgmr.msra.gmra.mxu3 %vm1337_vm1, %v4669_v16  ;;  %v4928_v23 = vld [vmem:[%s11730_s7 + $0xf0] sm:$0xff] }
 0xdef   : > { %9268 = vmatmul.msk.f32.vlgmr.msra.gmra.mxu2 %vm1337_vm1, %v4668_v22  ;;  %5050 = vmatpush.msra.mxu3 %v4913_v62  ;;  %v4924_v22 = vld [vmem:[%s11730_s7 + $0xd0] sm:$0xff] }
 0xdf0   : > { %5030 = vmatpush.msra.mxu2 %v4909_v61  ;;  %4993 = vmatpush.msra.mxu0 %v4898_v4  ;;  %v4940_v61 = vld [vmem:[%s11730_s7 + $0x150] sm:$0xff] }
 0xdf1   : > { %5051 = vmatpush.msra.mxu3 %v4912_v45  ;;  %v4944_v62 = vld [vmem:[%s11730_s7 + $0x170] sm:$0xff] }
 0xdf2   : > { %5031 = vmatpush.msra.mxu2 %v4908_v44  ;;  %v4943_v44 = vld [vmem:[%s11730_s7 + $0x168] sm:$0xff] }
 0xdf3   : > { %5052 = vmatpush.msra.mxu3 %v4911_v1  ;;  %v4942_v1 = vld [vmem:[%s11730_s7 + $0x160] sm:$0xff] }
 0xdf4   : > { %v9783_v24 = vpop.eup %9782  ;;  %5032 = vmatpush.msra.mxu2 %v4907_v3  ;;  %v4938_v3 = vld [vmem:[%s11730_s7 + $0x140] sm:$0xff] }
 0xdf5   : > { %v4667_v25 = vmul.f32 %v9783_v24, %v9775_v5  ;;  %v4902_v5 = vld [vmem:[%s11730_s7 + $0x20] sm:$0xff]  ;;  %5053 = vmatpush.msra.mxu3 %v4910_v7  ;;  %v4915_v24 = vld [vmem:[%s11730_s7 + $0x88] sm:$0xff] }
 0xdf6   : > { %5033 = vmatpush.msra.mxu2 %v4906_v6  ;;  %v9677_v6 = vld [vmem:[%s11733_s30] ss:$0 sm:$0xff]  ;;  %v9678_v7 = vld [vmem:[%s11733_s30 + $0x1] ss:$0 sm:$0xff] }
 0xdf7   : > { %9267 = vmatmul.msk.f32.vlgmr.msra.gmra.mxu1 %vm1337_vm1, %v4667_v25 }
 0xdf8   : > { %5010 = vmatpush.msra.mxu1 %v4905_v40 }
 0xdfa   : > { %5011 = vmatpush.msra.mxu1 %v4904_v42  ;;  %v4939_v42 = vld [vmem:[%s11730_s7 + $0x148] sm:$0xff] }
 0xdfc   : > { %5012 = vmatpush.msra.mxu1 %v4903_v2  ;;  %v4934_v2 = vld [vmem:[%s11730_s7 + $0x120] sm:$0xff] }
 0xdfe   : > { %5013 = vmatpush.msra.mxu1 %v4902_v5 }
 0xe5a   : > { %v4690_v31 = vpop.f32.mrf.mxu0 }
 0xe5b   : > { %9270 = vmatmul.msk.f32.vlgmr.msrb.gmra.mxu0 %vm1337_vm1, %v4690_v31  ;;  %v4914_v31 = vld [vmem:[%s11730_s7 + $0x80] sm:$0xff] }
 0xe5c   : > { %5085 = vmatpush.msrb.mxu0 %v4917_v8  ;;  %v9681_v8 = vld [vmem:[%s11733_s30 + $0x4] ss:$0 sm:$0xff] }
 0xe5e   : > { %5086 = vmatpush.msrb.mxu0 %v4916_v14 }
 0xe60   : > { %5087 = vmatpush.msrb.mxu0 %v4915_v24 }
 0xe62   : > { %5088 = vmatpush.msrb.mxu0 %v4914_v31  ;;  %v9684_v31 = vld [vmem:[%s11733_s30 + $0x7] ss:$0 sm:$0xff] }
 0xe71   : > { %v4759_v36 = vpop.f32.mrf.mxu3 }
 0xe72   : > { %v4736_v37 = vpop.f32.mrf.mxu2  ;;  %9273 = vmatmul.msk.f32.vlgmr.msrb.gmra.mxu3 %vm1337_vm1, %v4759_v36  ;;  %v4918_v36 = vld [vmem:[%s11730_s7 + $0xa0] sm:$0xff] }
 0xe73   : > { %9272 = vmatmul.msk.f32.vlgmr.msrb.gmra.mxu2 %vm1337_vm1, %v4736_v37  ;;  %5145 = vmatpush.msrb.mxu3 %v4929_v12 }
 0xe74   : > { %v4713_v20 = vpop.f32.mrf.mxu1  ;;  %5125 = vmatpush.msrb.mxu2 %v4925_v10 }
 0xe75   : > { %9271 = vmatmul.msk.f32.vlgmr.msrb.gmra.mxu1 %vm1337_vm1, %v4713_v20  ;;  %5146 = vmatpush.msrb.mxu3 %v4928_v23  ;;  %v4922_v20 = vld [vmem:[%s11730_s7 + $0xc0] sm:$0xff] }
 0xe76   : > { %5105 = vmatpush.msrb.mxu1 %v4921_v9  ;;  %5126 = vmatpush.msrb.mxu2 %v4924_v22  ;;  %v9682_v9 = vld [vmem:[%s11733_s30 + $0x5] ss:$0 sm:$0xff] }
 0xe77   : > { %5147 = vmatpush.msrb.mxu3 %v4927_v30 }
 0xe78   : > { %5106 = vmatpush.msrb.mxu1 %v4920_v15  ;;  %5127 = vmatpush.msrb.mxu2 %v4923_v29 }
 0xe7a   : > { %5107 = vmatpush.msrb.mxu1 %v4919_v27  ;;  %5128 = vmatpush.msrb.mxu2 %v4922_v20  ;;  %v9683_v27 = vld [vmem:[%s11733_s30 + $0x6] ss:$0 sm:$0xff] }
 0xe7c   : > { %5108 = vmatpush.msrb.mxu1 %v4918_v36  ;;  %v9685_v36 = vld [vmem:[%s11733_s30 + $0x8] ss:$0 sm:$0xff] }
 0xed8   : > { %v4782_v41 = vpop.f32.mrf.mxu0 }
 0xed9   : > { %v4854_v47 = vsel %vm1065_vm0, %v4782_v41, 0.0  ;;  %v4926_v41 = vld [vmem:[%s11730_s7 + $0xe0] sm:$0xff] }
 0xeda   : > { %5148 = vmatpush.msrb.mxu3 %v4926_v41 }
 0xef2   : > { %v4805_v43 = vpop.f32.mrf.mxu1 }
 0xef3   : > { %v4855_v46 = vsel %vm1065_vm0, %v4805_v43, 0.0 }
 0xef4   : > { %v4856_v48 = vadd.f32 %v4855_v46, %v4854_v47 }
 0xef5   : > { %v4851_v50 = vpop.f32.mrf.mxu3 }
 0xef6   : > { %v4828_v49 = vpop.f32.mrf.mxu2  ;;  %v4859_v56 = vsel %vm1065_vm0, %v4851_v50, 0.0 }
 0xef7   : > { %v4857_v51 = vsel %vm1065_vm0, %v4828_v49, 0.0 }
 0xef8   : > { %v4858_v53 = vadd.f32 %v4857_v51, %v4856_v48 }
 0xefa   : > { %v4860_v52 = vadd.f32 %v4859_v56, %v4858_v53 }
 0xefc   : > { %v4864_v11 = vadd.f32 %v9672_v54, %v4860_v52  ;;  %v9675_v52 = vld [vmem:[%s11731_s1] ss:$0 sm:$0xff] }
 0xefe   : > { %v4865_v17 = vadd.f32 %v10923_v57, %v4864_v11  ;;  %v9676_v11 = vld [vmem:[%s11732_s2] ss:$0 sm:$0xff] }
 0xf00   : > { %v4868_v21 = vsel %vm1065_vm0, %v4865_v17, 0.0 }
 0xf01   : > { %4869 = vadd.xlane.f32.xlu0 %v4868_v21 }
 0xf09   : > { %4154 = vadd.xlane.f32.xlu0 %v4153_v60  ;;  %v9673_v60 = vld [vmem:[%s10081_s24 + $0x1] ss:$0 sm:$0xff] }
 0xf74   : > { %v4870_v18 = vpop.xlane.xlu0 %4869 }
 0xf75   : > { %v4871_v28 = vmul.f32 %v4870_v18, %v10403_v32 }
 0xf77   : > { %v11091_v57 = vsub.f32 %v4865_v17, %v4871_v28 }
 0xf79   : > { %v4873_v33 = vmul.f32 %v11091_v57, %v11091_v57 }
 0xf7b   : > { %v4874_v34 = vsel %vm1065_vm0, %v4873_v33, 0.0  ;;  %v4933_v33 = vld [vmem:[%s11730_s7 + $0x118] sm:$0xff] }
 0xf7c   : > { %4875 = vadd.xlane.f32.xlu2 %v4874_v34  ;;  %v4155_v13 = vpop.xlane.xlu0 %4154  ;;  %v4937_v34 = vld [vmem:[%s11730_s7 + $0x138] sm:$0xff] }
 0xf7d   : > { %v4156_v39 = vmul.f32 %v4155_v13, %v10403_v32  ;;  %v4945_v13 = vld [vmem:[%s11730_s7 + $0x178] sm:$0xff] }
 0xf7f   : > { %v11101_v38 = vadd.f32 1e-05, %v4156_v39  ;;  %v4936_v39 = vld [vmem:[%s11730_s7 + $0x130] sm:$0xff] }
 0xf81   : > { %9784 = vrsqrt.f32 %v11101_v38  ;;  %vm4164_vm2 = vweird.f32 %v11101_v38 }
 0xf87   : > { %v9785_v25 = vpop.eup %9784 }
 0xf88   : > { %v4159_v43 = vmul.f32 %v9785_v25, %v11101_v38  ;;  %vm4165_vm13 = vweird.f32 %v9785_v25  ;;  %v4931_v38 = vld [vmem:[%s11730_s7 + $0x108] sm:$0xff] }
 0xf89   : > { %vm4166_vm3 = vmor %vm4164_vm2, %vm4165_vm13 }
 0xf8a   : > { %v4160_v46 = vmul.f32 %v9785_v25, %v4159_v43 }
 0xf8c   : > { %v4161_v48 = vmul.f32 0.5, %v4160_v46 }
 0xf8e   : > { %v4162_v51 = vsub.f32 1.5, %v4161_v48 }
 0xf90   : > { %v4163_v55 = vmul.f32 %v9785_v25, %v4162_v51 }
 0xf92   : > { %v4167_v21 = vsel %vm4166_vm3, %v9785_v25, %v4163_v55  ;;  %v9679_v25 = vld [vmem:[%s11733_s30 + $0x2] ss:$0 sm:$0xff] }
 0xf93   : > { %v4168_v18 = vmul.f32 %v4167_v21, %v11084_v59  ;;  %v4932_v59 = vld [vmem:[%s11730_s7 + $0x110] sm:$0xff] }
 0xf95   : > { %v4172_v40 = vmul.f32 %v9673_v60, %v4168_v18 }
 0xf97   : > { %v11163_v45 = vadd.f32 %v9674_v35, %v4172_v40 }
 0xfef   : > { %v4876_v16 = vpop.xlane.xlu2 %4875 }
 0xff0   : > { %v4877_v26 = vmul.f32 %v4876_v16, %v10403_v32 }
 0xff2   : > { %v4878_v37 = vadd.f32 1e-05, %v4877_v26  ;;  %v9680_v26 = vld [vmem:[%s11733_s30 + $0x3] ss:$0 sm:$0xff] }
 0xff4   : > { %9786 = vrsqrt.f32 %v4878_v37  ;;  %vm4885_vm14 = vweird.f32 %v4878_v37 }
 0xffa   : > { %v9787_v47 = vpop.eup %9786 }
 0xffb   : > { %v4880_v49 = vmul.f32 %v9787_v47, %v4878_v37  ;;  %vm4886_vm12 = vweird.f32 %v9787_v47  ;;  %v9686_v37 = vld [vmem:[%s11733_s30 + $0x9] ss:$0 sm:$0xff] }
 0xffc   : > { %vm4887_vm15 = vmor %vm4885_vm14, %vm4886_vm12 }
 0xffd   : > { %v4881_v50 = vmul.f32 %v9787_v47, %v4880_v49 }
 0xfff   : > { %v4882_v53 = vmul.f32 0.5, %v4881_v50 }
0x1001   : > { %v4883_v54 = vsub.f32 1.5, %v4882_v53 }
0x1003   : > { %v4884_v56 = vmul.f32 %v9787_v47, %v4883_v54 }
0x1005   : > { %v4888_v58 = vsel %vm4887_vm15, %v9787_v47, %v4884_v56  ;;  %v9687_v56 = vld [vmem:[%s11733_s30 + $0xa] ss:$0 sm:$0xff] }
0x1006   : > { %v4889_v17 = vmul.f32 %v4888_v58, %v11091_v57  ;;  %v4941_v57 = vld [vmem:[%s11730_s7 + $0x158] sm:$0xff] }
0x1008   : > { %v4893_v19 = vmul.f32 %v9675_v52, %v4889_v17  ;;  %v9688_v52 = vld [vmem:[%s11733_s30 + $0xb] ss:$0 sm:$0xff] }
0x100a   : > { %v11140_v28 = vadd.f32 %v9676_v11, %v4893_v19 }
0x100c   : > { %9274 = vmatmul.msk.f32.vlgmr.msra.gmra.mxu0 %vm1065_vm0, %v11140_v28  ;;  %9275 = vmatmul.msk.f32.vlgmr.msra.gmra.mxu1 %vm1065_vm0, %v11140_v28 }
0x100d   : > { %9276 = vmatmul.msk.f32.vlgmr.msra.gmra.mxu2 %vm1065_vm0, %v11140_v28  ;;  %9277 = vmatmul.msk.f32.vlgmr.msra.gmra.mxu3 %vm1065_vm0, %v11140_v28 }
0x100e   : > { %5177 = vmatpush.msra.mxu0 %v4933_v33  ;;  %5197 = vmatpush.msra.mxu1 %v4937_v34 }
0x100f   : > { %5217 = vmatpush.msra.mxu2 %v4941_v57  ;;  %5237 = vmatpush.msra.mxu3 %v4945_v13 }
0x1010   : > { %5178 = vmatpush.msra.mxu0 %v4932_v59  ;;  %5198 = vmatpush.msra.mxu1 %v4936_v39 }
0x1011   : > { %5218 = vmatpush.msra.mxu2 %v4940_v61  ;;  %5238 = vmatpush.msra.mxu3 %v4944_v62 }
0x1012   : > { %5179 = vmatpush.msra.mxu0 %v4931_v38  ;;  %5199 = vmatpush.msra.mxu1 %v4935_v63 }
0x1013   : > { %5219 = vmatpush.msra.mxu2 %v4939_v42  ;;  %5239 = vmatpush.msra.mxu3 %v4943_v44 }
0x1014   : > { %9278 = vmatmul.msk.f32.vlgmr.msrb.gmra.mxu0 %vm1065_vm0, %v11163_v45  ;;  %9279 = vmatmul.msk.f32.vlgmr.msrb.gmra.mxu1 %vm1065_vm0, %v11163_v45 }
0x1015   : > { %9280 = vmatmul.msk.f32.vlgmr.msrb.gmra.mxu2 %vm1065_vm0, %v11163_v45  ;;  %9281 = vmatmul.msk.f32.vlgmr.msrb.gmra.mxu3 %vm1065_vm0, %v11163_v45 }
0x1016   : > { %5180 = vmatpush.msra.mxu0 %v4930_v0  ;;  %5200 = vmatpush.msra.mxu1 %v4934_v2 }
0x1017   : > { %5220 = vmatpush.msra.mxu2 %v4938_v3  ;;  %5240 = vmatpush.msra.mxu3 %v4942_v1 }
0x101c   : > { %9282 = vmatmul.msk.f32.vlgmr.msra.gmra.mxu0 %vm1065_vm0, %v11163_v45  ;;  %9283 = vmatmul.msk.f32.vlgmr.msra.gmra.mxu1 %vm1065_vm0, %v11163_v45 }
0x101d   : > { %9284 = vmatmul.msk.f32.vlgmr.msra.gmra.mxu2 %vm1065_vm0, %v11163_v45  ;;  %9285 = vmatmul.msk.f32.vlgmr.msra.gmra.mxu3 %vm1065_vm0, %v11163_v45 }
0x1089   : > { %v4995_v4 = vpop.f32.mrf.mxu0  ;;  %v5015_v5 = vpop.f32.mrf.mxu1 }
0x108a   : > { %v4996_v14 = vadd.f32 %v9677_v6, %v4995_v4  ;;  %v5016_v15 = vadd.f32 %v9678_v7, %v5015_v5 }
0x108c   : > { %v5245_v29 = vmul.f32 0.35355338, %v4996_v14  ;;  %v5246_v30 = vmul.f32 0.35355338, %v5016_v15 }
0x1090   : > { %v5035_v10 = vpop.f32.mrf.mxu2  ;;  %v5055_v12 = vpop.f32.mrf.mxu3 }
0x1091   : > { %v5090_v16 = vpop.f32.mrf.mxu0  ;;  %v5110_v22 = vpop.f32.mrf.mxu1  ;;  %v5036_v20 = vadd.f32 %v9679_v25, %v5035_v10  ;;  %v5056_v41 = vadd.f32 %v9680_v26, %v5055_v12 }
0x1092   : > { %v5091_v23 = vadd.f32 %v9681_v8, %v5090_v16  ;;  %v5111_v24 = vadd.f32 %v9682_v9, %v5110_v22 }
0x1093   : > { %v5247_v54 = vmul.f32 0.35355338, %v5036_v20  ;;  %v5248_v55 = vmul.f32 0.35355338, %v5056_v41  ;;  %v4959_v20 = vld [vmem:[%s11734_s12 + $0x8] sm:$0xff] }
0x1094   : > { %9286 = vmatpush.xpose.msk.msrb.mxu0 %vm1337_vm1, %v5091_v23  ;;  %9288 = vmatpush.xpose.msk.msrb.mxu1 %vm1337_vm1, %v5111_v24 }
0x1097   : > { %9287 = vmatmul.msk.f32.vlgmr.msrb.gmra.mxu0 %vm1337_vm1, %v5245_v29  ;;  %9289 = vmatmul.msk.f32.vlgmr.msrb.gmra.mxu1 %vm1337_vm1, %v5246_v30 }
0x1098   : > { %v5130_v43 = vpop.f32.mrf.mxu2  ;;  %v5150_v46 = vpop.f32.mrf.mxu3 }
0x1099   : > { %v5131_v47 = vadd.f32 %v9683_v27, %v5130_v43  ;;  %v5151_v48 = vadd.f32 %v9684_v31, %v5150_v46  ;;  %v5182_v49 = vpop.f32.mrf.mxu0  ;;  %v5202_v50 = vpop.f32.mrf.mxu1  ;;  %v4958_v31 = vld [vmem:[%s11734_s12] sm:$0xff] }
0x109a   : > { %v5183_v51 = vadd.f32 %v9685_v36, %v5182_v49  ;;  %v5203_v53 = vadd.f32 %v9686_v37, %v5202_v50  ;;  %v4960_v36 = vld [vmem:[%s11734_s12 + $0x10] sm:$0xff]  ;;  %v4961_v37 = vld [vmem:[%s11734_s12 + $0x18] sm:$0xff] }
0x109b   : > { %9290 = vmatpush.xpose.msk.msrb.mxu2 %vm1337_vm1, %v5131_v47  ;;  %9292 = vmatpush.xpose.msk.msrb.mxu3 %vm1337_vm1, %v5151_v48 }
0x109c   : > { %5415 = vmatpush.msra.mxu0 %v5183_v51  ;;  %5438 = vmatpush.msra.mxu1 %v5203_v53 }
0x109e   : > { %9291 = vmatmul.msk.f32.vlgmr.msrb.gmra.mxu2 %vm1337_vm1, %v5247_v54  ;;  %9293 = vmatmul.msk.f32.vlgmr.msrb.gmra.mxu3 %vm1337_vm1, %v5248_v55 }
0x109f   : > { %5507 = vmatpush.msrb.mxu0 %v4958_v31  ;;  %5530 = vmatpush.msrb.mxu1 %v4959_v20  ;;  %v5632_v31 = vld [vmem:[#allocation2 + $0x38] sm:$0xff] }
0x10a0   : > { %v5222_v58 = vpop.f32.mrf.mxu2  ;;  %v5242_v11 = vpop.f32.mrf.mxu3 }
0x10a1   : > { %v5223_v17 = vadd.f32 %v9687_v56, %v5222_v58  ;;  %v5243_v21 = vadd.f32 %v9688_v52, %v5242_v11  ;;  %v9689_v58 = vld [vmem:[%s11735_s22] ss:$0 sm:$0xff]  ;;  %s11743_s22 = sld [smem:[#allocation31_spill]] }
0x10a3   : > { %5461 = vmatpush.msra.mxu2 %v5223_v17  ;;  %5484 = vmatpush.msra.mxu3 %v5243_v21 }
0x10a5   : > { %5553 = vmatpush.msrb.mxu2 %v4960_v36  ;;  %5576 = vmatpush.msrb.mxu3 %v4961_v37 }
0x10a7   : > { %s11744_s9 = smov %s11743_s22 }
0x1114   : > { %v5272_v19 = vpop.f32.mrf.mxu0  ;;  %v5298_v13 = vpop.f32.mrf.mxu1 }
0x1115   : > { %v5353_v60 = vsel %vm1337_vm1, %v5272_v19, -inf  ;;  %v5356_v59 = vsel %vm1337_vm1, %v5298_v13, -inf }
0x1116   : > { %5354 = vmax.xlane.f32.xlu0 %v5353_v60 }
0x1121   : > { %v5324_v18 = vpop.f32.mrf.mxu2  ;;  %v5350_v33 = vpop.f32.mrf.mxu3 }
0x1122   : > { %v5362_v34 = vsel %vm1337_vm1, %v5350_v33, -inf  ;;  %v5359_v57 = vsel %vm1337_vm1, %v5324_v18, -inf }
0x1123   : > { %5363 = vmax.xlane.f32.xlu2 %v5362_v34  ;;  %5360 = vmax.xlane.f32.xlu1 %v5359_v57 }
0x112b   : > { %5357 = vmax.xlane.f32.xlu1 %v5356_v59  ;;  %v5673_v59 = vld [vmem:[#allocation2 + $0x180] sm:$0xff] }
0x1189   : > { %v5355_v39 = vpop.xlane.xlu0 %5354 }
0x118a   : > { %v5365_v35 = vsub.f32 %v5272_v19, %v5355_v39  ;;  %v5674_v39 = vld [vmem:[#allocation2 + $0x188] sm:$0xff] }
0x118c   : > { %v5369_v40 = vmul.f32 1.442695, %v5365_v35  ;;  %v5675_v35 = vld [vmem:[#allocation2 + $0x190] sm:$0xff] }
0x118e   : > { %9788 = vpow2.f32 %v5369_v40  ;;  %v5657_v40 = vld [vmem:[#allocation2 + $0x100] sm:$0xff] }
0x1194   : > { %v9789_v61 = vpop.eup %9788 }
0x1195   : > { %v5377_v62 = vsel %vm1337_vm1, %v9789_v61, 0.0 }
0x1196   : > { %v5364_v38 = vpop.xlane.xlu2 %5363  ;;  %v5361_v63 = vpop.xlane.xlu1 %5360  ;;  %5378 = vadd.xlane.f32.xlu1 %v5377_v62  ;;  %v5659_v62 = vld [vmem:[#allocation2 + $0x110] sm:$0xff] }
0x1197   : > { %v5368_v42 = vsub.f32 %v5350_v33, %v5364_v38  ;;  %v5367_v44 = vsub.f32 %v5324_v18, %v5361_v63  ;;  %v5660_v38 = vld [vmem:[#allocation2 + $0x118] sm:$0xff]  ;;  %v5641_v63 = vld [vmem:[#allocation2 + $0x80] sm:$0xff] }
0x1199   : > { %v5375_v0 = vmul.f32 1.442695, %v5368_v42  ;;  %v5373_v2 = vmul.f32 1.442695, %v5367_v44  ;;  %v5642_v42 = vld [vmem:[#allocation2 + $0x88] sm:$0xff]  ;;  %v5643_v44 = vld [vmem:[#allocation2 + $0x90] sm:$0xff] }
0x119b   : > { %9790 = vpow2.f32 %v5375_v0  ;;  %v5644_v0 = vld [vmem:[#allocation2 + $0x98] sm:$0xff] }
0x119c   : > { %9792 = vpow2.f32 %v5373_v2  ;;  %v5625_v2 = vld [vmem:[#allocation2] sm:$0xff] }
0x119e   : > { %v5358_v3 = vpop.xlane.xlu1 %5357 }
0x119f   : > { %v5366_v1 = vsub.f32 %v5298_v13, %v5358_v3  ;;  %v5626_v3 = vld [vmem:[#allocation2 + $0x8] sm:$0xff] }
0x11a1   : > { %v9791_v4 = vpop.eup %9790  ;;  %v5371_v5 = vmul.f32 1.442695, %v5366_v1  ;;  %v5627_v1 = vld [vmem:[#allocation2 + $0x10] sm:$0xff] }
0x11a2   : > { %v9793_v6 = vpop.eup %9792  ;;  %v5386_v7 = vsel %vm1337_vm1, %v9791_v4, 0.0 }
0x11a3   : > { %9794 = vpow2.f32 %v5371_v5  ;;  %v5383_v8 = vsel %vm1337_vm1, %v9793_v6, 0.0  ;;  %5387 = vadd.xlane.f32.xlu0 %v5386_v7  ;;  %v5677_v5 = vld [vmem:[#allocation2 + $0x1a0] sm:$0xff]  ;;  %v5679_v7 = vld [vmem:[#allocation2 + $0x1b0] sm:$0xff] }
0x11a4   : > { %5384 = vadd.xlane.f32.xlu2 %v5383_v8  ;;  %v5680_v8 = vld [vmem:[#allocation2 + $0x1b8] sm:$0xff] }
0x11a9   : > { %v9795_v9 = vpop.eup %9794 }
0x11aa   : > { %v5380_v10 = vsel %vm1337_vm1, %v9795_v9, 0.0 }
0x11ac   : > { %5381 = vadd.xlane.f32.xlu2 %v5380_v10  ;;  %v5662_v10 = vld [vmem:[#allocation2 + $0x128] sm:$0xff] }
0x1209   : > { %v5379_v12 = vpop.xlane.xlu1 %5378 }
0x120a   : > { %9796 = vrcp.f32 %v5379_v12 }
0x1210   : > { %v9797_v14 = vpop.eup %9796 }
0x1211   : > { %v5393_v15 = vmul.f32 %v9797_v14, %v9789_v61  ;;  %v5658_v61 = vld [vmem:[#allocation2 + $0x108] sm:$0xff]  ;;  %v5663_v14 = vld [vmem:[#allocation2 + $0x130] sm:$0xff] }
0x1213   : > { %9294 = vmatmul.msk.f32.vlgmr.msra.gmra.mxu0 %vm1337_vm1, %v5393_v15  ;;  %v5664_v15 = vld [vmem:[#allocation2 + $0x138] sm:$0xff] }
0x1214   : > { %5805 = vmatpush.msra.mxu0 %v5673_v59  ;;  %v5636_v59 = vld [vmem:[#allocation2 + $0x58] sm:$0xff] }
0x1216   : > { %v5388_v16 = vpop.xlane.xlu0 %5387  ;;  %5806 = vmatpush.msra.mxu0 %v5657_v40  ;;  %v5688_v40 = vld [vmem:[#allocation2 + $0x1f8] sm:$0xff] }
0x1217   : > { %v5385_v22 = vpop.xlane.xlu2 %5384  ;;  %9798 = vrcp.f32 %v5388_v16  ;;  %v5645_v16 = vld [vmem:[#allocation2 + $0xa0] sm:$0xff] }
0x1218   : > { %9800 = vrcp.f32 %v5385_v22  ;;  %5807 = vmatpush.msra.mxu0 %v5641_v63  ;;  %v5672_v63 = vld [vmem:[#allocation2 + $0x178] sm:$0xff] }
0x121a   : > { %5808 = vmatpush.msra.mxu0 %v5625_v2  ;;  %v5656_v2 = vld [vmem:[#allocation2 + $0xf8] sm:$0xff] }
0x121d   : > { %v9799_v23 = vpop.eup %9798 }
0x121e   : > { %v9801_v24 = vpop.eup %9800  ;;  %v5396_v25 = vmul.f32 %v9799_v23, %v9791_v4  ;;  %v5628_v4 = vld [vmem:[#allocation2 + $0x18] sm:$0xff]  ;;  %v5646_v23 = vld [vmem:[#allocation2 + $0xa8] sm:$0xff] }
0x121f   : > { %v5395_v26 = vmul.f32 %v9801_v24, %v9793_v6  ;;  %v5382_v27 = vpop.xlane.xlu2 %5381  ;;  %v5678_v6 = vld [vmem:[#allocation2 + $0x1a8] sm:$0xff]  ;;  %v5647_v24 = vld [vmem:[#allocation2 + $0xb0] sm:$0xff] }
0x1220   : > { %9802 = vrcp.f32 %v5382_v27  ;;  %9297 = vmatmul.msk.f32.vlgmr.msra.gmra.mxu3 %vm1337_vm1, %v5396_v25  ;;  %v5648_v25 = vld [vmem:[#allocation2 + $0xb8] sm:$0xff]  ;;  %v5630_v27 = vld [vmem:[#allocation2 + $0x28] sm:$0xff] }
0x1221   : > { %9296 = vmatmul.msk.f32.vlgmr.msra.gmra.mxu2 %vm1337_vm1, %v5395_v26  ;;  %v5629_v26 = vld [vmem:[#allocation2 + $0x20] sm:$0xff] }
0x1222   : > { %5845 = vmatpush.msra.mxu2 %v5675_v35  ;;  %v5686_v35 = vld [vmem:[#allocation2 + $0x1e8] sm:$0xff] }
0x1224   : > { %5846 = vmatpush.msra.mxu2 %v5659_v62  ;;  %v5670_v62 = vld [vmem:[#allocation2 + $0x168] sm:$0xff] }
0x1226   : > { %v9803_v29 = vpop.eup %9802  ;;  %5847 = vmatpush.msra.mxu2 %v5643_v44  ;;  %v5654_v44 = vld [vmem:[#allocation2 + $0xe8] sm:$0xff] }
0x1227   : > { %v5394_v30 = vmul.f32 %v9803_v29, %v9795_v9  ;;  %v5661_v9 = vld [vmem:[#allocation2 + $0x120] sm:$0xff] }
0x1228   : > { %5848 = vmatpush.msra.mxu2 %v5627_v1  ;;  %v5638_v1 = vld [vmem:[#allocation2 + $0x68] sm:$0xff] }
0x1229   : > { %9295 = vmatmul.msk.f32.vlgmr.msra.gmra.mxu1 %vm1337_vm1, %v5394_v30  ;;  %v5631_v30 = vld [vmem:[#allocation2 + $0x30] sm:$0xff] }
0x122a   : > { %5825 = vmatpush.msra.mxu1 %v5674_v39  ;;  %v5685_v39 = vld [vmem:[#allocation2 + $0x1e0] sm:$0xff] }
0x122c   : > { %5826 = vmatpush.msra.mxu1 %v5658_v61  ;;  %v5669_v61 = vld [vmem:[#allocation2 + $0x160] sm:$0xff] }
0x122e   : > { %5827 = vmatpush.msra.mxu1 %v5642_v42  ;;  %v5653_v42 = vld [vmem:[#allocation2 + $0xe0] sm:$0xff] }
0x1230   : > { %5828 = vmatpush.msra.mxu1 %v5626_v3  ;;  %v5637_v3 = vld [vmem:[#allocation2 + $0x60] sm:$0xff] }
0x1290   : > { %v5417_v41 = vpop.f32.mrf.mxu0 }
0x1291   : > { %9298 = vmatmul.msk.f32.vlgmr.msrb.gmra.mxu0 %vm1337_vm1, %v5417_v41 }
0x1292   : > { %5885 = vmatpush.msrb.mxu0 %v5677_v5  ;;  %v5640_v5 = vld [vmem:[#allocation2 + $0x78] sm:$0xff] }
0x1294   : > { %5886 = vmatpush.msrb.mxu0 %v5661_v9  ;;  %v5742_v9 = vld [vmem:[#allocation5 + $0x198] sm:$0xff] }
0x1296   : > { %5887 = vmatpush.msrb.mxu0 %v5645_v16  ;;  %v5707_v16 = vld [vmem:[#allocation5 + $0x80] sm:$0xff] }
0x1298   : > { %5888 = vmatpush.msrb.mxu0 %v5629_v26  ;;  %v5692_v26 = vld [vmem:[#allocation5 + $0x8] sm:$0xff] }
0x12a3   : > { %v5486_v43 = vpop.f32.mrf.mxu3 }
0x12a4   : > { %v5463_v46 = vpop.f32.mrf.mxu2  ;;  %9301 = vmatmul.msk.f32.vlgmr.msrb.gmra.mxu3 %vm1337_vm1, %v5486_v43 }
0x12a5   : > { %9300 = vmatmul.msk.f32.vlgmr.msrb.gmra.mxu2 %vm1337_vm1, %v5463_v46 }
0x12a6   : > { %v5440_v47 = vpop.f32.mrf.mxu1  ;;  %5925 = vmatpush.msrb.mxu2 %v5679_v7  ;;  %v5740_v7 = vld [vmem:[#allocation5 + $0x188] sm:$0xff] }
0x12a7   : > { %9299 = vmatmul.msk.f32.vlgmr.msrb.gmra.mxu1 %vm1337_vm1, %v5440_v47  ;;  %v9690_v47 = vld [vmem:[%s11737_s23] ss:$0 sm:$0xff]  ;;  %s11745_s23 = sld [smem:[#allocation34_spill]] }
0x12a8   : > { %5905 = vmatpush.msrb.mxu1 %v5678_v6  ;;  %5926 = vmatpush.msrb.mxu2 %v5663_v14  ;;  %v5739_v6 = vld [vmem:[#allocation5 + $0x180] sm:$0xff]  ;;  %v5725_v14 = vld [vmem:[#allocation5 + $0x110] sm:$0xff] }
0x12aa   : > { %5906 = vmatpush.msrb.mxu1 %v5662_v10  ;;  %5927 = vmatpush.msrb.mxu2 %v5647_v24  ;;  %v5723_v10 = vld [vmem:[#allocation5 + $0x100] sm:$0xff]  ;;  %v5710_v24 = vld [vmem:[#allocation5 + $0x98] sm:$0xff] }
0x12ac   : > { %5907 = vmatpush.msrb.mxu1 %v5646_v23  ;;  %5928 = vmatpush.msrb.mxu2 %v5631_v30  ;;  %v5709_v23 = vld [vmem:[#allocation5 + $0x90] sm:$0xff] }
0x12ad   : > { %v5693_v30 = vld [vmem:[#allocation5 + $0x10] sm:$0xff] }
0x12ae   : > { %5908 = vmatpush.msrb.mxu1 %v5630_v27  ;;  %v5743_v27 = vld [vmem:[#allocation5 + $0x1a0] sm:$0xff] }
0x130e   : > { %v5509_v48 = vpop.f32.mrf.mxu0 }
0x130f   : > { %v5581_v51 = vsel %vm1065_vm0, %v5509_v48, 0.0 }
0x1324   : > { %v5532_v49 = vpop.f32.mrf.mxu1 }
0x1325   : > { %v5582_v50 = vsel %vm1065_vm0, %v5532_v49, 0.0  ;;  %v9691_v49 = vld [vmem:[%s10166_s27] ss:$0 sm:$0xff] }
0x1326   : > { %v5583_v53 = vadd.f32 %v5582_v50, %v5581_v51 }
0x1327   : > { %v5578_v55 = vpop.f32.mrf.mxu3 }
0x1328   : > { %v5555_v54 = vpop.f32.mrf.mxu2  ;;  %v5586_v11 = vsel %vm1065_vm0, %v5578_v55, 0.0  ;;  %v5682_v55 = vld [vmem:[#allocation2 + $0x1c8] sm:$0xff] }
0x1329   : > { %v5584_v56 = vsel %vm1065_vm0, %v5555_v54, 0.0  ;;  %v5681_v54 = vld [vmem:[#allocation2 + $0x1c0] sm:$0xff] }
0x132a   : > { %v5585_v52 = vadd.f32 %v5584_v56, %v5583_v53  ;;  %v5683_v56 = vld [vmem:[#allocation2 + $0x1d0] sm:$0xff] }
0x132c   : > { %v5587_v17 = vadd.f32 %v5586_v11, %v5585_v52  ;;  %v5684_v52 = vld [vmem:[#allocation2 + $0x1d8] sm:$0xff]  ;;  %v5666_v11 = vld [vmem:[#allocation2 + $0x148] sm:$0xff] }
0x132e   : > { %v5591_v21 = vadd.f32 %v9689_v58, %v5587_v17  ;;  %v5665_v58 = vld [vmem:[#allocation2 + $0x140] sm:$0xff]  ;;  %v5667_v17 = vld [vmem:[#allocation2 + $0x150] sm:$0xff] }
0x1330   : > { %v5592_v19 = vadd.f32 %v5591_v21, %v11140_v28  ;;  %v5676_v28 = vld [vmem:[#allocation2 + $0x198] sm:$0xff] }
0x1331   : > { %5865 = vmatpush.msra.mxu3 %v5676_v28  ;;  %v5668_v21 = vld [vmem:[#allocation2 + $0x158] sm:$0xff]  ;;  %v5687_v28 = vld [vmem:[#allocation2 + $0x1f0] sm:$0xff] }
0x1332   : > { %v5595_v60 = vsel %vm1065_vm0, %v5592_v19, 0.0 }
0x1333   : > { %5596 = vadd.xlane.f32.xlu0 %v5595_v60  ;;  %5866 = vmatpush.msra.mxu3 %v5660_v38  ;;  %v5650_v60 = vld [vmem:[#allocation2 + $0xc8] sm:$0xff]  ;;  %v5671_v38 = vld [vmem:[#allocation2 + $0x170] sm:$0xff] }
0x1335   : > { %5867 = vmatpush.msra.mxu3 %v5644_v0  ;;  %v5655_v0 = vld [vmem:[#allocation2 + $0xf0] sm:$0xff] }
0x1337   : > { %5868 = vmatpush.msra.mxu3 %v5628_v4  ;;  %v5639_v4 = vld [vmem:[#allocation2 + $0x70] sm:$0xff] }
0x1339   : > { %5945 = vmatpush.msrb.mxu3 %v5680_v8  ;;  %v5741_v8 = vld [vmem:[#allocation5 + $0x190] sm:$0xff] }
0x133b   : > { %5946 = vmatpush.msrb.mxu3 %v5664_v15  ;;  %v5726_v15 = vld [vmem:[#allocation5 + $0x118] sm:$0xff] }
0x133d   : > { %5947 = vmatpush.msrb.mxu3 %v5648_v25  ;;  %v5691_v25 = vld [vmem:[#allocation5] sm:$0xff] }
0x133f   : > { %5948 = vmatpush.msrb.mxu3 %v5632_v31  ;;  %v5694_v31 = vld [vmem:[#allocation5 + $0x18] sm:$0xff] }
0x13a6   : > { %v5597_v18 = vpop.xlane.xlu0 %5596 }
0x13a7   : > { %v5598_v33 = vmul.f32 %v5597_v18, %v10403_v32  ;;  %v5651_v18 = vld [vmem:[#allocation2 + $0xd0] sm:$0xff] }
0x13a9   : > { %v11233_v34 = vsub.f32 %v5592_v19, %v5598_v33  ;;  %v5649_v19 = vld [vmem:[#allocation2 + $0xc0] sm:$0xff]  ;;  %v5652_v33 = vld [vmem:[#allocation2 + $0xd8] sm:$0xff] }
0x13ab   : > { %v5600_v57 = vmul.f32 %v11233_v34, %v11233_v34 }
0x13ad   : > { %v5601_v13 = vsel %vm1065_vm0, %v5600_v57, 0.0  ;;  %v5634_v57 = vld [vmem:[#allocation2 + $0x48] sm:$0xff] }
0x13ae   : > { %5602 = vadd.xlane.f32.xlu1 %v5601_v13  ;;  %v5635_v13 = vld [vmem:[#allocation2 + $0x50] sm:$0xff] }
0x1421   : > { %v5603_v12 = vpop.xlane.xlu1 %5602 }
0x1422   : > { %v5604_v22 = vmul.f32 %v5603_v12, %v10403_v32  ;;  %v5724_v12 = vld [vmem:[#allocation5 + $0x108] sm:$0xff] }
0x1424   : > { %v5605_v29 = vadd.f32 1e-05, %v5604_v22  ;;  %v5708_v22 = vld [vmem:[#allocation5 + $0x88] sm:$0xff] }
0x1426   : > { %9804 = vrsqrt.f32 %v5605_v29  ;;  %vm5612_vm5 = vweird.f32 %v5605_v29 }
0x142c   : > { %v9805_v36 = vpop.eup %9804 }
0x142d   : > { %v5607_v37 = vmul.f32 %v9805_v36, %v5605_v29  ;;  %vm5613_vm4 = vweird.f32 %v9805_v36  ;;  %v5744_v29 = vld [vmem:[#allocation5 + $0x1a8] sm:$0xff] }
0x142e   : > { %vm5614_vm6 = vmor %vm5612_vm5, %vm5613_vm4  ;;  %vm8826_vm5 = vcmask 253952  }
0x142f   : > { %v5608_v20 = vmul.f32 %v9805_v36, %v5607_v37  ;;  %v5746_v37 = vld [vmem:[#allocation5 + $0x1b8] sm:$0xff] }
0x1431   : > { %v5609_v41 = vmul.f32 0.5, %v5608_v20  ;;  %v5727_v20 = vld [vmem:[#allocation5 + $0x120] sm:$0xff] }
0x1433   : > { %v5610_v43 = vsub.f32 1.5, %v5609_v41  ;;  %v5728_v41 = vld [vmem:[#allocation5 + $0x128] sm:$0xff] }
0x1435   : > { %v5611_v46 = vmul.f32 %v9805_v36, %v5610_v43  ;;  %v5711_v43 = vld [vmem:[#allocation5 + $0xa0] sm:$0xff] }
0x1437   : > { %v5615_v48 = vsel %vm5614_vm6, %v9805_v36, %v5611_v46  ;;  %v5745_v36 = vld [vmem:[#allocation5 + $0x1b0] sm:$0xff]  ;;  %v5712_v46 = vld [vmem:[#allocation5 + $0xa8] sm:$0xff] }
0x1438   : > { %v5616_v50 = vmul.f32 %v5615_v48, %v11233_v34  ;;  %v5633_v34 = vld [vmem:[#allocation2 + $0x40] sm:$0xff]  ;;  %v5730_v48 = vld [vmem:[#allocation5 + $0x138] sm:$0xff] }
0x143a   : > { %v5620_v51 = vmul.f32 %v9690_v47, %v5616_v50  ;;  %v5729_v47 = vld [vmem:[#allocation5 + $0x130] sm:$0xff]  ;;  %v5696_v50 = vld [vmem:[#allocation5 + $0x28] sm:$0xff] }
0x143c   : > { %v11242_v53 = vadd.f32 %v9691_v49, %v5620_v51  ;;  %v5695_v49 = vld [vmem:[#allocation5 + $0x20] sm:$0xff]  ;;  %v5713_v51 = vld [vmem:[#allocation5 + $0xb0] sm:$0xff] }
0x143e   : > { %9302 = vmatmul.msk.f32.vlgmr.msra.gmra.mxu0 %vm1065_vm0, %v11242_v53  ;;  %9303 = vmatmul.msk.f32.vlgmr.msra.gmra.mxu1 %vm1065_vm0, %v11242_v53 }
0x143f   : > { %9304 = vmatmul.msk.f32.vlgmr.msra.gmra.mxu2 %vm1065_vm0, %v11242_v53  ;;  %9305 = vmatmul.msk.f32.vlgmr.msra.gmra.mxu3 %vm1065_vm0, %v11242_v53 }
0x1440   : > { %5965 = vmatpush.msra.mxu0 %v5681_v54  ;;  %5985 = vmatpush.msra.mxu1 %v5682_v55  ;;  %v5714_v54 = vld [vmem:[#allocation5 + $0xb8] sm:$0xff]  ;;  %v5697_v55 = vld [vmem:[#allocation5 + $0x30] sm:$0xff] }
0x1441   : > { %6005 = vmatpush.msra.mxu2 %v5683_v56  ;;  %6025 = vmatpush.msra.mxu3 %v5684_v52  ;;  %v5698_v56 = vld [vmem:[#allocation5 + $0x38] sm:$0xff]  ;;  %v5689_v52 = vld [vmem:[%s11739_s26] sm:$0xff]  ;;  %s11746_s26 = sld [smem:[#allocation32_spill]] }
0x1442   : > { %5966 = vmatpush.msra.mxu0 %v5665_v58  ;;  %5986 = vmatpush.msra.mxu1 %v5666_v11  ;;  %v5758_v58 = vperm.slane %v5689_v52, 0  ;;  %v5759_v11 = vperm.slane %v5689_v52, 1 }
0x1443   : > { %6006 = vmatpush.msra.mxu2 %v5667_v17  ;;  %6026 = vmatpush.msra.mxu3 %v5668_v21 }
0x1444   : > { %5967 = vmatpush.msra.mxu0 %v5649_v19  ;;  %5987 = vmatpush.msra.mxu1 %v5650_v60 }
0x1445   : > { %6007 = vmatpush.msra.mxu2 %v5651_v18  ;;  %6027 = vmatpush.msra.mxu3 %v5652_v33 }
0x1446   : > { %9306 = vmatmul.msk.f32.vlgmr.msrb.gmra.mxu0 %vm1065_vm0, %v11242_v53  ;;  %9307 = vmatmul.msk.f32.vlgmr.msrb.gmra.mxu1 %vm1065_vm0, %v11242_v53 }
0x1447   : > { %9308 = vmatmul.msk.f32.vlgmr.msrb.gmra.mxu2 %vm1065_vm0, %v11242_v53  ;;  %9309 = vmatmul.msk.f32.vlgmr.msrb.gmra.mxu3 %vm1065_vm0, %v11242_v53 }
0x1448   : > { %5968 = vmatpush.msra.mxu0 %v5633_v34  ;;  %5988 = vmatpush.msra.mxu1 %v5634_v57  ;;  %v5747_v34 = vld [vmem:[#allocation5 + $0x1c0] sm:$0xff]  ;;  %v5748_v57 = vld [vmem:[#allocation5 + $0x1c8] sm:$0xff] }
0x1449   : > { %6008 = vmatpush.msra.mxu2 %v5635_v13  ;;  %6028 = vmatpush.msra.mxu3 %v5636_v59  ;;  %v5760_v13 = vperm.slane %v5689_v52, 2  ;;  %v5761_v59 = vperm.slane %v5689_v52, 3 }
0x144a   : > { %6045 = vmatpush.msrb.mxu0 %v5685_v39  ;;  %6065 = vmatpush.msrb.mxu1 %v5686_v35  ;;  %v5762_v39 = vperm.slane %v5689_v52, 4  ;;  %v5763_v35 = vperm.slane %v5689_v52, 5 }
0x144b   : > { %6085 = vmatpush.msrb.mxu2 %v5687_v28  ;;  %6105 = vmatpush.msrb.mxu3 %v5688_v40 }
0x144c   : > { %6046 = vmatpush.msrb.mxu0 %v5669_v61  ;;  %6066 = vmatpush.msrb.mxu1 %v5670_v62  ;;  %v5731_v61 = vld [vmem:[#allocation5 + $0x140] sm:$0xff]  ;;  %v5732_v62 = vld [vmem:[#allocation5 + $0x148] sm:$0xff] }
0x144d   : > { %6086 = vmatpush.msrb.mxu2 %v5671_v38  ;;  %6106 = vmatpush.msrb.mxu3 %v5672_v63 }
0x144e   : > { %9310 = vmatmul.msk.f32.vlgmr.msra.gmra.mxu0 %vm1065_vm0, %v11242_v53  ;;  %9311 = vmatmul.msk.f32.vlgmr.msra.gmra.mxu1 %vm1065_vm0, %v11242_v53 }
0x144f   : > { %9312 = vmatmul.msk.f32.vlgmr.msra.gmra.mxu2 %vm1065_vm0, %v11242_v53  ;;  %9313 = vmatmul.msk.f32.vlgmr.msra.gmra.mxu3 %vm1065_vm0, %v11242_v53 }
0x1450   : > { %6047 = vmatpush.msrb.mxu0 %v5653_v42  ;;  %6067 = vmatpush.msrb.mxu1 %v5654_v44 }
0x1451   : > { %6087 = vmatpush.msrb.mxu2 %v5655_v0  ;;  %6107 = vmatpush.msrb.mxu3 %v5656_v2 }
0x1452   : > { %6048 = vmatpush.msrb.mxu0 %v5637_v3  ;;  %6068 = vmatpush.msrb.mxu1 %v5638_v1 }
0x1453   : > { %6088 = vmatpush.msrb.mxu2 %v5639_v4  ;;  %6108 = vmatpush.msrb.mxu3 %v5640_v5  ;;  %v5749_v4 = vld [vmem:[#allocation5 + $0x1d0] sm:$0xff]  ;;  %v5750_v5 = vld [vmem:[#allocation5 + $0x1d8] sm:$0xff] }
0x1454   : > { %6144 = vmatpush.xpose.msra.mxu0 %v5739_v6  ;;  %6164 = vmatpush.xpose.msra.mxu1 %v5740_v7  ;;  %v11278_v6 = vld [vmem:[%s11740_s5 + $0x8] sm:$0xff] }
0x1455   : > { %6184 = vmatpush.xpose.msra.mxu2 %v5741_v8  ;;  %6204 = vmatpush.xpose.msra.mxu3 %v5742_v9  ;;  %v5715_v9 = vld [vmem:[#allocation5 + $0xc0] sm:$0xff] }
0x1456   : > { %9314 = vmatmul.msk.f32.vlgmr.msrb.gmra.mxu0 %vm1065_vm0, %v11242_v53  ;;  %9315 = vmatmul.msk.f32.vlgmr.msrb.gmra.mxu1 %vm1065_vm0, %v11242_v53 }
0x1457   : > { %9316 = vmatmul.msk.f32.vlgmr.msrb.gmra.mxu2 %vm1065_vm0, %v11242_v53  ;;  %9317 = vmatmul.msk.f32.vlgmr.msrb.gmra.mxu3 %vm1065_vm0, %v11242_v53 }
0x1458   : > { %6145 = vmatpush.xpose.msra.mxu0 %v5723_v10  ;;  %6165 = vmatpush.xpose.msra.mxu1 %v5724_v12  ;;  %v5716_v10 = vld [vmem:[#allocation5 + $0xc8] sm:$0xff]  ;;  %v5764_v12 = vperm.slane %v5689_v52, 6 }
0x1459   : > { %6185 = vmatpush.xpose.msra.mxu2 %v5725_v14  ;;  %6205 = vmatpush.xpose.msra.mxu3 %v5726_v15  ;;  %v5765_v14 = vperm.slane %v5689_v52, 7  ;;  %v5766_v15 = vperm.slane %v11278_v6, 0  ;;  %v5736_v52 = vld [vmem:[#allocation5 + $0x168] sm:$0xff] }
0x145c   : > { %6146 = vmatpush.xpose.msra.mxu0 %v5707_v16  ;;  %6166 = vmatpush.xpose.msra.mxu1 %v5708_v22  ;;  %v5767_v16 = vperm.slane %v11278_v6, 1  ;;  %v5733_v22 = vld [vmem:[#allocation5 + $0x150] sm:$0xff] }
0x145d   : > { %6186 = vmatpush.xpose.msra.mxu2 %v5709_v23  ;;  %6206 = vmatpush.xpose.msra.mxu3 %v5710_v24  ;;  %v5734_v23 = vld [vmem:[#allocation5 + $0x158] sm:$0xff] }
0x1460   : > { %6147 = vmatpush.xpose.msra.mxu0 %v5691_v25  ;;  %6167 = vmatpush.xpose.msra.mxu1 %v5692_v26 }
0x1461   : > { %6187 = vmatpush.xpose.msra.mxu2 %v5693_v30  ;;  %6207 = vmatpush.xpose.msra.mxu3 %v5694_v31  ;;  %v5699_v31 = vld [vmem:[#allocation5 + $0x40] sm:$0xff] }
0x1464   : > { %6224 = vmatpush.xpose.msrb.mxu0 %v5743_v27  ;;  %6244 = vmatpush.xpose.msrb.mxu1 %v5744_v29 }
0x1465   : > { %6264 = vmatpush.xpose.msrb.mxu2 %v5745_v36  ;;  %6284 = vmatpush.xpose.msrb.mxu3 %v5746_v37  ;;  %v5700_v36 = vld [vmem:[#allocation5 + $0x48] sm:$0xff] }
0x1468   : > { %6225 = vmatpush.xpose.msrb.mxu0 %v5727_v20  ;;  %6245 = vmatpush.xpose.msrb.mxu1 %v5728_v41  ;;  %v5751_v41 = vld [vmem:[#allocation5 + $0x1e0] sm:$0xff] }
0x1469   : > { %6265 = vmatpush.xpose.msrb.mxu2 %v5729_v47  ;;  %6285 = vmatpush.xpose.msrb.mxu3 %v5730_v48 }
0x146c   : > { %6226 = vmatpush.xpose.msrb.mxu0 %v5711_v43  ;;  %6246 = vmatpush.xpose.msrb.mxu1 %v5712_v46  ;;  %v5752_v43 = vld [vmem:[#allocation5 + $0x1e8] sm:$0xff] }
0x146d   : > { %6266 = vmatpush.xpose.msrb.mxu2 %v5713_v51  ;;  %6286 = vmatpush.xpose.msrb.mxu3 %v5714_v54  ;;  %v5718_v51 = vld [vmem:[#allocation5 + $0xd8] sm:$0xff]  ;;  %v5768_v54 = vperm.slane %v11278_v6, 2 }
0x1470   : > { %6227 = vmatpush.xpose.msrb.mxu0 %v5695_v49  ;;  %6247 = vmatpush.xpose.msrb.mxu1 %v5696_v50  ;;  %v5717_v50 = vld [vmem:[#allocation5 + $0xd0] sm:$0xff] }
0x1471   : > { %6267 = vmatpush.xpose.msrb.mxu2 %v5697_v55  ;;  %6287 = vmatpush.xpose.msrb.mxu3 %v5698_v56  ;;  %v5769_v55 = vperm.slane %v11278_v6, 3  ;;  %v5735_v56 = vld [vmem:[#allocation5 + $0x160] sm:$0xff] }
0x14bb   : > { %v5810_v17 = vpop.f32.mrf.mxu0  ;;  %v5830_v21 = vpop.f32.mrf.mxu1 }
0x14bc   : > { %v5811_v19 = vadd.f32 %v5810_v17, %v5758_v58  ;;  %v5831_v60 = vadd.f32 %v5830_v21, %v5759_v11  ;;  %v5701_v17 = vld [vmem:[#allocation5 + $0x50] sm:$0xff]  ;;  %v5702_v21 = vld [vmem:[#allocation5 + $0x58] sm:$0xff] }
0x14be   : > { %v6113_v18 = vmax.f32 %v5811_v19, 0.0  ;;  %v6114_v33 = vmax.f32 %v5831_v60, 0.0 }
0x14c0   : > { %6148 = vmatmul.f32.vlgmr.msra.gmra.mxu0 %v6113_v18  ;;  %6168 = vmatmul.f32.vlgmr.msra.gmra.mxu1 %v6114_v33  ;;  %v5753_v18 = vld [vmem:[#allocation5 + $0x1f0] sm:$0xff]  ;;  %v5754_v33 = vld [vmem:[#allocation5 + $0x1f8] sm:$0xff] }
0x14c1   : > { %6304 = vmatpush.xpose.msra.mxu0 %v5747_v34  ;;  %6324 = vmatpush.xpose.msra.mxu1 %v5748_v57  ;;  %v5719_v34 = vld [vmem:[#allocation5 + $0xe0] sm:$0xff]  ;;  %v5720_v57 = vld [vmem:[#allocation5 + $0xe8] sm:$0xff] }
0x14c2   : > { %v5850_v28 = vpop.f32.mrf.mxu2  ;;  %v5870_v40 = vpop.f32.mrf.mxu3 }
0x14c3   : > { %v5851_v38 = vadd.f32 %v5850_v28, %v5760_v13  ;;  %v5871_v63 = vadd.f32 %v5870_v40, %v5761_v59  ;;  %v5890_v42 = vpop.f32.mrf.mxu0  ;;  %v5910_v44 = vpop.f32.mrf.mxu1 }
0x14c4   : > { %v5891_v0 = vadd.f32 %v5890_v42, %v5762_v39  ;;  %v5911_v2 = vadd.f32 %v5910_v44, %v5763_v35  ;;  %v5770_v39 = vperm.slane %v11278_v6, 4  ;;  %v5771_v35 = vperm.slane %v11278_v6, 5 }
0x14c5   : > { %v6115_v3 = vmax.f32 %v5851_v38, 0.0  ;;  %v6116_v1 = vmax.f32 %v5871_v63, 0.0  ;;  %6305 = vmatpush.xpose.msra.mxu0 %v5731_v61  ;;  %6325 = vmatpush.xpose.msra.mxu1 %v5732_v62  ;;  %v5737_v61 = vld [vmem:[#allocation5 + $0x170] sm:$0xff]  ;;  %v5738_v62 = vld [vmem:[#allocation5 + $0x178] sm:$0xff]  ;;  %v5703_v38 = vld [vmem:[#allocation5 + $0x60] sm:$0xff] }
0x14c6   : > { %v6117_v7 = vmax.f32 %v5891_v0, 0.0  ;;  %v6118_v8 = vmax.f32 %v5911_v2, 0.0  ;;  %v5704_v63 = vld [vmem:[#allocation5 + $0x68] sm:$0xff]  ;;  %v5772_v0 = vperm.slane %v11278_v6, 6  ;;  %v5773_v2 = vperm.slane %v11278_v6, 7 }
0x14c7   : > { %6188 = vmatmul.f32.vlgmr.msra.gmra.mxu2 %v6115_v3  ;;  %6208 = vmatmul.f32.vlgmr.msra.gmra.mxu3 %v6116_v1  ;;  %v5721_v3 = vld [vmem:[#allocation5 + $0xf0] sm:$0xff]  ;;  %v5722_v1 = vld [vmem:[#allocation5 + $0xf8] sm:$0xff] }
0x14c8   : > { %6344 = vmatpush.xpose.msra.mxu2 %v5749_v4  ;;  %6364 = vmatpush.xpose.msra.mxu3 %v5750_v5 }
0x14c9   : > { %6228 = vmatmul.f32.vlgmr.msrb.gmra.mxu0 %v6117_v7  ;;  %6248 = vmatmul.f32.vlgmr.msrb.gmra.mxu1 %v6118_v8 }
0x14ca   : > { %6306 = vmatpush.xpose.msra.mxu0 %v5715_v9  ;;  %6326 = vmatpush.xpose.msra.mxu1 %v5716_v10  ;;  %v5930_v24 = vpop.f32.mrf.mxu2  ;;  %v5950_v25 = vpop.f32.mrf.mxu3 }
0x14cb   : > { %v5931_v26 = vadd.f32 %v5930_v24, %v5764_v12  ;;  %v5951_v27 = vadd.f32 %v5950_v25, %v5765_v14  ;;  %v5970_v29 = vpop.f32.mrf.mxu0  ;;  %v5990_v30 = vpop.f32.mrf.mxu1  ;;  %v5705_v12 = vld [vmem:[#allocation5 + $0x70] sm:$0xff]  ;;  %v5706_v14 = vld [vmem:[#allocation5 + $0x78] sm:$0xff] }
0x14cc   : > { %6345 = vmatpush.xpose.msra.mxu2 %v5733_v22  ;;  %6365 = vmatpush.xpose.msra.mxu3 %v5734_v23  ;;  %v5971_v37 = vadd.f32 %v5970_v29, %v5766_v15  ;;  %v5991_v20 = vadd.f32 %v5990_v30, %v5767_v16  ;;  %v9692_v16 = vld [vmem:[%s11741_s28] ss:$0 sm:$0xff]  ;;  %s981_s28 = sand.u32 1, %s11745_s23  }
0x14cd   : > { %v6119_v46 = vmax.f32 %v5931_v26, 0.0  ;;  %v6120_v47 = vmax.f32 %v5951_v27, 0.0  ;;  %s8829_s23 = scalar_lea.sflag [#allocation4], %s981_s28 }
0x14ce   : > { %v6121_v48 = vmax.f32 %v5971_v37, 0.0  ;;  %v6122_v49 = vmax.f32 %v5991_v20, 0.0  ;;  %6307 = vmatpush.xpose.msra.mxu0 %v5699_v31  ;;  %6327 = vmatpush.xpose.msra.mxu1 %v5700_v36 }
0x14cf   : > { %6268 = vmatmul.f32.vlgmr.msrb.gmra.mxu2 %v6119_v46  ;;  %6288 = vmatmul.f32.vlgmr.msrb.gmra.mxu3 %v6120_v47 }
0x14d0   : > { %6346 = vmatpush.xpose.msra.mxu2 %v5717_v50  ;;  %6366 = vmatpush.xpose.msra.mxu3 %v5718_v51 }
0x14d1   : > { %6308 = vmatmul.f32.vlgmr.msra.gmra.mxu0 %v6121_v48  ;;  %6328 = vmatmul.f32.vlgmr.msra.gmra.mxu1 %v6122_v49 }
0x14d2   : > { %6384 = vmatpush.xpose.msrb.mxu0 %v5751_v41  ;;  %6404 = vmatpush.xpose.msrb.mxu1 %v5752_v43  ;;  %v6010_v58 = vpop.f32.mrf.mxu2  ;;  %v6030_v11 = vpop.f32.mrf.mxu3 }
0x14d3   : > { %v6011_v19 = vadd.f32 %v6010_v58, %v5768_v54  ;;  %v6031_v60 = vadd.f32 %v6030_v11, %v5769_v55  ;;  %v6050_v28 = vpop.f32.mrf.mxu0  ;;  %v6070_v40 = vpop.f32.mrf.mxu1 }
0x14d4   : > { %6347 = vmatpush.xpose.msra.mxu2 %v5701_v17  ;;  %6367 = vmatpush.xpose.msra.mxu3 %v5702_v21  ;;  %v6051_v42 = vadd.f32 %v6050_v28, %v5770_v39  ;;  %v6071_v44 = vadd.f32 %v6070_v40, %v5771_v35  ;;  %v9321_v40 = vld [vmem:[%s11725_s15 + $0x198] sm:$0xff] }
0x14d5   : > { %v6123_v13 = vmax.f32 %v6011_v19, 0.0  ;;  %v6124_v59 = vmax.f32 %v6031_v60, 0.0 }
0x14d6   : > { %6385 = vmatpush.xpose.msrb.mxu0 %v5735_v56  ;;  %6405 = vmatpush.xpose.msrb.mxu1 %v5736_v52  ;;  %v6125_v7 = vmax.f32 %v6051_v42, 0.0  ;;  %v6126_v8 = vmax.f32 %v6071_v44, 0.0  ;;  %v9328_v42 = vld [vmem:[%s11725_s15 + $0x1d0] sm:$0xff] }
0x14d7   : > { %6348 = vmatmul.f32.vlgmr.msra.gmra.mxu2 %v6123_v13  ;;  %6368 = vmatmul.f32.vlgmr.msra.gmra.mxu3 %v6124_v59  ;;  %v9332_v44 = vld [vmem:[%s11725_s15 + $0x1f0] sm:$0xff] }
0x14d8   : > { %6424 = vmatpush.xpose.msrb.mxu2 %v5753_v18  ;;  %6444 = vmatpush.xpose.msrb.mxu3 %v5754_v33 }
0x14da   : > { %6386 = vmatpush.xpose.msrb.mxu0 %v5719_v34  ;;  %6406 = vmatpush.xpose.msrb.mxu1 %v5720_v57  ;;  %v6090_v4 = vpop.f32.mrf.mxu2  ;;  %v6110_v5 = vpop.f32.mrf.mxu3 }
0x14db   : > { %v6091_v9 = vadd.f32 %v6090_v4, %v5772_v0  ;;  %v6111_v10 = vadd.f32 %v6110_v5, %v5773_v2  ;;  %v9319_v0 = vld [vmem:[%s11725_s15 + $0x188] sm:$0xff]  ;;  %v9318_v4 = vld [vmem:[%s11725_s15 + $0x180] sm:$0xff] }
0x14dc   : > { %6425 = vmatpush.xpose.msrb.mxu2 %v5737_v61  ;;  %6445 = vmatpush.xpose.msrb.mxu3 %v5738_v62  ;;  %v9329_v61 = vld [vmem:[%s11725_s15 + $0x1d8] sm:$0xff]  ;;  %v9323_v2 = vld [vmem:[%s11725_s15 + $0x1a8] sm:$0xff]  ;;  %v9322_v5 = vld [vmem:[%s11725_s15 + $0x1a0] sm:$0xff] }
0x14dd   : > { %v6127_v6 = vmax.f32 %v6091_v9, 0.0  ;;  %v6128_v15 = vmax.f32 %v6111_v10, 0.0  ;;  %v9333_v62 = vld [vmem:[%s11725_s15 + $0x1f8] sm:$0xff] }
0x14de   : > { %6387 = vmatpush.xpose.msrb.mxu0 %v5703_v38  ;;  %6407 = vmatpush.xpose.msrb.mxu1 %v5704_v63  ;;  %v9320_v38 = vld [vmem:[%s11725_s15 + $0x190] sm:$0xff]  ;;  %v9337_v9 = vld [vmem:[%s11725_s15 + $0x218] sm:$0xff] }
0x14df   : > { %v9324_v63 = vld [vmem:[%s11725_s15 + $0x1b0] sm:$0xff]  ;;  %v9341_v10 = vld [vmem:[%s11725_s15 + $0x238] sm:$0xff] }
0x14e0   : > { %6426 = vmatpush.xpose.msrb.mxu2 %v5721_v3  ;;  %6446 = vmatpush.xpose.msrb.mxu3 %v5722_v1  ;;  %v9327_v3 = vld [vmem:[%s11725_s15 + $0x1c8] sm:$0xff] }
0x14e1   : > { %6388 = vmatmul.f32.vlgmr.msrb.gmra.mxu0 %v6125_v7  ;;  %6408 = vmatmul.f32.vlgmr.msrb.gmra.mxu1 %v6126_v8  ;;  %v9331_v1 = vld [vmem:[%s11725_s15 + $0x1e8] sm:$0xff]  ;;  %v9326_v7 = vld [vmem:[%s11725_s15 + $0x1c0] sm:$0xff] }
0x14e2   : > { %6581 = vmatpush.msra.mxu0 %v9321_v40  ;;  %v9330_v8 = vld [vmem:[%s11725_s15 + $0x1e0] sm:$0xff] }
0x14e3   : > { %v9362_v40 = vld [vmem:[%s11725_s15 + $0x2e0] sm:$0xff] }
0x14e4   : > { %6427 = vmatpush.xpose.msrb.mxu2 %v5705_v12  ;;  %6447 = vmatpush.xpose.msrb.mxu3 %v5706_v14  ;;  %v9345_v12 = vld [vmem:[%s11725_s15 + $0x258] sm:$0xff] }
0x14e5   : > { %6582 = vmatpush.msra.mxu0 %v9320_v38  ;;  %v9349_v14 = vld [vmem:[%s11725_s15 + $0x278] sm:$0xff]  ;;  %v9696_v38 = vld [vmem:[%s11727_s16 + $0xd] ss:$0 sm:$0xff] }
0x14e7   : > { %6428 = vmatmul.f32.vlgmr.msrb.gmra.mxu2 %v6127_v6  ;;  %6448 = vmatmul.f32.vlgmr.msrb.gmra.mxu3 %v6128_v15  ;;  %v9336_v6 = vld [vmem:[%s11725_s15 + $0x210] sm:$0xff] }
0x14e8   : > { %6621 = vmatpush.msra.mxu2 %v9329_v61  ;;  %6641 = vmatpush.msra.mxu3 %v9333_v62  ;;  %v9340_v15 = vld [vmem:[%s11725_s15 + $0x230] sm:$0xff]  ;;  %v9695_v62 = vld [vmem:[%s11727_s16 + $0xc] ss:$0 sm:$0xff] }
0x14e9   : > { %6583 = vmatpush.msra.mxu0 %v9319_v0 }
0x14ea   : > { %6622 = vmatpush.msra.mxu2 %v9328_v42  ;;  %6642 = vmatpush.msra.mxu3 %v9332_v44  ;;  %v9700_v42 = vld [vmem:[%s11727_s16 + $0x11] ss:$0 sm:$0xff] }
0x14eb   : > { %6584 = vmatpush.msra.mxu0 %v9318_v4 }
0x14ec   : > { %6623 = vmatpush.msra.mxu2 %v9327_v3  ;;  %6643 = vmatpush.msra.mxu3 %v9331_v1 }
0x14ed   : > { %6673 = vmatpush.msrb.mxu0 %v9337_v9  ;;  %v9698_v9 = vld [vmem:[%s11727_s16 + $0xf] ss:$0 sm:$0xff] }
0x14ee   : > { %6624 = vmatpush.msra.mxu2 %v9326_v7  ;;  %6644 = vmatpush.msra.mxu3 %v9330_v8  ;;  %v9697_v8 = vld [vmem:[%s11727_s16 + $0xe] ss:$0 sm:$0xff] }
0x14ef   : > { %6674 = vmatpush.msrb.mxu0 %v9336_v6  ;;  %v9702_v6 = vld [vmem:[%s11727_s16 + $0x13] ss:$0 sm:$0xff] }
0x14f0   : > { %6713 = vmatpush.msrb.mxu2 %v9345_v12  ;;  %6733 = vmatpush.msrb.mxu3 %v9349_v14 }
0x153d   : > { %v6149_v22 = vpop.f32.mrf.mxu0  ;;  %v6169_v24 = vpop.f32.mrf.mxu1 }
0x153e   : > { %v6150_v23 = vadd.f32 %v9692_v16, %v6149_v22  ;;  %v9344_v22 = vld [vmem:[%s11725_s15 + $0x250] sm:$0xff] }
0x153f   : > { %6714 = vmatpush.msrb.mxu2 %v9344_v22 }
0x1540   : > { %v6170_v25 = vadd.f32 %v6169_v24, %v6150_v23  ;;  %v9348_v23 = vld [vmem:[%s11725_s15 + $0x270] sm:$0xff]  ;;  %v9335_v24 = vld [vmem:[%s11725_s15 + $0x208] sm:$0xff] }
0x1541   : > { %6734 = vmatpush.msrb.mxu3 %v9348_v23  ;;  %6675 = vmatpush.msrb.mxu0 %v9335_v24 }
0x1546   : > { %v6229_v30 = vpop.f32.mrf.mxu0  ;;  %v6249_v36 = vpop.f32.mrf.mxu1 }
0x154a   : > { %v6189_v26 = vpop.f32.mrf.mxu2  ;;  %v6209_v27 = vpop.f32.mrf.mxu3 }
0x154b   : > { %v6190_v29 = vadd.f32 %v6189_v26, %v6170_v25  ;;  %v9339_v26 = vld [vmem:[%s11725_s15 + $0x228] sm:$0xff] }
0x154d   : > { %v6210_v31 = vadd.f32 %v6209_v27, %v6190_v29  ;;  %v9343_v27 = vld [vmem:[%s11725_s15 + $0x248] sm:$0xff] }
0x154e   : > { %v6309_v48 = vpop.f32.mrf.mxu0  ;;  %v6329_v50 = vpop.f32.mrf.mxu1  ;;  %v9347_v29 = vld [vmem:[%s11725_s15 + $0x268] sm:$0xff]  ;;  %6715 = vmatpush.msrb.mxu2 %v9343_v27 }
0x154f   : > { %v6230_v37 = vadd.f32 %v6229_v30, %v6210_v31  ;;  %v9334_v30 = vld [vmem:[%s11725_s15 + $0x200] sm:$0xff]  ;;  %6735 = vmatpush.msrb.mxu3 %v9347_v29 }
0x1550   : > { %v9338_v31 = vld [vmem:[%s11725_s15 + $0x220] sm:$0xff]  ;;  %6676 = vmatpush.msrb.mxu0 %v9334_v30 }
0x1551   : > { %v6250_v20 = vadd.f32 %v6249_v36, %v6230_v37  ;;  %v9342_v37 = vld [vmem:[%s11725_s15 + $0x240] sm:$0xff] }
0x1552   : > { %v6269_v41 = vpop.f32.mrf.mxu2  ;;  %v6289_v46 = vpop.f32.mrf.mxu3  ;;  %6716 = vmatpush.msrb.mxu2 %v9342_v37 }
0x1553   : > { %v6270_v43 = vadd.f32 %v6269_v41, %v6250_v20  ;;  %v9346_v20 = vld [vmem:[%s11725_s15 + $0x260] sm:$0xff] }
0x1554   : > { %6736 = vmatpush.msrb.mxu3 %v9346_v20 }
0x1555   : > { %v6290_v47 = vadd.f32 %v6289_v46, %v6270_v43 }
0x1557   : > { %v6310_v49 = vadd.f32 %v6309_v48, %v6290_v47 }
0x1559   : > { %v6330_v51 = vadd.f32 %v6329_v50, %v6310_v49  ;;  %v9693_v50 = vld [vmem:[%s11704_s6] ss:$0 sm:$0xff] }
0x155a   : > { %v6349_v54 = vpop.f32.mrf.mxu2  ;;  %v6369_v56 = vpop.f32.mrf.mxu3 }
0x155b   : > { %v6350_v55 = vadd.f32 %v6349_v54, %v6330_v51  ;;  %v9694_v54 = vld [vmem:[%s11743_s22] ss:$0 sm:$0xff]  ;;  %s8837_s22 = scalar_lea.hbm %s11746_s26, %s10204_s0 }
0x155d   : > { %v6370_v52 = vadd.f32 %v6369_v56, %v6350_v55 }
0x155e   : > { %v6389_v58 = vpop.f32.mrf.mxu0  ;;  %v6409_v17 = vpop.f32.mrf.mxu1 }
0x155f   : > { %v6390_v11 = vadd.f32 %v6389_v58, %v6370_v52  ;;  %v9353_v58 = vld [vmem:[%s11725_s15 + $0x298] sm:$0xff] }
0x1561   : > { %v6410_v21 = vadd.f32 %v6409_v17, %v6390_v11  ;;  %v9357_v11 = vld [vmem:[%s11725_s15 + $0x2b8] sm:$0xff] }
0x1562   : > { %v9361_v17 = vld [vmem:[%s11725_s15 + $0x2d8] sm:$0xff] }
0x156a   : > { %v6429_v19 = vpop.f32.mrf.mxu2  ;;  %v6449_v18 = vpop.f32.mrf.mxu3 }
0x156b   : > { %v6430_v60 = vadd.f32 %v6429_v19, %v6410_v21  ;;  %v9365_v21 = vld [vmem:[%s11725_s15 + $0x2f8] sm:$0xff]  ;;  %v9352_v19 = vld [vmem:[%s11725_s15 + $0x290] sm:$0xff] }
0x156d   : > { %v6450_v33 = vadd.f32 %v6449_v18, %v6430_v60  ;;  %v9356_v60 = vld [vmem:[%s11725_s15 + $0x2b0] sm:$0xff] }
0x156e   : > { %v9360_v18 = vld [vmem:[%s11725_s15 + $0x2d0] sm:$0xff] }
0x156f   : > { %v6452_v34 = vadd.f32 %v6450_v33, %v11242_v53  ;;  %v9325_v53 = vld [vmem:[%s11725_s15 + $0x1b8] sm:$0xff]  ;;  %v9364_v33 = vld [vmem:[%s11725_s15 + $0x2f0] sm:$0xff] }
0x1570   : > { %6601 = vmatpush.msra.mxu1 %v9325_v53 }
0x1571   : > { %v6455_v57 = vsel %vm1065_vm0, %v6452_v34, 0.0 }
0x1572   : > { %6456 = vadd.xlane.f32.xlu2 %v6455_v57  ;;  %6602 = vmatpush.msra.mxu1 %v9324_v63  ;;  %v9355_v57 = vld [vmem:[%s11725_s15 + $0x2a8] sm:$0xff]  ;;  %v9699_v63 = vld [vmem:[%s11727_s16 + $0x10] ss:$0 sm:$0xff] }
0x1574   : > { %6603 = vmatpush.msra.mxu1 %v9323_v2 }
0x1576   : > { %6604 = vmatpush.msra.mxu1 %v9322_v5 }
0x1578   : > { %6693 = vmatpush.msrb.mxu1 %v9341_v10  ;;  %v9701_v10 = vld [vmem:[%s11727_s16 + $0x12] ss:$0 sm:$0xff] }
0x157a   : > { %6694 = vmatpush.msrb.mxu1 %v9340_v15  ;;  %v9703_v15 = vld [vmem:[%s11727_s16 + $0x14] ss:$0 sm:$0xff] }
0x157c   : > { %6695 = vmatpush.msrb.mxu1 %v9339_v26 }
0x157e   : > { %6696 = vmatpush.msrb.mxu1 %v9338_v31 }
0x15e5   : > { %v6457_v13 = vpop.xlane.xlu2 %6456 }
0x15e6   : > { %v6458_v59 = vmul.f32 %v6457_v13, %v10403_v32  ;;  %v9359_v13 = vld [vmem:[%s11725_s15 + $0x2c8] sm:$0xff] }
0x15e8   : > { %v11292_v39 = vsub.f32 %v6452_v34, %v6458_v59  ;;  %v9351_v34 = vld [vmem:[%s11725_s15 + $0x288] sm:$0xff] }
0x15e9   : > { %v9363_v59 = vld [vmem:[%s11725_s15 + $0x2e8] sm:$0xff] }
0x15ea   : > { %v6460_v35 = vmul.f32 %v11292_v39, %v11292_v39 }
0x15ec   : > { %v6461_v28 = vsel %vm1065_vm0, %v6460_v35, 0.0  ;;  %v9354_v35 = vld [vmem:[%s11725_s15 + $0x2a0] sm:$0xff] }
0x15ed   : > { %6462 = vadd.xlane.f32.xlu0 %v6461_v28  ;;  %v9358_v28 = vld [vmem:[%s11725_s15 + $0x2c0] sm:$0xff] }
0x1660   : > { %v6463_v16 = vpop.xlane.xlu0 %6462 }
0x1661   : > { %v6464_v25 = vmul.f32 %v6463_v16, %v10403_v32  ;;  %v9704_v16 = vld [vmem:[%s11727_s16 + $0x15] ss:$0 sm:$0xff] }
0x1663   : > { %v6465_v36 = vadd.f32 1e-05, %v6464_v25 }
0x1665   : > { %9806 = vrsqrt.f32 %v6465_v36  ;;  %vm6472_vm8 = vweird.f32 %v6465_v36 }
0x166b   : > { %v9807_v41 = vpop.eup %9806 }
0x166c   : > { %v6467_v43 = vmul.f32 %v9807_v41, %v6465_v36  ;;  %vm6473_vm7 = vweird.f32 %v9807_v41 }
0x166d   : > { %vm6474_vm9 = vmor %vm6472_vm8, %vm6473_vm7 }
0x166e   : > { %v6468_v46 = vmul.f32 %v9807_v41, %v6467_v43  ;;  %v9706_v43 = vld [vmem:[%s11727_s16 + $0x17] ss:$0 sm:$0xff] }
0x1670   : > { %v6469_v47 = vmul.f32 0.5, %v6468_v46 }
0x1672   : > { %v6470_v48 = vsub.f32 1.5, %v6469_v47 }
0x1674   : > { %v6471_v49 = vmul.f32 %v9807_v41, %v6470_v48 }
0x1676   : > { %v6475_v51 = vsel %vm6474_vm9, %v9807_v41, %v6471_v49  ;;  %v9705_v41 = vld [vmem:[%s11727_s16 + $0x16] ss:$0 sm:$0xff] }
0x1677   : > { %v6476_v55 = vmul.f32 %v6475_v51, %v11292_v39  ;;  %v9350_v39 = vld [vmem:[%s11725_s15 + $0x280] sm:$0xff] }
0x1679   : > { %v6480_v56 = vmul.f32 %v9693_v50, %v6476_v55 }
0x167b   : > { %v11333_v52 = vadd.f32 %v9694_v54, %v6480_v56 }
0x167d   : > { %9383 = vmatmul.msk.f32.vlgmr.msra.gmra.mxu0 %vm1065_vm0, %v11333_v52  ;;  %9384 = vmatmul.msk.f32.vlgmr.msra.gmra.mxu1 %vm1065_vm0, %v11333_v52 }
0x167e   : > { %9385 = vmatmul.msk.f32.vlgmr.msra.gmra.mxu2 %vm1065_vm0, %v11333_v52  ;;  %9386 = vmatmul.msk.f32.vlgmr.msra.gmra.mxu3 %vm1065_vm0, %v11333_v52 }
0x167f   : > { %6765 = vmatpush.msra.mxu0 %v9353_v58  ;;  %6785 = vmatpush.msra.mxu1 %v9357_v11 }
0x1680   : > { %6805 = vmatpush.msra.mxu2 %v9361_v17  ;;  %6825 = vmatpush.msra.mxu3 %v9365_v21 }
0x1681   : > { %6766 = vmatpush.msra.mxu0 %v9352_v19  ;;  %6786 = vmatpush.msra.mxu1 %v9356_v60 }
0x1682   : > { %6806 = vmatpush.msra.mxu2 %v9360_v18  ;;  %6826 = vmatpush.msra.mxu3 %v9364_v33 }
0x1683   : > { %6767 = vmatpush.msra.mxu0 %v9351_v34  ;;  %6787 = vmatpush.msra.mxu1 %v9355_v57 }
0x1684   : > { %6807 = vmatpush.msra.mxu2 %v9359_v13  ;;  %6827 = vmatpush.msra.mxu3 %v9363_v59 }
0x1685   : > { %9387 = vmatmul.msk.f32.vlgmr.msrb.gmra.mxu0 %vm1065_vm0, %v11333_v52  ;;  %9388 = vmatmul.msk.f32.vlgmr.msrb.gmra.mxu1 %vm1065_vm0, %v11333_v52 }
0x1686   : > { %9389 = vmatmul.msk.f32.vlgmr.msrb.gmra.mxu2 %vm1065_vm0, %v11333_v52  ;;  %9390 = vmatmul.msk.f32.vlgmr.msrb.gmra.mxu3 %vm1065_vm0, %v11333_v52 }
0x1687   : > { %6768 = vmatpush.msra.mxu0 %v9350_v39  ;;  %6788 = vmatpush.msra.mxu1 %v9354_v35 }
0x1688   : > { %6808 = vmatpush.msra.mxu2 %v9358_v28  ;;  %6828 = vmatpush.msra.mxu3 %v9362_v40 }
0x168d   : > { %9391 = vmatmul.msk.f32.vlgmr.msra.gmra.mxu0 %vm1065_vm0, %v11333_v52  ;;  %9392 = vmatmul.msk.f32.vlgmr.msra.gmra.mxu1 %vm1065_vm0, %v11333_v52 }
0x168e   : > { %9393 = vmatmul.msk.f32.vlgmr.msra.gmra.mxu2 %vm1065_vm0, %v11333_v52  ;;  %9394 = vmatmul.msk.f32.vlgmr.msra.gmra.mxu3 %vm1065_vm0, %v11333_v52 }
0x16fa   : > { %v6586_v53 = vpop.f32.mrf.mxu0  ;;  %v6606_v61 = vpop.f32.mrf.mxu1 }
0x16fb   : > { %v6587_v2 = vadd.f32 %v9695_v62, %v6586_v53  ;;  %v6607_v3 = vadd.f32 %v9696_v38, %v6606_v61 }
0x16fd   : > { %v6833_v12 = vmul.f32 0.35355338, %v6587_v2  ;;  %v6834_v14 = vmul.f32 0.35355338, %v6607_v3 }
0x1701   : > { %v6626_v44 = vpop.f32.mrf.mxu2  ;;  %v6646_v0 = vpop.f32.mrf.mxu3 }
0x1702   : > { %v6678_v1 = vpop.f32.mrf.mxu0  ;;  %v6698_v4 = vpop.f32.mrf.mxu1  ;;  %v6627_v22 = vadd.f32 %v9697_v8, %v6626_v44  ;;  %v6647_v23 = vadd.f32 %v9698_v9, %v6646_v0 }
0x1703   : > { %v6679_v5 = vadd.f32 %v9699_v63, %v6678_v1  ;;  %v6699_v7 = vadd.f32 %v9700_v42, %v6698_v4 }
0x1704   : > { %v6835_v37 = vmul.f32 0.35355338, %v6627_v22  ;;  %v6836_v20 = vmul.f32 0.35355338, %v6647_v23  ;;  %v9379_v22 = vld [vmem:[%s11728_s18 + $0x28] sm:$0xff] }
0x1705   : > { %9395 = vmatpush.xpose.msk.msrb.mxu0 %vm1337_vm1, %v6679_v5  ;;  %9397 = vmatpush.xpose.msk.msrb.mxu1 %vm1337_vm1, %v6699_v7 }
0x1708   : > { %9396 = vmatmul.msk.f32.vlgmr.msrb.gmra.mxu0 %vm1337_vm1, %v6833_v12  ;;  %9398 = vmatmul.msk.f32.vlgmr.msrb.gmra.mxu1 %vm1337_vm1, %v6834_v14 }
0x1709   : > { %v6718_v24 = vpop.f32.mrf.mxu2  ;;  %v6738_v25 = vpop.f32.mrf.mxu3 }
0x170a   : > { %v6719_v26 = vadd.f32 %v9701_v10, %v6718_v24  ;;  %v6739_v27 = vadd.f32 %v9702_v6, %v6738_v25  ;;  %v6770_v29 = vpop.f32.mrf.mxu0  ;;  %v6790_v30 = vpop.f32.mrf.mxu1  ;;  %v9378_v6 = vld [vmem:[%s11728_s18 + $0x20] sm:$0xff] }
0x170b   : > { %v6771_v31 = vadd.f32 %v9703_v15, %v6770_v29  ;;  %v6791_v36 = vadd.f32 %v9704_v16, %v6790_v30  ;;  %v9380_v15 = vld [vmem:[%s11728_s18 + $0x30] sm:$0xff]  ;;  %v9381_v16 = vld [vmem:[%s11728_s18 + $0x38] sm:$0xff] }
0x170c   : > { %9399 = vmatpush.xpose.msk.msrb.mxu2 %vm1337_vm1, %v6719_v26  ;;  %9401 = vmatpush.xpose.msk.msrb.mxu3 %vm1337_vm1, %v6739_v27 }
0x170d   : > { %7003 = vmatpush.msra.mxu0 %v6771_v31  ;;  %7026 = vmatpush.msra.mxu1 %v6791_v36 }
0x170f   : > { %9400 = vmatmul.msk.f32.vlgmr.msrb.gmra.mxu2 %vm1337_vm1, %v6835_v37  ;;  %9402 = vmatmul.msk.f32.vlgmr.msrb.gmra.mxu3 %vm1337_vm1, %v6836_v20 }
0x1710   : > { %7095 = vmatpush.msrb.mxu0 %v9378_v6  ;;  %7118 = vmatpush.msrb.mxu1 %v9379_v22  ;;  %v9441_v6 = vld [vmem:[%s11730_s7 + $0x260] sm:$0xff] }
0x1711   : > { %v6810_v46 = vpop.f32.mrf.mxu2  ;;  %v6830_v47 = vpop.f32.mrf.mxu3 }
0x1712   : > { %v6811_v48 = vadd.f32 %v9705_v41, %v6810_v46  ;;  %v6831_v49 = vadd.f32 %v9706_v43, %v6830_v47  ;;  %v9707_v46 = vld [vmem:[%s11729_s10 + $0x1] ss:$0 sm:$0xff] }
0x1714   : > { %7049 = vmatpush.msra.mxu2 %v6811_v48  ;;  %7072 = vmatpush.msra.mxu3 %v6831_v49 }
0x1716   : > { %7141 = vmatpush.msrb.mxu2 %v9380_v15  ;;  %7164 = vmatpush.msrb.mxu3 %v9381_v16 }
0x1785   : > { %v6860_v50 = vpop.f32.mrf.mxu0  ;;  %v6886_v11 = vpop.f32.mrf.mxu1 }
0x1786   : > { %v6941_v51 = vsel %vm1337_vm1, %v6860_v50, -inf  ;;  %v6944_v17 = vsel %vm1337_vm1, %v6886_v11, -inf }
0x1787   : > { %6942 = vmax.xlane.f32.xlu0 %v6941_v51 }
0x1792   : > { %v6912_v54 = vpop.f32.mrf.mxu2  ;;  %v6938_v55 = vpop.f32.mrf.mxu3 }
0x1793   : > { %v6950_v56 = vsel %vm1337_vm1, %v6938_v55, -inf  ;;  %v6947_v58 = vsel %vm1337_vm1, %v6912_v54, -inf }
0x1794   : > { %6951 = vmax.xlane.f32.xlu2 %v6950_v56  ;;  %6948 = vmax.xlane.f32.xlu1 %v6947_v58 }
0x179c   : > { %6945 = vmax.xlane.f32.xlu1 %v6944_v17  ;;  %v9416_v17 = vld [vmem:[%s11730_s7 + $0x198] sm:$0xff] }
0x17fa   : > { %v6943_v21 = vpop.xlane.xlu0 %6942 }
0x17fb   : > { %v6953_v19 = vsub.f32 %v6860_v50, %v6943_v21  ;;  %v9424_v21 = vld [vmem:[%s11730_s7 + $0x1d8] sm:$0xff] }
0x17fd   : > { %v6957_v60 = vmul.f32 1.442695, %v6953_v19  ;;  %v9428_v19 = vld [vmem:[%s11730_s7 + $0x1f8] sm:$0xff] }
0x17ff   : > { %9808 = vpow2.f32 %v6957_v60  ;;  %v9415_v60 = vld [vmem:[%s11730_s7 + $0x190] sm:$0xff] }
0x1805   : > { %v9809_v18 = vpop.eup %9808 }
0x1806   : > { %v6965_v33 = vsel %vm1337_vm1, %v9809_v18, 0.0 }
0x1807   : > { %v6952_v34 = vpop.xlane.xlu2 %6951  ;;  %v6949_v57 = vpop.xlane.xlu1 %6948  ;;  %6966 = vadd.xlane.f32.xlu1 %v6965_v33  ;;  %v9423_v33 = vld [vmem:[%s11730_s7 + $0x1d0] sm:$0xff] }
0x1808   : > { %v6956_v13 = vsub.f32 %v6938_v55, %v6952_v34  ;;  %v6955_v59 = vsub.f32 %v6912_v54, %v6949_v57  ;;  %v9427_v34 = vld [vmem:[%s11730_s7 + $0x1f0] sm:$0xff]  ;;  %v9414_v57 = vld [vmem:[%s11730_s7 + $0x188] sm:$0xff] }
0x180a   : > { %v6963_v39 = vmul.f32 1.442695, %v6956_v13  ;;  %v6961_v35 = vmul.f32 1.442695, %v6955_v59  ;;  %v9418_v13 = vld [vmem:[%s11730_s7 + $0x1a8] sm:$0xff] }
0x180b   : > { %v9422_v59 = vld [vmem:[%s11730_s7 + $0x1c8] sm:$0xff] }
0x180c   : > { %9810 = vpow2.f32 %v6963_v39  ;;  %v9426_v39 = vld [vmem:[%s11730_s7 + $0x1e8] sm:$0xff] }
0x180d   : > { %9812 = vpow2.f32 %v6961_v35  ;;  %v9413_v35 = vld [vmem:[%s11730_s7 + $0x180] sm:$0xff] }
0x180f   : > { %v6946_v28 = vpop.xlane.xlu1 %6945 }
0x1810   : > { %v6954_v40 = vsub.f32 %v6886_v11, %v6946_v28  ;;  %v9417_v28 = vld [vmem:[%s11730_s7 + $0x1a0] sm:$0xff] }
0x1812   : > { %v9811_v53 = vpop.eup %9810  ;;  %v6959_v61 = vmul.f32 1.442695, %v6954_v40  ;;  %v9421_v40 = vld [vmem:[%s11730_s7 + $0x1c0] sm:$0xff] }
0x1813   : > { %v9813_v62 = vpop.eup %9812  ;;  %v6974_v38 = vsel %vm1337_vm1, %v9811_v53, 0.0 }
0x1814   : > { %9814 = vpow2.f32 %v6959_v61  ;;  %v6971_v63 = vsel %vm1337_vm1, %v9813_v62, 0.0  ;;  %6975 = vadd.xlane.f32.xlu0 %v6974_v38  ;;  %v9432_v61 = vld [vmem:[%s11730_s7 + $0x218] sm:$0xff] }
0x1815   : > { %6972 = vadd.xlane.f32.xlu2 %v6971_v63  ;;  %v9440_v38 = vld [vmem:[%s11730_s7 + $0x258] sm:$0xff] }
0x1816   : > { %v9444_v63 = vld [vmem:[%s11730_s7 + $0x278] sm:$0xff] }
0x181a   : > { %v9815_v42 = vpop.eup %9814 }
0x181b   : > { %v6968_v44 = vsel %vm1337_vm1, %v9815_v42, 0.0 }
0x181d   : > { %6969 = vadd.xlane.f32.xlu2 %v6968_v44  ;;  %v9435_v44 = vld [vmem:[%s11730_s7 + $0x230] sm:$0xff] }
0x187a   : > { %v6967_v0 = vpop.xlane.xlu1 %6966 }
0x187b   : > { %9816 = vrcp.f32 %v6967_v0 }
0x1881   : > { %v9817_v2 = vpop.eup %9816 }
0x1882   : > { %v6981_v3 = vmul.f32 %v9817_v2, %v9809_v18  ;;  %v9419_v18 = vld [vmem:[%s11730_s7 + $0x1b0] sm:$0xff] }
0x1883   : > { %v9439_v2 = vld [vmem:[%s11730_s7 + $0x250] sm:$0xff] }
0x1884   : > { %9403 = vmatmul.msk.f32.vlgmr.msra.gmra.mxu0 %vm1337_vm1, %v6981_v3  ;;  %v9443_v3 = vld [vmem:[%s11730_s7 + $0x270] sm:$0xff] }
0x1885   : > { %7311 = vmatpush.msra.mxu0 %v9416_v17  ;;  %v9457_v17 = vld [vmem:[%s11730_s7 + $0x2e0] sm:$0xff] }
0x1887   : > { %v6976_v1 = vpop.xlane.xlu0 %6975  ;;  %7312 = vmatpush.msra.mxu0 %v9415_v60  ;;  %v9711_v60 = vld [vmem:[%s11733_s30 + $0xd] ss:$0 sm:$0xff] }
0x1888   : > { %v6973_v4 = vpop.xlane.xlu2 %6972  ;;  %9818 = vrcp.f32 %v6976_v1  ;;  %v9430_v1 = vld [vmem:[%s11730_s7 + $0x208] sm:$0xff] }
0x1889   : > { %9820 = vrcp.f32 %v6973_v4  ;;  %7313 = vmatpush.msra.mxu0 %v9414_v57 }
0x188b   : > { %7314 = vmatpush.msra.mxu0 %v9413_v35 }
0x188e   : > { %v9819_v5 = vpop.eup %9818 }
0x188f   : > { %v9821_v7 = vpop.eup %9820  ;;  %v6984_v8 = vmul.f32 %v9819_v5, %v9811_v53  ;;  %v9425_v53 = vld [vmem:[%s11730_s7 + $0x1e0] sm:$0xff]  ;;  %v9434_v5 = vld [vmem:[%s11730_s7 + $0x228] sm:$0xff] }
0x1890   : > { %v6983_v9 = vmul.f32 %v9821_v7, %v9813_v62  ;;  %v6970_v10 = vpop.xlane.xlu2 %6969  ;;  %v9436_v62 = vld [vmem:[%s11730_s7 + $0x238] sm:$0xff]  ;;  %v9438_v7 = vld [vmem:[%s11730_s7 + $0x248] sm:$0xff] }
0x1891   : > { %9822 = vrcp.f32 %v6970_v10  ;;  %9406 = vmatmul.msk.f32.vlgmr.msra.gmra.mxu3 %vm1337_vm1, %v6984_v8  ;;  %v9442_v8 = vld [vmem:[%s11730_s7 + $0x268] sm:$0xff]  ;;  %v9433_v10 = vld [vmem:[%s11730_s7 + $0x220] sm:$0xff] }
0x1892   : > { %9405 = vmatmul.msk.f32.vlgmr.msra.gmra.mxu2 %vm1337_vm1, %v6983_v9  ;;  %7371 = vmatpush.msra.mxu3 %v9428_v19  ;;  %v9429_v9 = vld [vmem:[%s11730_s7 + $0x200] sm:$0xff]  ;;  %v9710_v19 = vld [vmem:[%s11733_s30 + $0xc] ss:$0 sm:$0xff] }
0x1893   : > { %7351 = vmatpush.msra.mxu2 %v9424_v21 }
0x1894   : > { %7372 = vmatpush.msra.mxu3 %v9427_v34 }
0x1895   : > { %7352 = vmatpush.msra.mxu2 %v9423_v33  ;;  %v9715_v33 = vld [vmem:[%s11733_s30 + $0x11] ss:$0 sm:$0xff] }
0x1896   : > { %7373 = vmatpush.msra.mxu3 %v9426_v39 }
0x1897   : > { %v9823_v12 = vpop.eup %9822  ;;  %7353 = vmatpush.msra.mxu2 %v9422_v59 }
0x1898   : > { %v6982_v14 = vmul.f32 %v9823_v12, %v9815_v42  ;;  %7374 = vmatpush.msra.mxu3 %v9425_v53  ;;  %v9431_v42 = vld [vmem:[%s11730_s7 + $0x210] sm:$0xff]  ;;  %v9713_v53 = vld [vmem:[%s11733_s30 + $0xf] ss:$0 sm:$0xff] }
0x1899   : > { %7354 = vmatpush.msra.mxu2 %v9421_v40 }
0x189a   : > { %9404 = vmatmul.msk.f32.vlgmr.msra.gmra.mxu1 %vm1337_vm1, %v6982_v14  ;;  %v9437_v14 = vld [vmem:[%s11730_s7 + $0x240] sm:$0xff] }
0x1901   : > { %v7005_v23 = vpop.f32.mrf.mxu0 }
0x1902   : > { %9407 = vmatmul.msk.f32.vlgmr.msrb.gmra.mxu0 %vm1337_vm1, %v7005_v23 }
0x1903   : > { %7403 = vmatpush.msrb.mxu0 %v9432_v61  ;;  %v9716_v61 = vld [vmem:[%s11733_s30 + $0x12] ss:$0 sm:$0xff] }
0x1905   : > { %7404 = vmatpush.msrb.mxu0 %v9431_v42  ;;  %v9718_v42 = vld [vmem:[%s11733_s30 + $0x14] ss:$0 sm:$0xff] }
0x1907   : > { %7405 = vmatpush.msrb.mxu0 %v9430_v1 }
0x1909   : > { %7406 = vmatpush.msrb.mxu0 %v9429_v9 }
0x1914   : > { %v7074_v24 = vpop.f32.mrf.mxu3 }
0x1915   : > { %v7051_v25 = vpop.f32.mrf.mxu2  ;;  %9410 = vmatmul.msk.f32.vlgmr.msrb.gmra.mxu3 %vm1337_vm1, %v7074_v24 }
0x1916   : > { %9409 = vmatmul.msk.f32.vlgmr.msrb.gmra.mxu2 %vm1337_vm1, %v7051_v25  ;;  %7463 = vmatpush.msrb.mxu3 %v9444_v63  ;;  %v9717_v63 = vld [vmem:[%s11733_s30 + $0x13] ss:$0 sm:$0xff] }
0x1917   : > { %v7028_v26 = vpop.f32.mrf.mxu1  ;;  %7443 = vmatpush.msrb.mxu2 %v9440_v38 }
0x1918   : > { %9408 = vmatmul.msk.f32.vlgmr.msrb.gmra.mxu1 %vm1337_vm1, %v7028_v26  ;;  %7464 = vmatpush.msrb.mxu3 %v9443_v3  ;;  %v9708_v26 = vld [vmem:[%s11731_s1 + $0x1] ss:$0 sm:$0xff]  ;;  %s11747_s1 = smov %s11746_s26 }
0x1919   : > { %7444 = vmatpush.msrb.mxu2 %v9439_v2  ;;  %s9929_s0 = scalar_lea.hbm %s11747_s1, 2 }
0x191a   : > { %7465 = vmatpush.msrb.mxu3 %v9442_v8 }
0x191b   : > { %7445 = vmatpush.msrb.mxu2 %v9438_v7 }
0x191c   : > { %7466 = vmatpush.msrb.mxu3 %v9441_v6  ;;  %v9720_v6 = vld [vmem:[%s11733_s30 + $0x16] ss:$0 sm:$0xff] }
0x191d   : > { %7446 = vmatpush.msrb.mxu2 %v9437_v14 }
0x197f   : > { %v7097_v27 = vpop.f32.mrf.mxu0 }
0x1980   : > { %v7169_v31 = vsel %vm1065_vm0, %v7097_v27, 0.0 }
0x1995   : > { %v7120_v29 = vpop.f32.mrf.mxu1 }
0x1996   : > { %v7170_v30 = vsel %vm1065_vm0, %v7120_v29, 0.0  ;;  %v9709_v29 = vld [vmem:[%s11732_s2 + $0x1] ss:$0 sm:$0xff] }
0x1997   : > { %v7171_v36 = vadd.f32 %v7170_v30, %v7169_v31 }
0x1998   : > { %v7166_v20 = vpop.f32.mrf.mxu3 }
0x1999   : > { %v7143_v37 = vpop.f32.mrf.mxu2  ;;  %v7174_v47 = vsel %vm1065_vm0, %v7166_v20, 0.0  ;;  %v9452_v20 = vld [vmem:[%s11730_s7 + $0x2b8] sm:$0xff] }
0x199a   : > { %v7172_v41 = vsel %vm1065_vm0, %v7143_v37, 0.0  ;;  %v9448_v37 = vld [vmem:[%s11730_s7 + $0x298] sm:$0xff] }
0x199b   : > { %v7173_v43 = vadd.f32 %v7172_v41, %v7171_v36  ;;  %v9456_v41 = vld [vmem:[%s11730_s7 + $0x2d8] sm:$0xff] }
0x199d   : > { %v7175_v48 = vadd.f32 %v7174_v47, %v7173_v43  ;;  %v9460_v43 = vld [vmem:[%s11730_s7 + $0x2f8] sm:$0xff]  ;;  %v9451_v47 = vld [vmem:[%s11730_s7 + $0x2b0] sm:$0xff] }
0x199f   : > { %v7179_v49 = vadd.f32 %v9707_v46, %v7175_v48  ;;  %v9447_v46 = vld [vmem:[%s11730_s7 + $0x290] sm:$0xff] }
0x19a0   : > { %v9455_v48 = vld [vmem:[%s11730_s7 + $0x2d0] sm:$0xff] }
0x19a1   : > { %v7180_v50 = vadd.f32 %v7179_v49, %v11333_v52  ;;  %v9420_v52 = vld [vmem:[%s11730_s7 + $0x1b8] sm:$0xff]  ;;  %v9459_v49 = vld [vmem:[%s11730_s7 + $0x2f0] sm:$0xff] }
0x19a2   : > { %7331 = vmatpush.msra.mxu1 %v9420_v52 }
0x19a3   : > { %v7185_v51 = vsel %vm1065_vm0, %v7180_v50, 0.0 }
0x19a4   : > { %7186 = vadd.xlane.f32.xlu0 %v7185_v51  ;;  %7332 = vmatpush.msra.mxu1 %v9419_v18  ;;  %v9450_v51 = vld [vmem:[%s11730_s7 + $0x2a8] sm:$0xff]  ;;  %v9714_v18 = vld [vmem:[%s11733_s30 + $0x10] ss:$0 sm:$0xff] }
0x19a6   : > { %7333 = vmatpush.msra.mxu1 %v9418_v13 }
0x19a8   : > { %7334 = vmatpush.msra.mxu1 %v9417_v28 }
0x19aa   : > { %7423 = vmatpush.msrb.mxu1 %v9436_v62 }
0x19ac   : > { %7424 = vmatpush.msrb.mxu1 %v9435_v44  ;;  %v9719_v44 = vld [vmem:[%s11733_s30 + $0x15] ss:$0 sm:$0xff] }
0x19ae   : > { %7425 = vmatpush.msrb.mxu1 %v9434_v5 }
0x19b0   : > { %7426 = vmatpush.msrb.mxu1 %v9433_v10 }
0x1a17   : > { %v7187_v54 = vpop.xlane.xlu0 %7186 }
0x1a18   : > { %v7188_v55 = vmul.f32 %v7187_v54, %v10403_v32  ;;  %v9454_v54 = vld [vmem:[%s11730_s7 + $0x2c8] sm:$0xff] }
0x1a1a   : > { %v11423_v56 = vsub.f32 %v7180_v50, %v7188_v55  ;;  %v9446_v50 = vld [vmem:[%s11730_s7 + $0x288] sm:$0xff] }
0x1a1b   : > { %v9458_v55 = vld [vmem:[%s11730_s7 + $0x2e8] sm:$0xff] }
0x1a1c   : > { %v7190_v58 = vmul.f32 %v11423_v56, %v11423_v56 }
0x1a1e   : > { %v7191_v11 = vsel %vm1065_vm0, %v7190_v58, 0.0  ;;  %v9449_v58 = vld [vmem:[%s11730_s7 + $0x2a0] sm:$0xff] }
0x1a1f   : > { %7192 = vadd.xlane.f32.xlu1 %v7191_v11  ;;  %v9453_v11 = vld [vmem:[%s11730_s7 + $0x2c0] sm:$0xff] }
0x1a92   : > { %v7193_v0 = vpop.xlane.xlu1 %7192 }
0x1a93   : > { %v7194_v4 = vmul.f32 %v7193_v0, %v10403_v32 }
0x1a95   : > { %v7195_v12 = vadd.f32 1e-05, %v7194_v4 }
0x1a97   : > { %9824 = vrsqrt.f32 %v7195_v12  ;;  %vm7202_vm11 = vweird.f32 %v7195_v12 }
0x1a9d   : > { %v9825_v15 = vpop.eup %9824 }
0x1a9e   : > { %v7197_v16 = vmul.f32 %v9825_v15, %v7195_v12  ;;  %vm7203_vm10 = vweird.f32 %v9825_v15 }
0x1a9f   : > { %vm7204_vm12 = vmor %vm7202_vm11, %vm7203_vm10 }
0x1aa0   : > { %v7198_v22 = vmul.f32 %v9825_v15, %v7197_v16 }
0x1aa2   : > { %v7199_v23 = vmul.f32 0.5, %v7198_v22 }
0x1aa4   : > { %v7200_v24 = vsub.f32 1.5, %v7199_v23 }
0x1aa6   : > { %v7201_v25 = vmul.f32 %v9825_v15, %v7200_v24 }
0x1aa8   : > { %v7205_v27 = vsel %vm7204_vm12, %v9825_v15, %v7201_v25  ;;  %v9721_v15 = vld [vmem:[%s11733_s30 + $0x17] ss:$0 sm:$0xff] }
0x1aa9   : > { %v7206_v30 = vmul.f32 %v7205_v27, %v11423_v56  ;;  %v9445_v56 = vld [vmem:[%s11730_s7 + $0x280] sm:$0xff] }
0x1aab   : > { %v7210_v31 = vmul.f32 %v9708_v26, %v7206_v30 }
0x1aad   : > { %v11464_v36 = vadd.f32 %v9709_v29, %v7210_v31 }
0x1aaf   : > { %9478 = vmatmul.msk.f32.vlgmr.msra.gmra.mxu0 %vm1065_vm0, %v11464_v36  ;;  %9479 = vmatmul.msk.f32.vlgmr.msra.gmra.mxu1 %vm1065_vm0, %v11464_v36 }
0x1ab0   : > { %9480 = vmatmul.msk.f32.vlgmr.msra.gmra.mxu2 %vm1065_vm0, %v11464_v36  ;;  %9481 = vmatmul.msk.f32.vlgmr.msra.gmra.mxu3 %vm1065_vm0, %v11464_v36 }
0x1ab1   : > { %7495 = vmatpush.msra.mxu0 %v9448_v37  ;;  %7515 = vmatpush.msra.mxu1 %v9452_v20 }
0x1ab2   : > { %7535 = vmatpush.msra.mxu2 %v9456_v41  ;;  %7555 = vmatpush.msra.mxu3 %v9460_v43 }
0x1ab3   : > { %7496 = vmatpush.msra.mxu0 %v9447_v46  ;;  %7516 = vmatpush.msra.mxu1 %v9451_v47 }
0x1ab4   : > { %7536 = vmatpush.msra.mxu2 %v9455_v48  ;;  %7556 = vmatpush.msra.mxu3 %v9459_v49 }
0x1ab5   : > { %7497 = vmatpush.msra.mxu0 %v9446_v50  ;;  %7517 = vmatpush.msra.mxu1 %v9450_v51 }
0x1ab6   : > { %7537 = vmatpush.msra.mxu2 %v9454_v54  ;;  %7557 = vmatpush.msra.mxu3 %v9458_v55 }
0x1ab7   : > { %9482 = vmatmul.msk.f32.vlgmr.msrb.gmra.mxu0 %vm1065_vm0, %v11163_v45  ;;  %9483 = vmatmul.msk.f32.vlgmr.msrb.gmra.mxu1 %vm1065_vm0, %v11163_v45 }
0x1ab8   : > { %9484 = vmatmul.msk.f32.vlgmr.msrb.gmra.mxu2 %vm1065_vm0, %v11163_v45  ;;  %9485 = vmatmul.msk.f32.vlgmr.msrb.gmra.mxu3 %vm1065_vm0, %v11163_v45 }
0x1ab9   : > { %7498 = vmatpush.msra.mxu0 %v9445_v56  ;;  %7518 = vmatpush.msra.mxu1 %v9449_v58 }
0x1aba   : > { %7538 = vmatpush.msra.mxu2 %v9453_v11  ;;  %7558 = vmatpush.msra.mxu3 %v9457_v17 }
0x1abf   : > { %9486 = vmatmul.msk.f32.vlgmr.msra.gmra.mxu0 %vm1065_vm0, %v11163_v45  ;;  %9487 = vmatmul.msk.f32.vlgmr.msra.gmra.mxu1 %vm1065_vm0, %v11163_v45 }
0x1ac0   : > { %9488 = vmatmul.msk.f32.vlgmr.msra.gmra.mxu2 %vm1065_vm0, %v11163_v45  ;;  %9489 = vmatmul.msk.f32.vlgmr.msra.gmra.mxu3 %vm1065_vm0, %v11163_v45  ;;  %v9712_v45 = vld [vmem:[%s11733_s30 + $0xe] ss:$0 sm:$0xff] }
0x1b2c   : > { %v7316_v52 = vpop.f32.mrf.mxu0  ;;  %v7336_v21 = vpop.f32.mrf.mxu1 }
0x1b2d   : > { %v7317_v13 = vadd.f32 %v9710_v19, %v7316_v52  ;;  %v7337_v59 = vadd.f32 %v9711_v60, %v7336_v21 }
0x1b2f   : > { %v7563_v62 = vmul.f32 0.35355338, %v7317_v13  ;;  %v7564_v38 = vmul.f32 0.35355338, %v7337_v59 }
0x1b33   : > { %v7356_v34 = vpop.f32.mrf.mxu2  ;;  %v7376_v57 = vpop.f32.mrf.mxu3 }
0x1b34   : > { %v7408_v39 = vpop.f32.mrf.mxu0  ;;  %v7428_v35 = vpop.f32.mrf.mxu1  ;;  %v7357_v0 = vadd.f32 %v9712_v45, %v7356_v34  ;;  %v7377_v2 = vadd.f32 %v9713_v53, %v7376_v57 }
0x1b35   : > { %v7409_v28 = vadd.f32 %v9714_v18, %v7408_v39  ;;  %v7429_v40 = vadd.f32 %v9715_v33, %v7428_v35 }
0x1b36   : > { %v7565_v12 = vmul.f32 0.35355338, %v7357_v0  ;;  %v7566_v14 = vmul.f32 0.35355338, %v7377_v2 }
0x1b37   : > { %9490 = vmatpush.xpose.msk.msrb.mxu0 %vm1337_vm1, %v7409_v28  ;;  %9492 = vmatpush.xpose.msk.msrb.mxu1 %vm1337_vm1, %v7429_v40 }
0x1b3a   : > { %9491 = vmatmul.msk.f32.vlgmr.msrb.gmra.mxu0 %vm1337_vm1, %v7563_v62  ;;  %9493 = vmatmul.msk.f32.vlgmr.msrb.gmra.mxu1 %vm1337_vm1, %v7564_v38  ;;  %v9473_v38 = vld [vmem:[%s11734_s12 + $0x20] sm:$0xff] }
0x1b3b   : > { %v7448_v3 = vpop.f32.mrf.mxu2  ;;  %v7468_v1 = vpop.f32.mrf.mxu3 }
0x1b3c   : > { %v7449_v4 = vadd.f32 %v9716_v61, %v7448_v3  ;;  %v7469_v5 = vadd.f32 %v9717_v63, %v7468_v1  ;;  %v7500_v7 = vpop.f32.mrf.mxu0  ;;  %v7520_v8 = vpop.f32.mrf.mxu1  ;;  %v9475_v63 = vld [vmem:[%s11734_s12 + $0x30] sm:$0xff] }
0x1b3d   : > { %v7501_v9 = vadd.f32 %v9718_v42, %v7500_v7  ;;  %v7521_v10 = vadd.f32 %v9719_v44, %v7520_v8  ;;  %v9476_v42 = vld [vmem:[%s11734_s12 + $0x38] sm:$0xff]  ;;  %v9474_v44 = vld [vmem:[%s11734_s12 + $0x28] sm:$0xff] }
0x1b3e   : > { %9494 = vmatpush.xpose.msk.msrb.mxu2 %vm1337_vm1, %v7449_v4  ;;  %9496 = vmatpush.xpose.msk.msrb.mxu3 %vm1337_vm1, %v7469_v5 }
0x1b3f   : > { %7733 = vmatpush.msra.mxu0 %v7501_v9  ;;  %7756 = vmatpush.msra.mxu1 %v7521_v10 }
0x1b41   : > { %9495 = vmatmul.msk.f32.vlgmr.msrb.gmra.mxu2 %vm1337_vm1, %v7565_v12  ;;  %9497 = vmatmul.msk.f32.vlgmr.msrb.gmra.mxu3 %vm1337_vm1, %v7566_v14 }
0x1b42   : > { %7825 = vmatpush.msrb.mxu0 %v9473_v38  ;;  %7848 = vmatpush.msrb.mxu1 %v9474_v44 }
0x1b43   : > { %v7540_v16 = vpop.f32.mrf.mxu2  ;;  %v7560_v22 = vpop.f32.mrf.mxu3 }
0x1b44   : > { %v7541_v23 = vadd.f32 %v9720_v6, %v7540_v16  ;;  %v7561_v24 = vadd.f32 %v9721_v15, %v7560_v22  ;;  %v9722_v15 = vld [vmem:[%s11736_s3 + $0x1] ss:$0 sm:$0xff]  ;;  %s982_s3 = scalar_lea.vmem [#allocation7], %s981_s28 }
0x1b46   : > { %7779 = vmatpush.msra.mxu2 %v7541_v23  ;;  %7802 = vmatpush.msra.mxu3 %v7561_v24 }
0x1b48   : > { %7871 = vmatpush.msrb.mxu2 %v9475_v63  ;;  %7894 = vmatpush.msrb.mxu3 %v9476_v42 }
0x1bb7   : > { %v7590_v25 = vpop.f32.mrf.mxu0  ;;  %v7616_v37 = vpop.f32.mrf.mxu1 }
0x1bb8   : > { %v7671_v26 = vsel %vm1337_vm1, %v7590_v25, -inf  ;;  %v7674_v20 = vsel %vm1337_vm1, %v7616_v37, -inf }
0x1bb9   : > { %7672 = vmax.xlane.f32.xlu1 %v7671_v26 }
0x1bc4   : > { %v7642_v27 = vpop.f32.mrf.mxu2  ;;  %v7668_v29 = vpop.f32.mrf.mxu3 }
0x1bc5   : > { %v7680_v30 = vsel %vm1337_vm1, %v7668_v29, -inf  ;;  %v7677_v31 = vsel %vm1337_vm1, %v7642_v27, -inf }
0x1bc6   : > { %7681 = vmax.xlane.f32.xlu0 %v7680_v30  ;;  %7678 = vmax.xlane.f32.xlu2 %v7677_v31 }
0x1bce   : > { %7675 = vmax.xlane.f32.xlu2 %v7674_v20  ;;  %v7995_v20 = vld [vmem:[#allocation2 + $0x388] sm:$0xff] }
0x1c2c   : > { %v7673_v41 = vpop.xlane.xlu1 %7672 }
0x1c2d   : > { %v7683_v43 = vsub.f32 %v7590_v25, %v7673_v41  ;;  %v7996_v41 = vld [vmem:[#allocation2 + $0x390] sm:$0xff] }
0x1c2f   : > { %v7687_v46 = vmul.f32 1.442695, %v7683_v43  ;;  %v7978_v43 = vld [vmem:[#allocation2 + $0x300] sm:$0xff] }
0x1c31   : > { %9826 = vpow2.f32 %v7687_v46  ;;  %v7979_v46 = vld [vmem:[#allocation2 + $0x308] sm:$0xff] }
0x1c37   : > { %v9827_v47 = vpop.eup %9826 }
0x1c38   : > { %v7695_v48 = vsel %vm1337_vm1, %v9827_v47, 0.0 }
0x1c39   : > { %v7682_v49 = vpop.xlane.xlu0 %7681  ;;  %v7679_v50 = vpop.xlane.xlu2 %7678  ;;  %7696 = vadd.xlane.f32.xlu2 %v7695_v48  ;;  %v7981_v48 = vld [vmem:[#allocation2 + $0x318] sm:$0xff] }
0x1c3a   : > { %v7686_v51 = vsub.f32 %v7668_v29, %v7682_v49  ;;  %v7685_v54 = vsub.f32 %v7642_v27, %v7679_v50  ;;  %v7962_v49 = vld [vmem:[#allocation2 + $0x280] sm:$0xff]  ;;  %v7963_v50 = vld [vmem:[#allocation2 + $0x288] sm:$0xff] }
0x1c3c   : > { %v7693_v55 = vmul.f32 1.442695, %v7686_v51  ;;  %v7691_v56 = vmul.f32 1.442695, %v7685_v54  ;;  %v7964_v51 = vld [vmem:[#allocation2 + $0x290] sm:$0xff]  ;;  %v7965_v54 = vld [vmem:[#allocation2 + $0x298] sm:$0xff] }
0x1c3e   : > { %9828 = vpow2.f32 %v7693_v55  ;;  %v7946_v55 = vld [vmem:[#allocation2 + $0x200] sm:$0xff] }
0x1c3f   : > { %9830 = vpow2.f32 %v7691_v56  ;;  %v7947_v56 = vld [vmem:[#allocation2 + $0x208] sm:$0xff] }
0x1c41   : > { %v7676_v58 = vpop.xlane.xlu2 %7675 }
0x1c42   : > { %v7684_v11 = vsub.f32 %v7616_v37, %v7676_v58  ;;  %v7994_v37 = vld [vmem:[#allocation2 + $0x380] sm:$0xff]  ;;  %v7948_v58 = vld [vmem:[#allocation2 + $0x210] sm:$0xff] }
0x1c44   : > { %v9829_v17 = vpop.eup %9828  ;;  %v7689_v52 = vmul.f32 1.442695, %v7684_v11  ;;  %v7949_v11 = vld [vmem:[#allocation2 + $0x218] sm:$0xff] }
0x1c45   : > { %v9831_v21 = vpop.eup %9830  ;;  %v7704_v19 = vsel %vm1337_vm1, %v9829_v17, 0.0 }
0x1c46   : > { %9832 = vpow2.f32 %v7689_v52  ;;  %v7701_v60 = vsel %vm1337_vm1, %v9831_v21, 0.0  ;;  %7705 = vadd.xlane.f32.xlu1 %v7704_v19  ;;  %v7999_v52 = vld [vmem:[#allocation2 + $0x3a8] sm:$0xff]  ;;  %v8001_v19 = vld [vmem:[#allocation2 + $0x3b8] sm:$0xff] }
0x1c47   : > { %7702 = vadd.xlane.f32.xlu0 %v7701_v60  ;;  %v7982_v60 = vld [vmem:[#allocation2 + $0x320] sm:$0xff] }
0x1c4c   : > { %v9833_v18 = vpop.eup %9832 }
0x1c4d   : > { %v7698_v33 = vsel %vm1337_vm1, %v9833_v18, 0.0 }
0x1c4f   : > { %7699 = vadd.xlane.f32.xlu0 %v7698_v33 }
0x1cac   : > { %v7697_v34 = vpop.xlane.xlu2 %7696 }
0x1cad   : > { %9834 = vrcp.f32 %v7697_v34  ;;  %v7984_v34 = vld [vmem:[#allocation2 + $0x330] sm:$0xff] }
0x1cb3   : > { %v9835_v57 = vpop.eup %9834 }
0x1cb4   : > { %v7711_v13 = vmul.f32 %v9835_v57, %v9827_v47  ;;  %v7980_v47 = vld [vmem:[#allocation2 + $0x310] sm:$0xff]  ;;  %v7985_v57 = vld [vmem:[#allocation2 + $0x338] sm:$0xff] }
0x1cb6   : > { %9498 = vmatmul.msk.f32.vlgmr.msra.gmra.mxu0 %vm1337_vm1, %v7711_v13  ;;  %v7966_v13 = vld [vmem:[#allocation2 + $0x2a0] sm:$0xff] }
0x1cb7   : > { %8129 = vmatpush.msra.mxu0 %v7994_v37  ;;  %v8006_v37 = vld [vmem:[#allocation2 + $0x3e0] sm:$0xff] }
0x1cb9   : > { %v7706_v59 = vpop.xlane.xlu1 %7705  ;;  %8130 = vmatpush.msra.mxu0 %v7978_v43  ;;  %v7990_v43 = vld [vmem:[#allocation2 + $0x360] sm:$0xff] }
0x1cba   : > { %v7703_v39 = vpop.xlane.xlu0 %7702  ;;  %9836 = vrcp.f32 %v7706_v59 }
0x1cbb   : > { %9838 = vrcp.f32 %v7703_v39  ;;  %8131 = vmatpush.msra.mxu0 %v7962_v49  ;;  %v7967_v39 = vld [vmem:[#allocation2 + $0x2a8] sm:$0xff]  ;;  %v7974_v49 = vld [vmem:[#allocation2 + $0x2e0] sm:$0xff] }
0x1cbd   : > { %8132 = vmatpush.msra.mxu0 %v7946_v55  ;;  %v7958_v55 = vld [vmem:[#allocation2 + $0x260] sm:$0xff] }
0x1cc0   : > { %v9837_v35 = vpop.eup %9836 }
0x1cc1   : > { %v9839_v28 = vpop.eup %9838  ;;  %v7714_v40 = vmul.f32 %v9837_v35, %v9829_v17  ;;  %v7998_v17 = vld [vmem:[#allocation2 + $0x3a0] sm:$0xff]  ;;  %v7968_v35 = vld [vmem:[#allocation2 + $0x2b0] sm:$0xff] }
0x1cc2   : > { %v7713_v45 = vmul.f32 %v9839_v28, %v9831_v21  ;;  %v7700_v53 = vpop.xlane.xlu0 %7699  ;;  %v8000_v21 = vld [vmem:[#allocation2 + $0x3b0] sm:$0xff]  ;;  %v7969_v28 = vld [vmem:[#allocation2 + $0x2b8] sm:$0xff] }
0x1cc3   : > { %9840 = vrcp.f32 %v7700_v53  ;;  %9501 = vmatmul.msk.f32.vlgmr.msra.gmra.mxu3 %vm1337_vm1, %v7714_v40  ;;  %v7950_v40 = vld [vmem:[#allocation2 + $0x220] sm:$0xff] }
0x1cc4   : > { %9500 = vmatmul.msk.f32.vlgmr.msra.gmra.mxu2 %vm1337_vm1, %v7713_v45  ;;  %v7951_v45 = vld [vmem:[#allocation2 + $0x228] sm:$0xff] }
0x1cc5   : > { %8169 = vmatpush.msra.mxu2 %v7996_v41  ;;  %v8008_v41 = vld [vmem:[#allocation2 + $0x3f0] sm:$0xff] }
0x1cc7   : > { %8170 = vmatpush.msra.mxu2 %v7980_v47  ;;  %v7992_v47 = vld [vmem:[#allocation2 + $0x370] sm:$0xff] }
0x1cc9   : > { %v9841_v61 = vpop.eup %9840  ;;  %8171 = vmatpush.msra.mxu2 %v7964_v51  ;;  %v7976_v51 = vld [vmem:[#allocation2 + $0x2f0] sm:$0xff] }
0x1cca   : > { %v7712_v62 = vmul.f32 %v9841_v61, %v9833_v18  ;;  %v7983_v18 = vld [vmem:[#allocation2 + $0x328] sm:$0xff]  ;;  %v7952_v61 = vld [vmem:[#allocation2 + $0x230] sm:$0xff] }
0x1ccb   : > { %8172 = vmatpush.msra.mxu2 %v7948_v58  ;;  %v7960_v58 = vld [vmem:[#allocation2 + $0x270] sm:$0xff] }
0x1ccc   : > { %9499 = vmatmul.msk.f32.vlgmr.msra.gmra.mxu1 %vm1337_vm1, %v7712_v62  ;;  %v7953_v62 = vld [vmem:[#allocation2 + $0x238] sm:$0xff] }
0x1ccd   : > { %8149 = vmatpush.msra.mxu1 %v7995_v20  ;;  %v8007_v20 = vld [vmem:[#allocation2 + $0x3e8] sm:$0xff] }
0x1ccf   : > { %8150 = vmatpush.msra.mxu1 %v7979_v46  ;;  %v7991_v46 = vld [vmem:[#allocation2 + $0x368] sm:$0xff] }
0x1cd1   : > { %8151 = vmatpush.msra.mxu1 %v7963_v50  ;;  %v7975_v50 = vld [vmem:[#allocation2 + $0x2e8] sm:$0xff] }
0x1cd3   : > { %8152 = vmatpush.msra.mxu1 %v7947_v56  ;;  %v7959_v56 = vld [vmem:[#allocation2 + $0x268] sm:$0xff] }
0x1d33   : > { %v7735_v0 = vpop.f32.mrf.mxu0 }
0x1d34   : > { %9502 = vmatmul.msk.f32.vlgmr.msrb.gmra.mxu0 %vm1337_vm1, %v7735_v0 }
0x1d35   : > { %8209 = vmatpush.msrb.mxu0 %v7998_v17  ;;  %v8062_v17 = vld [vmem:[#allocation5 + $0x380] sm:$0xff] }
0x1d37   : > { %8210 = vmatpush.msrb.mxu0 %v7982_v60  ;;  %v8046_v60 = vld [vmem:[#allocation5 + $0x300] sm:$0xff] }
0x1d39   : > { %8211 = vmatpush.msrb.mxu0 %v7966_v13  ;;  %v8031_v13 = vld [vmem:[#allocation5 + $0x288] sm:$0xff] }
0x1d3b   : > { %8212 = vmatpush.msrb.mxu0 %v7950_v40  ;;  %v8066_v40 = vld [vmem:[#allocation5 + $0x3a0] sm:$0xff] }
0x1d46   : > { %v7804_v2 = vpop.f32.mrf.mxu3 }
0x1d47   : > { %v7781_v3 = vpop.f32.mrf.mxu2  ;;  %9505 = vmatmul.msk.f32.vlgmr.msrb.gmra.mxu3 %vm1337_vm1, %v7804_v2 }
0x1d48   : > { %9504 = vmatmul.msk.f32.vlgmr.msrb.gmra.mxu2 %vm1337_vm1, %v7781_v3  ;;  %v9723_v3 = vld [vmem:[%s11738_s4 + $0x1] ss:$0 sm:$0xff]  ;;  %s8839_s4 = sshll.u32 %s982_s3, 4  ;;  %s8840_s4 = int_to_ptr.vmem [resolvable:$true] %s8839_s4 }
0x1d49   : > { %v7758_v1 = vpop.f32.mrf.mxu1  ;;  %8249 = vmatpush.msrb.mxu2 %v8000_v21  ;;  %v8064_v21 = vld [vmem:[#allocation5 + $0x390] sm:$0xff] }
0x1d4a   : > { %9503 = vmatmul.msk.f32.vlgmr.msrb.gmra.mxu1 %vm1337_vm1, %v7758_v1 }
0x1d4b   : > { %8229 = vmatpush.msrb.mxu1 %v7999_v52  ;;  %8250 = vmatpush.msrb.mxu2 %v7984_v34  ;;  %v8063_v52 = vld [vmem:[#allocation5 + $0x388] sm:$0xff]  ;;  %v8049_v34 = vld [vmem:[#allocation5 + $0x318] sm:$0xff] }
0x1d4d   : > { %8230 = vmatpush.msrb.mxu1 %v7983_v18  ;;  %8251 = vmatpush.msrb.mxu2 %v7968_v35  ;;  %v8047_v18 = vld [vmem:[#allocation5 + $0x308] sm:$0xff]  ;;  %v8014_v35 = vld [vmem:[#allocation5 + $0x200] sm:$0xff] }
0x1d4f   : > { %8231 = vmatpush.msrb.mxu1 %v7967_v39  ;;  %8252 = vmatpush.msrb.mxu2 %v7952_v61  ;;  %v8033_v39 = vld [vmem:[#allocation5 + $0x298] sm:$0xff] }
0x1d50   : > { %v8017_v61 = vld [vmem:[#allocation5 + $0x218] sm:$0xff] }
0x1d51   : > { %8232 = vmatpush.msrb.mxu1 %v7951_v45  ;;  %v8067_v45 = vld [vmem:[#allocation5 + $0x3a8] sm:$0xff] }
0x1db1   : > { %v7827_v4 = vpop.f32.mrf.mxu0 }
0x1db2   : > { %v7899_v8 = vsel %vm1065_vm0, %v7827_v4, 0.0  ;;  %v9724_v4 = vld [vmem:[%s10166_s27 + $0x1] ss:$0 sm:$0xff] }
0x1dc7   : > { %v7850_v5 = vpop.f32.mrf.mxu1 }
0x1dc8   : > { %v7900_v7 = vsel %vm1065_vm0, %v7850_v5, 0.0 }
0x1dc9   : > { %v7901_v9 = vadd.f32 %v7900_v7, %v7899_v8 }
0x1dca   : > { %v7896_v12 = vpop.f32.mrf.mxu3 }
0x1dcb   : > { %v7873_v10 = vpop.f32.mrf.mxu2  ;;  %v7904_v16 = vsel %vm1065_vm0, %v7896_v12, 0.0  ;;  %v8004_v12 = vld [vmem:[#allocation2 + $0x3d0] sm:$0xff] }
0x1dcc   : > { %v7902_v14 = vsel %vm1065_vm0, %v7873_v10, 0.0  ;;  %v8003_v10 = vld [vmem:[#allocation2 + $0x3c8] sm:$0xff] }
0x1dcd   : > { %v7903_v6 = vadd.f32 %v7902_v14, %v7901_v9  ;;  %v8002_v9 = vld [vmem:[#allocation2 + $0x3c0] sm:$0xff]  ;;  %v8005_v14 = vld [vmem:[#allocation2 + $0x3d8] sm:$0xff] }
0x1dcf   : > { %v7905_v22 = vadd.f32 %v7904_v16, %v7903_v6  ;;  %v7986_v6 = vld [vmem:[#allocation2 + $0x340] sm:$0xff]  ;;  %v7988_v16 = vld [vmem:[#allocation2 + $0x350] sm:$0xff] }
0x1dd1   : > { %v7909_v23 = vadd.f32 %v9722_v15, %v7905_v22  ;;  %v7987_v15 = vld [vmem:[#allocation2 + $0x348] sm:$0xff]  ;;  %v7989_v22 = vld [vmem:[#allocation2 + $0x358] sm:$0xff] }
0x1dd3   : > { %v7910_v24 = vadd.f32 %v7909_v23, %v11464_v36  ;;  %v7997_v36 = vld [vmem:[#allocation2 + $0x398] sm:$0xff]  ;;  %v7970_v23 = vld [vmem:[#allocation2 + $0x2c0] sm:$0xff] }
0x1dd4   : > { %8189 = vmatpush.msra.mxu3 %v7997_v36  ;;  %v8009_v36 = vld [vmem:[#allocation2 + $0x3f8] sm:$0xff] }
0x1dd5   : > { %v7915_v25 = vsel %vm1065_vm0, %v7910_v24, 0.0 }
0x1dd6   : > { %7916 = vadd.xlane.f32.xlu1 %v7915_v25  ;;  %8190 = vmatpush.msra.mxu3 %v7981_v48  ;;  %v7972_v25 = vld [vmem:[#allocation2 + $0x2d0] sm:$0xff]  ;;  %v7993_v48 = vld [vmem:[#allocation2 + $0x378] sm:$0xff] }
0x1dd8   : > { %8191 = vmatpush.msra.mxu3 %v7965_v54  ;;  %v7977_v54 = vld [vmem:[#allocation2 + $0x2f8] sm:$0xff] }
0x1dda   : > { %8192 = vmatpush.msra.mxu3 %v7949_v11  ;;  %v7961_v11 = vld [vmem:[#allocation2 + $0x278] sm:$0xff] }
0x1ddc   : > { %8269 = vmatpush.msrb.mxu3 %v8001_v19  ;;  %v8065_v19 = vld [vmem:[#allocation5 + $0x398] sm:$0xff] }
0x1dde   : > { %8270 = vmatpush.msrb.mxu3 %v7985_v57  ;;  %v8030_v57 = vld [vmem:[#allocation5 + $0x280] sm:$0xff] }
0x1de0   : > { %8271 = vmatpush.msrb.mxu3 %v7969_v28  ;;  %v8015_v28 = vld [vmem:[#allocation5 + $0x208] sm:$0xff] }
0x1de2   : > { %8272 = vmatpush.msrb.mxu3 %v7953_v62  ;;  %v8068_v62 = vld [vmem:[#allocation5 + $0x3b0] sm:$0xff] }
0x1e49   : > { %v7917_v26 = vpop.xlane.xlu1 %7916 }
0x1e4a   : > { %v7918_v27 = vmul.f32 %v7917_v26, %v10403_v32  ;;  %v7973_v26 = vld [vmem:[#allocation2 + $0x2d8] sm:$0xff] }
0x1e4c   : > { %v11554_v29 = vsub.f32 %v7910_v24, %v7918_v27  ;;  %v7971_v24 = vld [vmem:[#allocation2 + $0x2c8] sm:$0xff]  ;;  %v7954_v27 = vld [vmem:[#allocation2 + $0x240] sm:$0xff] }
0x1e4e   : > { %v7920_v30 = vmul.f32 %v11554_v29, %v11554_v29 }
0x1e50   : > { %v7921_v31 = vsel %vm1065_vm0, %v7920_v30, 0.0  ;;  %v7956_v30 = vld [vmem:[#allocation2 + $0x250] sm:$0xff] }
0x1e51   : > { %7922 = vadd.xlane.f32.xlu2 %v7921_v31  ;;  %v7957_v31 = vld [vmem:[#allocation2 + $0x258] sm:$0xff] }
0x1ec4   : > { %v7923_v33 = vpop.xlane.xlu2 %7922 }
0x1ec5   : > { %v7924_v59 = vmul.f32 %v7923_v33, %v10403_v32  ;;  %v8048_v33 = vld [vmem:[#allocation5 + $0x310] sm:$0xff] }
0x1ec7   : > { %v7925_v53 = vadd.f32 1e-05, %v7924_v59  ;;  %v8032_v59 = vld [vmem:[#allocation5 + $0x290] sm:$0xff] }
0x1ec9   : > { %9842 = vrsqrt.f32 %v7925_v53  ;;  %vm7932_vm13 = vweird.f32 %v7925_v53 }
0x1ecf   : > { %v9843_v38 = vpop.eup %9842 }
0x1ed0   : > { %v7927_v63 = vmul.f32 %v9843_v38, %v7925_v53  ;;  %vm7933_vm1 = vweird.f32 %v9843_v38  ;;  %v8016_v53 = vld [vmem:[#allocation5 + $0x210] sm:$0xff] }
0x1ed1   : > { %vm7934_vm14 = vmor %vm7932_vm13, %vm7933_vm1 }
0x1ed2   : > { %v7928_v42 = vmul.f32 %v9843_v38, %v7927_v63  ;;  %v8050_v63 = vld [vmem:[#allocation5 + $0x320] sm:$0xff] }
0x1ed4   : > { %v7929_v44 = vmul.f32 0.5, %v7928_v42  ;;  %v8051_v42 = vld [vmem:[#allocation5 + $0x328] sm:$0xff] }
0x1ed6   : > { %v7930_v0 = vsub.f32 1.5, %v7929_v44  ;;  %v8034_v44 = vld [vmem:[#allocation5 + $0x2a0] sm:$0xff] }
0x1ed8   : > { %v7931_v2 = vmul.f32 %v9843_v38, %v7930_v0  ;;  %v8035_v0 = vld [vmem:[#allocation5 + $0x2a8] sm:$0xff] }
0x1eda   : > { %v7935_v1 = vsel %vm7934_vm14, %v9843_v38, %v7931_v2  ;;  %v8069_v38 = vld [vmem:[#allocation5 + $0x3b8] sm:$0xff]  ;;  %v8052_v2 = vld [vmem:[#allocation5 + $0x330] sm:$0xff] }
0x1edb   : > { %v7936_v5 = vmul.f32 %v7935_v1, %v11554_v29  ;;  %v7955_v29 = vld [vmem:[#allocation2 + $0x248] sm:$0xff]  ;;  %v8018_v1 = vld [vmem:[#allocation5 + $0x220] sm:$0xff] }
0x1edd   : > { %v7940_v7 = vmul.f32 %v9723_v3, %v7936_v5  ;;  %v8053_v3 = vld [vmem:[#allocation5 + $0x338] sm:$0xff]  ;;  %v8036_v5 = vld [vmem:[#allocation5 + $0x2b0] sm:$0xff] }
0x1edf   : > { %v11563_v8 = vadd.f32 %v9724_v4, %v7940_v7  ;;  %v8019_v4 = vld [vmem:[#allocation5 + $0x228] sm:$0xff]  ;;  %v8037_v7 = vld [vmem:[#allocation5 + $0x2b8] sm:$0xff] }
0x1ee1   : > { %9511 = vmatmul.msk.f32.vlgmr.msra.gmra.mxu0 %vm1065_vm0, %v11563_v8  ;;  %9512 = vmatmul.msk.f32.vlgmr.msra.gmra.mxu1 %vm1065_vm0, %v11563_v8 }
0x1ee2   : > { %9513 = vmatmul.msk.f32.vlgmr.msra.gmra.mxu2 %vm1065_vm0, %v11563_v8  ;;  %9514 = vmatmul.msk.f32.vlgmr.msra.gmra.mxu3 %vm1065_vm0, %v11563_v8 }
0x1ee3   : > { %8289 = vmatpush.msra.mxu0 %v8002_v9  ;;  %8309 = vmatpush.msra.mxu1 %v8003_v10  ;;  %v8020_v9 = vld [vmem:[#allocation5 + $0x230] sm:$0xff]  ;;  %v8021_v10 = vld [vmem:[#allocation5 + $0x238] sm:$0xff] }
0x1ee4   : > { %8329 = vmatpush.msra.mxu2 %v8004_v12  ;;  %8349 = vmatpush.msra.mxu3 %v8005_v14  ;;  %v9508_v12 = vld [vmem:[%s11740_s5 + $0x10] sm:$0xff] }
0x1ee5   : > { %8290 = vmatpush.msra.mxu0 %v7986_v6  ;;  %8310 = vmatpush.msra.mxu1 %v7987_v15  ;;  %v8082_v14 = vperm.slane %v9508_v12, 0  ;;  %v8083_v6 = vperm.slane %v9508_v12, 1 }
0x1ee6   : > { %8330 = vmatpush.msra.mxu2 %v7988_v16  ;;  %8350 = vmatpush.msra.mxu3 %v7989_v22 }
0x1ee7   : > { %8291 = vmatpush.msra.mxu0 %v7970_v23  ;;  %8311 = vmatpush.msra.mxu1 %v7971_v24 }
0x1ee8   : > { %8331 = vmatpush.msra.mxu2 %v7972_v25  ;;  %8351 = vmatpush.msra.mxu3 %v7973_v26  ;;  %v8070_v26 = vld [vmem:[#allocation5 + $0x3c0] sm:$0xff] }
0x1ee9   : > { %9515 = vmatmul.msk.f32.vlgmr.msrb.gmra.mxu0 %vm1065_vm0, %v11563_v8  ;;  %9516 = vmatmul.msk.f32.vlgmr.msrb.gmra.mxu1 %vm1065_vm0, %v11563_v8 }
0x1eea   : > { %9517 = vmatmul.msk.f32.vlgmr.msrb.gmra.mxu2 %vm1065_vm0, %v11563_v8  ;;  %9518 = vmatmul.msk.f32.vlgmr.msrb.gmra.mxu3 %vm1065_vm0, %v11563_v8 }
0x1eeb   : > { %8292 = vmatpush.msra.mxu0 %v7954_v27  ;;  %8312 = vmatpush.msra.mxu1 %v7955_v29  ;;  %v8071_v27 = vld [vmem:[#allocation5 + $0x3c8] sm:$0xff]  ;;  %v8084_v29 = vperm.slane %v9508_v12, 2 }
0x1eec   : > { %8332 = vmatpush.msra.mxu2 %v7956_v30  ;;  %8352 = vmatpush.msra.mxu3 %v7957_v31  ;;  %v8085_v30 = vperm.slane %v9508_v12, 3  ;;  %v8086_v31 = vperm.slane %v9508_v12, 4 }
0x1eed   : > { %8369 = vmatpush.msrb.mxu0 %v8006_v37  ;;  %8389 = vmatpush.msrb.mxu1 %v8007_v20  ;;  %v8087_v37 = vperm.slane %v9508_v12, 5 }
0x1eee   : > { %8409 = vmatpush.msrb.mxu2 %v8008_v41  ;;  %8429 = vmatpush.msrb.mxu3 %v8009_v36  ;;  %v8054_v36 = vld [vmem:[#allocation5 + $0x340] sm:$0xff] }
0x1eef   : > { %8370 = vmatpush.msrb.mxu0 %v7990_v43  ;;  %8390 = vmatpush.msrb.mxu1 %v7991_v46  ;;  %v8055_v43 = vld [vmem:[#allocation5 + $0x348] sm:$0xff] }
0x1ef0   : > { %8410 = vmatpush.msrb.mxu2 %v7992_v47  ;;  %8430 = vmatpush.msrb.mxu3 %v7993_v48 }
0x1ef1   : > { %9519 = vmatmul.msk.f32.vlgmr.msra.gmra.mxu0 %vm1065_vm0, %v11563_v8  ;;  %9520 = vmatmul.msk.f32.vlgmr.msra.gmra.mxu1 %vm1065_vm0, %v11563_v8 }
0x1ef2   : > { %9521 = vmatmul.msk.f32.vlgmr.msra.gmra.mxu2 %vm1065_vm0, %v11563_v8  ;;  %9522 = vmatmul.msk.f32.vlgmr.msra.gmra.mxu3 %vm1065_vm0, %v11563_v8 }
0x1ef3   : > { %8371 = vmatpush.msrb.mxu0 %v7974_v49  ;;  %8391 = vmatpush.msrb.mxu1 %v7975_v50 }
0x1ef4   : > { %8411 = vmatpush.msrb.mxu2 %v7976_v51  ;;  %8431 = vmatpush.msrb.mxu3 %v7977_v54 }
0x1ef5   : > { %8372 = vmatpush.msrb.mxu0 %v7958_v55  ;;  %8392 = vmatpush.msrb.mxu1 %v7959_v56  ;;  %v8072_v56 = vld [vmem:[#allocation5 + $0x3d0] sm:$0xff] }
0x1ef6   : > { %8412 = vmatpush.msrb.mxu2 %v7960_v58  ;;  %8432 = vmatpush.msrb.mxu3 %v7961_v11  ;;  %v8073_v58 = vld [vmem:[#allocation5 + $0x3d8] sm:$0xff] }
0x1ef7   : > { %8468 = vmatpush.xpose.msra.mxu0 %v8062_v17  ;;  %8488 = vmatpush.xpose.msra.mxu1 %v8063_v52  ;;  %v11599_v11 = vld [vmem:[%s11740_s5 + $0x18] sm:$0xff]  ;;  %s8841_s5 = sshll.u32 %s8837_s22, 4  ;;  %s8842_s5 = int_to_ptr.hbm [resolvable:$true] %s8841_s5 }
0x1ef8   : > { %8508 = vmatpush.xpose.msra.mxu2 %v8064_v21  ;;  %8528 = vmatpush.xpose.msra.mxu3 %v8065_v19  ;;  %v8038_v21 = vld [vmem:[#allocation5 + $0x2c0] sm:$0xff]  ;;  %v8039_v19 = vld [vmem:[#allocation5 + $0x2c8] sm:$0xff] }
0x1ef9   : > { %9523 = vmatmul.msk.f32.vlgmr.msrb.gmra.mxu0 %vm1065_vm0, %v11563_v8  ;;  %9524 = vmatmul.msk.f32.vlgmr.msrb.gmra.mxu1 %vm1065_vm0, %v11563_v8 }
0x1efa   : > { %9525 = vmatmul.msk.f32.vlgmr.msrb.gmra.mxu2 %vm1065_vm0, %v11563_v8  ;;  %9526 = vmatmul.msk.f32.vlgmr.msrb.gmra.mxu3 %vm1065_vm0, %v11563_v8 }
0x1efb   : > { %8469 = vmatpush.xpose.msra.mxu0 %v8046_v60  ;;  %8489 = vmatpush.xpose.msra.mxu1 %v8047_v18  ;;  %v8088_v60 = vperm.slane %v9508_v12, 6  ;;  %v8089_v18 = vperm.slane %v9508_v12, 7 }
0x1efc   : > { %8509 = vmatpush.xpose.msra.mxu2 %v8048_v33  ;;  %8529 = vmatpush.xpose.msra.mxu3 %v8049_v34  ;;  %v8090_v33 = vperm.slane %v11599_v11, 0  ;;  %v8091_v34 = vperm.slane %v11599_v11, 1 }
0x1eff   : > { %8470 = vmatpush.xpose.msra.mxu0 %v8030_v57  ;;  %8490 = vmatpush.xpose.msra.mxu1 %v8031_v13  ;;  %v8056_v57 = vld [vmem:[#allocation5 + $0x350] sm:$0xff]  ;;  %v8057_v13 = vld [vmem:[#allocation5 + $0x358] sm:$0xff] }
0x1f00   : > { %8510 = vmatpush.xpose.msra.mxu2 %v8032_v59  ;;  %8530 = vmatpush.xpose.msra.mxu3 %v8033_v39 }
0x1f03   : > { %8471 = vmatpush.xpose.msra.mxu0 %v8014_v35  ;;  %8491 = vmatpush.xpose.msra.mxu1 %v8015_v28 }
0x1f04   : > { %8511 = vmatpush.xpose.msra.mxu2 %v8016_v53  ;;  %8531 = vmatpush.xpose.msra.mxu3 %v8017_v61  ;;  %v8022_v53 = vld [vmem:[#allocation5 + $0x240] sm:$0xff]  ;;  %v8023_v61 = vld [vmem:[#allocation5 + $0x248] sm:$0xff] }
0x1f07   : > { %8548 = vmatpush.xpose.msrb.mxu0 %v8066_v40  ;;  %8568 = vmatpush.xpose.msrb.mxu1 %v8067_v45 }
0x1f08   : > { %8588 = vmatpush.xpose.msrb.mxu2 %v8068_v62  ;;  %8608 = vmatpush.xpose.msrb.mxu3 %v8069_v38 }
0x1f0b   : > { %8549 = vmatpush.xpose.msrb.mxu0 %v8050_v63  ;;  %8569 = vmatpush.xpose.msrb.mxu1 %v8051_v42  ;;  %v8074_v63 = vld [vmem:[#allocation5 + $0x3e0] sm:$0xff]  ;;  %v8075_v42 = vld [vmem:[#allocation5 + $0x3e8] sm:$0xff] }
0x1f0c   : > { %8589 = vmatpush.xpose.msrb.mxu2 %v8052_v2  ;;  %8609 = vmatpush.xpose.msrb.mxu3 %v8053_v3 }
0x1f0f   : > { %8550 = vmatpush.xpose.msrb.mxu0 %v8034_v44  ;;  %8570 = vmatpush.xpose.msrb.mxu1 %v8035_v0 }
0x1f10   : > { %8590 = vmatpush.xpose.msrb.mxu2 %v8036_v5  ;;  %8610 = vmatpush.xpose.msrb.mxu3 %v8037_v7  ;;  %v8092_v5 = vperm.slane %v11599_v11, 2  ;;  %v8093_v7 = vperm.slane %v11599_v11, 3 }
0x1f13   : > { %8551 = vmatpush.xpose.msrb.mxu0 %v8018_v1  ;;  %8571 = vmatpush.xpose.msrb.mxu1 %v8019_v4  ;;  %v8040_v1 = vld [vmem:[#allocation5 + $0x2d0] sm:$0xff]  ;;  %v8041_v4 = vld [vmem:[#allocation5 + $0x2d8] sm:$0xff] }
0x1f14   : > { %8591 = vmatpush.xpose.msrb.mxu2 %v8020_v9  ;;  %8611 = vmatpush.xpose.msrb.mxu3 %v8021_v10  ;;  %v8058_v9 = vld [vmem:[#allocation5 + $0x360] sm:$0xff]  ;;  %v8059_v10 = vld [vmem:[#allocation5 + $0x368] sm:$0xff] }
0x1f5e   : > { %v8134_v15 = vpop.f32.mrf.mxu0  ;;  %v8154_v16 = vpop.f32.mrf.mxu1 }
0x1f5f   : > { %v8135_v22 = vadd.f32 %v8134_v15, %v8082_v14  ;;  %v8155_v23 = vadd.f32 %v8154_v16, %v8083_v6  ;;  %v8024_v6 = vld [vmem:[#allocation5 + $0x250] sm:$0xff]  ;;  %v8025_v15 = vld [vmem:[#allocation5 + $0x258] sm:$0xff] }
0x1f61   : > { %v8437_v24 = vmax.f32 %v8135_v22, 0.0  ;;  %v8438_v25 = vmax.f32 %v8155_v23, 0.0  ;;  %v8076_v23 = vld [vmem:[#allocation5 + $0x3f0] sm:$0xff] }
0x1f63   : > { %8472 = vmatmul.f32.vlgmr.msra.gmra.mxu0 %v8437_v24  ;;  %8492 = vmatmul.f32.vlgmr.msra.gmra.mxu1 %v8438_v25  ;;  %v8077_v24 = vld [vmem:[#allocation5 + $0x3f8] sm:$0xff]  ;;  %v8042_v25 = vld [vmem:[#allocation5 + $0x2e0] sm:$0xff] }
0x1f64   : > { %8628 = vmatpush.xpose.msra.mxu0 %v8070_v26  ;;  %8648 = vmatpush.xpose.msra.mxu1 %v8071_v27  ;;  %v8043_v26 = vld [vmem:[#allocation5 + $0x2e8] sm:$0xff] }
0x1f65   : > { %v8174_v20 = vpop.f32.mrf.mxu2  ;;  %v8194_v41 = vpop.f32.mrf.mxu3 }
0x1f66   : > { %v8175_v46 = vadd.f32 %v8174_v20, %v8084_v29  ;;  %v8195_v47 = vadd.f32 %v8194_v41, %v8085_v30  ;;  %v8214_v48 = vpop.f32.mrf.mxu0  ;;  %v8234_v49 = vpop.f32.mrf.mxu1  ;;  %v8094_v30 = vperm.slane %v11599_v11, 4  ;;  %v8060_v41 = vld [vmem:[#allocation5 + $0x370] sm:$0xff] }
0x1f67   : > { %v8215_v50 = vadd.f32 %v8214_v48, %v8086_v31  ;;  %v8235_v51 = vadd.f32 %v8234_v49, %v8087_v37  ;;  %v8095_v31 = vperm.slane %v11599_v11, 5  ;;  %v8096_v49 = vperm.slane %v11599_v11, 6 }
0x1f68   : > { %v8439_v54 = vmax.f32 %v8175_v46, 0.0  ;;  %v8440_v55 = vmax.f32 %v8195_v47, 0.0  ;;  %8629 = vmatpush.xpose.msra.mxu0 %v8054_v36  ;;  %8649 = vmatpush.xpose.msra.mxu1 %v8055_v43  ;;  %v8061_v36 = vld [vmem:[#allocation5 + $0x378] sm:$0xff]  ;;  %v8026_v43 = vld [vmem:[#allocation5 + $0x260] sm:$0xff]  ;;  %v8027_v46 = vld [vmem:[#allocation5 + $0x268] sm:$0xff] }
0x1f69   : > { %v8441_v17 = vmax.f32 %v8215_v50, 0.0  ;;  %v8442_v52 = vmax.f32 %v8235_v51, 0.0  ;;  %v8097_v50 = vperm.slane %v11599_v11, 7  ;;  %v8044_v51 = vld [vmem:[#allocation5 + $0x2f0] sm:$0xff] }
0x1f6a   : > { %8512 = vmatmul.f32.vlgmr.msra.gmra.mxu2 %v8439_v54  ;;  %8532 = vmatmul.f32.vlgmr.msra.gmra.mxu3 %v8440_v55  ;;  %v8045_v54 = vld [vmem:[#allocation5 + $0x2f8] sm:$0xff] }
0x1f6b   : > { %8668 = vmatpush.xpose.msra.mxu2 %v8072_v56  ;;  %8688 = vmatpush.xpose.msra.mxu3 %v8073_v58 }
0x1f6c   : > { %8552 = vmatmul.f32.vlgmr.msrb.gmra.mxu0 %v8441_v17  ;;  %8572 = vmatmul.f32.vlgmr.msrb.gmra.mxu1 %v8442_v52 }
0x1f6d   : > { %8630 = vmatpush.xpose.msra.mxu0 %v8038_v21  ;;  %8650 = vmatpush.xpose.msra.mxu1 %v8039_v19  ;;  %v8254_v59 = vpop.f32.mrf.mxu2  ;;  %v8274_v39 = vpop.f32.mrf.mxu3  ;;  %v8028_v19 = vld [vmem:[#allocation5 + $0x270] sm:$0xff] }
0x1f6e   : > { %v8255_v35 = vadd.f32 %v8254_v59, %v8088_v60  ;;  %v8275_v28 = vadd.f32 %v8274_v39, %v8089_v18  ;;  %v8294_v40 = vpop.f32.mrf.mxu0  ;;  %v8314_v45 = vpop.f32.mrf.mxu1  ;;  %v8029_v60 = vld [vmem:[#allocation5 + $0x278] sm:$0xff] }
0x1f6f   : > { %8669 = vmatpush.xpose.msra.mxu2 %v8056_v57  ;;  %8689 = vmatpush.xpose.msra.mxu3 %v8057_v13  ;;  %v8295_v62 = vadd.f32 %v8294_v40, %v8090_v33  ;;  %v8315_v38 = vadd.f32 %v8314_v45, %v8091_v34  ;;  %v9725_v33 = vld [vmem:[%s11742_s8 + $0x1] ss:$0 sm:$0xff] }
0x1f70   : > { %v8443_v44 = vmax.f32 %v8255_v35, 0.0  ;;  %v8444_v0 = vmax.f32 %v8275_v28, 0.0 }
0x1f71   : > { %v8445_v2 = vmax.f32 %v8295_v62, 0.0  ;;  %v8446_v3 = vmax.f32 %v8315_v38, 0.0  ;;  %8631 = vmatpush.xpose.msra.mxu0 %v8022_v53  ;;  %8651 = vmatpush.xpose.msra.mxu1 %v8023_v61 }
0x1f72   : > { %8592 = vmatmul.f32.vlgmr.msrb.gmra.mxu2 %v8443_v44  ;;  %8612 = vmatmul.f32.vlgmr.msrb.gmra.mxu3 %v8444_v0 }
0x1f73   : > { %8670 = vmatpush.xpose.msra.mxu2 %v8040_v1  ;;  %8690 = vmatpush.xpose.msra.mxu3 %v8041_v4 }
0x1f74   : > { %8632 = vmatmul.f32.vlgmr.msra.gmra.mxu0 %v8445_v2  ;;  %8652 = vmatmul.f32.vlgmr.msra.gmra.mxu1 %v8446_v3 }
0x1f75   : > { %8708 = vmatpush.xpose.msrb.mxu0 %v8074_v63  ;;  %8728 = vmatpush.xpose.msrb.mxu1 %v8075_v42  ;;  %v8334_v12 = vpop.f32.mrf.mxu2  ;;  %v8354_v14 = vpop.f32.mrf.mxu3 }
0x1f76   : > { %v8335_v16 = vadd.f32 %v8334_v12, %v8092_v5  ;;  %v8355_v22 = vadd.f32 %v8354_v14, %v8093_v7  ;;  %v8374_v37 = vpop.f32.mrf.mxu0  ;;  %v8394_v20 = vpop.f32.mrf.mxu1 }
0x1f77   : > { %8671 = vmatpush.xpose.msra.mxu2 %v8024_v6  ;;  %8691 = vmatpush.xpose.msra.mxu3 %v8025_v15  ;;  %v8375_v47 = vadd.f32 %v8374_v37, %v8094_v30  ;;  %v8395_v48 = vadd.f32 %v8394_v20, %v8095_v31 }
0x1f78   : > { %v8447_v27 = vmax.f32 %v8335_v16, 0.0  ;;  %v8448_v29 = vmax.f32 %v8355_v22, 0.0 }
0x1f79   : > { %8709 = vmatpush.xpose.msrb.mxu0 %v8058_v9  ;;  %8729 = vmatpush.xpose.msrb.mxu1 %v8059_v10  ;;  %v8449_v58 = vmax.f32 %v8375_v47, 0.0  ;;  %v8450_v17 = vmax.f32 %v8395_v48, 0.0 }
0x1f7a   : > { %8672 = vmatmul.f32.vlgmr.msra.gmra.mxu2 %v8447_v27  ;;  %8692 = vmatmul.f32.vlgmr.msra.gmra.mxu3 %v8448_v29 }
0x1f7b   : > { %8748 = vmatpush.xpose.msrb.mxu2 %v8076_v23  ;;  %8768 = vmatpush.xpose.msrb.mxu3 %v8077_v24 }
0x1f7d   : > { %8710 = vmatpush.xpose.msrb.mxu0 %v8042_v25  ;;  %8730 = vmatpush.xpose.msrb.mxu1 %v8043_v26  ;;  %v8414_v55 = vpop.f32.mrf.mxu2  ;;  %v8434_v56 = vpop.f32.mrf.mxu3 }
0x1f7e   : > { %v8415_v52 = vadd.f32 %v8414_v55, %v8096_v49  ;;  %v8435_v21 = vadd.f32 %v8434_v56, %v8097_v50 }
0x1f7f   : > { %8749 = vmatpush.xpose.msrb.mxu2 %v8060_v41  ;;  %8769 = vmatpush.xpose.msrb.mxu3 %v8061_v36 }
0x1f80   : > { %v8451_v11 = vmax.f32 %v8415_v52, 0.0  ;;  %v8452_v18 = vmax.f32 %v8435_v21, 0.0 }
0x1f81   : > { %8711 = vmatpush.xpose.msrb.mxu0 %v8026_v43  ;;  %8731 = vmatpush.xpose.msrb.mxu1 %v8027_v46  ;;  %v10017_v46 = vmov 8.0  }
0x1f83   : > { %8750 = vmatpush.xpose.msrb.mxu2 %v8044_v51  ;;  %8770 = vmatpush.xpose.msrb.mxu3 %v8045_v54  ;;  %v9726_v51 = vld [vmem:[%s11704_s6 + $0x1] ss:$0 sm:$0xff]  ;;  %s9923_s6 = sshra.s32 %s8842_s5, 4  ;;  %s9924_s6 = int_to_ptr.hbm [resolvable:$true] %s9923_s6 }
0x1f84   : > { %8712 = vmatmul.f32.vlgmr.msrb.gmra.mxu0 %v8449_v58  ;;  %8732 = vmatmul.f32.vlgmr.msrb.gmra.mxu1 %v8450_v17  ;;  %s9925_s7 = scalar_lea.hbm %s9924_s6, 1  ;;  %p9930_p8 = scmp.lt.s32.totalorder %s9924_s6, %s11747_s1 }
0x1f85   : > { %p9926_p9 = scmp.ne.s32.totalorder %s9924_s6, %s9925_s7  ;;  %p9931_p11 = scmp.lt.s32.totalorder %s9929_s0, %s9925_s7 }
0x1f87   : > { %8751 = vmatpush.xpose.msrb.mxu2 %v8028_v19  ;;  %8771 = vmatpush.xpose.msrb.mxu3 %v8029_v60  ;;  %p9927_p12 = pnand %p9926_p9, %p10221_p5  ;;  %p9932_p13 = por %p9931_p11, %p9930_p8 }
0x1f89   : > { %p9928_p0 = pneg %p9927_p12 }
0x1f8a   : > { %8752 = vmatmul.f32.vlgmr.msrb.gmra.mxu2 %v8451_v11  ;;  %8772 = vmatmul.f32.vlgmr.msrb.gmra.mxu3 %v8452_v18 }
0x1f8b   : > { %p9933_p1 = pnand %p9932_p13, %p9928_p0 }
0x1fe0   : > { %v8473_v34 = vpop.f32.mrf.mxu0  ;;  %v8493_v13 = vpop.f32.mrf.mxu1 }
0x1fe1   : > { %v8474_v57 = vadd.f32 %v9725_v33, %v8473_v34 }
0x1fe3   : > { %v8494_v59 = vadd.f32 %v8493_v13, %v8474_v57 }
0x1fe9   : > { %v8553_v40 = vpop.f32.mrf.mxu0  ;;  %v8573_v53 = vpop.f32.mrf.mxu1 }
0x1fed   : > { %v8513_v39 = vpop.f32.mrf.mxu2  ;;  %v8533_v35 = vpop.f32.mrf.mxu3 }
0x1fee   : > { %v8514_v28 = vadd.f32 %v8513_v39, %v8494_v59 }
0x1ff0   : > { %v8534_v45 = vadd.f32 %v8533_v35, %v8514_v28 }
0x1ff1   : > { %v8633_v0 = vpop.f32.mrf.mxu0  ;;  %v8653_v3 = vpop.f32.mrf.mxu1 }
0x1ff2   : > { %v8554_v61 = vadd.f32 %v8553_v40, %v8534_v45 }
0x1ff4   : > { %v8574_v62 = vadd.f32 %v8573_v53, %v8554_v61 }
0x1ff5   : > { %v8593_v38 = vpop.f32.mrf.mxu2  ;;  %v8613_v42 = vpop.f32.mrf.mxu3 }
0x1ff6   : > { %v8594_v63 = vadd.f32 %v8593_v38, %v8574_v62 }
0x1ff8   : > { %v8614_v44 = vadd.f32 %v8613_v42, %v8594_v63 }
0x1ffa   : > { %v8634_v2 = vadd.f32 %v8633_v0, %v8614_v44 }
0x1ffc   : > { %v8654_v1 = vadd.f32 %v8653_v3, %v8634_v2 }
0x1ffd   : > { %v8673_v4 = vpop.f32.mrf.mxu2  ;;  %v8693_v7 = vpop.f32.mrf.mxu3 }
0x1ffe   : > { %v8674_v5 = vadd.f32 %v8673_v4, %v8654_v1 }
0x2000   : > { %v8694_v9 = vadd.f32 %v8693_v7, %v8674_v5 }
0x2001   : > { %v8713_v10 = vpop.f32.mrf.mxu0  ;;  %v8733_v14 = vpop.f32.mrf.mxu1 }
0x2002   : > { %v8714_v12 = vadd.f32 %v8713_v10, %v8694_v9 }
0x2004   : > { %v8734_v6 = vadd.f32 %v8733_v14, %v8714_v12 }
0x200d   : > { %v8753_v15 = vpop.f32.mrf.mxu2  ;;  %v8773_v22 = vpop.f32.mrf.mxu3 }
0x200e   : > { %v8754_v16 = vadd.f32 %v8753_v15, %v8734_v6 }
0x2010   : > { %v8774_v23 = vadd.f32 %v8773_v22, %v8754_v16 }
0x2012   : > { %v8776_v24 = vadd.f32 %v8774_v23, %v11563_v8 }
0x2014   : > { %v8781_v25 = vsel %vm1065_vm0, %v8776_v24, 0.0 }
0x2015   : > { %8782 = vadd.xlane.f32.xlu0 %v8781_v25 }
0x2088   : > { %v8783_v26 = vpop.xlane.xlu0 %8782 }
0x2089   : > { %v8784_v27 = vmul.f32 %v8783_v26, %v10403_v32 }
0x208b   : > { %v8785_v29 = vsub.f32 %v8776_v24, %v8784_v27 }
0x208d   : > { %v8786_v30 = vmul.f32 %v8785_v29, %v8785_v29 }
0x208f   : > { %v8787_v31 = vsel %vm1065_vm0, %v8786_v30, 0.0 }
0x2090   : > { %8788 = vadd.xlane.f32.xlu1 %v8787_v31 }
0x2103   : > { %v8789_v37 = vpop.xlane.xlu1 %8788 }
0x2104   : > { %v8790_v20 = vmul.f32 %v8789_v37, %v10403_v32  ;;  %v9727_v32 = vld [vmem:[%s11744_s9 + $0x1] ss:$0 sm:$0xff] }
0x2106   : > { %v8791_v41 = vadd.f32 1e-05, %v8790_v20 }
0x2108   : > { %9844 = vrsqrt.f32 %v8791_v41  ;;  %vm8798_vm2 = vweird.f32 %v8791_v41 }
0x2109   : > { %9846 = vrcp.f32 %v10017_v46 }
0x210e   : > { %v9845_v36 = vpop.eup %9844 }
0x210f   : > { %v8793_v8 = vmul.f32 %v9845_v36, %v8791_v41  ;;  %vm8799_vm15 = vweird.f32 %v9845_v36  ;;  %v9847_v49 = vpop.eup %9846 }
0x2110   : > { %vm8800_vm3 = vmor %vm8798_vm2, %vm8799_vm15  ;;  %v8819_v56 = vmul.f32 8.0, %v9847_v49  ;;  %vm8823_vm4 = vweird.f32 %v9847_v49 }
0x2111   : > { %v8794_v43 = vmul.f32 %v9845_v36, %v8793_v8 }
0x2112   : > { %v8820_v52 = vsub.f32 1.0, %v8819_v56 }
0x2113   : > { %v8795_v47 = vmul.f32 0.5, %v8794_v43 }
0x2114   : > { %v8821_v60 = vmul.f32 %v9847_v49, %v8820_v52 }
0x2115   : > { %v8796_v48 = vsub.f32 1.5, %v8795_v47 }
0x2116   : > { %v8822_v33 = vadd.f32 %v9847_v49, %v8821_v60 }
0x2117   : > { %v8797_v50 = vmul.f32 %v9845_v36, %v8796_v48 }
0x2118   : > { %v8824_v13 = vsel %vm8823_vm4, %v9847_v49, %v8822_v33 }
0x2119   : > { %v8801_v54 = vsel %vm8800_vm3, %v9845_v36, %v8797_v50 }
0x211a   : > { %v8802_v55 = vmul.f32 %v8801_v54, %v8785_v29 }
0x211c   : > { %v8806_v58 = vmul.f32 %v9726_v51, %v8802_v55 }
0x211e   : > { %v8810_v17 = vadd.f32 %v9727_v32, %v8806_v58 }
0x2120   : > { %v8811_v21 = vsel %vm1065_vm0, %v8810_v17, 0.0 }
0x2121   : > { %v8812_v19 = vrot.slane %v8811_v21, 4 }
0x2123   : > { %v8813_v11 = vadd.f32 %v8812_v19, %v8811_v21 }
0x2125   : > { %v8814_v18 = vrot.slane %v8813_v11, 2 }
0x2127   : > { %v8815_v34 = vadd.f32 %v8814_v18, %v8813_v11 }
0x2129   : > { %v8816_v57 = vrot.slane %v8815_v34, 1 }
0x212b   : > { %v8817_v59 = vadd.f32 %v8816_v57, %v8815_v34 }
0x212d   : > { %v8825_v39 = vmul.f32 %v8824_v13, %v8817_v59 }
0x212f   : > { %8827 = vst.msk [vmem:[%s982_s3] sm:$0x1] %vm8826_vm5, %v8825_v39 }
0x2130   : > { %9936 = shalt.err (!%p9933_p1)
}
0x2131   : > { %9539 = dma.vmem_to_hbm [thread:$0]  (%p10221_p5), %s8840_s4, 16, %s8842_s5, %s8829_s23  }
0x2132 PF: > { %s11749_s26 = sld [smem:[#allocation36_spill]] }
0x2133   : > { %s11750_s3 = sld [smem:[#allocation33_spill]] }
0x2138   : > { %p9556_p2 = scmp.ge.s32.totalorder %s11749_s26, 2 }
0x2139   : > { %s8853_s22 = sand.u32 1, %s11750_s3  }
0x213a   : > { %p9549_p3 = pnand %p9556_p2, %p10225_p6  ;;  %s8854_s8 = scalar_lea.sflag [#allocation4], %s8853_s22 }
0x213c   : > { %p9550_p4 = pneg %p9549_p3 }
0x213e   : > { %9962 = dma.done.wait (%p9550_p4), %s8854_s8, 16  }
0x213f   : > { %9964 = vsyncadd (%p9550_p4), %s8854_s8, 4294967280  ;;  %s11752_s28 = sld [smem:[#allocation37_spill]] }
0x2140   : > { %s11753_s22 = sld [smem:[#allocation34_spill]] }
0x2141   : > { %s11754_s23 = sld [smem:[#allocation35_spill]] }
0x2142   : > { %s11755_s26 = sld [smem:[#allocation38_spill]] }
0x2145   : > { %p75_p7 = scmp.ge.s32.totalorder %s11752_s28, 4  }
0x2147   :  { %77 = sbr.rel (!%p75_p7) target bundleno = 65 (0x41), region = 249 }
0x214c   :  { %8859 = vsyncpa [#allocation3], 1 }
0x214d   :  { %8861 = vsyncpa [#allocation3 + $0x1], 1 }
0x214e   :  { %8862 = vsyncpa [#allocation6], 1 }
0x214f   :  { %8863 = vsyncpa [#allocation4], 1 }
0x2150   :  { %8865 = vsyncpa [#allocation4 + $0x1], 1 }

</bundles_post_ra>
